<compile_context>
chip_gen: v7x
topology: tpu7x:2x2x1
jax: 0.10.0
libtpu: 0.0.40
codegen_flags: <defaults>
</compile_context>

<pallas_src>
import functools

import jax
import jax.numpy as jnp
from jax.experimental import pallas as pl
from jax.experimental.pallas import tpu as pltpu


def _round_up(x, m):
    return ((x + m - 1) // m) * m


# ----------------------------------------------------------------------------
# Pallas kernel: y = act(a @ b + bias)   (used for every conv layer via im2col)
# ----------------------------------------------------------------------------
def _matmul_bias_act_kernel(a_ref, b_ref, bias_ref, o_ref, *, activation):
    acc = jnp.dot(a_ref[...], b_ref[...], preferred_element_type=jnp.float32)
    acc = acc + bias_ref[...]                 # (1, N) broadcasts over rows, f32
    if activation == "relu":
        acc = jnp.maximum(acc, 0.0)
    elif activation == "tanh":
        acc = jnp.tanh(acc)
    o_ref[...] = acc.astype(o_ref.dtype)


def matmul_bias_act(a, b, bias, activation="none", out_dtype=jnp.float32,
                    tm_big=512):
    """y = act(a @ b + bias).  a: [M, K], b: [K, N], bias: [N] or [1, N].

    K and N are passed as full-array blocks (no zero-padded operand copies);
    only M is padded to the tile multiple.
    """
    M, K = a.shape
    Kb, N = b.shape
    assert K == Kb
    bias = jnp.asarray(bias, jnp.float32).reshape(1, N)

    if M <= 1024:
        tm = _round_up(M, 8)        # single block
    else:
        tm = tm_big                 # 512-row tiles: near-roofline, even-ish grid
    Mp = _round_up(M, tm)
    if Mp != M:
        a = jnp.pad(a, ((0, Mp - M), (0, 0)))

    out = pl.pallas_call(
        functools.partial(_matmul_bias_act_kernel, activation=activation),
        out_shape=jax.ShapeDtypeStruct((Mp, N), out_dtype),
        grid=(Mp // tm,),
        in_specs=[
            pl.BlockSpec((tm, K), lambda i: (i, 0)),
            pl.BlockSpec((K, N), lambda i: (0, 0)),
            pl.BlockSpec((1, N), lambda i: (0, 0)),
        ],
        out_specs=pl.BlockSpec((tm, N), lambda i: (i, 0)),
        compiler_params=pltpu.CompilerParams(
            dimension_semantics=("parallel",)),
    )(a, b, bias)
    if Mp != M:
        out = out[:M]
    return out


# ----------------------------------------------------------------------------
# Fused FC head: fc1 -> relu -> fc2 -> tanh -> |h1-h2| -> score -> BCE (mean)
# ----------------------------------------------------------------------------
def _fc_head_pair_loss_kernel(h1_ref, h2_ref, w1_ref, b1_ref, w2_ref, b2_ref,
                              wd_ref, y_ref, mask_ref, o_ref):
    def feat(h):
        z = jnp.dot(h, w1_ref[...], preferred_element_type=jnp.float32) + b1_ref[...]
        z = jnp.maximum(z, 0.0).astype(w2_ref.dtype)      # relu, bf16 for MXU
        z = jnp.dot(z, w2_ref[...], preferred_element_type=jnp.float32) + b2_ref[...]
        return jnp.tanh(z)                                # (Bp, 128) f32

    f1 = feat(h1_ref[...])
    f2 = feat(h2_ref[...])
    d = jnp.abs(f1 - f2)                                  # (Bp, 128)
    score = jnp.sum(d * wd_ref[...], axis=-1, keepdims=True)   # (Bp, 1)
    y = y_ref[...]
    m = mask_ref[...]
    # numerically-stable BCE with logits: max(x,0) - x*y + log(1 + exp(-|x|))
    per = (jnp.maximum(score, 0.0) - score * y
           + jnp.log(1.0 + jnp.exp(-jnp.abs(score))))
    num = jnp.sum(per * m, keepdims=True)                 # (1, 1)
    den = jnp.sum(m, keepdims=True)                       # (1, 1)
    o_ref[...] = num / den


def fc_head_pair_loss(h1, h2, w1, b1, w2, b2, wd, is_same):
    """h1/h2: [B, 3200] (NHWC flatten order, bf16)."""
    B, _ = h1.shape
    Bp = _round_up(B, 8)
    h1p = jnp.pad(h1, ((0, Bp - B), (0, 0)))
    h2p = jnp.pad(h2, ((0, Bp - B), (0, 0)))
    y = jnp.zeros((Bp, 1), jnp.float32).at[:B, 0].set(is_same.astype(jnp.float32))
    mask = jnp.zeros((Bp, 1), jnp.float32).at[:B, 0].set(1.0)
    out = pl.pallas_call(
        _fc_head_pair_loss_kernel,
        out_shape=jax.ShapeDtypeStruct((1, 1), jnp.float32),
    )(h1p, h2p, w1, b1, w2, b2, wd, y, mask)
    return out[0, 0]


# ----------------------------------------------------------------------------
# Conv layer = NHWC im2col (JAX glue) + Pallas matmul kernel (no transposes)
# ----------------------------------------------------------------------------
def conv2d_relu_nhwc(x, w_mat, b, stride=2, out_dtype=jnp.bfloat16):
    """x: [N,H,W,C]; w_mat: [KH*KW*C, OC] with rows ordered (kh, kw, c);
    valid 3x3 conv, stride 2, ReLU.  Returns [N, OH, OW, OC] in out_dtype."""
    N, H, W, C = x.shape
    KH = KW = 3
    OH = (H - KH) // stride + 1
    OW = (W - KW) // stride + 1
    # TODO(synk): im2col stays as XLA strided-slice/concat glue; a direct-conv
    # Pallas kernel reading overlapping rows via pl.ds would keep patches in VMEM.
    cols = []
    for di in range(KH):
        for dj in range(KW):
            cols.append(
                x[:,
                  di:di + stride * (OH - 1) + 1:stride,
                  dj:dj + stride * (OW - 1) + 1:stride,
                  :])                                       # [N,OH,OW,C]
    patches = jnp.concatenate(cols, axis=-1)                # [N,OH,OW,KH*KW*C]
    patches = patches.reshape(N * OH * OW, KH * KW * C)
    y = matmul_bias_act(patches, w_mat, b, activation="relu", out_dtype=out_dtype)
    return y.reshape(N, OH, OW, -1)


# ----------------------------------------------------------------------------
# SiameseNet forward (pair mode)
# ----------------------------------------------------------------------------
def extract_features_nhwc(x, p):
    """x: [N, H, W, C] -> [N, 3200] (bf16), flattened in (h, w, c) order."""
    x = conv2d_relu_nhwc(x, p["conv1_wm"], p["conv1_b"])    # f32 matmul, bf16 out
    x = conv2d_relu_nhwc(x, p["conv2_wm"], p["conv2_b"])
    x = conv2d_relu_nhwc(x, p["conv3_wm"], p["conv3_b"])
    x = conv2d_relu_nhwc(x, p["conv4_wm"], p["conv4_b"])
    n = x.shape[0]
    return x.reshape(n, -1)                                 # 5*5*128 = 3200


def siamese_forward_pair(img1, img2, is_same, p):
    B = img1.shape[0]
    # Run both Siamese branches as one batch so every weight is loaded once.
    x = jnp.concatenate([img1, img2], axis=0)               # [2B,1,H,W]
    x = jnp.transpose(x, (0, 2, 3, 1))                      # NHWC once (C=1)
    h = extract_features_nhwc(x, p)                         # [2B, 3200]
    h1, h2 = h[:B], h[B:]
    return fc_head_pair_loss(h1, h2, p["fc1_wm"], p["fc1_b"],
                             p["fc2_wm"], p["fc2_b"], p["dist_w"], is_same)


# ----------------------------------------------------------------------------
# Params: synthetic PyTorch-layout init + one-time conversion to kernel layout
# ----------------------------------------------------------------------------
def init_params_torch_layout(key):
    keys = jax.random.split(key, 13)

    def u(k, shape, fan_in):
        bound = 1.0 / jnp.sqrt(float(fan_in))
        return jax.random.uniform(k, shape, jnp.float32, -bound, bound)

    p = {}
    p["conv1_w"] = u(keys[0], (8, 1, 3, 3), 1 * 9)
    p["conv1_b"] = u(keys[1], (8,), 1 * 9)
    p["conv2_w"] = u(keys[2], (64, 8, 3, 3), 8 * 9)
    p["conv2_b"] = u(keys[3], (64,), 8 * 9)
    p["conv3_w"] = u(keys[4], (128, 64, 3, 3), 64 * 9)
    p["conv3_b"] = u(keys[5], (128,), 64 * 9)
    p["conv4_w"] = u(keys[6], (128, 128, 3, 3), 128 * 9)
    p["conv4_b"] = u(keys[7], (128,), 128 * 9)
    p["fc1_w"] = u(keys[8], (512, 3200), 3200)
    p["fc1_b"] = u(keys[9], (512,), 3200)
    p["fc2_w"] = u(keys[10], (128, 512), 512)
    p["fc2_b"] = u(keys[11], (128,), 512)
    p["dist_w"] = u(keys[12], (1, 128), 128)   # distance_score (bias=False)
    return p


def prepare_params(raw):
    """One-time conversion: conv weights -> [KH*KW*C, OC] in NHWC im2col order,
    fc weights pre-transposed (fc1 columns permuted to the NHWC flatten order),
    heavy weights stored in bf16 for the MXU, biases/dist in f32."""
    def conv_mat(w, dtype):
        OC, C, KH, KW = w.shape
        return w.transpose(2, 3, 1, 0).reshape(KH * KW * C, OC).astype(dtype)

    p = {}
    p["conv1_wm"] = conv_mat(raw["conv1_w"], jnp.float32)   # K=9/N=8: keep f32
    p["conv2_wm"] = conv_mat(raw["conv2_w"], jnp.bfloat16)
    p["conv3_wm"] = conv_mat(raw["conv3_w"], jnp.bfloat16)
    p["conv4_wm"] = conv_mat(raw["conv4_w"], jnp.bfloat16)
    for i in range(1, 5):
        p[f"conv{i}_b"] = raw[f"conv{i}_b"].reshape(1, -1).astype(jnp.float32)
    # PyTorch fc1 columns are ordered (c=128, h=5, w=5); we feed NHWC (h, w, c).
    fc1 = raw["fc1_w"].reshape(512, 128, 5, 5).transpose(2, 3, 1, 0).reshape(3200, 512)
    p["fc1_wm"] = fc1.astype(jnp.bfloat16)
    p["fc1_b"] = raw["fc1_b"].reshape(1, -1).astype(jnp.float32)
    p["fc2_wm"] = raw["fc2_w"].T.astype(jnp.bfloat16)        # [512, 128]
    p["fc2_b"] = raw["fc2_b"].reshape(1, -1).astype(jnp.float32)
    p["dist_w"] = raw["dist_w"].reshape(1, 128).astype(jnp.float32)
    return p


if __name__ == "__main__":
    B = 2
    HW = 105  # IMG_HW_DIM: required so conv4 output flattens to 3200 for fc1

    key = jax.random.PRNGKey(0)
    k1, k2, k3, kp = jax.random.split(key, 4)
    img1 = jax.random.normal(k1, (B, 1, HW, HW), jnp.float32)
    img2 = jax.random.normal(k2, (B, 1, HW, HW), jnp.float32)
    is_same = jax.random.bernoulli(k3, 0.5, (B,)).astype(jnp.int32)

    params = prepare_params(init_params_torch_layout(kp))

    loss_fn = jax.jit(siamese_forward_pair)
    loss = loss_fn(img1, img2, is_same, params)
    jax.block_until_ready(loss)
    print("KERNEL_OK")
</pallas_src>

<mosaic_0001>
module attributes {stable_mosaic.version = 11 : i64} {
  func.func @_matmul_bias_act_kernel(%arg0: i32, %arg1: memref<512x9xf32, #tpu.memory_space<vmem>>, %arg2: memref<9x8xf32, #tpu.memory_space<vmem>>, %arg3: memref<1x8xf32, #tpu.memory_space<vmem>>, %arg4: memref<512x8xbf16, #tpu.memory_space<vmem>>) attributes {dimension_semantics = [#tpu.dimension_semantics<parallel>], iteration_bounds = array<i64: 22>, scalar_prefetch = 0 : i64, scratch_operands = 0 : i64, tpu.core_type = #tpu.core_type<tc>, window_params = [{transform_indices = @transform_0, window_bounds = array<i64: 512, 9>}, {pipeline_mode = #tpu.pipeline_mode<synchronous>, transform_indices = @transform_1, window_bounds = array<i64: 9, 8>}, {pipeline_mode = #tpu.pipeline_mode<synchronous>, transform_indices = @transform_2, window_bounds = array<i64: 1, 8>}, {transform_indices = @transform_3, window_bounds = array<i64: 512, 8>}]} {
    %c0 = arith.constant 0 : index
    %c0_0 = arith.constant 0 : index
    %0 = vector.load %arg1[%c0, %c0_0] : memref<512x9xf32, #tpu.memory_space<vmem>>, vector<512x9xf32>
    %c0_1 = arith.constant 0 : index
    %c0_2 = arith.constant 0 : index
    %1 = vector.load %arg2[%c0_1, %c0_2] : memref<9x8xf32, #tpu.memory_space<vmem>>, vector<9x8xf32>
    %cst = arith.constant dense<0.000000e+00> : vector<512x8xf32>
    %2 = tpu.matmul %0, %1, %cst {dimension_numbers = #tpu.dot_dimension_numbers<[1], [0], [0], [1], [0, 0, 1, 1], [], []>} : vector<512x9xf32>, vector<9x8xf32>, vector<512x8xf32> -> vector<512x8xf32>
    %c0_3 = arith.constant 0 : index
    %c0_4 = arith.constant 0 : index
    %3 = vector.load %arg3[%c0_3, %c0_4] : memref<1x8xf32, #tpu.memory_space<vmem>>, vector<1x8xf32>
    %4 = vector.broadcast %3 : vector<1x8xf32> to vector<512x8xf32>
    %5 = arith.addf %2, %4 : vector<512x8xf32>
    %cst_5 = arith.constant 0.000000e+00 : f32
    %6 = vector.broadcast %cst_5 : f32 to vector<512x8xf32>
    %7 = arith.maximumf %5, %6 : vector<512x8xf32>
    %8 = arith.truncf %7 : vector<512x8xf32> to vector<512x8xbf16>
    %c0_6 = arith.constant 0 : index
    %c0_7 = arith.constant 0 : index
    %9 = vector.load %arg4[%c0_6, %c0_7] : memref<512x8xbf16, #tpu.memory_space<vmem>>, vector<512x8xbf16>
    tpu.vector_store %arg4[%c0_6, %c0_7], %8 {strides = array<i32>} : memref<512x8xbf16, #tpu.memory_space<vmem>>, vector<512x8xbf16>,
    return
  }
  func.func @transform_0(%arg0: i32) -> (i32, i32) {
    %c0_i32 = arith.constant 0 : i32
    %c0_i32_0 = arith.constant 0 : i32
    return %arg0, %c0_i32 : i32, i32
  }
  func.func @transform_1(%arg0: i32) -> (i32, i32) {
    %c0_i32 = arith.constant 0 : i32
    %c0_i32_0 = arith.constant 0 : i32
    %c0_i32_1 = arith.constant 0 : i32
    return %c0_i32, %c0_i32_0 : i32, i32
  }
  func.func @transform_2(%arg0: i32) -> (i32, i32) {
    %c0_i32 = arith.constant 0 : i32
    %c0_i32_0 = arith.constant 0 : i32
    %c0_i32_1 = arith.constant 0 : i32
    return %c0_i32, %c0_i32_0 : i32, i32
  }
  func.func @transform_3(%arg0: i32) -> (i32, i32) {
    %c0_i32 = arith.constant 0 : i32
    %c0_i32_0 = arith.constant 0 : i32
    return %arg0, %c0_i32 : i32, i32
  }
}

module attributes {stable_mosaic.version = 11 : i64} {
  func.func @_matmul_bias_act_kernel(%arg0: i32, %arg1: memref<512x72xbf16, #tpu.memory_space<vmem>>, %arg2: memref<72x64xbf16, #tpu.memory_space<vmem>>, %arg3: memref<1x64xf32, #tpu.memory_space<vmem>>, %arg4: memref<512x64xbf16, #tpu.memory_space<vmem>>) attributes {dimension_semantics = [#tpu.dimension_semantics<parallel>], iteration_bounds = array<i64: 5>, scalar_prefetch = 0 : i64, scratch_operands = 0 : i64, tpu.core_type = #tpu.core_type<tc>, window_params = [{transform_indices = @transform_0, window_bounds = array<i64: 512, 72>}, {pipeline_mode = #tpu.pipeline_mode<synchronous>, transform_indices = @transform_1, window_bounds = array<i64: 72, 64>}, {pipeline_mode = #tpu.pipeline_mode<synchronous>, transform_indices = @transform_2, window_bounds = array<i64: 1, 64>}, {transform_indices = @transform_3, window_bounds = array<i64: 512, 64>}]} {
    %c0 = arith.constant 0 : index
    %c0_0 = arith.constant 0 : index
    %0 = vector.load %arg1[%c0, %c0_0] : memref<512x72xbf16, #tpu.memory_space<vmem>>, vector<512x72xbf16>
    %c0_1 = arith.constant 0 : index
    %c0_2 = arith.constant 0 : index
    %1 = vector.load %arg2[%c0_1, %c0_2] : memref<72x64xbf16, #tpu.memory_space<vmem>>, vector<72x64xbf16>
    %cst = arith.constant dense<0.000000e+00> : vector<512x64xf32>
    %2 = tpu.matmul %0, %1, %cst {dimension_numbers = #tpu.dot_dimension_numbers<[1], [0], [0], [1], [0, 0, 1, 1], [], []>} : vector<512x72xbf16>, vector<72x64xbf16>, vector<512x64xf32> -> vector<512x64xf32>
    %c0_3 = arith.constant 0 : index
    %c0_4 = arith.constant 0 : index
    %3 = vector.load %arg3[%c0_3, %c0_4] : memref<1x64xf32, #tpu.memory_space<vmem>>, vector<1x64xf32>
    %4 = vector.broadcast %3 : vector<1x64xf32> to vector<512x64xf32>
    %5 = arith.addf %2, %4 : vector<512x64xf32>
    %cst_5 = arith.constant 0.000000e+00 : f32
    %6 = vector.broadcast %cst_5 : f32 to vector<512x64xf32>
    %7 = arith.maximumf %5, %6 : vector<512x64xf32>
    %8 = arith.truncf %7 : vector<512x64xf32> to vector<512x64xbf16>
    %c0_6 = arith.constant 0 : index
    %c0_7 = arith.constant 0 : index
    %9 = vector.load %arg4[%c0_6, %c0_7] : memref<512x64xbf16, #tpu.memory_space<vmem>>, vector<512x64xbf16>
    tpu.vector_store %arg4[%c0_6, %c0_7], %8 {strides = array<i32>} : memref<512x64xbf16, #tpu.memory_space<vmem>>, vector<512x64xbf16>,
    return
  }
  func.func @transform_0(%arg0: i32) -> (i32, i32) {
    %c0_i32 = arith.constant 0 : i32
    %c0_i32_0 = arith.constant 0 : i32
    return %arg0, %c0_i32 : i32, i32
  }
  func.func @transform_1(%arg0: i32) -> (i32, i32) {
    %c0_i32 = arith.constant 0 : i32
    %c0_i32_0 = arith.constant 0 : i32
    %c0_i32_1 = arith.constant 0 : i32
    return %c0_i32, %c0_i32_0 : i32, i32
  }
  func.func @transform_2(%arg0: i32) -> (i32, i32) {
    %c0_i32 = arith.constant 0 : i32
    %c0_i32_0 = arith.constant 0 : i32
    %c0_i32_1 = arith.constant 0 : i32
    return %c0_i32, %c0_i32_0 : i32, i32
  }
  func.func @transform_3(%arg0: i32) -> (i32, i32) {
    %c0_i32 = arith.constant 0 : i32
    %c0_i32_0 = arith.constant 0 : i32
    return %arg0, %c0_i32 : i32, i32
  }
}

module attributes {stable_mosaic.version = 11 : i64} {
  func.func @_matmul_bias_act_kernel(%arg0: i32, %arg1: memref<576x576xbf16, #tpu.memory_space<vmem>>, %arg2: memref<576x128xbf16, #tpu.memory_space<vmem>>, %arg3: memref<1x128xf32, #tpu.memory_space<vmem>>, %arg4: memref<576x128xbf16, #tpu.memory_space<vmem>>) attributes {dimension_semantics = [#tpu.dimension_semantics<parallel>], iteration_bounds = array<i64: 1>, scalar_prefetch = 0 : i64, scratch_operands = 0 : i64, tpu.core_type = #tpu.core_type<tc>, window_params = [{transform_indices = @transform_0, window_bounds = array<i64: 576, 576>}, {pipeline_mode = #tpu.pipeline_mode<synchronous>, transform_indices = @transform_1, window_bounds = array<i64: 576, 128>}, {pipeline_mode = #tpu.pipeline_mode<synchronous>, transform_indices = @transform_2, window_bounds = array<i64: 1, 128>}, {transform_indices = @transform_3, window_bounds = array<i64: 576, 128>}]} {
    %c0 = arith.constant 0 : index
    %c0_0 = arith.constant 0 : index
    %0 = vector.load %arg1[%c0, %c0_0] : memref<576x576xbf16, #tpu.memory_space<vmem>>, vector<576x576xbf16>
    %c0_1 = arith.constant 0 : index
    %c0_2 = arith.constant 0 : index
    %1 = vector.load %arg2[%c0_1, %c0_2] : memref<576x128xbf16, #tpu.memory_space<vmem>>, vector<576x128xbf16>
    %cst = arith.constant dense<0.000000e+00> : vector<576x128xf32>
    %2 = tpu.matmul %0, %1, %cst {dimension_numbers = #tpu.dot_dimension_numbers<[1], [0], [0], [1], [0, 0, 1, 1], [], []>} : vector<576x576xbf16>, vector<576x128xbf16>, vector<576x128xf32> -> vector<576x128xf32>
    %c0_3 = arith.constant 0 : index
    %c0_4 = arith.constant 0 : index
    %3 = vector.load %arg3[%c0_3, %c0_4] : memref<1x128xf32, #tpu.memory_space<vmem>>, vector<1x128xf32>
    %4 = vector.broadcast %3 : vector<1x128xf32> to vector<576x128xf32>
    %5 = arith.addf %2, %4 : vector<576x128xf32>
    %cst_5 = arith.constant 0.000000e+00 : f32
    %6 = vector.broadcast %cst_5 : f32 to vector<576x128xf32>
    %7 = arith.maximumf %5, %6 : vector<576x128xf32>
    %8 = arith.truncf %7 : vector<576x128xf32> to vector<576x128xbf16>
    %c0_6 = arith.constant 0 : index
    %c0_7 = arith.constant 0 : index
    %9 = vector.load %arg4[%c0_6, %c0_7] : memref<576x128xbf16, #tpu.memory_space<vmem>>, vector<576x128xbf16>
    tpu.vector_store %arg4[%c0_6, %c0_7], %8 {strides = array<i32>} : memref<576x128xbf16, #tpu.memory_space<vmem>>, vector<576x128xbf16>,
    return
  }
  func.func @transform_0(%arg0: i32) -> (i32, i32) {
    %c0_i32 = arith.constant 0 : i32
    %c0_i32_0 = arith.constant 0 : i32
    return %arg0, %c0_i32 : i32, i32
  }
  func.func @transform_1(%arg0: i32) -> (i32, i32) {
    %c0_i32 = arith.constant 0 : i32
    %c0_i32_0 = arith.constant 0 : i32
    %c0_i32_1 = arith.constant 0 : i32
    return %c0_i32, %c0_i32_0 : i32, i32
  }
  func.func @transform_2(%arg0: i32) -> (i32, i32) {
    %c0_i32 = arith.constant 0 : i32
    %c0_i32_0 = arith.constant 0 : i32
    %c0_i32_1 = arith.constant 0 : i32
    return %c0_i32, %c0_i32_0 : i32, i32
  }
  func.func @transform_3(%arg0: i32) -> (i32, i32) {
    %c0_i32 = arith.constant 0 : i32
    %c0_i32_0 = arith.constant 0 : i32
    return %arg0, %c0_i32 : i32, i32
  }
}

module attributes {stable_mosaic.version = 11 : i64} {
  func.func @_matmul_bias_act_kernel(%arg0: i32, %arg1: memref<104x1152xbf16, #tpu.memory_space<vmem>>, %arg2: memref<1152x128xbf16, #tpu.memory_space<vmem>>, %arg3: memref<1x128xf32, #tpu.memory_space<vmem>>, %arg4: memref<104x128xbf16, #tpu.memory_space<vmem>>) attributes {dimension_semantics = [#tpu.dimension_semantics<parallel>], iteration_bounds = array<i64: 1>, scalar_prefetch = 0 : i64, scratch_operands = 0 : i64, tpu.core_type = #tpu.core_type<tc>, window_params = [{transform_indices = @transform_0, window_bounds = array<i64: 104, 1152>}, {pipeline_mode = #tpu.pipeline_mode<synchronous>, transform_indices = @transform_1, window_bounds = array<i64: 1152, 128>}, {pipeline_mode = #tpu.pipeline_mode<synchronous>, transform_indices = @transform_2, window_bounds = array<i64: 1, 128>}, {transform_indices = @transform_3, window_bounds = array<i64: 104, 128>}]} {
    %c0 = arith.constant 0 : index
    %c0_0 = arith.constant 0 : index
    %0 = vector.load %arg1[%c0, %c0_0] : memref<104x1152xbf16, #tpu.memory_space<vmem>>, vector<104x1152xbf16>
    %c0_1 = arith.constant 0 : index
    %c0_2 = arith.constant 0 : index
    %1 = vector.load %arg2[%c0_1, %c0_2] : memref<1152x128xbf16, #tpu.memory_space<vmem>>, vector<1152x128xbf16>
    %cst = arith.constant dense<0.000000e+00> : vector<104x128xf32>
    %2 = tpu.matmul %0, %1, %cst {dimension_numbers = #tpu.dot_dimension_numbers<[1], [0], [0], [1], [0, 0, 1, 1], [], []>} : vector<104x1152xbf16>, vector<1152x128xbf16>, vector<104x128xf32> -> vector<104x128xf32>
    %c0_3 = arith.constant 0 : index
    %c0_4 = arith.constant 0 : index
    %3 = vector.load %arg3[%c0_3, %c0_4] : memref<1x128xf32, #tpu.memory_space<vmem>>, vector<1x128xf32>
    %4 = vector.broadcast %3 : vector<1x128xf32> to vector<104x128xf32>
    %5 = arith.addf %2, %4 : vector<104x128xf32>
    %cst_5 = arith.constant 0.000000e+00 : f32
    %6 = vector.broadcast %cst_5 : f32 to vector<104x128xf32>
    %7 = arith.maximumf %5, %6 : vector<104x128xf32>
    %8 = arith.truncf %7 : vector<104x128xf32> to vector<104x128xbf16>
    %c0_6 = arith.constant 0 : index
    %c0_7 = arith.constant 0 : index
    %9 = vector.load %arg4[%c0_6, %c0_7] : memref<104x128xbf16, #tpu.memory_space<vmem>>, vector<104x128xbf16>
    tpu.vector_store %arg4[%c0_6, %c0_7], %8 {strides = array<i32>} : memref<104x128xbf16, #tpu.memory_space<vmem>>, vector<104x128xbf16>,
    return
  }
  func.func @transform_0(%arg0: i32) -> (i32, i32) {
    %c0_i32 = arith.constant 0 : i32
    %c0_i32_0 = arith.constant 0 : i32
    return %arg0, %c0_i32 : i32, i32
  }
  func.func @transform_1(%arg0: i32) -> (i32, i32) {
    %c0_i32 = arith.constant 0 : i32
    %c0_i32_0 = arith.constant 0 : i32
    %c0_i32_1 = arith.constant 0 : i32
    return %c0_i32, %c0_i32_0 : i32, i32
  }
  func.func @transform_2(%arg0: i32) -> (i32, i32) {
    %c0_i32 = arith.constant 0 : i32
    %c0_i32_0 = arith.constant 0 : i32
    %c0_i32_1 = arith.constant 0 : i32
    return %c0_i32, %c0_i32_0 : i32, i32
  }
  func.func @transform_3(%arg0: i32) -> (i32, i32) {
    %c0_i32 = arith.constant 0 : i32
    %c0_i32_0 = arith.constant 0 : i32
    return %arg0, %c0_i32 : i32, i32
  }
}

module attributes {stable_mosaic.version = 11 : i64} {
  func.func @_fc_head_pair_loss_kernel(%arg0: memref<8x3200xbf16, #tpu.memory_space<vmem>>, %arg1: memref<8x3200xbf16, #tpu.memory_space<vmem>>, %arg2: memref<3200x512xbf16, #tpu.memory_space<vmem>>, %arg3: memref<1x512xf32, #tpu.memory_space<vmem>>, %arg4: memref<512x128xbf16, #tpu.memory_space<vmem>>, %arg5: memref<1x128xf32, #tpu.memory_space<vmem>>, %arg6: memref<1x128xf32, #tpu.memory_space<vmem>>, %arg7: memref<8x1xf32, #tpu.memory_space<vmem>>, %arg8: memref<8x1xf32, #tpu.memory_space<vmem>>, %arg9: memref<1x1xf32, #tpu.memory_space<vmem>>) attributes {dimension_semantics = [], scalar_prefetch = 0 : i64, scratch_operands = 0 : i64, tpu.core_type = #tpu.core_type<tc>} {
    %c0 = arith.constant 0 : index
    %c0_0 = arith.constant 0 : index
    %0 = vector.load %arg0[%c0, %c0_0] : memref<8x3200xbf16, #tpu.memory_space<vmem>>, vector<8x3200xbf16>
    %c0_1 = arith.constant 0 : index
    %c0_2 = arith.constant 0 : index
    %1 = vector.load %arg2[%c0_1, %c0_2] : memref<3200x512xbf16, #tpu.memory_space<vmem>>, vector<3200x512xbf16>
    %cst = arith.constant dense<0.000000e+00> : vector<8x512xf32>
    %2 = tpu.matmul %0, %1, %cst {dimension_numbers = #tpu.dot_dimension_numbers<[1], [0], [0], [1], [0, 0, 1, 1], [], []>} : vector<8x3200xbf16>, vector<3200x512xbf16>, vector<8x512xf32> -> vector<8x512xf32>
    %c0_3 = arith.constant 0 : index
    %c0_4 = arith.constant 0 : index
    %3 = vector.load %arg3[%c0_3, %c0_4] : memref<1x512xf32, #tpu.memory_space<vmem>>, vector<1x512xf32>
    %4 = vector.broadcast %3 : vector<1x512xf32> to vector<8x512xf32>
    %5 = arith.addf %2, %4 : vector<8x512xf32>
    %cst_5 = arith.constant 0.000000e+00 : f32
    %6 = vector.broadcast %cst_5 : f32 to vector<8x512xf32>
    %7 = arith.maximumf %5, %6 : vector<8x512xf32>
    %8 = arith.truncf %7 : vector<8x512xf32> to vector<8x512xbf16>
    %c0_6 = arith.constant 0 : index
    %c0_7 = arith.constant 0 : index
    %9 = vector.load %arg4[%c0_6, %c0_7] : memref<512x128xbf16, #tpu.memory_space<vmem>>, vector<512x128xbf16>
    %cst_8 = arith.constant dense<0.000000e+00> : vector<8x128xf32>
    %10 = tpu.matmul %8, %9, %cst_8 {dimension_numbers = #tpu.dot_dimension_numbers<[1], [0], [0], [1], [0, 0, 1, 1], [], []>} : vector<8x512xbf16>, vector<512x128xbf16>, vector<8x128xf32> -> vector<8x128xf32>
    %c0_9 = arith.constant 0 : index
    %c0_10 = arith.constant 0 : index
    %11 = vector.load %arg5[%c0_9, %c0_10] : memref<1x128xf32, #tpu.memory_space<vmem>>, vector<1x128xf32>
    %12 = vector.broadcast %11 : vector<1x128xf32> to vector<8x128xf32>
    %13 = arith.addf %10, %12 : vector<8x128xf32>
    %14 = math.tanh %13 : vector<8x128xf32>
    %c0_11 = arith.constant 0 : index
    %c0_12 = arith.constant 0 : index
    %15 = vector.load %arg1[%c0_11, %c0_12] : memref<8x3200xbf16, #tpu.memory_space<vmem>>, vector<8x3200xbf16>
    %c0_13 = arith.constant 0 : index
    %c0_14 = arith.constant 0 : index
    %16 = vector.load %arg2[%c0_13, %c0_14] : memref<3200x512xbf16, #tpu.memory_space<vmem>>, vector<3200x512xbf16>
    %cst_15 = arith.constant dense<0.000000e+00> : vector<8x512xf32>
    %17 = tpu.matmul %15, %16, %cst_15 {dimension_numbers = #tpu.dot_dimension_numbers<[1], [0], [0], [1], [0, 0, 1, 1], [], []>} : vector<8x3200xbf16>, vector<3200x512xbf16>, vector<8x512xf32> -> vector<8x512xf32>
    %c0_16 = arith.constant 0 : index
    %c0_17 = arith.constant 0 : index
    %18 = vector.load %arg3[%c0_16, %c0_17] : memref<1x512xf32, #tpu.memory_space<vmem>>, vector<1x512xf32>
    %19 = vector.broadcast %18 : vector<1x512xf32> to vector<8x512xf32>
    %20 = arith.addf %17, %19 : vector<8x512xf32>
    %cst_18 = arith.constant 0.000000e+00 : f32
    %21 = vector.broadcast %cst_18 : f32 to vector<8x512xf32>
    %22 = arith.maximumf %20, %21 : vector<8x512xf32>
    %23 = arith.truncf %22 : vector<8x512xf32> to vector<8x512xbf16>
    %c0_19 = arith.constant 0 : index
    %c0_20 = arith.constant 0 : index
    %24 = vector.load %arg4[%c0_19, %c0_20] : memref<512x128xbf16, #tpu.memory_space<vmem>>, vector<512x128xbf16>
    %cst_21 = arith.constant dense<0.000000e+00> : vector<8x128xf32>
    %25 = tpu.matmul %23, %24, %cst_21 {dimension_numbers = #tpu.dot_dimension_numbers<[1], [0], [0], [1], [0, 0, 1, 1], [], []>} : vector<8x512xbf16>, vector<512x128xbf16>, vector<8x128xf32> -> vector<8x128xf32>
    %c0_22 = arith.constant 0 : index
    %c0_23 = arith.constant 0 : index
    %26 = vector.load %arg5[%c0_22, %c0_23] : memref<1x128xf32, #tpu.memory_space<vmem>>, vector<1x128xf32>
    %27 = vector.broadcast %26 : vector<1x128xf32> to vector<8x128xf32>
    %28 = arith.addf %25, %27 : vector<8x128xf32>
    %29 = math.tanh %28 : vector<8x128xf32>
    %30 = arith.subf %14, %29 : vector<8x128xf32>
    %31 = math.absf %30 : vector<8x128xf32>
    %c0_24 = arith.constant 0 : index
    %c0_25 = arith.constant 0 : index
    %32 = vector.load %arg6[%c0_24, %c0_25] : memref<1x128xf32, #tpu.memory_space<vmem>>, vector<1x128xf32>
    %33 = vector.broadcast %32 : vector<1x128xf32> to vector<8x128xf32>
    %34 = arith.mulf %31, %33 : vector<8x128xf32>
    %cst_26 = arith.constant dense<0.000000e+00> : vector<8xf32>
    %35 = vector.multi_reduction <add>, %34, %cst_26 [1] : vector<8x128xf32> to vector<8xf32>
    %36 = vector.shape_cast %35 : vector<8xf32> to vector<8x1xf32>
    %c0_27 = arith.constant 0 : index
    %c0_28 = arith.constant 0 : index
    %37 = vector.load %arg7[%c0_27, %c0_28] : memref<8x1xf32, #tpu.memory_space<vmem>>, vector<8x1xf32>
    %c0_29 = arith.constant 0 : index
    %c0_30 = arith.constant 0 : index
    %38 = vector.load %arg8[%c0_29, %c0_30] : memref<8x1xf32, #tpu.memory_space<vmem>>, vector<8x1xf32>
    %cst_31 = arith.constant 0.000000e+00 : f32
    %39 = vector.broadcast %cst_31 : f32 to vector<8x1xf32>
    %40 = arith.maximumf %36, %39 : vector<8x1xf32>
    %41 = arith.mulf %36, %37 : vector<8x1xf32>
    %42 = arith.subf %40, %41 : vector<8x1xf32>
    %43 = math.absf %36 : vector<8x1xf32>
    %cst_32 = arith.constant 0.000000e+00 : f32
    %44 = vector.broadcast %cst_32 : f32 to vector<8x1xf32>
    %45 = arith.subf %44, %43 : vector<8x1xf32>
    %46 = math.exp %45 : vector<8x1xf32>
    %cst_33 = arith.constant 1.000000e+00 : f32
    %47 = vector.broadcast %cst_33 : f32 to vector<8x1xf32>
    %48 = arith.addf %47, %46 : vector<8x1xf32>
    %49 = math.log %48 : vector<8x1xf32>
    %50 = arith.addf %42, %49 : vector<8x1xf32>
    %51 = arith.mulf %50, %38 : vector<8x1xf32>
    %52 = vector.shape_cast %51 : vector<8x1xf32> to vector<1x8x1xf32>
    %cst_34 = arith.constant dense<0.000000e+00> : vector<1xf32>
    %53 = vector.multi_reduction <add>, %52, %cst_34 [1, 2] : vector<1x8x1xf32> to vector<1xf32>
    %54 = vector.shape_cast %53 : vector<1xf32> to vector<1x1x1xf32>
    %55 = vector.extract %54[0, 0, 0] : f32 from vector<1x1x1xf32>
    %56 = vector.broadcast %55 : f32 to vector<1x1xf32>
    %57 = vector.shape_cast %38 : vector<8x1xf32> to vector<1x8x1xf32>
    %cst_35 = arith.constant dense<0.000000e+00> : vector<1xf32>
    %58 = vector.multi_reduction <add>, %57, %cst_35 [1, 2] : vector<1x8x1xf32> to vector<1xf32>
    %59 = vector.shape_cast %58 : vector<1xf32> to vector<1x1x1xf32>
    %60 = vector.extract %59[0, 0, 0] : f32 from vector<1x1x1xf32>
    %61 = vector.broadcast %60 : f32 to vector<1x1xf32>
    %62 = arith.divf %56, %61 : vector<1x1xf32>
    %c0_36 = arith.constant 0 : index
    %c0_37 = arith.constant 0 : index
    %63 = vector.load %arg9[%c0_36, %c0_37] : memref<1x1xf32, #tpu.memory_space<vmem>>, vector<1x1xf32>
    tpu.vector_store %arg9[%c0_36, %c0_37], %62 {strides = array<i32>} : memref<1x1xf32, #tpu.memory_space<vmem>>, vector<1x1xf32>,
    return
  }
}

</mosaic_0001>

<bundles_post_ra>
// kernel: siamese_forward_pair.5
= control target key start
LH: loop header
LB: loop body
LE: loop exit
PB: predicated region body
PF: predicated region fallthrough
CT: control target
= control target key end

     0   :  { %s1687_s12 = smov 0   ;;  %s2043_s0 = inlined_call_operand.vmem [shape: f32[11264,9], index: 0, kind: input, shape index: {}]   ;;  %s2044_s1 = inlined_call_operand.vmem [shape: f32[9,8], index: 1, kind: input, shape index: {}]   ;;  %s2045_s2 = inlined_call_operand.vmem [shape: f32[1,8], index: 2, kind: input, shape index: {}]   ;;  %s2046_s3 = inlined_call_operand.vmem [shape: bf16[11264,8], index: 3, kind: output, shape index: {}]  }
   0x1 LB: > { %s1270_s13 = sadd.s32 4294967295, %s1664_s12   ;;  %p1274_p0 = scmp.ge.s32.totalorder %s1664_s12, 1  ;;  %s1664_s12 = sphi %s1687_s12, %s13_s12  }
   0x2   : > { %p138_p1 = scmp.lt.s32.totalorder %s1664_s12, 23 }
   0x4   : > { %p139_p2 = pnand %p1274_p0, %p138_p1 }
   0x5   : > { %v238_v0 = vld [vmem:[%s2044_s1] sm:$0xff] (!%p139_p2)  ;;  %v239_v1 = vld [vmem:[%s2044_s1 + $0x8] sm:$0x1] (!%p139_p2)  ;;  %vm440_vm0 = vcmask (!%p139_p2), 1040384   ;;  %s1275_s18 = sshll.u32 (!%p139_p2), %s1270_s13, 6  ;;  %vm1666_vm1 = vmmov (!%p139_p2), 1  }
   0x6   : > { %142 = sbr.rel (%p139_p2) target bundleno = 299 (0x12b), region = 32  ;;  %v1641_v2 = vpack.c.bf16 (!%p139_p2), %v239_v1, %v238_v0  ;;  %vm1642_vm2 = vmpackc.low (!%p139_p2), %vm440_vm0, %vm1666_vm1  ;;  %p163_p3 = scmp.lt.s32.totalorder (!%p139_p2), %s1275_s18, 1407  ;;  %vm247_vm3 = vcmask (!%p139_p2), 72704   ;;  %vm1149_vm4 = vcmask (!%p139_p2), 60416  }
   0x8   : > { %1643 = vmatprep.subr.msk.bf16.mxu0 (!%p139_p2), %vm1642_vm2, %v1641_v2  ;;  %1647 = vmatprep.subr.msk.bf16.mxu1 (!%p139_p2), %vm1642_vm2, %v1641_v2 }
   0x9   : > { %1646 = vmatpush3.bf16.msk.msra.mxu0 (!%p139_p2), %vm1642_vm2, %v1641_v2  ;;  %1648 = vmatpush3.bf16.msk.msra.mxu1 (!%p139_p2), %vm1642_vm2, %v1641_v2 }
   0xd   : > { %s2048_s18 = smov (!%p163_p3, %s1275_s18), 1407 }
   0xe   : > { %s1276_s19 = sshll.u32 %s2048_s18, 3  ;;  %s1278_s25 = sshll.u32 %s2048_s18, 2 }
   0xf   : > { %s1707_s22 = scalar_lea.vmem %s2043_s0, %s1276_s19  ;;  %s1850_s28 = scalar_lea.vmem %s2046_s3, %s1278_s25 }
  0x10   : > { %v174_v3 = vld [vmem:[%s1707_s22] sm:$0xff]  ;;  %v175_v5 = vld [vmem:[%s1707_s22 + $0x8] sm:$0xff]  ;;  %v176_v7 = vld [vmem:[%s1707_s22 + $0x10] sm:$0xff] }
  0x11   : > { %v206_v4 = vld [vmem:[%s1707_s22 + $0x100] sm:$0xff]  ;;  %1545 = vmatprep.mubr.msk.f32.mxu0 %vm247_vm3, %v174_v3  ;;  %v207_v6 = vld [vmem:[%s1707_s22 + $0x108] sm:$0xff]  ;;  %v208_v8 = vld [vmem:[%s1707_s22 + $0x110] sm:$0xff] }
  0x12   : > { %1593 = vmatprep.mubr.msk.f32.mxu1 %vm247_vm3, %v206_v4  ;;  %1546 = vmatmul.mubr.msk.f32.vlgmr.msra.gmra.mrb[0].mxu0 %vm247_vm3, %v175_v5  ;;  %v177_v9 = vld [vmem:[%s1707_s22 + $0x18] sm:$0xff]  ;;  %v178_v11 = vld [vmem:[%s1707_s22 + $0x20] sm:$0xff]  ;;  %v179_v13 = vld [vmem:[%s1707_s22 + $0x28] sm:$0xff] }
  0x13   : > { %1594 = vmatmul.mubr.msk.f32.vlgmr.msra.gmra.mrb[0].mxu1 %vm247_vm3, %v207_v6  ;;  %1548 = vmatprep.mubr.msk.f32.mxu0 %vm247_vm3, %v176_v7  ;;  %v209_v10 = vld [vmem:[%s1707_s22 + $0x118] sm:$0xff]  ;;  %v210_v12 = vld [vmem:[%s1707_s22 + $0x120] sm:$0xff]  ;;  %v211_v14 = vld [vmem:[%s1707_s22 + $0x128] sm:$0xff] }
  0x14   : > { %1596 = vmatprep.mubr.msk.f32.mxu1 %vm247_vm3, %v208_v8  ;;  %v180_v15 = vld [vmem:[%s1707_s22 + $0x30] sm:$0xff]  ;;  %v181_v17 = vld [vmem:[%s1707_s22 + $0x38] sm:$0xff]  ;;  %v182_v19 = vld [vmem:[%s1707_s22 + $0x40] sm:$0xff] }
  0x15   : > { %v212_v16 = vld [vmem:[%s1707_s22 + $0x130] sm:$0xff]  ;;  %v213_v18 = vld [vmem:[%s1707_s22 + $0x138] sm:$0xff]  ;;  %v214_v20 = vld [vmem:[%s1707_s22 + $0x140] sm:$0xff] }
  0x16   : > { %1549 = vmatmul.mubr.msk.f32.gmra.mrb[2].mxu0 %vm247_vm3, %v177_v9  ;;  %v183_v21 = vld [vmem:[%s1707_s22 + $0x48] sm:$0xff]  ;;  %v184_v23 = vld [vmem:[%s1707_s22 + $0x50] sm:$0xff]  ;;  %v185_v25 = vld [vmem:[%s1707_s22 + $0x58] sm:$0xff] }
  0x17   : > { %1597 = vmatmul.mubr.msk.f32.gmra.mrb[2].mxu1 %vm247_vm3, %v209_v10  ;;  %1551 = vmatprep.mubr.msk.f32.mxu0 %vm247_vm3, %v178_v11  ;;  %v215_v22 = vld [vmem:[%s1707_s22 + $0x148] sm:$0xff]  ;;  %v216_v24 = vld [vmem:[%s1707_s22 + $0x150] sm:$0xff]  ;;  %v217_v26 = vld [vmem:[%s1707_s22 + $0x158] sm:$0xff] }
  0x18   : > { %1599 = vmatprep.mubr.msk.f32.mxu1 %vm247_vm3, %v210_v12  ;;  %v186_v27 = vld [vmem:[%s1707_s22 + $0x60] sm:$0xff]  ;;  %v187_v29 = vld [vmem:[%s1707_s22 + $0x68] sm:$0xff]  ;;  %v188_v31 = vld [vmem:[%s1707_s22 + $0x70] sm:$0xff] }
  0x19   : > { %v218_v28 = vld [vmem:[%s1707_s22 + $0x160] sm:$0xff]  ;;  %v219_v30 = vld [vmem:[%s1707_s22 + $0x168] sm:$0xff]  ;;  %v220_v32 = vld [vmem:[%s1707_s22 + $0x170] sm:$0xff] }
  0x1a   : > { %1552 = vmatmul.mubr.msk.f32.gmra.mrb[4].mxu0 %vm247_vm3, %v179_v13  ;;  %v189_v33 = vld [vmem:[%s1707_s22 + $0x78] sm:$0xff]  ;;  %v190_v35 = vld [vmem:[%s1707_s22 + $0x80] sm:$0xff]  ;;  %v191_v37 = vld [vmem:[%s1707_s22 + $0x88] sm:$0xff] }
  0x1b   : > { %1600 = vmatmul.mubr.msk.f32.gmra.mrb[4].mxu1 %vm247_vm3, %v211_v14  ;;  %1554 = vmatprep.mubr.msk.f32.mxu0 %vm247_vm3, %v180_v15  ;;  %v221_v34 = vld [vmem:[%s1707_s22 + $0x178] sm:$0xff]  ;;  %v222_v36 = vld [vmem:[%s1707_s22 + $0x180] sm:$0xff]  ;;  %v223_v38 = vld [vmem:[%s1707_s22 + $0x188] sm:$0xff] }
  0x1c   : > { %1602 = vmatprep.mubr.msk.f32.mxu1 %vm247_vm3, %v212_v16  ;;  %v192_v39 = vld [vmem:[%s1707_s22 + $0x90] sm:$0xff]  ;;  %v193_v41 = vld [vmem:[%s1707_s22 + $0x98] sm:$0xff]  ;;  %v194_v43 = vld [vmem:[%s1707_s22 + $0xa0] sm:$0xff] }
  0x1d   : > { %v224_v40 = vld [vmem:[%s1707_s22 + $0x190] sm:$0xff]  ;;  %v225_v42 = vld [vmem:[%s1707_s22 + $0x198] sm:$0xff]  ;;  %v226_v44 = vld [vmem:[%s1707_s22 + $0x1a0] sm:$0xff] }
  0x1e   : > { %1555 = vmatmul.mubr.msk.f32.gmra.mrb[6].mxu0 %vm247_vm3, %v181_v17  ;;  %v195_v45 = vld [vmem:[%s1707_s22 + $0xa8] sm:$0xff]  ;;  %v196_v47 = vld [vmem:[%s1707_s22 + $0xb0] sm:$0xff]  ;;  %v197_v49 = vld [vmem:[%s1707_s22 + $0xb8] sm:$0xff] }
  0x1f   : > { %1603 = vmatmul.mubr.msk.f32.gmra.mrb[6].mxu1 %vm247_vm3, %v213_v18  ;;  %1557 = vmatprep.mubr.msk.f32.mxu0 %vm247_vm3, %v182_v19  ;;  %v227_v46 = vld [vmem:[%s1707_s22 + $0x1a8] sm:$0xff]  ;;  %v228_v48 = vld [vmem:[%s1707_s22 + $0x1b0] sm:$0xff]  ;;  %v229_v50 = vld [vmem:[%s1707_s22 + $0x1b8] sm:$0xff] }
  0x20   : > { %1605 = vmatprep.mubr.msk.f32.mxu1 %vm247_vm3, %v214_v20  ;;  %v198_v51 = vld [vmem:[%s1707_s22 + $0xc0] sm:$0xff]  ;;  %v199_v53 = vld [vmem:[%s1707_s22 + $0xc8] sm:$0xff]  ;;  %v200_v55 = vld [vmem:[%s1707_s22 + $0xd0] sm:$0xff] }
  0x21   : > { %v230_v52 = vld [vmem:[%s1707_s22 + $0x1c0] sm:$0xff]  ;;  %v231_v54 = vld [vmem:[%s1707_s22 + $0x1c8] sm:$0xff]  ;;  %v232_v56 = vld [vmem:[%s1707_s22 + $0x1d0] sm:$0xff] }
  0x22   : > { %1558 = vmatmul.mubr.msk.f32.gmra.mrb[8].mxu0 %vm247_vm3, %v183_v21  ;;  %v201_v57 = vld [vmem:[%s1707_s22 + $0xd8] sm:$0xff]  ;;  %v202_v59 = vld [vmem:[%s1707_s22 + $0xe0] sm:$0xff]  ;;  %v203_v61 = vld [vmem:[%s1707_s22 + $0xe8] sm:$0xff] }
  0x23   : > { %1606 = vmatmul.mubr.msk.f32.gmra.mrb[8].mxu1 %vm247_vm3, %v215_v22  ;;  %1560 = vmatprep.mubr.msk.f32.mxu0 %vm247_vm3, %v184_v23  ;;  %v233_v58 = vld [vmem:[%s1707_s22 + $0x1d8] sm:$0xff]  ;;  %v234_v60 = vld [vmem:[%s1707_s22 + $0x1e0] sm:$0xff]  ;;  %v235_v62 = vld [vmem:[%s1707_s22 + $0x1e8] sm:$0xff] }
  0x24   : > { %1608 = vmatprep.mubr.msk.f32.mxu1 %vm247_vm3, %v216_v24  ;;  %v204_v63 = vld [vmem:[%s1707_s22 + $0xf0] sm:$0xff]  ;;  %v205_v1 = vld [vmem:[%s1707_s22 + $0xf8] sm:$0xff]  ;;  %v1840_v3 = vld [vmem:[%s2045_s2] ss:$0 sm:$0xff] }
  0x25   : > { %v236_v0 = vld [vmem:[%s1707_s22 + $0x1f0] sm:$0xff]  ;;  %v237_v2 = vld [vmem:[%s1707_s22 + $0x1f8] sm:$0xff] }
  0x26   : > { %1561 = vmatmul.mubr.msk.f32.gmra.mrb[10].mxu0 %vm247_vm3, %v185_v25 }
  0x27   : > { %1609 = vmatmul.mubr.msk.f32.gmra.mrb[10].mxu1 %vm247_vm3, %v217_v26  ;;  %1563 = vmatprep.mubr.msk.f32.mxu0 %vm247_vm3, %v186_v27 }
  0x28   : > { %1611 = vmatprep.mubr.msk.f32.mxu1 %vm247_vm3, %v218_v28 }
  0x2a   : > { %1564 = vmatmul.mubr.msk.f32.gmra.mrb[12].mxu0 %vm247_vm3, %v187_v29 }
  0x2b   : > { %1612 = vmatmul.mubr.msk.f32.gmra.mrb[12].mxu1 %vm247_vm3, %v219_v30  ;;  %1566 = vmatprep.mubr.msk.f32.mxu0 %vm247_vm3, %v188_v31 }
  0x2c   : > { %1614 = vmatprep.mubr.msk.f32.mxu1 %vm247_vm3, %v220_v32 }
  0x2e   : > { %1567 = vmatmul.mubr.msk.f32.gmra.mrb[14].mxu0 %vm247_vm3, %v189_v33 }
  0x2f   : > { %1615 = vmatmul.mubr.msk.f32.gmra.mrb[14].mxu1 %vm247_vm3, %v221_v34  ;;  %1569 = vmatprep.mubr.msk.f32.mxu0 %vm247_vm3, %v190_v35 }
  0x30   : > { %1617 = vmatprep.mubr.msk.f32.mxu1 %vm247_vm3, %v222_v36 }
  0x32   : > { %1570 = vmatmul.mubr.msk.f32.gmra.mrb[16].mxu0 %vm247_vm3, %v191_v37 }
  0x33   : > { %1618 = vmatmul.mubr.msk.f32.gmra.mrb[16].mxu1 %vm247_vm3, %v223_v38  ;;  %1572 = vmatprep.mubr.msk.f32.mxu0 %vm247_vm3, %v192_v39 }
  0x34   : > { %1620 = vmatprep.mubr.msk.f32.mxu1 %vm247_vm3, %v224_v40 }
  0x36   : > { %1573 = vmatmul.mubr.msk.f32.gmra.mrb[18].mxu0 %vm247_vm3, %v193_v41 }
  0x37   : > { %1621 = vmatmul.mubr.msk.f32.gmra.mrb[18].mxu1 %vm247_vm3, %v225_v42  ;;  %1575 = vmatprep.mubr.msk.f32.mxu0 %vm247_vm3, %v194_v43 }
  0x38   : > { %1623 = vmatprep.mubr.msk.f32.mxu1 %vm247_vm3, %v226_v44 }
  0x3a   : > { %1576 = vmatmul.mubr.msk.f32.gmra.mrb[20].mxu0 %vm247_vm3, %v195_v45 }
  0x3b   : > { %1624 = vmatmul.mubr.msk.f32.gmra.mrb[20].mxu1 %vm247_vm3, %v227_v46  ;;  %1578 = vmatprep.mubr.msk.f32.mxu0 %vm247_vm3, %v196_v47 }
  0x3c   : > { %1626 = vmatprep.mubr.msk.f32.mxu1 %vm247_vm3, %v228_v48 }
  0x3e   : > { %1579 = vmatmul.mubr.msk.f32.gmra.mrb[22].mxu0 %vm247_vm3, %v197_v49 }
  0x3f   : > { %1627 = vmatmul.mubr.msk.f32.gmra.mrb[22].mxu1 %vm247_vm3, %v229_v50  ;;  %1581 = vmatprep.mubr.msk.f32.mxu0 %vm247_vm3, %v198_v51 }
  0x40   : > { %1629 = vmatprep.mubr.msk.f32.mxu1 %vm247_vm3, %v230_v52 }
  0x42   : > { %1582 = vmatmul.mubr.msk.f32.gmra.mrb[24].mxu0 %vm247_vm3, %v199_v53 }
  0x43   : > { %1630 = vmatmul.mubr.msk.f32.gmra.mrb[24].mxu1 %vm247_vm3, %v231_v54  ;;  %1584 = vmatprep.mubr.msk.f32.mxu0 %vm247_vm3, %v200_v55 }
  0x44   : > { %1632 = vmatprep.mubr.msk.f32.mxu1 %vm247_vm3, %v232_v56 }
  0x46   : > { %1585 = vmatmul.mubr.msk.f32.gmra.mrb[26].mxu0 %vm247_vm3, %v201_v57 }
  0x47   : > { %1633 = vmatmul.mubr.msk.f32.gmra.mrb[26].mxu1 %vm247_vm3, %v233_v58  ;;  %1587 = vmatprep.mubr.msk.f32.mxu0 %vm247_vm3, %v202_v59 }
  0x48   : > { %1635 = vmatprep.mubr.msk.f32.mxu1 %vm247_vm3, %v234_v60 }
  0x4a   : > { %1588 = vmatmul.mubr.msk.f32.gmra.mrb[28].mxu0 %vm247_vm3, %v203_v61 }
  0x4b   : > { %1636 = vmatmul.mubr.msk.f32.gmra.mrb[28].mxu1 %vm247_vm3, %v235_v62  ;;  %1590 = vmatprep.mubr.msk.f32.mxu0 %vm247_vm3, %v204_v63 }
  0x4c   : > { %1638 = vmatprep.mubr.msk.f32.mxu1 %vm247_vm3, %v236_v0 }
  0x4e   : > { %1591 = vmatmul.mubr.msk.f32.gmra.mrb[30].mxu0 %vm247_vm3, %v205_v1 }
  0x4f   : > { %1639 = vmatmul.mubr.msk.f32.gmra.mrb[30].mxu1 %vm247_vm3, %v237_v2 }
  0xe5   : > { %v1547_v4 = vpop.f32.mrb[0].mxu0 }
  0xe6   : > { %v1595_v5 = vpop.f32.mrb[0].mxu1  ;;  %v516_v6 = vadd.f32 %v1547_v4, %v1840_v3  ;;  %v510_v8 = vpop.f32.mrb[1].mxu0 }
  0xe7   : > { %v676_v7 = vadd.f32 %v1595_v5, %v1840_v3  ;;  %v670_v9 = vpop.f32.mrb[1].mxu1  ;;  %v511_v10 = vadd.f32 %v1840_v3, %v510_v8 }
  0xe8   : > { %v671_v11 = vadd.f32 %v1840_v3, %v670_v9  ;;  %v830_v12 = vmax.f32 %v516_v6, 0.0 }
  0xe9   : > { %v862_v13 = vmax.f32 %v676_v7, 0.0  ;;  %v829_v14 = vmax.f32 %v511_v10, 0.0  ;;  %v1550_v16 = vpop.f32.mrb[2].mxu0 }
  0xea   : > { %v861_v15 = vmax.f32 %v671_v11, 0.0  ;;  %v1598_v17 = vpop.f32.mrb[2].mxu1  ;;  %v1412_v18 = vpack.c.bf16 %v830_v12, %v830_v12  ;;  %v526_v20 = vadd.f32 %v1550_v16, %v1840_v3  ;;  %v520_v22 = vpop.f32.mrb[3].mxu0 }
  0xeb   : > { %v1444_v19 = vpack.c.bf16 %v862_v13, %v862_v13  ;;  %v686_v21 = vadd.f32 %v1598_v17, %v1840_v3  ;;  %v680_v23 = vpop.f32.mrb[3].mxu1  ;;  %v1411_v24 = vpack.c.bf16 %v829_v14, %v829_v14  ;;  %v521_v26 = vadd.f32 %v1840_v3, %v520_v22 }
  0xec   : > { %v1443_v25 = vpack.c.bf16 %v861_v15, %v861_v15  ;;  %v681_v27 = vadd.f32 %v1840_v3, %v680_v23  ;;  %1151 = vst.msk [vmem:[%s1850_s28 + $0x4] sm:$0xf] %vm1149_vm4, %v1412_v18  ;;  %v832_v28 = vmax.f32 %v526_v20, 0.0 }
  0xed   : > { %1183 = vst.msk [vmem:[%s1850_s28 + $0x84] sm:$0xf] %vm1149_vm4, %v1444_v19  ;;  %v864_v29 = vmax.f32 %v686_v21, 0.0  ;;  %1150 = vst.msk [vmem:[%s1850_s28] sm:$0xf] %vm1149_vm4, %v1411_v24  ;;  %v831_v30 = vmax.f32 %v521_v26, 0.0 }
  0xee   : > { %1182 = vst.msk [vmem:[%s1850_s28 + $0x80] sm:$0xf] %vm1149_vm4, %v1443_v25  ;;  %v863_v31 = vmax.f32 %v681_v27, 0.0  ;;  %v1553_v32 = vpop.f32.mrb[4].mxu0  ;;  %v1601_v33 = vpop.f32.mrb[4].mxu1  ;;  %v1414_v34 = vpack.c.bf16 %v832_v28, %v832_v28 }
  0xef   : > { %v1446_v35 = vpack.c.bf16 %v864_v29, %v864_v29  ;;  %v536_v36 = vadd.f32 %v1553_v32, %v1840_v3  ;;  %v696_v37 = vadd.f32 %v1601_v33, %v1840_v3  ;;  %v530_v38 = vpop.f32.mrb[5].mxu0  ;;  %v690_v39 = vpop.f32.mrb[5].mxu1  ;;  %v1413_v40 = vpack.c.bf16 %v831_v30, %v831_v30 }
  0xf0   : > { %v1445_v41 = vpack.c.bf16 %v863_v31, %v863_v31  ;;  %v531_v42 = vadd.f32 %v1840_v3, %v530_v38  ;;  %v691_v43 = vadd.f32 %v1840_v3, %v690_v39  ;;  %1153 = vst.msk [vmem:[%s1850_s28 + $0xc] sm:$0xf] %vm1149_vm4, %v1414_v34 }
  0xf1   : > { %1185 = vst.msk [vmem:[%s1850_s28 + $0x8c] sm:$0xf] %vm1149_vm4, %v1446_v35  ;;  %v834_v44 = vmax.f32 %v536_v36, 0.0  ;;  %v866_v45 = vmax.f32 %v696_v37, 0.0  ;;  %1152 = vst.msk [vmem:[%s1850_s28 + $0x8] sm:$0xf] %vm1149_vm4, %v1413_v40 }
  0xf2   : > { %1184 = vst.msk [vmem:[%s1850_s28 + $0x88] sm:$0xf] %vm1149_vm4, %v1445_v41  ;;  %v833_v46 = vmax.f32 %v531_v42, 0.0  ;;  %v865_v47 = vmax.f32 %v691_v43, 0.0  ;;  %v1556_v48 = vpop.f32.mrb[6].mxu0  ;;  %v1604_v49 = vpop.f32.mrb[6].mxu1 }
  0xf3   : > { %v1416_v50 = vpack.c.bf16 %v834_v44, %v834_v44  ;;  %v1448_v51 = vpack.c.bf16 %v866_v45, %v866_v45  ;;  %v546_v52 = vadd.f32 %v1556_v48, %v1840_v3  ;;  %v706_v53 = vadd.f32 %v1604_v49, %v1840_v3  ;;  %v540_v54 = vpop.f32.mrb[7].mxu0  ;;  %v700_v55 = vpop.f32.mrb[7].mxu1 }
  0xf4   : > { %v1415_v56 = vpack.c.bf16 %v833_v46, %v833_v46  ;;  %v1447_v57 = vpack.c.bf16 %v865_v47, %v865_v47  ;;  %v541_v58 = vadd.f32 %v1840_v3, %v540_v54  ;;  %v701_v59 = vadd.f32 %v1840_v3, %v700_v55 }
  0xf5   : > { %1155 = vst.msk [vmem:[%s1850_s28 + $0x14] sm:$0xf] %vm1149_vm4, %v1416_v50  ;;  %1187 = vst.msk [vmem:[%s1850_s28 + $0x94] sm:$0xf] %vm1149_vm4, %v1448_v51  ;;  %v836_v60 = vmax.f32 %v546_v52, 0.0  ;;  %v868_v61 = vmax.f32 %v706_v53, 0.0 }
  0xf6   : > { %1154 = vst.msk [vmem:[%s1850_s28 + $0x10] sm:$0xf] %vm1149_vm4, %v1415_v56  ;;  %1186 = vst.msk [vmem:[%s1850_s28 + $0x90] sm:$0xf] %vm1149_vm4, %v1447_v57  ;;  %v835_v62 = vmax.f32 %v541_v58, 0.0  ;;  %v867_v63 = vmax.f32 %v701_v59, 0.0 }
  0xf7   : > { %v1559_v0 = vpop.f32.mrb[8].mxu0  ;;  %v1607_v1 = vpop.f32.mrb[8].mxu1  ;;  %v1418_v2 = vpack.c.bf16 %v836_v60, %v836_v60  ;;  %v1450_v4 = vpack.c.bf16 %v868_v61, %v868_v61 }
  0xf8   : > { %v556_v5 = vadd.f32 %v1559_v0, %v1840_v3  ;;  %v716_v6 = vadd.f32 %v1607_v1, %v1840_v3  ;;  %v550_v7 = vpop.f32.mrb[9].mxu0  ;;  %v710_v8 = vpop.f32.mrb[9].mxu1  ;;  %v1417_v9 = vpack.c.bf16 %v835_v62, %v835_v62  ;;  %v1449_v10 = vpack.c.bf16 %v867_v63, %v867_v63 }
  0xf9   : > { %v551_v11 = vadd.f32 %v1840_v3, %v550_v7  ;;  %v711_v12 = vadd.f32 %v1840_v3, %v710_v8  ;;  %1157 = vst.msk [vmem:[%s1850_s28 + $0x1c] sm:$0xf] %vm1149_vm4, %v1418_v2  ;;  %1189 = vst.msk [vmem:[%s1850_s28 + $0x9c] sm:$0xf] %vm1149_vm4, %v1450_v4  ;;  %v1562_v17 = vpop.f32.mrb[10].mxu0 }
  0xfa   : > { %v838_v13 = vmax.f32 %v556_v5, 0.0  ;;  %v870_v14 = vmax.f32 %v716_v6, 0.0  ;;  %1156 = vst.msk [vmem:[%s1850_s28 + $0x18] sm:$0xf] %vm1149_vm4, %v1417_v9  ;;  %1188 = vst.msk [vmem:[%s1850_s28 + $0x98] sm:$0xf] %vm1149_vm4, %v1449_v10  ;;  %v566_v21 = vadd.f32 %v1562_v17, %v1840_v3 }
  0xfb   : > { %v837_v15 = vmax.f32 %v551_v11, 0.0  ;;  %v869_v16 = vmax.f32 %v711_v12, 0.0  ;;  %v1610_v18 = vpop.f32.mrb[10].mxu1  ;;  %v560_v23 = vpop.f32.mrb[11].mxu0 }
  0xfc   : > { %v1420_v19 = vpack.c.bf16 %v838_v13, %v838_v13  ;;  %v1452_v20 = vpack.c.bf16 %v870_v14, %v870_v14  ;;  %v726_v22 = vadd.f32 %v1610_v18, %v1840_v3  ;;  %v720_v24 = vpop.f32.mrb[11].mxu1  ;;  %v561_v27 = vadd.f32 %v1840_v3, %v560_v23 }
  0xfd   : > { %v1419_v25 = vpack.c.bf16 %v837_v15, %v837_v15  ;;  %v1451_v26 = vpack.c.bf16 %v869_v16, %v869_v16  ;;  %v721_v28 = vadd.f32 %v1840_v3, %v720_v24  ;;  %v840_v29 = vmax.f32 %v566_v21, 0.0  ;;  %v1565_v33 = vpop.f32.mrb[12].mxu0 }
  0xfe   : > { %1159 = vst.msk [vmem:[%s1850_s28 + $0x24] sm:$0xf] %vm1149_vm4, %v1420_v19  ;;  %1191 = vst.msk [vmem:[%s1850_s28 + $0xa4] sm:$0xf] %vm1149_vm4, %v1452_v20  ;;  %v872_v30 = vmax.f32 %v726_v22, 0.0  ;;  %v839_v31 = vmax.f32 %v561_v27, 0.0  ;;  %v576_v37 = vadd.f32 %v1565_v33, %v1840_v3 }
  0xff   : > { %1158 = vst.msk [vmem:[%s1850_s28 + $0x20] sm:$0xf] %vm1149_vm4, %v1419_v25  ;;  %1190 = vst.msk [vmem:[%s1850_s28 + $0xa0] sm:$0xf] %vm1149_vm4, %v1451_v26  ;;  %v871_v32 = vmax.f32 %v721_v28, 0.0  ;;  %v1613_v34 = vpop.f32.mrb[12].mxu1  ;;  %v1422_v35 = vpack.c.bf16 %v840_v29, %v840_v29 }
 0x100   : > { %v1454_v36 = vpack.c.bf16 %v872_v30, %v872_v30  ;;  %v736_v38 = vadd.f32 %v1613_v34, %v1840_v3  ;;  %v570_v39 = vpop.f32.mrb[13].mxu0  ;;  %v730_v40 = vpop.f32.mrb[13].mxu1  ;;  %v1421_v41 = vpack.c.bf16 %v839_v31, %v839_v31  ;;  %v842_v45 = vmax.f32 %v576_v37, 0.0 }
 0x101   : > { %v1453_v42 = vpack.c.bf16 %v871_v32, %v871_v32  ;;  %v571_v43 = vadd.f32 %v1840_v3, %v570_v39  ;;  %v731_v44 = vadd.f32 %v1840_v3, %v730_v40  ;;  %1161 = vst.msk [vmem:[%s1850_s28 + $0x2c] sm:$0xf] %vm1149_vm4, %v1422_v35  ;;  %v1568_v49 = vpop.f32.mrb[14].mxu0 }
 0x102   : > { %1193 = vst.msk [vmem:[%s1850_s28 + $0xac] sm:$0xf] %vm1149_vm4, %v1454_v36  ;;  %v874_v46 = vmax.f32 %v736_v38, 0.0  ;;  %1160 = vst.msk [vmem:[%s1850_s28 + $0x28] sm:$0xf] %vm1149_vm4, %v1421_v41  ;;  %v1616_v50 = vpop.f32.mrb[14].mxu1  ;;  %v1424_v51 = vpack.c.bf16 %v842_v45, %v842_v45  ;;  %v586_v53 = vadd.f32 %v1568_v49, %v1840_v3 }
 0x103   : > { %1192 = vst.msk [vmem:[%s1850_s28 + $0xa8] sm:$0xf] %vm1149_vm4, %v1453_v42  ;;  %v841_v47 = vmax.f32 %v571_v43, 0.0  ;;  %v873_v48 = vmax.f32 %v731_v44, 0.0  ;;  %v746_v54 = vadd.f32 %v1616_v50, %v1840_v3  ;;  %v580_v55 = vpop.f32.mrb[15].mxu0  ;;  %v740_v56 = vpop.f32.mrb[15].mxu1 }
 0x104   : > { %v1456_v52 = vpack.c.bf16 %v874_v46, %v874_v46  ;;  %v581_v59 = vadd.f32 %v1840_v3, %v580_v55  ;;  %v741_v60 = vadd.f32 %v1840_v3, %v740_v56  ;;  %1163 = vst.msk [vmem:[%s1850_s28 + $0x34] sm:$0xf] %vm1149_vm4, %v1424_v51  ;;  %v844_v61 = vmax.f32 %v586_v53, 0.0 }
 0x105   : > { %v1423_v57 = vpack.c.bf16 %v841_v47, %v841_v47  ;;  %v1455_v58 = vpack.c.bf16 %v873_v48, %v873_v48  ;;  %v876_v62 = vmax.f32 %v746_v54, 0.0  ;;  %v1571_v1 = vpop.f32.mrb[16].mxu0 }
 0x106   : > { %1195 = vst.msk [vmem:[%s1850_s28 + $0xb4] sm:$0xf] %vm1149_vm4, %v1456_v52  ;;  %v843_v63 = vmax.f32 %v581_v59, 0.0  ;;  %v875_v0 = vmax.f32 %v741_v60, 0.0  ;;  %v1619_v2 = vpop.f32.mrb[16].mxu1  ;;  %v1426_v4 = vpack.c.bf16 %v844_v61, %v844_v61  ;;  %v596_v6 = vadd.f32 %v1571_v1, %v1840_v3  ;;  %v590_v8 = vpop.f32.mrb[17].mxu0 }
 0x107   : > { %1162 = vst.msk [vmem:[%s1850_s28 + $0x30] sm:$0xf] %vm1149_vm4, %v1423_v57  ;;  %1194 = vst.msk [vmem:[%s1850_s28 + $0xb0] sm:$0xf] %vm1149_vm4, %v1455_v58  ;;  %v1458_v5 = vpack.c.bf16 %v876_v62, %v876_v62  ;;  %v756_v7 = vadd.f32 %v1619_v2, %v1840_v3  ;;  %v750_v9 = vpop.f32.mrb[17].mxu1  ;;  %v591_v12 = vadd.f32 %v1840_v3, %v590_v8 }
 0x108   : > { %v1425_v10 = vpack.c.bf16 %v843_v63, %v843_v63  ;;  %v1457_v11 = vpack.c.bf16 %v875_v0, %v875_v0  ;;  %v751_v13 = vadd.f32 %v1840_v3, %v750_v9  ;;  %1165 = vst.msk [vmem:[%s1850_s28 + $0x3c] sm:$0xf] %vm1149_vm4, %v1426_v4  ;;  %v846_v14 = vmax.f32 %v596_v6, 0.0 }
 0x109   : > { %1197 = vst.msk [vmem:[%s1850_s28 + $0xbc] sm:$0xf] %vm1149_vm4, %v1458_v5  ;;  %v878_v15 = vmax.f32 %v756_v7, 0.0  ;;  %v845_v16 = vmax.f32 %v591_v12, 0.0  ;;  %v1574_v18 = vpop.f32.mrb[18].mxu0 }
 0x10a   : > { %1164 = vst.msk [vmem:[%s1850_s28 + $0x38] sm:$0xf] %vm1149_vm4, %v1425_v10  ;;  %1196 = vst.msk [vmem:[%s1850_s28 + $0xb8] sm:$0xf] %vm1149_vm4, %v1457_v11  ;;  %v877_v17 = vmax.f32 %v751_v13, 0.0  ;;  %v1622_v19 = vpop.f32.mrb[18].mxu1  ;;  %v1428_v20 = vpack.c.bf16 %v846_v14, %v846_v14  ;;  %v606_v22 = vadd.f32 %v1574_v18, %v1840_v3 }
 0x10b   : > { %v1460_v21 = vpack.c.bf16 %v878_v15, %v878_v15  ;;  %v766_v23 = vadd.f32 %v1622_v19, %v1840_v3  ;;  %v600_v24 = vpop.f32.mrb[19].mxu0  ;;  %v760_v25 = vpop.f32.mrb[19].mxu1  ;;  %v1427_v26 = vpack.c.bf16 %v845_v16, %v845_v16 }
 0x10c   : > { %v1459_v27 = vpack.c.bf16 %v877_v17, %v877_v17  ;;  %v601_v28 = vadd.f32 %v1840_v3, %v600_v24  ;;  %v761_v29 = vadd.f32 %v1840_v3, %v760_v25  ;;  %1167 = vst.msk [vmem:[%s1850_s28 + $0x44] sm:$0xf] %vm1149_vm4, %v1428_v20  ;;  %v848_v30 = vmax.f32 %v606_v22, 0.0 }
 0x10d   : > { %1199 = vst.msk [vmem:[%s1850_s28 + $0xc4] sm:$0xf] %vm1149_vm4, %v1460_v21  ;;  %v880_v31 = vmax.f32 %v766_v23, 0.0  ;;  %1166 = vst.msk [vmem:[%s1850_s28 + $0x40] sm:$0xf] %vm1149_vm4, %v1427_v26  ;;  %v1577_v34 = vpop.f32.mrb[20].mxu0 }
 0x10e   : > { %1198 = vst.msk [vmem:[%s1850_s28 + $0xc0] sm:$0xf] %vm1149_vm4, %v1459_v27  ;;  %v847_v32 = vmax.f32 %v601_v28, 0.0  ;;  %v879_v33 = vmax.f32 %v761_v29, 0.0  ;;  %v1625_v35 = vpop.f32.mrb[20].mxu1  ;;  %v1430_v36 = vpack.c.bf16 %v848_v30, %v848_v30  ;;  %v616_v38 = vadd.f32 %v1577_v34, %v1840_v3  ;;  %v610_v40 = vpop.f32.mrb[21].mxu0 }
 0x10f   : > { %v1462_v37 = vpack.c.bf16 %v880_v31, %v880_v31  ;;  %v776_v39 = vadd.f32 %v1625_v35, %v1840_v3  ;;  %v770_v41 = vpop.f32.mrb[21].mxu1  ;;  %v611_v44 = vadd.f32 %v1840_v3, %v610_v40 }
 0x110   : > { %v1429_v42 = vpack.c.bf16 %v847_v32, %v847_v32  ;;  %v1461_v43 = vpack.c.bf16 %v879_v33, %v879_v33  ;;  %v771_v45 = vadd.f32 %v1840_v3, %v770_v41  ;;  %1169 = vst.msk [vmem:[%s1850_s28 + $0x4c] sm:$0xf] %vm1149_vm4, %v1430_v36  ;;  %v850_v46 = vmax.f32 %v616_v38, 0.0 }
 0x111   : > { %1201 = vst.msk [vmem:[%s1850_s28 + $0xcc] sm:$0xf] %vm1149_vm4, %v1462_v37  ;;  %v882_v47 = vmax.f32 %v776_v39, 0.0  ;;  %v849_v48 = vmax.f32 %v611_v44, 0.0  ;;  %v1580_v50 = vpop.f32.mrb[22].mxu0 }
 0x112   : > { %1168 = vst.msk [vmem:[%s1850_s28 + $0x48] sm:$0xf] %vm1149_vm4, %v1429_v42  ;;  %1200 = vst.msk [vmem:[%s1850_s28 + $0xc8] sm:$0xf] %vm1149_vm4, %v1461_v43  ;;  %v881_v49 = vmax.f32 %v771_v45, 0.0  ;;  %v1628_v51 = vpop.f32.mrb[22].mxu1  ;;  %v1432_v52 = vpack.c.bf16 %v850_v46, %v850_v46  ;;  %v626_v54 = vadd.f32 %v1580_v50, %v1840_v3 }
 0x113   : > { %v1464_v53 = vpack.c.bf16 %v882_v47, %v882_v47  ;;  %v786_v55 = vadd.f32 %v1628_v51, %v1840_v3  ;;  %v620_v56 = vpop.f32.mrb[23].mxu0  ;;  %v780_v57 = vpop.f32.mrb[23].mxu1  ;;  %v1431_v58 = vpack.c.bf16 %v849_v48, %v849_v48 }
 0x114   : > { %v1463_v59 = vpack.c.bf16 %v881_v49, %v881_v49  ;;  %v621_v60 = vadd.f32 %v1840_v3, %v620_v56  ;;  %v781_v61 = vadd.f32 %v1840_v3, %v780_v57  ;;  %1171 = vst.msk [vmem:[%s1850_s28 + $0x54] sm:$0xf] %vm1149_vm4, %v1432_v52  ;;  %v852_v62 = vmax.f32 %v626_v54, 0.0 }
 0x115   : > { %1203 = vst.msk [vmem:[%s1850_s28 + $0xd4] sm:$0xf] %vm1149_vm4, %v1464_v53  ;;  %v884_v63 = vmax.f32 %v786_v55, 0.0  ;;  %1170 = vst.msk [vmem:[%s1850_s28 + $0x50] sm:$0xf] %vm1149_vm4, %v1431_v58  ;;  %v1583_v2 = vpop.f32.mrb[24].mxu0 }
 0x116   : > { %1202 = vst.msk [vmem:[%s1850_s28 + $0xd0] sm:$0xf] %vm1149_vm4, %v1463_v59  ;;  %v851_v0 = vmax.f32 %v621_v60, 0.0  ;;  %v883_v1 = vmax.f32 %v781_v61, 0.0  ;;  %v1631_v4 = vpop.f32.mrb[24].mxu1  ;;  %v1434_v5 = vpack.c.bf16 %v852_v62, %v852_v62  ;;  %v636_v7 = vadd.f32 %v1583_v2, %v1840_v3  ;;  %v630_v9 = vpop.f32.mrb[25].mxu0 }
 0x117   : > { %v1466_v6 = vpack.c.bf16 %v884_v63, %v884_v63  ;;  %v796_v8 = vadd.f32 %v1631_v4, %v1840_v3  ;;  %v790_v10 = vpop.f32.mrb[25].mxu1  ;;  %v631_v13 = vadd.f32 %v1840_v3, %v630_v9 }
 0x118   : > { %v1433_v11 = vpack.c.bf16 %v851_v0, %v851_v0  ;;  %v1465_v12 = vpack.c.bf16 %v883_v1, %v883_v1  ;;  %v791_v14 = vadd.f32 %v1840_v3, %v790_v10  ;;  %1173 = vst.msk [vmem:[%s1850_s28 + $0x5c] sm:$0xf] %vm1149_vm4, %v1434_v5  ;;  %v854_v15 = vmax.f32 %v636_v7, 0.0 }
 0x119   : > { %1205 = vst.msk [vmem:[%s1850_s28 + $0xdc] sm:$0xf] %vm1149_vm4, %v1466_v6  ;;  %v886_v16 = vmax.f32 %v796_v8, 0.0  ;;  %v853_v17 = vmax.f32 %v631_v13, 0.0  ;;  %v1586_v19 = vpop.f32.mrb[26].mxu0 }
 0x11a   : > { %1172 = vst.msk [vmem:[%s1850_s28 + $0x58] sm:$0xf] %vm1149_vm4, %v1433_v11  ;;  %1204 = vst.msk [vmem:[%s1850_s28 + $0xd8] sm:$0xf] %vm1149_vm4, %v1465_v12  ;;  %v885_v18 = vmax.f32 %v791_v14, 0.0  ;;  %v1634_v20 = vpop.f32.mrb[26].mxu1  ;;  %v1436_v21 = vpack.c.bf16 %v854_v15, %v854_v15  ;;  %v646_v23 = vadd.f32 %v1586_v19, %v1840_v3 }
 0x11b   : > { %v1468_v22 = vpack.c.bf16 %v886_v16, %v886_v16  ;;  %v806_v24 = vadd.f32 %v1634_v20, %v1840_v3  ;;  %v640_v25 = vpop.f32.mrb[27].mxu0  ;;  %v800_v26 = vpop.f32.mrb[27].mxu1  ;;  %v1435_v27 = vpack.c.bf16 %v853_v17, %v853_v17 }
 0x11c   : > { %v1467_v28 = vpack.c.bf16 %v885_v18, %v885_v18  ;;  %v641_v29 = vadd.f32 %v1840_v3, %v640_v25  ;;  %v801_v30 = vadd.f32 %v1840_v3, %v800_v26  ;;  %1175 = vst.msk [vmem:[%s1850_s28 + $0x64] sm:$0xf] %vm1149_vm4, %v1436_v21  ;;  %v856_v31 = vmax.f32 %v646_v23, 0.0 }
 0x11d   : > { %1207 = vst.msk [vmem:[%s1850_s28 + $0xe4] sm:$0xf] %vm1149_vm4, %v1468_v22  ;;  %v888_v32 = vmax.f32 %v806_v24, 0.0  ;;  %1174 = vst.msk [vmem:[%s1850_s28 + $0x60] sm:$0xf] %vm1149_vm4, %v1435_v27  ;;  %v1589_v35 = vpop.f32.mrb[28].mxu0 }
 0x11e   : > { %1206 = vst.msk [vmem:[%s1850_s28 + $0xe0] sm:$0xf] %vm1149_vm4, %v1467_v28  ;;  %v855_v33 = vmax.f32 %v641_v29, 0.0  ;;  %v887_v34 = vmax.f32 %v801_v30, 0.0  ;;  %v1637_v36 = vpop.f32.mrb[28].mxu1  ;;  %v1438_v37 = vpack.c.bf16 %v856_v31, %v856_v31  ;;  %v656_v39 = vadd.f32 %v1589_v35, %v1840_v3  ;;  %v650_v41 = vpop.f32.mrb[29].mxu0 }
 0x11f   : > { %v1470_v38 = vpack.c.bf16 %v888_v32, %v888_v32  ;;  %v816_v40 = vadd.f32 %v1637_v36, %v1840_v3  ;;  %v810_v42 = vpop.f32.mrb[29].mxu1  ;;  %v651_v45 = vadd.f32 %v1840_v3, %v650_v41 }
 0x120   : > { %v1437_v43 = vpack.c.bf16 %v855_v33, %v855_v33  ;;  %v1469_v44 = vpack.c.bf16 %v887_v34, %v887_v34  ;;  %v811_v46 = vadd.f32 %v1840_v3, %v810_v42  ;;  %1177 = vst.msk [vmem:[%s1850_s28 + $0x6c] sm:$0xf] %vm1149_vm4, %v1438_v37  ;;  %v858_v47 = vmax.f32 %v656_v39, 0.0 }
 0x121   : > { %1209 = vst.msk [vmem:[%s1850_s28 + $0xec] sm:$0xf] %vm1149_vm4, %v1470_v38  ;;  %v890_v48 = vmax.f32 %v816_v40, 0.0  ;;  %v857_v49 = vmax.f32 %v651_v45, 0.0  ;;  %v1592_v51 = vpop.f32.mrb[30].mxu0 }
 0x122   : > { %1176 = vst.msk [vmem:[%s1850_s28 + $0x68] sm:$0xf] %vm1149_vm4, %v1437_v43  ;;  %1208 = vst.msk [vmem:[%s1850_s28 + $0xe8] sm:$0xf] %vm1149_vm4, %v1469_v44  ;;  %v889_v50 = vmax.f32 %v811_v46, 0.0  ;;  %v1640_v52 = vpop.f32.mrb[30].mxu1  ;;  %v1440_v53 = vpack.c.bf16 %v858_v47, %v858_v47  ;;  %v666_v55 = vadd.f32 %v1592_v51, %v1840_v3 }
 0x123   : > { %v1472_v54 = vpack.c.bf16 %v890_v48, %v890_v48  ;;  %v826_v56 = vadd.f32 %v1640_v52, %v1840_v3  ;;  %v660_v57 = vpop.f32.mrb[31].mxu0  ;;  %v820_v58 = vpop.f32.mrb[31].mxu1  ;;  %v1439_v59 = vpack.c.bf16 %v857_v49, %v857_v49 }
 0x124   : > { %v1471_v60 = vpack.c.bf16 %v889_v50, %v889_v50  ;;  %v661_v61 = vadd.f32 %v1840_v3, %v660_v57  ;;  %v821_v62 = vadd.f32 %v1840_v3, %v820_v58  ;;  %1179 = vst.msk [vmem:[%s1850_s28 + $0x74] sm:$0xf] %vm1149_vm4, %v1440_v53  ;;  %v860_v63 = vmax.f32 %v666_v55, 0.0 }
 0x125   : > { %1211 = vst.msk [vmem:[%s1850_s28 + $0xf4] sm:$0xf] %vm1149_vm4, %v1472_v54  ;;  %v892_v0 = vmax.f32 %v826_v56, 0.0  ;;  %1178 = vst.msk [vmem:[%s1850_s28 + $0x70] sm:$0xf] %vm1149_vm4, %v1439_v59 }
 0x126   : > { %1210 = vst.msk [vmem:[%s1850_s28 + $0xf0] sm:$0xf] %vm1149_vm4, %v1471_v60  ;;  %v859_v1 = vmax.f32 %v661_v61, 0.0  ;;  %v891_v2 = vmax.f32 %v821_v62, 0.0  ;;  %v1442_v4 = vpack.c.bf16 %v860_v63, %v860_v63 }
 0x127   : > { %v1474_v5 = vpack.c.bf16 %v892_v0, %v892_v0 }
 0x128   : > { %v1441_v6 = vpack.c.bf16 %v859_v1, %v859_v1  ;;  %v1473_v7 = vpack.c.bf16 %v891_v2, %v891_v2  ;;  %1181 = vst.msk [vmem:[%s1850_s28 + $0x7c] sm:$0xf] %vm1149_vm4, %v1442_v4 }
 0x129   : > { %1213 = vst.msk [vmem:[%s1850_s28 + $0xfc] sm:$0xf] %vm1149_vm4, %v1474_v5 }
 0x12a   : > { %1180 = vst.msk [vmem:[%s1850_s28 + $0x78] sm:$0xf] %vm1149_vm4, %v1441_v6  ;;  %1212 = vst.msk [vmem:[%s1850_s28 + $0xf8] sm:$0xf] %vm1149_vm4, %v1473_v7 }
 0x12b PF: > { %s13_s12 = sadd.s32 1, %s1664_s12  }
 0x12c   : > { %p10_p4 = scmp.ge.s32.totalorder %s13_s12, 24  }
 0x12e   :  { %12 = sbr.rel (!%p10_p4) target bundleno = 1 (0x1), region = 62 }

// kernel: siamese_forward_pair.6
= control target key start
LH: loop header
LB: loop body
LE: loop exit
PB: predicated region body
PF: predicated region fallthrough
CT: control target
= control target key end

     0   :  { %s1678_s12 = smov 0   ;;  %s1982_s0 = inlined_call_operand.vmem [shape: bf16[2560,72], index: 0, kind: input, shape index: {}]   ;;  %s1983_s1 = inlined_call_operand.vmem [shape: bf16[72,64], index: 1, kind: input, shape index: {}]   ;;  %s1984_s2 = inlined_call_operand.vmem [shape: f32[1,64], index: 2, kind: input, shape index: {}]   ;;  %s1985_s3 = inlined_call_operand.vmem [shape: bf16[2560,64], index: 3, kind: output, shape index: {}]  }
   0x1 LB: > { %s1273_s13 = sadd.s32 4294967295, %s1656_s12   ;;  %p1277_p0 = scmp.ge.s32.totalorder %s1656_s12, 1  ;;  %s1656_s12 = sphi %s1678_s12, %s13_s12  }
   0x2   : > { %p138_p1 = scmp.lt.s32.totalorder %s1656_s12, 6 }
   0x4   : > { %p139_p2 = pnand %p1277_p0, %p138_p1 }
   0x5   : > { %v1613_v0 = vld [vmem:[%s1983_s1] sm:$0xff] (!%p139_p2)   ;;  %v1614_v1 = vld [vmem:[%s1983_s1 + $0x8] sm:$0xff] (!%p139_p2)   ;;  %s1278_s18 = sshll.u32 (!%p139_p2), %s1273_s13, 6  ;;  %v1615_v2 = vld [vmem:[%s1983_s1 + $0x10] sm:$0xff] (!%p139_p2)   ;;  %vm442_vm0 = vcmask (!%p139_p2), 588800   ;;  %vm539_vm1 = vcmask (!%p139_p2), 1043456  }
   0x6   : > { %142 = sbr.rel (%p139_p2) target bundleno = 304 (0x130), region = 32  ;;  %1519 = vmatprep.subr.bf16.mxu0 (!%p139_p2), %v1613_v0  ;;  %1593 = vmatprep.subr.bf16.mxu1 (!%p139_p2), %v1613_v0  ;;  %p163_p3 = scmp.lt.s32.totalorder (!%p139_p2), %s1278_s18, 319  ;;  %v1616_v3 = vld [vmem:[%s1983_s1 + $0x18] sm:$0xff] (!%p139_p2)   ;;  %v1617_v6 = vld [vmem:[%s1983_s1 + $0x20] ss:$0 sps:$4 sm:$0xff] (!%p139_p2)   ;;  %vm1152_vm2 = vcmask (!%p139_p2), 519168  }
   0x7   : > { %1520 = vmatpush3.bf16.msra.mxu0 (!%p139_p2), %v1613_v0  ;;  %1598 = vmatpush3.bf16.msra.mxu1 (!%p139_p2), %v1613_v0  ;;  %v541_v7 = vsel (!%p139_p2), %vm539_vm1, %v1617_v6, 0  ;;  %v1778_v38 = vld [vmem:[%s1984_s2] ss:$0 sm:$0xff] (!%p139_p2) }
   0x8   : > { %1521 = vmatprep.subr.bf16.mxu0 (!%p139_p2), %v1614_v1  ;;  %1594 = vmatprep.subr.bf16.mxu1 (!%p139_p2), %v1614_v1 }
   0xb   : > { %1522 = vmatpush3.bf16.msra.mxu0 (!%p139_p2), %v1614_v1  ;;  %1599 = vmatpush3.bf16.msra.mxu1 (!%p139_p2), %v1614_v1 }
   0xc   : > { %1523 = vmatprep.subr.bf16.mxu0 (!%p139_p2), %v1615_v2  ;;  %1595 = vmatprep.subr.bf16.mxu1 (!%p139_p2), %v1615_v2 }
   0xd   : > { %s1987_s18 = smov (!%p163_p3, %s1278_s18), 319 }
   0xe   : > { %s1279_s21 = sshll.u32 %s1987_s18, 2 }
   0xf   : > { %s1706_s26 = scalar_lea.vmem %s1982_s0, %s1279_s21  ;;  %1524 = vmatpush3.bf16.msra.mxu0 %v1615_v2  ;;  %1600 = vmatpush3.bf16.msra.mxu1 %v1615_v2  ;;  %s1791_s6 = scalar_lea.vmem %s1985_s3, %s1279_s21 }
  0x10   : > { %v1618_v4 = vld [vmem:[%s1706_s26] sm:$0xff]   ;;  %1525 = vmatprep.subr.bf16.mxu0 %v1616_v3  ;;  %1596 = vmatprep.subr.bf16.mxu1 %v1616_v3  ;;  %v1620_v8 = vld [vmem:[%s1706_s26 + $0x8] sm:$0xff]   ;;  %v1622_v10 = vld [vmem:[%s1706_s26 + $0x10] sm:$0xff]  }
  0x11   : > { %v1619_v5 = vld [vmem:[%s1706_s26 + $0x80] sm:$0xff]   ;;  %1529 = vmatprep.mubr.msk.bf16.mxu0 %vm442_vm0, %v1618_v4  ;;  %v1621_v9 = vld [vmem:[%s1706_s26 + $0x88] sm:$0xff]   ;;  %v1623_v11 = vld [vmem:[%s1706_s26 + $0x90] sm:$0xff]  }
  0x12   : > { %1561 = vmatprep.mubr.msk.bf16.mxu1 %vm442_vm0, %v1619_v5  ;;  %v1624_v12 = vld [vmem:[%s1706_s26 + $0x18] sm:$0xff]   ;;  %v1626_v14 = vld [vmem:[%s1706_s26 + $0x20] sm:$0xff]   ;;  %v1628_v16 = vld [vmem:[%s1706_s26 + $0x28] sm:$0xff]  }
  0x13   : > { %1526 = vmatpush3.bf16.msra.mxu0 %v1616_v3  ;;  %1601 = vmatpush3.bf16.msra.mxu1 %v1616_v3  ;;  %v1625_v13 = vld [vmem:[%s1706_s26 + $0x98] sm:$0xff]   ;;  %v1627_v15 = vld [vmem:[%s1706_s26 + $0xa0] sm:$0xff]   ;;  %v1629_v17 = vld [vmem:[%s1706_s26 + $0xa8] sm:$0xff]  }
  0x14   : > { %1603 = vmatprep.subr.msk.bf16.mxu0 %vm539_vm1, %v1617_v6  ;;  %1604 = vmatprep.subr.msk.bf16.mxu1 %vm539_vm1, %v1617_v6  ;;  %v1630_v18 = vld [vmem:[%s1706_s26 + $0x30] sm:$0xff]   ;;  %v1632_v20 = vld [vmem:[%s1706_s26 + $0x38] sm:$0xff]   ;;  %v1634_v22 = vld [vmem:[%s1706_s26 + $0x40] sm:$0xff]  }
  0x15   : > { %v1631_v19 = vld [vmem:[%s1706_s26 + $0xb0] sm:$0xff]   ;;  %v1633_v21 = vld [vmem:[%s1706_s26 + $0xb8] sm:$0xff]   ;;  %v1635_v23 = vld [vmem:[%s1706_s26 + $0xc0] sm:$0xff]  }
  0x16   : > { %v1636_v24 = vld [vmem:[%s1706_s26 + $0x48] sm:$0xff]   ;;  %v1638_v26 = vld [vmem:[%s1706_s26 + $0x50] sm:$0xff]   ;;  %v1640_v28 = vld [vmem:[%s1706_s26 + $0x58] sm:$0xff]  }
  0x17   : > { %1528 = vmatpush3.bf16.msra.mxu0 %v541_v7  ;;  %1602 = vmatpush3.bf16.msra.mxu1 %v541_v7  ;;  %v1637_v25 = vld [vmem:[%s1706_s26 + $0xc8] sm:$0xff]   ;;  %v1639_v27 = vld [vmem:[%s1706_s26 + $0xd0] sm:$0xff]   ;;  %v1641_v29 = vld [vmem:[%s1706_s26 + $0xd8] sm:$0xff]  }
  0x18   : > { %v1642_v30 = vld [vmem:[%s1706_s26 + $0x60] sm:$0xff]   ;;  %v1644_v32 = vld [vmem:[%s1706_s26 + $0x68] sm:$0xff]   ;;  %v1646_v34 = vld [vmem:[%s1706_s26 + $0x70] sm:$0xff]  }
  0x19   : > { %v1643_v31 = vld [vmem:[%s1706_s26 + $0xe0] sm:$0xff]   ;;  %v1645_v33 = vld [vmem:[%s1706_s26 + $0xe8] sm:$0xff]   ;;  %v1647_v35 = vld [vmem:[%s1706_s26 + $0xf0] sm:$0xff]  }
  0x1a   : > { %1530 = vmatmul.mubr.msk.bf16.vlgmr.msra.gmra.mrb[0].mxu0 %vm442_vm0, %v1620_v8  ;;  %1562 = vmatmul.mubr.msk.bf16.vlgmr.msra.gmra.mrb[0].mxu1 %vm442_vm0, %v1621_v9  ;;  %v1648_v36 = vld [vmem:[%s1706_s26 + $0x78] sm:$0xff]  }
  0x1b   : > { %1533 = vmatprep.mubr.msk.bf16.mxu0 %vm442_vm0, %v1622_v10  ;;  %1565 = vmatprep.mubr.msk.bf16.mxu1 %vm442_vm0, %v1623_v11  ;;  %v1649_v37 = vld [vmem:[%s1706_s26 + $0xf8] sm:$0xff]  }
  0x22   : > { %1534 = vmatmul.mubr.msk.bf16.gmra.mrb[4].mxu0 %vm442_vm0, %v1624_v12  ;;  %1566 = vmatmul.mubr.msk.bf16.gmra.mrb[4].mxu1 %vm442_vm0, %v1625_v13 }
  0x23   : > { %1537 = vmatprep.mubr.msk.bf16.mxu0 %vm442_vm0, %v1626_v14  ;;  %1569 = vmatprep.mubr.msk.bf16.mxu1 %vm442_vm0, %v1627_v15 }
  0x2a   : > { %1538 = vmatmul.mubr.msk.bf16.gmra.mrb[8].mxu0 %vm442_vm0, %v1628_v16  ;;  %1570 = vmatmul.mubr.msk.bf16.gmra.mrb[8].mxu1 %vm442_vm0, %v1629_v17 }
  0x2b   : > { %1541 = vmatprep.mubr.msk.bf16.mxu0 %vm442_vm0, %v1630_v18  ;;  %1573 = vmatprep.mubr.msk.bf16.mxu1 %vm442_vm0, %v1631_v19 }
  0x32   : > { %1542 = vmatmul.mubr.msk.bf16.gmra.mrb[12].mxu0 %vm442_vm0, %v1632_v20  ;;  %1574 = vmatmul.mubr.msk.bf16.gmra.mrb[12].mxu1 %vm442_vm0, %v1633_v21 }
  0x33   : > { %1545 = vmatprep.mubr.msk.bf16.mxu0 %vm442_vm0, %v1634_v22  ;;  %1577 = vmatprep.mubr.msk.bf16.mxu1 %vm442_vm0, %v1635_v23 }
  0x3a   : > { %1546 = vmatmul.mubr.msk.bf16.gmra.mrb[16].mxu0 %vm442_vm0, %v1636_v24  ;;  %1578 = vmatmul.mubr.msk.bf16.gmra.mrb[16].mxu1 %vm442_vm0, %v1637_v25 }
  0x3b   : > { %1549 = vmatprep.mubr.msk.bf16.mxu0 %vm442_vm0, %v1638_v26  ;;  %1581 = vmatprep.mubr.msk.bf16.mxu1 %vm442_vm0, %v1639_v27 }
  0x42   : > { %1550 = vmatmul.mubr.msk.bf16.gmra.mrb[20].mxu0 %vm442_vm0, %v1640_v28  ;;  %1582 = vmatmul.mubr.msk.bf16.gmra.mrb[20].mxu1 %vm442_vm0, %v1641_v29 }
  0x43   : > { %1553 = vmatprep.mubr.msk.bf16.mxu0 %vm442_vm0, %v1642_v30  ;;  %1585 = vmatprep.mubr.msk.bf16.mxu1 %vm442_vm0, %v1643_v31 }
  0x4a   : > { %1554 = vmatmul.mubr.msk.bf16.gmra.mrb[24].mxu0 %vm442_vm0, %v1644_v32  ;;  %1586 = vmatmul.mubr.msk.bf16.gmra.mrb[24].mxu1 %vm442_vm0, %v1645_v33 }
  0x4b   : > { %1557 = vmatprep.mubr.msk.bf16.mxu0 %vm442_vm0, %v1646_v34  ;;  %1589 = vmatprep.mubr.msk.bf16.mxu1 %vm442_vm0, %v1647_v35 }
  0x52   : > { %1558 = vmatmul.mubr.msk.bf16.gmra.mrb[28].mxu0 %vm442_vm0, %v1648_v36  ;;  %1590 = vmatmul.mubr.msk.bf16.gmra.mrb[28].mxu1 %vm442_vm0, %v1649_v37 }
  0xed   : > { %v1531_v39 = vpop.f32.mrb[0].mxu0  ;;  %v1563_v40 = vpop.f32.mrb[0].mxu1 }
  0xee   : > { %v586_v41 = vadd.f32 %v1531_v39, %v1778_v38  ;;  %v714_v42 = vadd.f32 %v1563_v40, %v1778_v38  ;;  %v577_v43 = vpop.f32.mrb[1].mxu0  ;;  %v705_v44 = vpop.f32.mrb[1].mxu1 }
  0xef   : > { %v578_v45 = vadd.f32 %v1778_v38, %v577_v43  ;;  %v706_v46 = vadd.f32 %v1778_v38, %v705_v44  ;;  %v1532_v47 = vpop.f32.mrb[2].mxu0  ;;  %v1564_v48 = vpop.f32.mrb[2].mxu1 }
  0xf0   : > { %v834_v49 = vmax.f32 %v586_v41, 0.0  ;;  %v866_v50 = vmax.f32 %v714_v42, 0.0  ;;  %v589_v51 = vadd.f32 %v1532_v47, %v1778_v38  ;;  %v717_v52 = vadd.f32 %v1564_v48, %v1778_v38  ;;  %v580_v53 = vpop.f32.mrb[3].mxu0  ;;  %v708_v54 = vpop.f32.mrb[3].mxu1 }
  0xf1   : > { %v832_v55 = vmax.f32 %v578_v45, 0.0  ;;  %v864_v56 = vmax.f32 %v706_v46, 0.0  ;;  %v581_v57 = vadd.f32 %v1778_v38, %v580_v53  ;;  %v709_v58 = vadd.f32 %v1778_v38, %v708_v54 }
  0xf2   : > { %v1420_v59 = vpack.c.bf16 %v834_v49, %v834_v49  ;;  %v1452_v60 = vpack.c.bf16 %v866_v50, %v866_v50  ;;  %v835_v61 = vmax.f32 %v589_v51, 0.0  ;;  %v867_v62 = vmax.f32 %v717_v52, 0.0 }
  0xf3   : > { %v1418_v63 = vpack.c.bf16 %v832_v55, %v832_v55  ;;  %v1450_v0 = vpack.c.bf16 %v864_v56, %v864_v56  ;;  %v833_v1 = vmax.f32 %v581_v57, 0.0  ;;  %v865_v2 = vmax.f32 %v709_v58, 0.0 }
  0xf4   : > { %1155 = vst.msk [vmem:[%s1791_s6 + $0x8] sm:$0xf] %vm1152_vm2, %v1420_v59  ;;  %1187 = vst.msk [vmem:[%s1791_s6 + $0x88] sm:$0xf] %vm1152_vm2, %v1452_v60  ;;  %v1421_v3 = vpack.c.bf16 %v835_v61, %v835_v61  ;;  %v1453_v4 = vpack.c.bf16 %v867_v62, %v867_v62 }
  0xf5   : > { %1153 = vst.msk [vmem:[%s1791_s6] sm:$0xf] %vm1152_vm2, %v1418_v63  ;;  %1185 = vst.msk [vmem:[%s1791_s6 + $0x80] sm:$0xf] %vm1152_vm2, %v1450_v0  ;;  %v1419_v5 = vpack.c.bf16 %v833_v1, %v833_v1  ;;  %v1451_v6 = vpack.c.bf16 %v865_v2, %v865_v2  ;;  %v1535_v7 = vpop.f32.mrb[4].mxu0  ;;  %v1567_v8 = vpop.f32.mrb[4].mxu1 }
  0xf6   : > { %1156 = vst.msk [vmem:[%s1791_s6 + $0xc] sm:$0xf] %vm1152_vm2, %v1421_v3  ;;  %1188 = vst.msk [vmem:[%s1791_s6 + $0x8c] sm:$0xf] %vm1152_vm2, %v1453_v4  ;;  %v602_v9 = vadd.f32 %v1535_v7, %v1778_v38  ;;  %v730_v10 = vadd.f32 %v1567_v8, %v1778_v38  ;;  %v593_v11 = vpop.f32.mrb[5].mxu0  ;;  %v721_v12 = vpop.f32.mrb[5].mxu1 }
  0xf7   : > { %1154 = vst.msk [vmem:[%s1791_s6 + $0x4] sm:$0xf] %vm1152_vm2, %v1419_v5  ;;  %1186 = vst.msk [vmem:[%s1791_s6 + $0x84] sm:$0xf] %vm1152_vm2, %v1451_v6  ;;  %v594_v13 = vadd.f32 %v1778_v38, %v593_v11  ;;  %v722_v14 = vadd.f32 %v1778_v38, %v721_v12  ;;  %v1536_v15 = vpop.f32.mrb[6].mxu0  ;;  %v1568_v16 = vpop.f32.mrb[6].mxu1 }
  0xf8   : > { %v838_v17 = vmax.f32 %v602_v9, 0.0  ;;  %v870_v18 = vmax.f32 %v730_v10, 0.0  ;;  %v605_v19 = vadd.f32 %v1536_v15, %v1778_v38  ;;  %v733_v20 = vadd.f32 %v1568_v16, %v1778_v38  ;;  %v596_v21 = vpop.f32.mrb[7].mxu0  ;;  %v724_v22 = vpop.f32.mrb[7].mxu1 }
  0xf9   : > { %v836_v23 = vmax.f32 %v594_v13, 0.0  ;;  %v868_v24 = vmax.f32 %v722_v14, 0.0  ;;  %v597_v25 = vadd.f32 %v1778_v38, %v596_v21  ;;  %v725_v26 = vadd.f32 %v1778_v38, %v724_v22 }
  0xfa   : > { %v1424_v27 = vpack.c.bf16 %v838_v17, %v838_v17  ;;  %v1456_v28 = vpack.c.bf16 %v870_v18, %v870_v18  ;;  %v839_v29 = vmax.f32 %v605_v19, 0.0  ;;  %v871_v30 = vmax.f32 %v733_v20, 0.0 }
  0xfb   : > { %v1422_v31 = vpack.c.bf16 %v836_v23, %v836_v23  ;;  %v1454_v32 = vpack.c.bf16 %v868_v24, %v868_v24  ;;  %v837_v33 = vmax.f32 %v597_v25, 0.0  ;;  %v869_v34 = vmax.f32 %v725_v26, 0.0 }
  0xfc   : > { %1159 = vst.msk [vmem:[%s1791_s6 + $0x18] sm:$0xf] %vm1152_vm2, %v1424_v27  ;;  %1191 = vst.msk [vmem:[%s1791_s6 + $0x98] sm:$0xf] %vm1152_vm2, %v1456_v28  ;;  %v1425_v35 = vpack.c.bf16 %v839_v29, %v839_v29  ;;  %v1457_v36 = vpack.c.bf16 %v871_v30, %v871_v30 }
  0xfd   : > { %1157 = vst.msk [vmem:[%s1791_s6 + $0x10] sm:$0xf] %vm1152_vm2, %v1422_v31  ;;  %1189 = vst.msk [vmem:[%s1791_s6 + $0x90] sm:$0xf] %vm1152_vm2, %v1454_v32  ;;  %v1423_v37 = vpack.c.bf16 %v837_v33, %v837_v33  ;;  %v1455_v39 = vpack.c.bf16 %v869_v34, %v869_v34  ;;  %v1539_v40 = vpop.f32.mrb[8].mxu0  ;;  %v1571_v41 = vpop.f32.mrb[8].mxu1 }
  0xfe   : > { %1160 = vst.msk [vmem:[%s1791_s6 + $0x1c] sm:$0xf] %vm1152_vm2, %v1425_v35  ;;  %1192 = vst.msk [vmem:[%s1791_s6 + $0x9c] sm:$0xf] %vm1152_vm2, %v1457_v36  ;;  %v618_v42 = vadd.f32 %v1539_v40, %v1778_v38  ;;  %v746_v43 = vadd.f32 %v1571_v41, %v1778_v38  ;;  %v609_v44 = vpop.f32.mrb[9].mxu0  ;;  %v737_v45 = vpop.f32.mrb[9].mxu1 }
  0xff   : > { %1158 = vst.msk [vmem:[%s1791_s6 + $0x14] sm:$0xf] %vm1152_vm2, %v1423_v37  ;;  %1190 = vst.msk [vmem:[%s1791_s6 + $0x94] sm:$0xf] %vm1152_vm2, %v1455_v39  ;;  %v610_v46 = vadd.f32 %v1778_v38, %v609_v44  ;;  %v738_v47 = vadd.f32 %v1778_v38, %v737_v45  ;;  %v1540_v48 = vpop.f32.mrb[10].mxu0  ;;  %v1572_v49 = vpop.f32.mrb[10].mxu1 }
 0x100   : > { %v842_v50 = vmax.f32 %v618_v42, 0.0  ;;  %v874_v51 = vmax.f32 %v746_v43, 0.0  ;;  %v621_v52 = vadd.f32 %v1540_v48, %v1778_v38  ;;  %v749_v53 = vadd.f32 %v1572_v49, %v1778_v38  ;;  %v612_v54 = vpop.f32.mrb[11].mxu0  ;;  %v740_v55 = vpop.f32.mrb[11].mxu1 }
 0x101   : > { %v840_v56 = vmax.f32 %v610_v46, 0.0  ;;  %v872_v57 = vmax.f32 %v738_v47, 0.0  ;;  %v613_v58 = vadd.f32 %v1778_v38, %v612_v54  ;;  %v741_v59 = vadd.f32 %v1778_v38, %v740_v55 }
 0x102   : > { %v1428_v60 = vpack.c.bf16 %v842_v50, %v842_v50  ;;  %v1460_v61 = vpack.c.bf16 %v874_v51, %v874_v51  ;;  %v843_v62 = vmax.f32 %v621_v52, 0.0  ;;  %v875_v63 = vmax.f32 %v749_v53, 0.0 }
 0x103   : > { %v1426_v0 = vpack.c.bf16 %v840_v56, %v840_v56  ;;  %v1458_v1 = vpack.c.bf16 %v872_v57, %v872_v57  ;;  %v841_v2 = vmax.f32 %v613_v58, 0.0  ;;  %v873_v3 = vmax.f32 %v741_v59, 0.0 }
 0x104   : > { %1163 = vst.msk [vmem:[%s1791_s6 + $0x28] sm:$0xf] %vm1152_vm2, %v1428_v60  ;;  %1195 = vst.msk [vmem:[%s1791_s6 + $0xa8] sm:$0xf] %vm1152_vm2, %v1460_v61  ;;  %v1429_v4 = vpack.c.bf16 %v843_v62, %v843_v62  ;;  %v1461_v5 = vpack.c.bf16 %v875_v63, %v875_v63 }
 0x105   : > { %1161 = vst.msk [vmem:[%s1791_s6 + $0x20] sm:$0xf] %vm1152_vm2, %v1426_v0  ;;  %1193 = vst.msk [vmem:[%s1791_s6 + $0xa0] sm:$0xf] %vm1152_vm2, %v1458_v1  ;;  %v1427_v6 = vpack.c.bf16 %v841_v2, %v841_v2  ;;  %v1459_v7 = vpack.c.bf16 %v873_v3, %v873_v3  ;;  %v1543_v8 = vpop.f32.mrb[12].mxu0  ;;  %v1575_v9 = vpop.f32.mrb[12].mxu1 }
 0x106   : > { %1164 = vst.msk [vmem:[%s1791_s6 + $0x2c] sm:$0xf] %vm1152_vm2, %v1429_v4  ;;  %1196 = vst.msk [vmem:[%s1791_s6 + $0xac] sm:$0xf] %vm1152_vm2, %v1461_v5  ;;  %v634_v10 = vadd.f32 %v1543_v8, %v1778_v38  ;;  %v762_v11 = vadd.f32 %v1575_v9, %v1778_v38  ;;  %v625_v12 = vpop.f32.mrb[13].mxu0  ;;  %v753_v13 = vpop.f32.mrb[13].mxu1 }
 0x107   : > { %1162 = vst.msk [vmem:[%s1791_s6 + $0x24] sm:$0xf] %vm1152_vm2, %v1427_v6  ;;  %1194 = vst.msk [vmem:[%s1791_s6 + $0xa4] sm:$0xf] %vm1152_vm2, %v1459_v7  ;;  %v626_v14 = vadd.f32 %v1778_v38, %v625_v12  ;;  %v754_v15 = vadd.f32 %v1778_v38, %v753_v13  ;;  %v1544_v16 = vpop.f32.mrb[14].mxu0  ;;  %v1576_v17 = vpop.f32.mrb[14].mxu1 }
 0x108   : > { %v846_v18 = vmax.f32 %v634_v10, 0.0  ;;  %v878_v19 = vmax.f32 %v762_v11, 0.0  ;;  %v637_v20 = vadd.f32 %v1544_v16, %v1778_v38  ;;  %v765_v21 = vadd.f32 %v1576_v17, %v1778_v38  ;;  %v628_v22 = vpop.f32.mrb[15].mxu0  ;;  %v756_v23 = vpop.f32.mrb[15].mxu1 }
 0x109   : > { %v844_v24 = vmax.f32 %v626_v14, 0.0  ;;  %v876_v25 = vmax.f32 %v754_v15, 0.0  ;;  %v629_v26 = vadd.f32 %v1778_v38, %v628_v22  ;;  %v757_v27 = vadd.f32 %v1778_v38, %v756_v23 }
 0x10a   : > { %v1432_v28 = vpack.c.bf16 %v846_v18, %v846_v18  ;;  %v1464_v29 = vpack.c.bf16 %v878_v19, %v878_v19  ;;  %v847_v30 = vmax.f32 %v637_v20, 0.0  ;;  %v879_v31 = vmax.f32 %v765_v21, 0.0 }
 0x10b   : > { %v1430_v32 = vpack.c.bf16 %v844_v24, %v844_v24  ;;  %v1462_v33 = vpack.c.bf16 %v876_v25, %v876_v25  ;;  %v845_v34 = vmax.f32 %v629_v26, 0.0  ;;  %v877_v35 = vmax.f32 %v757_v27, 0.0 }
 0x10c   : > { %1167 = vst.msk [vmem:[%s1791_s6 + $0x38] sm:$0xf] %vm1152_vm2, %v1432_v28  ;;  %1199 = vst.msk [vmem:[%s1791_s6 + $0xb8] sm:$0xf] %vm1152_vm2, %v1464_v29  ;;  %v1433_v36 = vpack.c.bf16 %v847_v30, %v847_v30  ;;  %v1465_v37 = vpack.c.bf16 %v879_v31, %v879_v31 }
 0x10d   : > { %1165 = vst.msk [vmem:[%s1791_s6 + $0x30] sm:$0xf] %vm1152_vm2, %v1430_v32  ;;  %1197 = vst.msk [vmem:[%s1791_s6 + $0xb0] sm:$0xf] %vm1152_vm2, %v1462_v33  ;;  %v1431_v39 = vpack.c.bf16 %v845_v34, %v845_v34  ;;  %v1463_v40 = vpack.c.bf16 %v877_v35, %v877_v35  ;;  %v1547_v41 = vpop.f32.mrb[16].mxu0  ;;  %v1579_v42 = vpop.f32.mrb[16].mxu1 }
 0x10e   : > { %1168 = vst.msk [vmem:[%s1791_s6 + $0x3c] sm:$0xf] %vm1152_vm2, %v1433_v36  ;;  %1200 = vst.msk [vmem:[%s1791_s6 + $0xbc] sm:$0xf] %vm1152_vm2, %v1465_v37  ;;  %v650_v43 = vadd.f32 %v1547_v41, %v1778_v38  ;;  %v778_v44 = vadd.f32 %v1579_v42, %v1778_v38  ;;  %v641_v45 = vpop.f32.mrb[17].mxu0  ;;  %v769_v46 = vpop.f32.mrb[17].mxu1 }
 0x10f   : > { %1166 = vst.msk [vmem:[%s1791_s6 + $0x34] sm:$0xf] %vm1152_vm2, %v1431_v39  ;;  %1198 = vst.msk [vmem:[%s1791_s6 + $0xb4] sm:$0xf] %vm1152_vm2, %v1463_v40  ;;  %v642_v47 = vadd.f32 %v1778_v38, %v641_v45  ;;  %v770_v48 = vadd.f32 %v1778_v38, %v769_v46  ;;  %v1548_v49 = vpop.f32.mrb[18].mxu0  ;;  %v1580_v50 = vpop.f32.mrb[18].mxu1 }
 0x110   : > { %v850_v51 = vmax.f32 %v650_v43, 0.0  ;;  %v882_v52 = vmax.f32 %v778_v44, 0.0  ;;  %v653_v53 = vadd.f32 %v1548_v49, %v1778_v38  ;;  %v781_v54 = vadd.f32 %v1580_v50, %v1778_v38  ;;  %v644_v55 = vpop.f32.mrb[19].mxu0  ;;  %v772_v56 = vpop.f32.mrb[19].mxu1 }
 0x111   : > { %v848_v57 = vmax.f32 %v642_v47, 0.0  ;;  %v880_v58 = vmax.f32 %v770_v48, 0.0  ;;  %v645_v59 = vadd.f32 %v1778_v38, %v644_v55  ;;  %v773_v60 = vadd.f32 %v1778_v38, %v772_v56 }
 0x112   : > { %v1436_v61 = vpack.c.bf16 %v850_v51, %v850_v51  ;;  %v1468_v62 = vpack.c.bf16 %v882_v52, %v882_v52  ;;  %v851_v63 = vmax.f32 %v653_v53, 0.0  ;;  %v883_v0 = vmax.f32 %v781_v54, 0.0 }
 0x113   : > { %v1434_v1 = vpack.c.bf16 %v848_v57, %v848_v57  ;;  %v1466_v2 = vpack.c.bf16 %v880_v58, %v880_v58  ;;  %v849_v3 = vmax.f32 %v645_v59, 0.0  ;;  %v881_v4 = vmax.f32 %v773_v60, 0.0 }
 0x114   : > { %1171 = vst.msk [vmem:[%s1791_s6 + $0x48] sm:$0xf] %vm1152_vm2, %v1436_v61  ;;  %1203 = vst.msk [vmem:[%s1791_s6 + $0xc8] sm:$0xf] %vm1152_vm2, %v1468_v62  ;;  %v1437_v5 = vpack.c.bf16 %v851_v63, %v851_v63  ;;  %v1469_v6 = vpack.c.bf16 %v883_v0, %v883_v0 }
 0x115   : > { %1169 = vst.msk [vmem:[%s1791_s6 + $0x40] sm:$0xf] %vm1152_vm2, %v1434_v1  ;;  %1201 = vst.msk [vmem:[%s1791_s6 + $0xc0] sm:$0xf] %vm1152_vm2, %v1466_v2  ;;  %v1435_v7 = vpack.c.bf16 %v849_v3, %v849_v3  ;;  %v1467_v8 = vpack.c.bf16 %v881_v4, %v881_v4  ;;  %v1551_v9 = vpop.f32.mrb[20].mxu0  ;;  %v1583_v10 = vpop.f32.mrb[20].mxu1 }
 0x116   : > { %1172 = vst.msk [vmem:[%s1791_s6 + $0x4c] sm:$0xf] %vm1152_vm2, %v1437_v5  ;;  %1204 = vst.msk [vmem:[%s1791_s6 + $0xcc] sm:$0xf] %vm1152_vm2, %v1469_v6  ;;  %v666_v11 = vadd.f32 %v1551_v9, %v1778_v38  ;;  %v794_v12 = vadd.f32 %v1583_v10, %v1778_v38  ;;  %v657_v13 = vpop.f32.mrb[21].mxu0  ;;  %v785_v14 = vpop.f32.mrb[21].mxu1 }
 0x117   : > { %1170 = vst.msk [vmem:[%s1791_s6 + $0x44] sm:$0xf] %vm1152_vm2, %v1435_v7  ;;  %1202 = vst.msk [vmem:[%s1791_s6 + $0xc4] sm:$0xf] %vm1152_vm2, %v1467_v8  ;;  %v658_v15 = vadd.f32 %v1778_v38, %v657_v13  ;;  %v786_v16 = vadd.f32 %v1778_v38, %v785_v14  ;;  %v1552_v17 = vpop.f32.mrb[22].mxu0  ;;  %v1584_v18 = vpop.f32.mrb[22].mxu1 }
 0x118   : > { %v854_v19 = vmax.f32 %v666_v11, 0.0  ;;  %v886_v20 = vmax.f32 %v794_v12, 0.0  ;;  %v669_v21 = vadd.f32 %v1552_v17, %v1778_v38  ;;  %v797_v22 = vadd.f32 %v1584_v18, %v1778_v38  ;;  %v660_v23 = vpop.f32.mrb[23].mxu0  ;;  %v788_v24 = vpop.f32.mrb[23].mxu1 }
 0x119   : > { %v852_v25 = vmax.f32 %v658_v15, 0.0  ;;  %v884_v26 = vmax.f32 %v786_v16, 0.0  ;;  %v661_v27 = vadd.f32 %v1778_v38, %v660_v23  ;;  %v789_v28 = vadd.f32 %v1778_v38, %v788_v24 }
 0x11a   : > { %v1440_v29 = vpack.c.bf16 %v854_v19, %v854_v19  ;;  %v1472_v30 = vpack.c.bf16 %v886_v20, %v886_v20  ;;  %v855_v31 = vmax.f32 %v669_v21, 0.0  ;;  %v887_v32 = vmax.f32 %v797_v22, 0.0 }
 0x11b   : > { %v1438_v33 = vpack.c.bf16 %v852_v25, %v852_v25  ;;  %v1470_v34 = vpack.c.bf16 %v884_v26, %v884_v26  ;;  %v853_v35 = vmax.f32 %v661_v27, 0.0  ;;  %v885_v36 = vmax.f32 %v789_v28, 0.0 }
 0x11c   : > { %1175 = vst.msk [vmem:[%s1791_s6 + $0x58] sm:$0xf] %vm1152_vm2, %v1440_v29  ;;  %1207 = vst.msk [vmem:[%s1791_s6 + $0xd8] sm:$0xf] %vm1152_vm2, %v1472_v30  ;;  %v1441_v37 = vpack.c.bf16 %v855_v31, %v855_v31  ;;  %v1473_v39 = vpack.c.bf16 %v887_v32, %v887_v32 }
 0x11d   : > { %1173 = vst.msk [vmem:[%s1791_s6 + $0x50] sm:$0xf] %vm1152_vm2, %v1438_v33  ;;  %1205 = vst.msk [vmem:[%s1791_s6 + $0xd0] sm:$0xf] %vm1152_vm2, %v1470_v34  ;;  %v1439_v40 = vpack.c.bf16 %v853_v35, %v853_v35  ;;  %v1471_v41 = vpack.c.bf16 %v885_v36, %v885_v36  ;;  %v1555_v42 = vpop.f32.mrb[24].mxu0  ;;  %v1587_v43 = vpop.f32.mrb[24].mxu1 }
 0x11e   : > { %1176 = vst.msk [vmem:[%s1791_s6 + $0x5c] sm:$0xf] %vm1152_vm2, %v1441_v37  ;;  %1208 = vst.msk [vmem:[%s1791_s6 + $0xdc] sm:$0xf] %vm1152_vm2, %v1473_v39  ;;  %v682_v44 = vadd.f32 %v1555_v42, %v1778_v38  ;;  %v810_v45 = vadd.f32 %v1587_v43, %v1778_v38  ;;  %v673_v46 = vpop.f32.mrb[25].mxu0  ;;  %v801_v47 = vpop.f32.mrb[25].mxu1 }
 0x11f   : > { %1174 = vst.msk [vmem:[%s1791_s6 + $0x54] sm:$0xf] %vm1152_vm2, %v1439_v40  ;;  %1206 = vst.msk [vmem:[%s1791_s6 + $0xd4] sm:$0xf] %vm1152_vm2, %v1471_v41  ;;  %v674_v48 = vadd.f32 %v1778_v38, %v673_v46  ;;  %v802_v49 = vadd.f32 %v1778_v38, %v801_v47  ;;  %v1556_v50 = vpop.f32.mrb[26].mxu0  ;;  %v1588_v51 = vpop.f32.mrb[26].mxu1 }
 0x120   : > { %v858_v52 = vmax.f32 %v682_v44, 0.0  ;;  %v890_v53 = vmax.f32 %v810_v45, 0.0  ;;  %v685_v54 = vadd.f32 %v1556_v50, %v1778_v38  ;;  %v813_v55 = vadd.f32 %v1588_v51, %v1778_v38  ;;  %v676_v56 = vpop.f32.mrb[27].mxu0  ;;  %v804_v57 = vpop.f32.mrb[27].mxu1 }
 0x121   : > { %v856_v58 = vmax.f32 %v674_v48, 0.0  ;;  %v888_v59 = vmax.f32 %v802_v49, 0.0  ;;  %v677_v60 = vadd.f32 %v1778_v38, %v676_v56  ;;  %v805_v61 = vadd.f32 %v1778_v38, %v804_v57 }
 0x122   : > { %v1444_v62 = vpack.c.bf16 %v858_v52, %v858_v52  ;;  %v1476_v63 = vpack.c.bf16 %v890_v53, %v890_v53  ;;  %v859_v0 = vmax.f32 %v685_v54, 0.0  ;;  %v891_v1 = vmax.f32 %v813_v55, 0.0 }
 0x123   : > { %v1442_v2 = vpack.c.bf16 %v856_v58, %v856_v58  ;;  %v1474_v3 = vpack.c.bf16 %v888_v59, %v888_v59  ;;  %v857_v4 = vmax.f32 %v677_v60, 0.0  ;;  %v889_v5 = vmax.f32 %v805_v61, 0.0 }
 0x124   : > { %1179 = vst.msk [vmem:[%s1791_s6 + $0x68] sm:$0xf] %vm1152_vm2, %v1444_v62  ;;  %1211 = vst.msk [vmem:[%s1791_s6 + $0xe8] sm:$0xf] %vm1152_vm2, %v1476_v63  ;;  %v1445_v6 = vpack.c.bf16 %v859_v0, %v859_v0  ;;  %v1477_v7 = vpack.c.bf16 %v891_v1, %v891_v1 }
 0x125   : > { %1177 = vst.msk [vmem:[%s1791_s6 + $0x60] sm:$0xf] %vm1152_vm2, %v1442_v2  ;;  %1209 = vst.msk [vmem:[%s1791_s6 + $0xe0] sm:$0xf] %vm1152_vm2, %v1474_v3  ;;  %v1443_v8 = vpack.c.bf16 %v857_v4, %v857_v4  ;;  %v1475_v9 = vpack.c.bf16 %v889_v5, %v889_v5  ;;  %v1559_v10 = vpop.f32.mrb[28].mxu0  ;;  %v1591_v11 = vpop.f32.mrb[28].mxu1 }
 0x126   : > { %1180 = vst.msk [vmem:[%s1791_s6 + $0x6c] sm:$0xf] %vm1152_vm2, %v1445_v6  ;;  %1212 = vst.msk [vmem:[%s1791_s6 + $0xec] sm:$0xf] %vm1152_vm2, %v1477_v7  ;;  %v698_v12 = vadd.f32 %v1559_v10, %v1778_v38  ;;  %v826_v13 = vadd.f32 %v1591_v11, %v1778_v38  ;;  %v689_v14 = vpop.f32.mrb[29].mxu0  ;;  %v817_v15 = vpop.f32.mrb[29].mxu1 }
 0x127   : > { %1178 = vst.msk [vmem:[%s1791_s6 + $0x64] sm:$0xf] %vm1152_vm2, %v1443_v8  ;;  %1210 = vst.msk [vmem:[%s1791_s6 + $0xe4] sm:$0xf] %vm1152_vm2, %v1475_v9  ;;  %v690_v16 = vadd.f32 %v1778_v38, %v689_v14  ;;  %v818_v17 = vadd.f32 %v1778_v38, %v817_v15  ;;  %v1560_v18 = vpop.f32.mrb[30].mxu0  ;;  %v1592_v19 = vpop.f32.mrb[30].mxu1 }
 0x128   : > { %v862_v20 = vmax.f32 %v698_v12, 0.0  ;;  %v894_v21 = vmax.f32 %v826_v13, 0.0  ;;  %v701_v22 = vadd.f32 %v1560_v18, %v1778_v38  ;;  %v829_v23 = vadd.f32 %v1592_v19, %v1778_v38  ;;  %v692_v24 = vpop.f32.mrb[31].mxu0  ;;  %v820_v25 = vpop.f32.mrb[31].mxu1 }
 0x129   : > { %v860_v26 = vmax.f32 %v690_v16, 0.0  ;;  %v892_v27 = vmax.f32 %v818_v17, 0.0  ;;  %v693_v28 = vadd.f32 %v1778_v38, %v692_v24  ;;  %v821_v29 = vadd.f32 %v1778_v38, %v820_v25 }
 0x12a   : > { %v1448_v30 = vpack.c.bf16 %v862_v20, %v862_v20  ;;  %v1480_v31 = vpack.c.bf16 %v894_v21, %v894_v21  ;;  %v863_v32 = vmax.f32 %v701_v22, 0.0  ;;  %v895_v33 = vmax.f32 %v829_v23, 0.0 }
 0x12b   : > { %v1446_v34 = vpack.c.bf16 %v860_v26, %v860_v26  ;;  %v1478_v35 = vpack.c.bf16 %v892_v27, %v892_v27  ;;  %v861_v36 = vmax.f32 %v693_v28, 0.0  ;;  %v893_v37 = vmax.f32 %v821_v29, 0.0 }
 0x12c   : > { %1183 = vst.msk [vmem:[%s1791_s6 + $0x78] sm:$0xf] %vm1152_vm2, %v1448_v30  ;;  %1215 = vst.msk [vmem:[%s1791_s6 + $0xf8] sm:$0xf] %vm1152_vm2, %v1480_v31  ;;  %v1449_v39 = vpack.c.bf16 %v863_v32, %v863_v32  ;;  %v1481_v40 = vpack.c.bf16 %v895_v33, %v895_v33 }
 0x12d   : > { %1181 = vst.msk [vmem:[%s1791_s6 + $0x70] sm:$0xf] %vm1152_vm2, %v1446_v34  ;;  %1213 = vst.msk [vmem:[%s1791_s6 + $0xf0] sm:$0xf] %vm1152_vm2, %v1478_v35  ;;  %v1447_v38 = vpack.c.bf16 %v861_v36, %v861_v36  ;;  %v1479_v41 = vpack.c.bf16 %v893_v37, %v893_v37 }
 0x12e   : > { %1184 = vst.msk [vmem:[%s1791_s6 + $0x7c] sm:$0xf] %vm1152_vm2, %v1449_v39  ;;  %1216 = vst.msk [vmem:[%s1791_s6 + $0xfc] sm:$0xf] %vm1152_vm2, %v1481_v40 }
 0x12f   : > { %1182 = vst.msk [vmem:[%s1791_s6 + $0x74] sm:$0xf] %vm1152_vm2, %v1447_v38  ;;  %1214 = vst.msk [vmem:[%s1791_s6 + $0xf4] sm:$0xf] %vm1152_vm2, %v1479_v41 }
 0x130 PF: > { %s13_s12 = sadd.s32 1, %s1656_s12  }
 0x131   : > { %p10_p4 = scmp.ge.s32.totalorder %s13_s12, 7  }
 0x133   :  { %12 = sbr.rel (!%p10_p4) target bundleno = 1 (0x1), region = 62 }

// kernel: siamese_forward_pair.7
= control target key start
LH: loop header
LB: loop body
LE: loop exit
PB: predicated region body
PF: predicated region fallthrough
CT: control target
= control target key end

     0   :  { %v4150_v0 = vmov 0   ;;  %vm1426_vm0 = vcmask 523264   ;;  %s5436_s1 = inlined_call_operand.vmem [shape: bf16[576,128], index: 1, kind: input, shape index: {}]   ;;  %s5437_s0 = inlined_call_operand.vmem [shape: bf16[576,576], index: 0, kind: input, shape index: {}]   ;;  %s5438_s2 = inlined_call_operand.vmem [shape: f32[1,128], index: 2, kind: input, shape index: {}]   ;;  %s5439_s3 = inlined_call_operand.vmem [shape: bf16[576,128], index: 3, kind: output, shape index: {}]  }
   0x1   :  { %1535 = vmatprep.subr.bf16.mxu0 %v4150_v0  ;;  %3666 = vmatprep.subr.bf16.mxu1 %v4150_v0  ;;  %v3861_v1 = vld [vmem:[%s5436_s1] sm:$0xff]   ;;  %v3862_v2 = vld [vmem:[%s5436_s1 + $0x8] sm:$0xff]   ;;  %v3863_v3 = vld [vmem:[%s5436_s1 + $0x10] sm:$0xff]  }
   0x2   :  { %1536 = vmatpush1.bf16.msra.mxu0 %v3861_v1  ;;  %3682 = vmatpush1.bf16.msra.mxu1 %v3861_v1  ;;  %v3864_v4 = vld [vmem:[%s5436_s1 + $0x18] sm:$0xff]   ;;  %v3865_v5 = vld [vmem:[%s5436_s1 + $0x20] sm:$0xff]   ;;  %v3866_v7 = vld [vmem:[%s5436_s1 + $0x28] sm:$0xff]  }
   0x3   :  { %1537 = vmatprep.subr.bf16.mxu0 %v4150_v0  ;;  %3667 = vmatprep.subr.bf16.mxu1 %v4150_v0  ;;  %v3879_v6 = vld [vmem:[%s5437_s0 + $0x4] ss:$20 sps:$4 sm:$0xff]   ;;  %v3882_v8 = vld [vmem:[%s5437_s0 + $0x16c] ss:$20 sps:$4 sm:$0xff]   ;;  %v3867_v9 = vld [vmem:[%s5436_s1 + $0x30] sm:$0xff]  }
   0x4   :  { %1567 = vmatprep.mubr.bf16.mxu0 %v3879_v6  ;;  %1639 = vmatprep.mubr.bf16.mxu1 %v3882_v8  ;;  %v3868_v10 = vld [vmem:[%s5436_s1 + $0x38] sm:$0xff]   ;;  %v3869_v11 = vld [vmem:[%s5436_s1 + $0x40] sm:$0xff]   ;;  %v3870_v12 = vld [vmem:[%s5436_s1 + $0x48] sm:$0xff]  }
   0x5   :  { %v3871_v13 = vld [vmem:[%s5436_s1 + $0x50] sm:$0xff]   ;;  %v3872_v14 = vld [vmem:[%s5436_s1 + $0x58] sm:$0xff]   ;;  %v3873_v15 = vld [vmem:[%s5436_s1 + $0x60] sm:$0xff]  }
   0x6   :  { %1538 = vmatpush1.bf16.msra.mxu0 %v3862_v2  ;;  %3683 = vmatpush1.bf16.msra.mxu1 %v3862_v2  ;;  %v3874_v16 = vld [vmem:[%s5436_s1 + $0x68] sm:$0xff]   ;;  %v3875_v17 = vld [vmem:[%s5436_s1 + $0x70] sm:$0xff]   ;;  %v3876_v18 = vld [vmem:[%s5436_s1 + $0x78] sm:$0xff]  }
   0x7   :  { %1539 = vmatprep.subr.bf16.mxu0 %v4150_v0  ;;  %3668 = vmatprep.subr.bf16.mxu1 %v4150_v0  ;;  %v3884_v19 = vld [vmem:[%s5436_s1 + $0x100] sm:$0xff]   ;;  %v3880_v21 = vld [vmem:[%s5437_s0 + $0x168] ss:$20 sps:$4 sm:$0xff]   ;;  %v3892_v29 = vld [vmem:[%s5436_s1 + $0x90] sm:$0xff]  }
   0x8   :  { %v3877_v20 = vld [vmem:[%s5437_s0] ss:$20 sps:$4 sm:$0xff]   ;;  %v3937_v25 = vld [vmem:[%s5436_s1 + $0x108] sm:$0xff]   ;;  %v3891_v28 = vld [vmem:[%s5437_s0 + $0x190] ss:$20 sps:$4 sm:$0xff]  }
   0x9   :  { %v3883_v22 = vld [vmem:[%s5436_s1 + $0x80] sm:$0xff]   ;;  %v3888_v24 = vld [vmem:[%s5437_s0 + $0x194] ss:$20 sps:$4 sm:$0xff]   ;;  %v3895_v31 = vld [vmem:[%s5437_s0 + $0x1bc] ss:$20 sps:$4 sm:$0xff]  }
   0xa   :  { %1540 = vmatpush1.bf16.msra.mxu0 %v3863_v3  ;;  %3684 = vmatpush1.bf16.msra.mxu1 %v3863_v3  ;;  %v3886_v23 = vld [vmem:[%s5437_s0 + $0x2c] ss:$20 sps:$4 sm:$0xff]   ;;  %v3890_v27 = vld [vmem:[%s5437_s0 + $0x28] ss:$20 sps:$4 sm:$0xff]   ;;  %v3979_v32 = vld [vmem:[%s5436_s1 + $0x110] sm:$0xff]  }
   0xb   :  { %1541 = vmatprep.subr.bf16.mxu0 %v4150_v0  ;;  %3669 = vmatprep.subr.bf16.mxu1 %v4150_v0  ;;  %v3885_v26 = vld [vmem:[%s5436_s1 + $0x88] sm:$0xff]   ;;  %v3897_v33 = vld [vmem:[%s5436_s1 + $0x98] sm:$0xff]   ;;  %v3898_v34 = vld [vmem:[%s5437_s0 + $0x50] ss:$20 sps:$4 sm:$0xff]  }
   0xc   :  { %v3893_v30 = vld [vmem:[%s5437_s0 + $0x54] ss:$20 sps:$4 sm:$0xff]   ;;  %v3899_v35 = vld [vmem:[%s5437_s0 + $0x1b8] ss:$20 sps:$4 sm:$0xff]   ;;  %v3900_v36 = vld [vmem:[%s5436_s1 + $0xa0] sm:$0xff]  }
   0xd   :  { %v3901_v37 = vld [vmem:[%s5437_s0 + $0x7c] ss:$20 sps:$4 sm:$0xff]   ;;  %v3903_v38 = vld [vmem:[%s5437_s0 + $0x1e4] ss:$20 sps:$4 sm:$0xff]   ;;  %v3907_v39 = vld [vmem:[%s5436_s1 + $0xa8] sm:$0xff]  }
   0xe   :  { %1542 = vmatpush1.bf16.msra.mxu0 %v3864_v4  ;;  %3685 = vmatpush1.bf16.msra.mxu1 %v3864_v4  ;;  %v3905_v40 = vld [vmem:[%s5437_s0 + $0x78] ss:$20 sps:$4 sm:$0xff]   ;;  %v3906_v41 = vld [vmem:[%s5437_s0 + $0x1e0] ss:$20 sps:$4 sm:$0xff]   ;;  %v3914_v47 = vld [vmem:[%s5437_s0 + $0x208] ss:$20 sps:$4 sm:$0xff]  }
   0xf   :  { %1543 = vmatprep.subr.bf16.mxu0 %v4150_v0  ;;  %3670 = vmatprep.subr.bf16.mxu1 %v4150_v0  ;;  %v3908_v42 = vld [vmem:[%s5436_s1 + $0xb0] sm:$0xff]   ;;  %v3909_v43 = vld [vmem:[%s5437_s0 + $0xa4] ss:$20 sps:$4 sm:$0xff]   ;;  %v3911_v44 = vld [vmem:[%s5437_s0 + $0x20c] ss:$20 sps:$4 sm:$0xff]  }
  0x10   :  { %v3915_v45 = vld [vmem:[%s5436_s1 + $0xb8] sm:$0xff]   ;;  %v3913_v46 = vld [vmem:[%s5437_s0 + $0xa0] ss:$20 sps:$4 sm:$0xff]   ;;  %v3923_v52 = vld [vmem:[%s5436_s1 + $0xc8] sm:$0xff]  }
  0x11   :  { %v3916_v48 = vld [vmem:[%s5436_s1 + $0xc0] sm:$0xff]   ;;  %v3919_v50 = vld [vmem:[%s5437_s0 + $0x234] ss:$20 sps:$4 sm:$0xff]   ;;  %v4022_v51 = vld [vmem:[%s5436_s1 + $0x118] sm:$0xff]  }
  0x12   :  { %1544 = vmatpush1.bf16.msra.mxu0 %v3865_v5  ;;  %3686 = vmatpush1.bf16.msra.mxu1 %v3865_v5  ;;  %v3917_v49 = vld [vmem:[%s5437_s0 + $0xcc] ss:$20 sps:$4 sm:$0xff]   ;;  %v3921_v53 = vld [vmem:[%s5437_s0 + $0xc8] ss:$20 sps:$4 sm:$0xff]   ;;  %v3922_v54 = vld [vmem:[%s5437_s0 + $0x230] ss:$20 sps:$4 sm:$0xff]  }
  0x13   :  { %1545 = vmatprep.subr.bf16.mxu0 %v4150_v0  ;;  %3671 = vmatprep.subr.bf16.mxu1 %v4150_v0  ;;  %v3924_v55 = vld [vmem:[%s5436_s1 + $0xd0] sm:$0xff]   ;;  %v3931_v58 = vld [vmem:[%s5436_s1 + $0xd8] sm:$0xff]   ;;  %v3936_v63 = vld [vmem:[%s5436_s1 + $0xe0] sm:$0xff]  }
  0x14   :  { %v3925_v56 = vld [vmem:[%s5437_s0 + $0xf4] ss:$20 sps:$4 sm:$0xff]   ;;  %v3927_v57 = vld [vmem:[%s5437_s0 + $0x25c] ss:$20 sps:$4 sm:$0xff]   ;;  %v3930_v60 = vld [vmem:[%s5437_s0 + $0x258] ss:$20 sps:$4 sm:$0xff]  }
  0x15   :  { %v3929_v59 = vld [vmem:[%s5437_s0 + $0xf0] ss:$20 sps:$4 sm:$0xff]   ;;  %v3940_v1 = vld [vmem:[%s5436_s1 + $0xe8] sm:$0xff]   ;;  %v3939_v3 = vld [vmem:[%s5437_s0 + $0x280] ss:$20 sps:$4 sm:$0xff]  }
  0x16   :  { %1546 = vmatpush1.bf16.msra.mxu0 %v3866_v7  ;;  %3687 = vmatpush1.bf16.msra.mxu1 %v3866_v7  ;;  %v3932_v61 = vld [vmem:[%s5437_s0 + $0x11c] ss:$20 sps:$4 sm:$0xff]   ;;  %v3934_v62 = vld [vmem:[%s5437_s0 + $0x284] ss:$20 sps:$4 sm:$0xff]   ;;  %v3943_v5 = vld [vmem:[%s5437_s0 + $0x2ac] ss:$20 sps:$4 sm:$0xff]  }
  0x17   :  { %1547 = vmatprep.subr.bf16.mxu0 %v4150_v0  ;;  %3672 = vmatprep.subr.bf16.mxu1 %v4150_v0  ;;  %v3938_v2 = vld [vmem:[%s5437_s0 + $0x118] ss:$20 sps:$4 sm:$0xff]   ;;  %v3947_v6 = vld [vmem:[%s5436_s1 + $0xf0] sm:$0xff]  }
  0x18   :  { %v3941_v4 = vld [vmem:[%s5437_s0 + $0x144] ss:$20 sps:$4 sm:$0xff]   ;;  %v3945_v8 = vld [vmem:[%s5437_s0 + $0x140] ss:$20 sps:$4 sm:$0xff]  }
  0x19   :  { %v3948_v7 = vld [vmem:[%s5436_s1 + $0xf8] sm:$0xff]  }
  0x1a   :  { %1548 = vmatpush1.bf16.msra.mxu0 %v3867_v9  ;;  %3688 = vmatpush1.bf16.msra.mxu1 %v3867_v9  ;;  %v3946_v9 = vld [vmem:[%s5437_s0 + $0x2a8] ss:$20 sps:$4 sm:$0xff]  }
  0x1b   :  { %1549 = vmatprep.subr.bf16.mxu0 %v4150_v0  ;;  %3673 = vmatprep.subr.bf16.mxu1 %v4150_v0 }
  0x1e   :  { %1550 = vmatpush1.bf16.msra.mxu0 %v3868_v10  ;;  %3689 = vmatpush1.bf16.msra.mxu1 %v3868_v10  ;;  %v3949_v10 = vld [vmem:[%s5437_s0 + $0x2d4] ss:$20 sps:$4 sm:$0xff]  }
  0x1f   :  { %1551 = vmatprep.subr.bf16.mxu0 %v4150_v0  ;;  %3674 = vmatprep.subr.bf16.mxu1 %v4150_v0 }
  0x22   :  { %1552 = vmatpush1.bf16.msra.mxu0 %v3869_v11  ;;  %3690 = vmatpush1.bf16.msra.mxu1 %v3869_v11  ;;  %v3953_v11 = vld [vmem:[%s5437_s0 + $0xc] ss:$20 sps:$4 sm:$0xff]  }
  0x23   :  { %1553 = vmatprep.subr.bf16.mxu0 %v4150_v0  ;;  %3675 = vmatprep.subr.bf16.mxu1 %v4150_v0 }
  0x26   :  { %1554 = vmatpush1.bf16.msra.mxu0 %v3870_v12  ;;  %3691 = vmatpush1.bf16.msra.mxu1 %v3870_v12  ;;  %v3951_v12 = vld [vmem:[%s5437_s0 + $0x8] ss:$20 sps:$4 sm:$0xff]  }
  0x27   :  { %1555 = vmatprep.subr.bf16.mxu0 %v4150_v0  ;;  %3676 = vmatprep.subr.bf16.mxu1 %v4150_v0 }
  0x2a   :  { %1556 = vmatpush1.bf16.msra.mxu0 %v3871_v13  ;;  %3692 = vmatpush1.bf16.msra.mxu1 %v3871_v13  ;;  %v3955_v13 = vld [vmem:[%s5437_s0 + $0x2fc] ss:$20 sps:$4 sm:$0xff]  }
  0x2b   :  { %1557 = vmatprep.subr.bf16.mxu0 %v4150_v0  ;;  %3677 = vmatprep.subr.bf16.mxu1 %v4150_v0 }
  0x2e   :  { %1558 = vmatpush1.bf16.msra.mxu0 %v3872_v14  ;;  %3693 = vmatpush1.bf16.msra.mxu1 %v3872_v14  ;;  %v3957_v14 = vld [vmem:[%s5437_s0 + $0x34] ss:$20 sps:$4 sm:$0xff]  }
  0x2f   :  { %1559 = vmatprep.subr.bf16.mxu0 %v4150_v0  ;;  %3678 = vmatprep.subr.bf16.mxu1 %v4150_v0 }
  0x32   :  { %1560 = vmatpush1.bf16.msra.mxu0 %v3873_v15  ;;  %3694 = vmatpush1.bf16.msra.mxu1 %v3873_v15  ;;  %v3959_v15 = vld [vmem:[%s5437_s0 + $0x2f8] ss:$20 sps:$4 sm:$0xff]  }
  0x33   :  { %1561 = vmatprep.subr.bf16.mxu0 %v4150_v0  ;;  %3679 = vmatprep.subr.bf16.mxu1 %v4150_v0 }
  0x36   :  { %1562 = vmatpush1.bf16.msra.mxu0 %v3874_v16  ;;  %3695 = vmatpush1.bf16.msra.mxu1 %v3874_v16  ;;  %v3960_v16 = vld [vmem:[%s5437_s0 + $0x30] ss:$20 sps:$4 sm:$0xff]  }
  0x37   :  { %1563 = vmatprep.subr.bf16.mxu0 %v4150_v0  ;;  %3680 = vmatprep.subr.bf16.mxu1 %v4150_v0 }
  0x3a   :  { %1564 = vmatpush1.bf16.msra.mxu0 %v3875_v17  ;;  %3696 = vmatpush1.bf16.msra.mxu1 %v3875_v17  ;;  %v3961_v17 = vld [vmem:[%s5437_s0 + $0x324] ss:$20 sps:$4 sm:$0xff]  }
  0x3b   :  { %1565 = vmatprep.subr.bf16.mxu0 %v4150_v0  ;;  %3681 = vmatprep.subr.bf16.mxu1 %v4150_v0 }
  0x3e   :  { %1566 = vmatpush1.bf16.msra.mxu0 %v3876_v18  ;;  %3697 = vmatpush1.bf16.msra.mxu1 %v3876_v18  ;;  %v3963_v18 = vld [vmem:[%s5437_s0 + $0x5c] ss:$20 sps:$4 sm:$0xff]  }
  0x3f   :  { %1856 = vmatprep.subr.bf16.mxu0 %v4150_v0  ;;  %3586 = vmatprep.subr.bf16.mxu1 %v3884_v19 }
  0x41   :  { %1568 = vmatmul.mubr.bf16.vlgmr.msra.gmra.mrb[0].mxu0 %v3877_v20  ;;  %1640 = vmatmul.mubr.bf16.vlgmr.msra.gmra.mrb[0].mxu1 %v3880_v21  ;;  %v3966_v20 = vld [vmem:[%s5437_s0 + $0x58] ss:$20 sps:$4 sm:$0xff]  }
  0x42   :  { %1857 = vmatpush1.bf16.msra.mxu0 %v3883_v22  ;;  %3587 = vmatpush3.bf16.msra.mxu1 %v3884_v19  ;;  %v3965_v19 = vld [vmem:[%s5437_s0 + $0x320] ss:$20 sps:$4 sm:$0xff]   ;;  %v3969_v22 = vld [vmem:[%s5437_s0 + $0x84] ss:$20 sps:$4 sm:$0xff]  }
  0x43   :  { %1858 = vmatprep.subr.bf16.mxu0 %v4150_v0  ;;  %1575 = vmatprep.mubr.bf16.mxu0 %v3886_v23  ;;  %v3967_v21 = vld [vmem:[%s5437_s0 + $0x34c] ss:$20 sps:$4 sm:$0xff]   ;;  %v3971_v23 = vld [vmem:[%s5437_s0 + $0x348] ss:$20 sps:$4 sm:$0xff]  }
  0x44   :  { %1647 = vmatprep.mubr.bf16.mxu1 %v3888_v24  ;;  %3588 = vmatprep.subr.bf16.mxu1 %v3937_v25  ;;  %v3972_v24 = vld [vmem:[%s5437_s0 + $0x80] ss:$20 sps:$4 sm:$0xff]  }
  0x46   :  { %1859 = vmatpush1.bf16.msra.mxu0 %v3885_v26  ;;  %3589 = vmatpush3.bf16.msra.mxu1 %v3937_v25  ;;  %v3973_v25 = vld [vmem:[%s5437_s0 + $0x374] ss:$20 sps:$4 sm:$0xff]   ;;  %v3975_v26 = vld [vmem:[%s5437_s0 + $0xac] ss:$20 sps:$4 sm:$0xff]  }
  0x47   :  { %1860 = vmatprep.subr.bf16.mxu0 %v4150_v0  ;;  %3590 = vmatprep.subr.bf16.mxu1 %v3979_v32 }
  0x49   :  { %1576 = vmatmul.mubr.bf16.gmra.mrb[4].mxu0 %v3890_v27  ;;  %1648 = vmatmul.mubr.bf16.gmra.mrb[4].mxu1 %v3891_v28  ;;  %v3977_v27 = vld [vmem:[%s5437_s0 + $0x370] ss:$20 sps:$4 sm:$0xff]   ;;  %v3978_v28 = vld [vmem:[%s5437_s0 + $0xa8] ss:$20 sps:$4 sm:$0xff]  }
  0x4a   :  { %1861 = vmatpush1.bf16.msra.mxu0 %v3892_v29  ;;  %1583 = vmatprep.mubr.bf16.mxu0 %v3893_v30  ;;  %v3980_v29 = vld [vmem:[%s5437_s0 + $0x39c] ss:$20 sps:$4 sm:$0xff]   ;;  %v3982_v30 = vld [vmem:[%s5437_s0 + $0xd4] ss:$20 sps:$4 sm:$0xff]  }
  0x4b   :  { %1862 = vmatprep.subr.bf16.mxu0 %v4150_v0  ;;  %1655 = vmatprep.mubr.bf16.mxu1 %v3895_v31  ;;  %v3984_v31 = vld [vmem:[%s5437_s0 + $0x398] ss:$20 sps:$4 sm:$0xff]  }
  0x4c   :  { %3591 = vmatpush3.bf16.msra.mxu1 %v3979_v32  ;;  %v3985_v32 = vld [vmem:[%s5437_s0 + $0xd0] ss:$20 sps:$4 sm:$0xff]  }
  0x4d   :  { %3592 = vmatprep.subr.bf16.mxu1 %v4022_v51 }
  0x4e   :  { %1863 = vmatpush1.bf16.msra.mxu0 %v3897_v33  ;;  %v3986_v33 = vld [vmem:[%s5437_s0 + $0x3c4] ss:$20 sps:$4 sm:$0xff]  }
  0x4f   :  { %1864 = vmatprep.subr.bf16.mxu0 %v4150_v0 }
  0x50   :  { %3593 = vmatpush3.bf16.msra.mxu1 %v4022_v51  ;;  %v4014_v51 = vld [vmem:[%s5437_s0 + $0x460] ss:$20 sps:$4 sm:$0xff]  }
  0x51   :  { %1584 = vmatmul.mubr.bf16.gmra.mrb[8].mxu0 %v3898_v34  ;;  %1656 = vmatmul.mubr.bf16.gmra.mrb[8].mxu1 %v3899_v35  ;;  %v3988_v34 = vld [vmem:[%s5437_s0 + $0xfc] ss:$20 sps:$4 sm:$0xff]   ;;  %v3990_v35 = vld [vmem:[%s5437_s0 + $0x3c0] ss:$20 sps:$4 sm:$0xff]  }
  0x52   :  { %1865 = vmatpush1.bf16.msra.mxu0 %v3900_v36  ;;  %1591 = vmatprep.mubr.bf16.mxu0 %v3901_v37  ;;  %v3991_v36 = vld [vmem:[%s5437_s0 + $0xf8] ss:$20 sps:$4 sm:$0xff]  }
  0x53   :  { %1663 = vmatprep.mubr.bf16.mxu1 %v3903_v38  ;;  %1866 = vmatprep.subr.bf16.mxu0 %v4150_v0  ;;  %v3992_v37 = vld [vmem:[%s5437_s0 + $0x3ec] ss:$20 sps:$4 sm:$0xff]   ;;  %v3994_v38 = vld [vmem:[%s5437_s0 + $0x124] ss:$20 sps:$4 sm:$0xff]  }
  0x56   :  { %1867 = vmatpush1.bf16.msra.mxu0 %v3907_v39  ;;  %v3996_v39 = vld [vmem:[%s5437_s0 + $0x3e8] ss:$20 sps:$4 sm:$0xff]  }
  0x57   :  { %1868 = vmatprep.subr.bf16.mxu0 %v4150_v0 }
  0x59   :  { %1592 = vmatmul.mubr.bf16.gmra.mrb[12].mxu0 %v3905_v40  ;;  %1664 = vmatmul.mubr.bf16.gmra.mrb[12].mxu1 %v3906_v41  ;;  %v3997_v40 = vld [vmem:[%s5437_s0 + $0x120] ss:$20 sps:$4 sm:$0xff]  }
  0x5a   :  { %1869 = vmatpush1.bf16.msra.mxu0 %v3908_v42  ;;  %1599 = vmatprep.mubr.bf16.mxu0 %v3909_v43  ;;  %v3998_v41 = vld [vmem:[%s5437_s0 + $0x414] ss:$20 sps:$4 sm:$0xff]   ;;  %v4000_v42 = vld [vmem:[%s5437_s0 + $0x14c] ss:$20 sps:$4 sm:$0xff]   ;;  %v4002_v43 = vld [vmem:[%s5437_s0 + $0x410] ss:$20 sps:$4 sm:$0xff]  }
  0x5b   :  { %1671 = vmatprep.mubr.bf16.mxu1 %v3911_v44  ;;  %1870 = vmatprep.subr.bf16.mxu0 %v4150_v0  ;;  %v4003_v44 = vld [vmem:[%s5437_s0 + $0x148] ss:$20 sps:$4 sm:$0xff]  }
  0x5e   :  { %1871 = vmatpush1.bf16.msra.mxu0 %v3915_v45  ;;  %v4004_v45 = vld [vmem:[%s5437_s0 + $0x43c] ss:$20 sps:$4 sm:$0xff]  }
  0x5f   :  { %1872 = vmatprep.subr.bf16.mxu0 %v4150_v0 }
  0x61   :  { %1600 = vmatmul.mubr.bf16.gmra.mrb[16].mxu0 %v3913_v46  ;;  %1672 = vmatmul.mubr.bf16.gmra.mrb[16].mxu1 %v3914_v47  ;;  %v4006_v46 = vld [vmem:[%s5437_s0 + $0x174] ss:$20 sps:$4 sm:$0xff]   ;;  %v4008_v47 = vld [vmem:[%s5437_s0 + $0x438] ss:$20 sps:$4 sm:$0xff]  }
  0x62   :  { %1873 = vmatpush1.bf16.msra.mxu0 %v3916_v48  ;;  %1607 = vmatprep.mubr.bf16.mxu0 %v3917_v49  ;;  %v4009_v48 = vld [vmem:[%s5437_s0 + $0x170] ss:$20 sps:$4 sm:$0xff]  }
  0x63   :  { %1679 = vmatprep.mubr.bf16.mxu1 %v3919_v50  ;;  %1874 = vmatprep.subr.bf16.mxu0 %v4150_v0  ;;  %v4010_v49 = vld [vmem:[%s5437_s0 + $0x464] ss:$20 sps:$4 sm:$0xff]   ;;  %v4012_v50 = vld [vmem:[%s5437_s0 + $0x19c] ss:$20 sps:$4 sm:$0xff]  }
  0x66   :  { %1875 = vmatpush1.bf16.msra.mxu0 %v3923_v52  ;;  %v4015_v52 = vld [vmem:[%s5437_s0 + $0x198] ss:$20 sps:$4 sm:$0xff]  }
  0x67   :  { %1876 = vmatprep.subr.bf16.mxu0 %v4150_v0 }
  0x69   :  { %1608 = vmatmul.mubr.bf16.gmra.mrb[20].mxu0 %v3921_v53  ;;  %1680 = vmatmul.mubr.bf16.gmra.mrb[20].mxu1 %v3922_v54  ;;  %v4016_v53 = vld [vmem:[%s5437_s0 + $0x48c] ss:$20 sps:$4 sm:$0xff]   ;;  %v4018_v54 = vld [vmem:[%s5437_s0 + $0x1c4] ss:$20 sps:$4 sm:$0xff]  }
  0x6a   :  { %1877 = vmatpush1.bf16.msra.mxu0 %v3924_v55  ;;  %1615 = vmatprep.mubr.bf16.mxu0 %v3925_v56  ;;  %v4020_v55 = vld [vmem:[%s5437_s0 + $0x488] ss:$20 sps:$4 sm:$0xff]   ;;  %v4021_v56 = vld [vmem:[%s5437_s0 + $0x1c0] ss:$20 sps:$4 sm:$0xff]  }
  0x6b   :  { %1687 = vmatprep.mubr.bf16.mxu1 %v3927_v57  ;;  %1878 = vmatprep.subr.bf16.mxu0 %v4150_v0  ;;  %v4023_v57 = vld [vmem:[%s5437_s0 + $0x4b4] ss:$20 sps:$4 sm:$0xff]  }
  0x6e   :  { %1879 = vmatpush1.bf16.msra.mxu0 %v3931_v58  ;;  %v4025_v58 = vld [vmem:[%s5437_s0 + $0x1ec] ss:$20 sps:$4 sm:$0xff]  }
  0x6f   :  { %1880 = vmatprep.subr.bf16.mxu0 %v4150_v0 }
  0x71   :  { %1616 = vmatmul.mubr.bf16.gmra.mrb[24].mxu0 %v3929_v59  ;;  %1688 = vmatmul.mubr.bf16.gmra.mrb[24].mxu1 %v3930_v60  ;;  %v4027_v59 = vld [vmem:[%s5437_s0 + $0x4b0] ss:$20 sps:$4 sm:$0xff]   ;;  %v4028_v60 = vld [vmem:[%s5437_s0 + $0x1e8] ss:$20 sps:$4 sm:$0xff]  }
  0x72   :  { %1623 = vmatprep.mubr.bf16.mxu0 %v3932_v61  ;;  %1695 = vmatprep.mubr.bf16.mxu1 %v3934_v62  ;;  %v4029_v61 = vld [vmem:[%s5437_s0 + $0x4dc] ss:$20 sps:$4 sm:$0xff]   ;;  %v4031_v62 = vld [vmem:[%s5437_s0 + $0x214] ss:$20 sps:$4 sm:$0xff]  }
  0x73   :  { %1881 = vmatpush1.bf16.msra.mxu0 %v3936_v63  ;;  %v4033_v63 = vld [vmem:[%s5437_s0 + $0x4d8] ss:$20 sps:$4 sm:$0xff]  }
  0x74   :  { %1882 = vmatprep.subr.bf16.mxu0 %v4150_v0 }
  0x77   :  { %1883 = vmatpush1.bf16.msra.mxu0 %v3940_v1  ;;  %v4034_v1 = vld [vmem:[%s5437_s0 + $0x210] ss:$20 sps:$4 sm:$0xff]  }
  0x78   :  { %1884 = vmatprep.subr.bf16.mxu0 %v4150_v0 }
  0x79   :  { %1624 = vmatmul.mubr.bf16.gmra.mrb[28].mxu0 %v3938_v2  ;;  %1696 = vmatmul.mubr.bf16.gmra.mrb[28].mxu1 %v3939_v3  ;;  %v4035_v2 = vld [vmem:[%s5437_s0 + $0x504] ss:$20 sps:$4 sm:$0xff]   ;;  %v4037_v3 = vld [vmem:[%s5437_s0 + $0x23c] ss:$20 sps:$4 sm:$0xff]  }
  0x7a   :  { %1631 = vmatprep.mubr.bf16.mxu0 %v3941_v4  ;;  %1703 = vmatprep.mubr.bf16.mxu1 %v3943_v5  ;;  %v4039_v4 = vld [vmem:[%s5437_s0 + $0x500] ss:$20 sps:$4 sm:$0xff]   ;;  %v4040_v5 = vld [vmem:[%s5437_s0 + $0x238] ss:$20 sps:$4 sm:$0xff]  }
  0x7b   :  { %1885 = vmatpush1.bf16.msra.mxu0 %v3947_v6  ;;  %v4041_v6 = vld [vmem:[%s5437_s0 + $0x52c] ss:$20 sps:$4 sm:$0xff]  }
  0x7c   :  { %1886 = vmatprep.subr.bf16.mxu0 %v4150_v0  ;;  %v3954_v0 = vld [vmem:[%s5437_s0 + $0x2d0] ss:$20 sps:$4 sm:$0xff]  }
  0x7f   :  { %1887 = vmatpush1.bf16.msra.mxu0 %v3948_v7  ;;  %v4043_v7 = vld [vmem:[%s5437_s0 + $0x264] ss:$20 sps:$4 sm:$0xff]  }
  0x81   :  { %1632 = vmatmul.mubr.bf16.gmra.mrb[32].mxu0 %v3945_v8  ;;  %1704 = vmatmul.mubr.bf16.gmra.mrb[32].mxu1 %v3946_v9  ;;  %v4045_v8 = vld [vmem:[%s5437_s0 + $0x528] ss:$20 sps:$4 sm:$0xff]   ;;  %v4046_v9 = vld [vmem:[%s5437_s0 + $0x260] ss:$20 sps:$4 sm:$0xff]  }
  0x82   :  { %1711 = vmatprep.mubr.bf16.mxu1 %v3949_v10  ;;  %1888 = vmatprep.mubr.bf16.mxu0 %v3953_v11  ;;  %v4047_v10 = vld [vmem:[%s5437_s0 + $0x554] ss:$20 sps:$4 sm:$0xff]   ;;  %v4049_v11 = vld [vmem:[%s5437_s0 + $0x28c] ss:$20 sps:$4 sm:$0xff]  }
  0x89   :  { %1712 = vmatmul.mubr.bf16.gmra.mrb[36].mxu1 %v3954_v0  ;;  %1889 = vmatmul.mubr.bf16.vlgmr.msra.gmra.mrb[0].mxu0 %v3951_v12  ;;  %v4051_v12 = vld [vmem:[%s5437_s0 + $0x550] ss:$20 sps:$4 sm:$0xff]   ;;  %v4052_v0 = vld [vmem:[%s5437_s0 + $0x288] ss:$20 sps:$4 sm:$0xff]  }
  0x8a   :  { %1719 = vmatprep.mubr.bf16.mxu1 %v3955_v13  ;;  %1896 = vmatprep.mubr.bf16.mxu0 %v3957_v14  ;;  %v4053_v13 = vld [vmem:[%s5437_s0 + $0x57c] ss:$20 sps:$4 sm:$0xff]   ;;  %v4055_v14 = vld [vmem:[%s5437_s0 + $0x2b4] ss:$20 sps:$4 sm:$0xff]  }
  0x91   :  { %1720 = vmatmul.mubr.bf16.gmra.mrb[40].mxu1 %v3959_v15  ;;  %1897 = vmatmul.mubr.bf16.gmra.mrb[4].mxu0 %v3960_v16  ;;  %v4057_v15 = vld [vmem:[%s5437_s0 + $0x578] ss:$20 sps:$4 sm:$0xff]   ;;  %v4058_v16 = vld [vmem:[%s5437_s0 + $0x2b0] ss:$20 sps:$4 sm:$0xff]  }
  0x92   :  { %1727 = vmatprep.mubr.bf16.mxu1 %v3961_v17  ;;  %1904 = vmatprep.mubr.bf16.mxu0 %v3963_v18  ;;  %v4059_v17 = vld [vmem:[%s5437_s0 + $0x2dc] ss:$20 sps:$4 sm:$0xff]  }
  0x93   :  { %v4061_v18 = vld [vmem:[%s5437_s0 + $0x10] ss:$20 sps:$4 sm:$0xff]  }
  0x99   :  { %1728 = vmatmul.mubr.bf16.gmra.mrb[44].mxu1 %v3965_v19  ;;  %1905 = vmatmul.mubr.bf16.gmra.mrb[8].mxu0 %v3966_v20 }
  0x9a   :  { %1735 = vmatprep.mubr.bf16.mxu1 %v3967_v21  ;;  %1912 = vmatprep.mubr.bf16.mxu0 %v3969_v22  ;;  %v4062_v21 = vld [vmem:[%s5437_s0 + $0x2d8] ss:$20 sps:$4 sm:$0xff]  }
  0x9b   :  { %v4063_v22 = vld [vmem:[%s5437_s0 + $0x38] ss:$20 sps:$4 sm:$0xff]  }
  0xa1   :  { %1736 = vmatmul.mubr.bf16.gmra.mrb[48].mxu1 %v3971_v23  ;;  %1913 = vmatmul.mubr.bf16.gmra.mrb[12].mxu0 %v3972_v24  ;;  %v4064_v24 = vld [vmem:[%s5437_s0 + $0x304] ss:$20 sps:$4 sm:$0xff]  }
  0xa2   :  { %1743 = vmatprep.mubr.bf16.mxu1 %v3973_v25  ;;  %1920 = vmatprep.mubr.bf16.mxu0 %v3975_v26  ;;  %v4066_v25 = vld [vmem:[%s5437_s0 + $0x60] ss:$20 sps:$4 sm:$0xff]  }
  0xa9   :  { %1744 = vmatmul.mubr.bf16.gmra.mrb[52].mxu1 %v3977_v27  ;;  %1921 = vmatmul.mubr.bf16.gmra.mrb[16].mxu0 %v3978_v28 }
  0xaa   :  { %1751 = vmatprep.mubr.bf16.mxu1 %v3980_v29  ;;  %1928 = vmatprep.mubr.bf16.mxu0 %v3982_v30  ;;  %v4067_v29 = vld [vmem:[%s5437_s0 + $0x300] ss:$20 sps:$4 sm:$0xff]   ;;  %v4068_v30 = vld [vmem:[%s5437_s0 + $0x88] ss:$20 sps:$4 sm:$0xff]  }
  0xb1   :  { %1752 = vmatmul.mubr.bf16.gmra.mrb[56].mxu1 %v3984_v31  ;;  %1929 = vmatmul.mubr.bf16.gmra.mrb[20].mxu0 %v3985_v32  ;;  %v4069_v32 = vld [vmem:[%s5437_s0 + $0x32c] ss:$20 sps:$4 sm:$0xff]  }
  0xb2   :  { %1759 = vmatprep.mubr.bf16.mxu1 %v3986_v33  ;;  %1936 = vmatprep.mubr.bf16.mxu0 %v3988_v34  ;;  %v4071_v33 = vld [vmem:[%s5437_s0 + $0xb0] ss:$20 sps:$4 sm:$0xff]  }
  0xb9   :  { %1760 = vmatmul.mubr.bf16.gmra.mrb[60].mxu1 %v3990_v35  ;;  %1937 = vmatmul.mubr.bf16.gmra.mrb[24].mxu0 %v3991_v36 }
  0xba   :  { %1767 = vmatprep.mubr.bf16.mxu1 %v3992_v37  ;;  %1944 = vmatprep.mubr.bf16.mxu0 %v3994_v38  ;;  %v4072_v37 = vld [vmem:[%s5437_s0 + $0x328] ss:$20 sps:$4 sm:$0xff]   ;;  %v4073_v38 = vld [vmem:[%s5437_s0 + $0xd8] ss:$20 sps:$4 sm:$0xff]  }
  0xc1   :  { %1768 = vmatmul.mubr.bf16.gmra.mrb[64].mxu1 %v3996_v39  ;;  %1945 = vmatmul.mubr.bf16.gmra.mrb[28].mxu0 %v3997_v40  ;;  %v4074_v40 = vld [vmem:[%s5437_s0 + $0x354] ss:$20 sps:$4 sm:$0xff]  }
  0xc2   :  { %1775 = vmatprep.mubr.bf16.mxu1 %v3998_v41  ;;  %1952 = vmatprep.mubr.bf16.mxu0 %v4000_v42  ;;  %v4076_v41 = vld [vmem:[%s5437_s0 + $0x100] ss:$20 sps:$4 sm:$0xff]  }
  0xc9   :  { %1776 = vmatmul.mubr.bf16.gmra.mrb[68].mxu1 %v4002_v43  ;;  %1953 = vmatmul.mubr.bf16.gmra.mrb[32].mxu0 %v4003_v44 }
  0xca   :  { %1783 = vmatprep.mubr.bf16.mxu1 %v4004_v45  ;;  %1960 = vmatprep.mubr.bf16.mxu0 %v4006_v46  ;;  %v4077_v45 = vld [vmem:[%s5437_s0 + $0x350] ss:$20 sps:$4 sm:$0xff]   ;;  %v4078_v46 = vld [vmem:[%s5437_s0 + $0x128] ss:$20 sps:$4 sm:$0xff]  }
  0xd1   :  { %1784 = vmatmul.mubr.bf16.gmra.mrb[72].mxu1 %v4008_v47  ;;  %1961 = vmatmul.mubr.bf16.gmra.mrb[36].mxu0 %v4009_v48  ;;  %v4079_v48 = vld [vmem:[%s5437_s0 + $0x37c] ss:$20 sps:$4 sm:$0xff]  }
  0xd2   :  { %1791 = vmatprep.mubr.bf16.mxu1 %v4010_v49  ;;  %1968 = vmatprep.mubr.bf16.mxu0 %v4012_v50  ;;  %v4081_v49 = vld [vmem:[%s5437_s0 + $0x150] ss:$20 sps:$4 sm:$0xff]  }
  0xd9   :  { %1792 = vmatmul.mubr.bf16.gmra.mrb[76].mxu1 %v4014_v51  ;;  %1969 = vmatmul.mubr.bf16.gmra.mrb[40].mxu0 %v4015_v52 }
  0xda   :  { %1799 = vmatprep.mubr.bf16.mxu1 %v4016_v53  ;;  %1976 = vmatprep.mubr.bf16.mxu0 %v4018_v54  ;;  %v4082_v53 = vld [vmem:[%s5437_s0 + $0x378] ss:$20 sps:$4 sm:$0xff]  }
  0xdb   :  { %v4083_v54 = vld [vmem:[%s5437_s0 + $0x178] ss:$20 sps:$4 sm:$0xff]  }
  0xe1   :  { %1800 = vmatmul.mubr.bf16.gmra.mrb[80].mxu1 %v4020_v55  ;;  %1977 = vmatmul.mubr.bf16.gmra.mrb[44].mxu0 %v4021_v56  ;;  %v4084_v56 = vld [vmem:[%s5437_s0 + $0x3a4] ss:$20 sps:$4 sm:$0xff]  }
  0xe2   :  { %1807 = vmatprep.mubr.bf16.mxu1 %v4023_v57  ;;  %1984 = vmatprep.mubr.bf16.mxu0 %v4025_v58  ;;  %v4086_v57 = vld [vmem:[%s5437_s0 + $0x1a0] ss:$20 sps:$4 sm:$0xff]  }
  0xe9   :  { %1808 = vmatmul.mubr.bf16.gmra.mrb[84].mxu1 %v4027_v59  ;;  %1985 = vmatmul.mubr.bf16.gmra.mrb[48].mxu0 %v4028_v60 }
  0xea   :  { %1815 = vmatprep.mubr.bf16.mxu1 %v4029_v61  ;;  %1992 = vmatprep.mubr.bf16.mxu0 %v4031_v62  ;;  %v4087_v61 = vld [vmem:[%s5437_s0 + $0x3a0] ss:$20 sps:$4 sm:$0xff]   ;;  %v4088_v62 = vld [vmem:[%s5437_s0 + $0x1c8] ss:$20 sps:$4 sm:$0xff]  }
  0xf1   :  { %1816 = vmatmul.mubr.bf16.gmra.mrb[88].mxu1 %v4033_v63  ;;  %1993 = vmatmul.mubr.bf16.gmra.mrb[52].mxu0 %v4034_v1  ;;  %v4089_v1 = vld [vmem:[%s5437_s0 + $0x3cc] ss:$20 sps:$4 sm:$0xff]  }
  0xf2   :  { %1823 = vmatprep.mubr.bf16.mxu1 %v4035_v2  ;;  %2000 = vmatprep.mubr.bf16.mxu0 %v4037_v3  ;;  %v4091_v2 = vld [vmem:[%s5437_s0 + $0x1f0] ss:$20 sps:$4 sm:$0xff]  }
  0xf9   :  { %1824 = vmatmul.mubr.bf16.gmra.mrb[92].mxu1 %v4039_v4  ;;  %2001 = vmatmul.mubr.bf16.gmra.mrb[56].mxu0 %v4040_v5 }
  0xfa   :  { %1831 = vmatprep.mubr.bf16.mxu1 %v4041_v6  ;;  %2008 = vmatprep.mubr.bf16.mxu0 %v4043_v7  ;;  %v4092_v6 = vld [vmem:[%s5437_s0 + $0x3c8] ss:$20 sps:$4 sm:$0xff]   ;;  %v4093_v7 = vld [vmem:[%s5437_s0 + $0x218] ss:$20 sps:$4 sm:$0xff]  }
 0x101   :  { %1832 = vmatmul.mubr.bf16.gmra.mrb[96].mxu1 %v4045_v8  ;;  %2009 = vmatmul.mubr.bf16.gmra.mrb[60].mxu0 %v4046_v9  ;;  %v4094_v9 = vld [vmem:[%s5437_s0 + $0x3f4] ss:$20 sps:$4 sm:$0xff]  }
 0x102   :  { %1839 = vmatprep.mubr.bf16.mxu1 %v4047_v10  ;;  %2016 = vmatprep.mubr.bf16.mxu0 %v4049_v11  ;;  %v4096_v10 = vld [vmem:[%s5437_s0 + $0x240] ss:$20 sps:$4 sm:$0xff]  }
 0x109   :  { %1840 = vmatmul.mubr.bf16.gmra.mrb[100].mxu1 %v4051_v12  ;;  %2017 = vmatmul.mubr.bf16.gmra.mrb[64].mxu0 %v4052_v0 }
 0x10a   :  { %1847 = vmatprep.mubr.bf16.mxu1 %v4053_v13  ;;  %2024 = vmatprep.mubr.bf16.mxu0 %v4055_v14  ;;  %v4097_v13 = vld [vmem:[%s5437_s0 + $0x3f0] ss:$20 sps:$4 sm:$0xff]   ;;  %v4098_v14 = vld [vmem:[%s5437_s0 + $0x268] ss:$20 sps:$4 sm:$0xff]  }
 0x111   :  { %1848 = vmatmul.mubr.bf16.gmra.mrb[104].mxu1 %v4057_v15  ;;  %2025 = vmatmul.mubr.bf16.gmra.mrb[68].mxu0 %v4058_v16  ;;  %v4099_v16 = vld [vmem:[%s5437_s0 + $0x41c] ss:$20 sps:$4 sm:$0xff]  }
 0x112   :  { %2032 = vmatprep.mubr.bf16.mxu0 %v4059_v17  ;;  %3594 = vmatprep.mubr.msk.bf16.mxu1 %vm1426_vm0, %v4061_v18  ;;  %v4101_v17 = vld [vmem:[%s5437_s0 + $0x290] ss:$20 sps:$4 sm:$0xff]  }
 0x114   :  { %v4658_v19 = vpop.f32.mrb[0].mxu1 }
 0x115   :  { %v1643_v20 = vpop.f32.mrb[1].mxu1 }
 0x116   :  { %v4666_v23 = vpop.f32.mrb[2].mxu1 }
 0x117   :  { %v1646_v26 = vpop.f32.mrb[3].mxu1 }
 0x118   :  { %v4104_v26 = vld [vmem:[%s5437_s0 + $0x444] ss:$20 sps:$4 sm:$0xff]  }
 0x119   :  { %2033 = vmatmul.mubr.bf16.gmra.mrb[72].mxu0 %v4062_v21  ;;  %3595 = vmatmul.mubr.msk.bf16.vlgmr.msra.gmra.mrb[108].mxu1 %vm1426_vm0, %v4063_v22  ;;  %v4102_v22 = vld [vmem:[%s5437_s0 + $0x418] ss:$20 sps:$4 sm:$0xff]  }
 0x11a   :  { %2040 = vmatprep.mubr.bf16.mxu0 %v4064_v24  ;;  %3598 = vmatprep.mubr.msk.bf16.mxu1 %vm1426_vm0, %v4066_v25  ;;  %v4103_v24 = vld [vmem:[%s5437_s0 + $0x2b8] ss:$20 sps:$4 sm:$0xff]  }
 0x11c   :  { %v4676_v27 = vpop.f32.mrb[4].mxu1 }
 0x11d   :  { %v1651_v28 = vpop.f32.mrb[5].mxu1 }
 0x11e   :  { %v4684_v31 = vpop.f32.mrb[6].mxu1  ;;  %v4106_v28 = vld [vmem:[%s5437_s0 + $0x2e0] ss:$20 sps:$4 sm:$0xff]  }
 0x11f   :  { %v1654_v34 = vpop.f32.mrb[7].mxu1 }
 0x121   :  { %2041 = vmatmul.mubr.bf16.gmra.mrb[76].mxu0 %v4067_v29  ;;  %3599 = vmatmul.mubr.msk.bf16.gmra.mrb[112].mxu1 %vm1426_vm0, %v4068_v30 }
 0x122   :  { %2048 = vmatprep.mubr.bf16.mxu0 %v4069_v32  ;;  %3602 = vmatprep.mubr.msk.bf16.mxu1 %vm1426_vm0, %v4071_v33 }
 0x124   :  { %v4694_v35 = vpop.f32.mrb[8].mxu1 }
 0x125   :  { %v1659_v36 = vpop.f32.mrb[9].mxu1 }
 0x126   :  { %v4702_v39 = vpop.f32.mrb[10].mxu1  ;;  %v4107_v36 = vld [vmem:[%s5437_s0 + $0x440] ss:$20 sps:$4 sm:$0xff]  }
 0x127   :  { %v1662_v42 = vpop.f32.mrb[11].mxu1 }
 0x128   :  { %v4111_v42 = vld [vmem:[%s5437_s0 + $0x330] ss:$20 sps:$4 sm:$0xff]  }
 0x129   :  { %2049 = vmatmul.mubr.bf16.gmra.mrb[80].mxu0 %v4072_v37  ;;  %3603 = vmatmul.mubr.msk.bf16.gmra.mrb[116].mxu1 %vm1426_vm0, %v4073_v38  ;;  %v4108_v37 = vld [vmem:[%s5437_s0 + $0x308] ss:$20 sps:$4 sm:$0xff]  }
 0x12a   :  { %2056 = vmatprep.mubr.bf16.mxu0 %v4074_v40  ;;  %3606 = vmatprep.mubr.msk.bf16.mxu1 %vm1426_vm0, %v4076_v41  ;;  %v4109_v41 = vld [vmem:[%s5437_s0 + $0x46c] ss:$20 sps:$4 sm:$0xff]  }
 0x12c   :  { %v4712_v43 = vpop.f32.mrb[12].mxu1 }
 0x12d   :  { %v1667_v44 = vpop.f32.mrb[13].mxu1 }
 0x12e   :  { %v4720_v47 = vpop.f32.mrb[14].mxu1 }
 0x12f   :  { %v1670_v50 = vpop.f32.mrb[15].mxu1 }
 0x131   :  { %2057 = vmatmul.mubr.bf16.gmra.mrb[84].mxu0 %v4077_v45  ;;  %3607 = vmatmul.mubr.msk.bf16.gmra.mrb[120].mxu1 %vm1426_vm0, %v4078_v46 }
 0x132   :  { %2064 = vmatprep.mubr.bf16.mxu0 %v4079_v48  ;;  %3610 = vmatprep.mubr.msk.bf16.mxu1 %vm1426_vm0, %v4081_v49 }
 0x134   :  { %v4730_v51 = vpop.f32.mrb[16].mxu1 }
 0x135   :  { %v1675_v52 = vpop.f32.mrb[17].mxu1 }
 0x136   :  { %v4738_v55 = vpop.f32.mrb[18].mxu1  ;;  %v4112_v52 = vld [vmem:[%s5437_s0 + $0x468] ss:$20 sps:$4 sm:$0xff]  }
 0x137   :  { %v1678_v58 = vpop.f32.mrb[19].mxu1 }
 0x138   :  { %v4116_v58 = vld [vmem:[%s5437_s0 + $0x380] ss:$20 sps:$4 sm:$0xff]  }
 0x139   :  { %2065 = vmatmul.mubr.bf16.gmra.mrb[88].mxu0 %v4082_v53  ;;  %3611 = vmatmul.mubr.msk.bf16.gmra.mrb[124].mxu1 %vm1426_vm0, %v4083_v54  ;;  %v4113_v53 = vld [vmem:[%s5437_s0 + $0x358] ss:$20 sps:$4 sm:$0xff]  }
 0x13a   :  { %2072 = vmatprep.mubr.bf16.mxu0 %v4084_v56  ;;  %3614 = vmatprep.mubr.msk.bf16.mxu1 %vm1426_vm0, %v4086_v57  ;;  %v4114_v57 = vld [vmem:[%s5437_s0 + $0x494] ss:$20 sps:$4 sm:$0xff]  }
 0x13c   :  { %v4748_v59 = vpop.f32.mrb[20].mxu1 }
 0x13d   :  { %v1683_v60 = vpop.f32.mrb[21].mxu1 }
 0x13e   :  { %v4756_v63 = vpop.f32.mrb[22].mxu1 }
 0x13f   :  { %v1686_v3 = vpop.f32.mrb[23].mxu1 }
 0x141   :  { %2073 = vmatmul.mubr.bf16.gmra.mrb[92].mxu0 %v4087_v61  ;;  %3615 = vmatmul.mubr.msk.bf16.gmra.mrb[128].mxu1 %vm1426_vm0, %v4088_v62 }
 0x142   :  { %2080 = vmatprep.mubr.bf16.mxu0 %v4089_v1  ;;  %3618 = vmatprep.mubr.msk.bf16.mxu1 %vm1426_vm0, %v4091_v2 }
 0x144   :  { %v4766_v4 = vpop.f32.mrb[24].mxu1 }
 0x145   :  { %v1691_v5 = vpop.f32.mrb[25].mxu1 }
 0x146   :  { %v4774_v8 = vpop.f32.mrb[26].mxu1  ;;  %v4117_v5 = vld [vmem:[%s5437_s0 + $0x490] ss:$20 sps:$4 sm:$0xff]  }
 0x147   :  { %v1694_v11 = vpop.f32.mrb[27].mxu1 }
 0x148   :  { %v4121_v11 = vld [vmem:[%s5437_s0 + $0x3d0] ss:$20 sps:$4 sm:$0xff]  }
 0x149   :  { %2081 = vmatmul.mubr.bf16.gmra.mrb[96].mxu0 %v4092_v6  ;;  %3619 = vmatmul.mubr.msk.bf16.gmra.mrb[132].mxu1 %vm1426_vm0, %v4093_v7  ;;  %v4118_v6 = vld [vmem:[%s5437_s0 + $0x3a8] ss:$20 sps:$4 sm:$0xff]  }
 0x14a   :  { %2088 = vmatprep.mubr.bf16.mxu0 %v4094_v9  ;;  %3622 = vmatprep.mubr.msk.bf16.mxu1 %vm1426_vm0, %v4096_v10  ;;  %v4119_v10 = vld [vmem:[%s5437_s0 + $0x4bc] ss:$20 sps:$4 sm:$0xff]  }
 0x14c   :  { %v4784_v12 = vpop.f32.mrb[28].mxu1 }
 0x14d   :  { %v1699_v0 = vpop.f32.mrb[29].mxu1 }
 0x14e   :  { %v4792_v15 = vpop.f32.mrb[30].mxu1 }
 0x14f   :  { %v1702_v18 = vpop.f32.mrb[31].mxu1 }
 0x151   :  { %2089 = vmatmul.mubr.bf16.gmra.mrb[100].mxu0 %v4097_v13  ;;  %3623 = vmatmul.mubr.msk.bf16.gmra.mrb[136].mxu1 %vm1426_vm0, %v4098_v14 }
 0x152   :  { %2096 = vmatprep.mubr.bf16.mxu0 %v4099_v16  ;;  %3626 = vmatprep.mubr.msk.bf16.mxu1 %vm1426_vm0, %v4101_v17 }
 0x154   :  { %v4802_v20 = vpop.f32.mrb[32].mxu1 }
 0x155   :  { %v1707_v21 = vpop.f32.mrb[33].mxu1 }
 0x156   :  { %v4810_v25 = vpop.f32.mrb[34].mxu1  ;;  %v4122_v21 = vld [vmem:[%s5437_s0 + $0x4b8] ss:$20 sps:$4 sm:$0xff]  }
 0x157   :  { %v1710_v29 = vpop.f32.mrb[35].mxu1 }
 0x158   :  { %v4126_v29 = vld [vmem:[%s5437_s0 + $0x420] ss:$20 sps:$4 sm:$0xff]  }
 0x159   :  { %2097 = vmatmul.mubr.bf16.gmra.mrb[104].mxu0 %v4102_v22  ;;  %3627 = vmatmul.mubr.msk.bf16.gmra.mrb[140].mxu1 %vm1426_vm0, %v4103_v24  ;;  %v4123_v22 = vld [vmem:[%s5437_s0 + $0x3f8] ss:$20 sps:$4 sm:$0xff]  }
 0x15a   :  { %2104 = vmatprep.mubr.bf16.mxu0 %v4104_v26  ;;  %3630 = vmatprep.mubr.msk.bf16.mxu1 %vm1426_vm0, %v4106_v28  ;;  %v4124_v28 = vld [vmem:[%s5437_s0 + $0x4e4] ss:$20 sps:$4 sm:$0xff]  }
 0x15c   :  { %v4820_v30 = vpop.f32.mrb[36].mxu1  ;;  %v4822_v32 = vpop.f32.mrb[0].mxu0 }
 0x15d   :  { %v1715_v33 = vpop.f32.mrb[37].mxu1  ;;  %v1892_v34 = vpop.f32.mrb[1].mxu0 }
 0x15e   :  { %v4830_v38 = vpop.f32.mrb[38].mxu1  ;;  %v4832_v40 = vpop.f32.mrb[2].mxu0 }
 0x15f   :  { %v1718_v44 = vpop.f32.mrb[39].mxu1  ;;  %v1895_v45 = vpop.f32.mrb[3].mxu0 }
 0x160   :  { %v4127_v44 = vld [vmem:[%s5437_s0 + $0x4e0] ss:$20 sps:$4 sm:$0xff]   ;;  %v4128_v45 = vld [vmem:[%s5437_s0 + $0x448] ss:$20 sps:$4 sm:$0xff]  }
 0x161   :  { %2105 = vmatmul.mubr.bf16.gmra.mrb[108].mxu0 %v4107_v36  ;;  %3631 = vmatmul.mubr.msk.bf16.gmra.mrb[144].mxu1 %vm1426_vm0, %v4108_v37 }
 0x162   :  { %2112 = vmatprep.mubr.bf16.mxu0 %v4109_v41  ;;  %3634 = vmatprep.mubr.msk.bf16.mxu1 %vm1426_vm0, %v4111_v42 }
 0x164   :  { %v4842_v46 = vpop.f32.mrb[40].mxu1  ;;  %v4844_v48 = vpop.f32.mrb[4].mxu0 }
 0x165   :  { %v1723_v49 = vpop.f32.mrb[41].mxu1  ;;  %v1900_v50 = vpop.f32.mrb[5].mxu0 }
 0x166   :  { %v4852_v54 = vpop.f32.mrb[42].mxu1  ;;  %v4854_v56 = vpop.f32.mrb[6].mxu0 }
 0x167   :  { %v1726_v60 = vpop.f32.mrb[43].mxu1  ;;  %v1903_v61 = vpop.f32.mrb[7].mxu0 }
 0x169   :  { %2113 = vmatmul.mubr.bf16.gmra.mrb[112].mxu0 %v4112_v52  ;;  %3635 = vmatmul.mubr.msk.bf16.gmra.mrb[148].mxu1 %vm1426_vm0, %v4113_v53  ;;  %v4129_v52 = vld [vmem:[%s5437_s0 + $0x50c] ss:$20 sps:$4 sm:$0xff]   ;;  %v4131_v53 = vld [vmem:[%s5437_s0 + $0x470] ss:$20 sps:$4 sm:$0xff]  }
 0x16a   :  { %2120 = vmatprep.mubr.bf16.mxu0 %v4114_v57  ;;  %3638 = vmatprep.mubr.msk.bf16.mxu1 %vm1426_vm0, %v4116_v58 }
 0x16c   :  { %v4864_v62 = vpop.f32.mrb[44].mxu1  ;;  %v4866_v1 = vpop.f32.mrb[8].mxu0 }
 0x16d   :  { %v1731_v2 = vpop.f32.mrb[45].mxu1  ;;  %v1908_v3 = vpop.f32.mrb[9].mxu0 }
 0x16e   :  { %v4874_v7 = vpop.f32.mrb[46].mxu1  ;;  %v4876_v9 = vpop.f32.mrb[10].mxu0 }
 0x16f   :  { %v1734_v0 = vpop.f32.mrb[47].mxu1  ;;  %v1911_v13 = vpop.f32.mrb[11].mxu0 }
 0x170   :  { %v4134_v0 = vld [vmem:[%s5437_s0 + $0x534] ss:$20 sps:$4 sm:$0xff]  }
 0x171   :  { %2121 = vmatmul.mubr.bf16.gmra.mrb[116].mxu0 %v4117_v5  ;;  %3639 = vmatmul.mubr.msk.bf16.gmra.mrb[152].mxu1 %vm1426_vm0, %v4118_v6  ;;  %v4132_v5 = vld [vmem:[%s5437_s0 + $0x508] ss:$20 sps:$4 sm:$0xff]   ;;  %v4133_v6 = vld [vmem:[%s5437_s0 + $0x498] ss:$20 sps:$4 sm:$0xff]   ;;  %v4136_v13 = vld [vmem:[%s5437_s0 + $0x4c0] ss:$20 sps:$4 sm:$0xff]  }
 0x172   :  { %2128 = vmatprep.mubr.bf16.mxu0 %v4119_v10  ;;  %3642 = vmatprep.mubr.msk.bf16.mxu1 %vm1426_vm0, %v4121_v11 }
 0x174   :  { %v4886_v14 = vpop.f32.mrb[48].mxu1  ;;  %v4888_v16 = vpop.f32.mrb[12].mxu0 }
 0x175   :  { %v1739_v17 = vpop.f32.mrb[49].mxu1  ;;  %v1916_v18 = vpop.f32.mrb[13].mxu0 }
 0x176   :  { %v4896_v24 = vpop.f32.mrb[50].mxu1  ;;  %v4898_v26 = vpop.f32.mrb[14].mxu0 }
 0x177   :  { %v1742_v33 = vpop.f32.mrb[51].mxu1  ;;  %v1919_v34 = vpop.f32.mrb[15].mxu0 }
 0x178   :  { %v4137_v33 = vld [vmem:[%s5437_s0 + $0x530] ss:$20 sps:$4 sm:$0xff]   ;;  %v4138_v34 = vld [vmem:[%s5437_s0 + $0x4e8] ss:$20 sps:$4 sm:$0xff]  }
 0x179   :  { %2129 = vmatmul.mubr.bf16.gmra.mrb[120].mxu0 %v4122_v21  ;;  %3643 = vmatmul.mubr.msk.bf16.gmra.mrb[156].mxu1 %vm1426_vm0, %v4123_v22 }
 0x17a   :  { %2136 = vmatprep.mubr.bf16.mxu0 %v4124_v28  ;;  %3646 = vmatprep.mubr.msk.bf16.mxu1 %vm1426_vm0, %v4126_v29 }
 0x17c   :  { %v4908_v36 = vpop.f32.mrb[52].mxu1  ;;  %v4910_v37 = vpop.f32.mrb[16].mxu0 }
 0x17d   :  { %v1747_v41 = vpop.f32.mrb[53].mxu1  ;;  %v1924_v42 = vpop.f32.mrb[17].mxu0 }
 0x17e   :  { %v4918_v49 = vpop.f32.mrb[54].mxu1  ;;  %v4920_v50 = vpop.f32.mrb[18].mxu0 }
 0x17f   :  { %v1750_v57 = vpop.f32.mrb[55].mxu1  ;;  %v1927_v58 = vpop.f32.mrb[19].mxu0 }
 0x181   :  { %2137 = vmatmul.mubr.bf16.gmra.mrb[124].mxu0 %v4127_v44  ;;  %3647 = vmatmul.mubr.msk.bf16.gmra.mrb[160].mxu1 %vm1426_vm0, %v4128_v45  ;;  %v4139_v44 = vld [vmem:[%s5437_s0 + $0x55c] ss:$20 sps:$4 sm:$0xff]  }
 0x182   :  { %2144 = vmatprep.mubr.bf16.mxu0 %v4129_v52  ;;  %3650 = vmatprep.mubr.msk.bf16.mxu1 %vm1426_vm0, %v4131_v53  ;;  %v4141_v45 = vld [vmem:[%s5437_s0 + $0x510] ss:$20 sps:$4 sm:$0xff]  }
 0x184   :  { %v4930_v60 = vpop.f32.mrb[56].mxu1  ;;  %v4932_v61 = vpop.f32.mrb[20].mxu0 }
 0x185   :  { %v1755_v2 = vpop.f32.mrb[57].mxu1  ;;  %v1932_v3 = vpop.f32.mrb[21].mxu0 }
 0x186   :  { %v4940_v10 = vpop.f32.mrb[58].mxu1  ;;  %v4942_v11 = vpop.f32.mrb[22].mxu0 }
 0x187   :  { %v1758_v17 = vpop.f32.mrb[59].mxu1  ;;  %v1935_v18 = vpop.f32.mrb[23].mxu0 }
 0x188   :  { %v4144_v17 = vld [vmem:[%s5437_s0 + $0x584] ss:$20 sps:$4 sm:$0xff]   ;;  %v4146_v18 = vld [vmem:[%s5437_s0 + $0x560] ss:$20 sps:$4 sm:$0xff]  }
 0x189   :  { %2145 = vmatmul.mubr.bf16.gmra.mrb[128].mxu0 %v4132_v5  ;;  %3651 = vmatmul.mubr.msk.bf16.gmra.mrb[164].mxu1 %vm1426_vm0, %v4133_v6  ;;  %v4142_v5 = vld [vmem:[%s5437_s0 + $0x558] ss:$20 sps:$4 sm:$0xff]  }
 0x18a   :  { %2152 = vmatprep.mubr.bf16.mxu0 %v4134_v0  ;;  %3654 = vmatprep.mubr.msk.bf16.mxu1 %vm1426_vm0, %v4136_v13  ;;  %v4143_v6 = vld [vmem:[%s5437_s0 + $0x538] ss:$20 sps:$4 sm:$0xff]  }
 0x18c   :  { %v4952_v21 = vpop.f32.mrb[60].mxu1  ;;  %v4954_v22 = vpop.f32.mrb[24].mxu0 }
 0x18d   :  { %v1763_v28 = vpop.f32.mrb[61].mxu1  ;;  %v1940_v29 = vpop.f32.mrb[25].mxu0 }
 0x18e   :  { %v4962_v41 = vpop.f32.mrb[62].mxu1  ;;  %v4964_v42 = vpop.f32.mrb[26].mxu0 }
 0x18f   :  { %v1766_v52 = vpop.f32.mrb[63].mxu1  ;;  %v1943_v53 = vpop.f32.mrb[27].mxu0 }
 0x190   :  { %v4147_v52 = vld [vmem:[%s5437_s0 + $0x580] ss:$20 sps:$4 sm:$0xff]   ;;  %v4148_v53 = vld [vmem:[%s5437_s0 + $0x588] ss:$20 sps:$4 sm:$0xff]  }
 0x191   :  { %2153 = vmatmul.mubr.bf16.gmra.mrb[132].mxu0 %v4137_v33  ;;  %3655 = vmatmul.mubr.msk.bf16.gmra.mrb[168].mxu1 %vm1426_vm0, %v4138_v34 }
 0x192   :  { %2160 = vmatprep.mubr.bf16.mxu0 %v4139_v44  ;;  %3658 = vmatprep.mubr.msk.bf16.mxu1 %vm1426_vm0, %v4141_v45 }
 0x194   :  { %v4974_v57 = vpop.f32.mrb[64].mxu1  ;;  %v4976_v58 = vpop.f32.mrb[28].mxu0 }
 0x195   :  { %5440 = vst [vmem:[#allocation2_spill] sm:$0xff] %v4974_v57  ;;  %v1771_v2 = vpop.f32.mrb[65].mxu1  ;;  %v1948_v3 = vpop.f32.mrb[29].mxu0 }
 0x196   :  { %v4984_v0 = vpop.f32.mrb[66].mxu1  ;;  %v4986_v13 = vpop.f32.mrb[30].mxu0 }
 0x197   :  { %5441 = vst [vmem:[#allocation3_spill] sm:$0xff] %v4984_v0  ;;  %v1774_v28 = vpop.f32.mrb[67].mxu1  ;;  %v1951_v29 = vpop.f32.mrb[31].mxu0 }
 0x199   :  { %2161 = vmatmul.mubr.bf16.gmra.mrb[136].mxu0 %v4142_v5  ;;  %3659 = vmatmul.mubr.msk.bf16.gmra.mrb[172].mxu1 %vm1426_vm0, %v4143_v6 }
 0x19a   :  { %2168 = vmatprep.mubr.bf16.mxu0 %v4144_v17  ;;  %3662 = vmatprep.mubr.msk.bf16.mxu1 %vm1426_vm0, %v4146_v18  ;;  %v5013_v17 = vld [vmem:[%s5438_s2] ss:$0 sm:$0xff] }
 0x19b   :  { %v1642_v18 = vadd.f32 %v5013_v17, %v4658_v19  ;;  %v1650_v19 = vadd.f32 %v5013_v17, %v4676_v27  ;;  %v1658_v27 = vadd.f32 %v5013_v17, %v4694_v35  ;;  %v1666_v35 = vadd.f32 %v5013_v17, %v4712_v43 }
 0x19c   :  { %v4996_v33 = vpop.f32.mrb[68].mxu1  ;;  %v4998_v34 = vpop.f32.mrb[32].mxu0  ;;  %v1674_v43 = vadd.f32 %v5013_v17, %v4730_v51  ;;  %v1682_v51 = vadd.f32 %v5013_v17, %v4748_v59  ;;  %v1690_v59 = vadd.f32 %v5013_v17, %v4766_v4  ;;  %v1698_v4 = vadd.f32 %v5013_v17, %v4784_v12 }
 0x19d   :  { %5442 = vst [vmem:[#allocation4_spill] sm:$0xff] %v4996_v33  ;;  %v1779_v44 = vpop.f32.mrb[69].mxu1  ;;  %v1956_v45 = vpop.f32.mrb[33].mxu0  ;;  %v1706_v12 = vadd.f32 %v5013_v17, %v4802_v20  ;;  %v1714_v20 = vadd.f32 %v5013_v17, %v4820_v30  ;;  %v3699_v30 = vadd.f32 %v5013_v17, %v4832_v40 }
 0x19e   :  { %v5006_v2 = vpop.f32.mrb[70].mxu1  ;;  %v5008_v3 = vpop.f32.mrb[34].mxu0  ;;  %v1645_v44 = vadd.f32 %v5013_v17, %v4666_v23  ;;  %v1653_v23 = vadd.f32 %v5013_v17, %v4684_v31  ;;  %v1661_v31 = vadd.f32 %v5013_v17, %v4702_v39  ;;  %v1669_v39 = vadd.f32 %v5013_v17, %v4720_v47 }
 0x19f   :  { %5443 = vst [vmem:[#allocation5_spill] sm:$0xff] %v5006_v2  ;;  %v1782_v5 = vpop.f32.mrb[71].mxu1  ;;  %v1959_v6 = vpop.f32.mrb[35].mxu0  ;;  %v1677_v47 = vadd.f32 %v5013_v17, %v4738_v55  ;;  %v1685_v55 = vadd.f32 %v5013_v17, %v4756_v63  ;;  %v1693_v63 = vadd.f32 %v5013_v17, %v4774_v8  ;;  %v1701_v8 = vadd.f32 %v5013_v17, %v4792_v15 }
 0x1a0   :  { %v1709_v15 = vadd.f32 %v5013_v17, %v4810_v25  ;;  %v3698_v25 = vadd.f32 %v5013_v17, %v4822_v32 }
 0x1a1   :  { %2169 = vmatmul.mubr.bf16.gmra.mrb[140].mxu0 %v4147_v52  ;;  %3663 = vmatmul.mubr.msk.bf16.gmra.mrb[176].mxu1 %vm1426_vm0, %v4148_v53 }
 0x1a4   :  { %v5018_v28 = vpop.f32.mrb[72].mxu1  ;;  %v1962_v29 = vpop.f32.mrb[36].mxu0 }
 0x1a5   :  { %5444 = vst [vmem:[#allocation6_spill] sm:$0xff] %v5018_v28  ;;  %v5022_v45 = vadd.f32 %v1962_v29, %v1642_v18  ;;  %v1787_v5 = vpop.f32.mrb[73].mxu1  ;;  %v1964_v6 = vpop.f32.mrb[37].mxu0 }
 0x1a6   :  { %v5024_v2 = vpop.f32.mrb[74].mxu1  ;;  %v1965_v33 = vpop.f32.mrb[38].mxu0 }
 0x1a7   :  { %5445 = vst [vmem:[#allocation7_spill] sm:$0xff] %v5024_v2  ;;  %v5026_v0 = vadd.f32 %v1965_v33, %v1645_v44  ;;  %v1790_v52 = vpop.f32.mrb[75].mxu1  ;;  %v1967_v53 = vpop.f32.mrb[39].mxu0 }
 0x1ac   :  { %v5030_v57 = vpop.f32.mrb[76].mxu1  ;;  %v1970_v28 = vpop.f32.mrb[40].mxu0 }
 0x1ad   :  { %5446 = vst [vmem:[#allocation8_spill] sm:$0xff] %v5030_v57  ;;  %v5034_v18 = vadd.f32 %v1970_v28, %v1650_v19  ;;  %v1795_v29 = vpop.f32.mrb[77].mxu1  ;;  %v1972_v5 = vpop.f32.mrb[41].mxu0 }
 0x1ae   :  { %v5036_v6 = vpop.f32.mrb[78].mxu1  ;;  %v1973_v2 = vpop.f32.mrb[42].mxu0 }
 0x1af   :  { %5447 = vst [vmem:[#allocation9_spill] sm:$0xff] %v5036_v6  ;;  %v5038_v33 = vadd.f32 %v1973_v2, %v1653_v23  ;;  %v1798_v44 = vpop.f32.mrb[79].mxu1  ;;  %v1975_v52 = vpop.f32.mrb[43].mxu0 }
 0x1b4   :  { %v5042_v53 = vpop.f32.mrb[80].mxu1  ;;  %v1978_v57 = vpop.f32.mrb[44].mxu0 }
 0x1b5   :  { %5448 = vst [vmem:[#allocation10_spill] sm:$0xff] %v5042_v53  ;;  %v5046_v28 = vadd.f32 %v1978_v57, %v1658_v27  ;;  %v1803_v19 = vpop.f32.mrb[81].mxu1  ;;  %v1980_v29 = vpop.f32.mrb[45].mxu0 }
 0x1b6   :  { %v5048_v5 = vpop.f32.mrb[82].mxu1  ;;  %v1981_v6 = vpop.f32.mrb[46].mxu0 }
 0x1b7   :  { %5449 = vst [vmem:[#allocation11_spill] sm:$0xff] %v5048_v5  ;;  %v5050_v2 = vadd.f32 %v1981_v6, %v1661_v31  ;;  %v1806_v23 = vpop.f32.mrb[83].mxu1  ;;  %v1983_v44 = vpop.f32.mrb[47].mxu0 }
 0x1bc   :  { %v5054_v52 = vpop.f32.mrb[84].mxu1  ;;  %v1986_v53 = vpop.f32.mrb[48].mxu0 }
 0x1bd   :  { %5450 = vst [vmem:[#allocation12_spill] sm:$0xff] %v5054_v52  ;;  %v5058_v57 = vadd.f32 %v1986_v53, %v1666_v35  ;;  %v1811_v27 = vpop.f32.mrb[85].mxu1  ;;  %v1988_v19 = vpop.f32.mrb[49].mxu0 }
 0x1be   :  { %v5060_v29 = vpop.f32.mrb[86].mxu1  ;;  %v1989_v5 = vpop.f32.mrb[50].mxu0 }
 0x1bf   :  { %5451 = vst [vmem:[#allocation13_spill] sm:$0xff] %v5060_v29  ;;  %v5062_v6 = vadd.f32 %v1989_v5, %v1669_v39  ;;  %v1814_v31 = vpop.f32.mrb[87].mxu1  ;;  %v1991_v23 = vpop.f32.mrb[51].mxu0 }
 0x1c4   :  { %v5066_v44 = vpop.f32.mrb[88].mxu1  ;;  %v1994_v52 = vpop.f32.mrb[52].mxu0 }
 0x1c5   :  { %5452 = vst [vmem:[#allocation14_spill] sm:$0xff] %v5066_v44  ;;  %v5070_v53 = vadd.f32 %v1994_v52, %v1674_v43  ;;  %v1819_v35 = vpop.f32.mrb[89].mxu1  ;;  %v1996_v27 = vpop.f32.mrb[53].mxu0 }
 0x1c6   :  { %v5072_v19 = vpop.f32.mrb[90].mxu1  ;;  %v1997_v29 = vpop.f32.mrb[54].mxu0 }
 0x1c7   :  { %5453 = vst [vmem:[#allocation15_spill] sm:$0xff] %v5072_v19  ;;  %v5074_v5 = vadd.f32 %v1997_v29, %v1677_v47  ;;  %v1822_v39 = vpop.f32.mrb[91].mxu1  ;;  %v1999_v31 = vpop.f32.mrb[55].mxu0 }
 0x1cc   :  { %v5078_v23 = vpop.f32.mrb[92].mxu1  ;;  %v2002_v44 = vpop.f32.mrb[56].mxu0 }
 0x1cd   :  { %5454 = vst [vmem:[#allocation16_spill] sm:$0xff] %v5078_v23  ;;  %v5082_v52 = vadd.f32 %v2002_v44, %v1682_v51  ;;  %v1827_v43 = vpop.f32.mrb[93].mxu1  ;;  %v2004_v35 = vpop.f32.mrb[57].mxu0 }
 0x1ce   :  { %v5084_v27 = vpop.f32.mrb[94].mxu1  ;;  %v2005_v19 = vpop.f32.mrb[58].mxu0 }
 0x1cf   :  { %5455 = vst [vmem:[#allocation17_spill] sm:$0xff] %v5084_v27  ;;  %v5086_v29 = vadd.f32 %v2005_v19, %v1685_v55  ;;  %v1830_v47 = vpop.f32.mrb[95].mxu1  ;;  %v2007_v39 = vpop.f32.mrb[59].mxu0 }
 0x1d1   :  { %5456 = vst [vmem:[#allocation18_spill] sm:$0xff] %v5086_v29 }
 0x1d4   :  { %v5090_v31 = vpop.f32.mrb[96].mxu1  ;;  %v2010_v23 = vpop.f32.mrb[60].mxu0 }
 0x1d5   :  { %5457 = vst [vmem:[#allocation19_spill] sm:$0xff] %v5090_v31  ;;  %v5094_v44 = vadd.f32 %v2010_v23, %v1690_v59  ;;  %v1835_v51 = vpop.f32.mrb[97].mxu1  ;;  %v2012_v43 = vpop.f32.mrb[61].mxu0 }
 0x1d6   :  { %v5096_v35 = vpop.f32.mrb[98].mxu1  ;;  %v2013_v27 = vpop.f32.mrb[62].mxu0 }
 0x1d7   :  { %5458 = vst [vmem:[#allocation20_spill] sm:$0xff] %v5096_v35  ;;  %v5098_v19 = vadd.f32 %v2013_v27, %v1693_v63  ;;  %v1838_v55 = vpop.f32.mrb[99].mxu1  ;;  %v2015_v47 = vpop.f32.mrb[63].mxu0 }
 0x1dc   :  { %v5102_v39 = vpop.f32.mrb[100].mxu1  ;;  %v2018_v31 = vpop.f32.mrb[64].mxu0 }
 0x1dd   :  { %5459 = vst [vmem:[#allocation21_spill] sm:$0xff] %v5102_v39  ;;  %v5106_v23 = vadd.f32 %v2018_v31, %v1698_v4  ;;  %v1843_v59 = vpop.f32.mrb[101].mxu1  ;;  %v2020_v51 = vpop.f32.mrb[65].mxu0 }
 0x1de   :  { %v5108_v43 = vpop.f32.mrb[102].mxu1  ;;  %v2021_v35 = vpop.f32.mrb[66].mxu0 }
 0x1df   :  { %5460 = vst [vmem:[#allocation22_spill] sm:$0xff] %v5106_v23  ;;  %5461 = vst [vmem:[#allocation23_spill] sm:$0xff] %v5108_v43  ;;  %v5110_v27 = vadd.f32 %v2021_v35, %v1701_v8  ;;  %v1846_v63 = vpop.f32.mrb[103].mxu1  ;;  %v2023_v55 = vpop.f32.mrb[67].mxu0 }
 0x1e0   :  { %v3700_v55 = vadd.f32 %v5013_v17, %v4844_v48 }
 0x1e1   :  { %5462 = vst [vmem:[#allocation24_spill] sm:$0xff] %v5110_v27 }
 0x1e4   :  { %v5114_v47 = vpop.f32.mrb[104].mxu1  ;;  %v2026_v39 = vpop.f32.mrb[68].mxu0 }
 0x1e5   :  { %5463 = vst [vmem:[#allocation25_spill] sm:$0xff] %v5114_v47  ;;  %v5118_v31 = vadd.f32 %v2026_v39, %v1706_v12  ;;  %v1851_v4 = vpop.f32.mrb[105].mxu1  ;;  %v2028_v59 = vpop.f32.mrb[69].mxu0 }
 0x1e6   :  { %v5120_v51 = vpop.f32.mrb[106].mxu1  ;;  %v2029_v43 = vpop.f32.mrb[70].mxu0  ;;  %v1717_v4 = vadd.f32 %v5013_v17, %v4830_v38 }
 0x1e7   :  { %5464 = vst [vmem:[#allocation26_spill] sm:$0xff] %v5118_v31  ;;  %5465 = vst [vmem:[#allocation27_spill] sm:$0xff] %v5120_v51  ;;  %v5122_v35 = vadd.f32 %v2029_v43, %v1709_v15  ;;  %v1854_v8 = vpop.f32.mrb[107].mxu1  ;;  %v2031_v63 = vpop.f32.mrb[71].mxu0  ;;  %v3701_v43 = vadd.f32 %v5013_v17, %v4854_v56 }
 0x1e9   :  { %5466 = vst [vmem:[#allocation28_spill] sm:$0xff] %v5122_v35 }
 0x1ec   :  { %v2034_v39 = vpop.f32.mrb[72].mxu0  ;;  %v3596_v12 = vpop.f32.mrb[108].mxu1 }
 0x1ed   :  { %v5134_v15 = vadd.f32 %v2034_v39, %v1714_v20  ;;  %v2220_v59 = vadd.f32 %v3700_v55, %v3596_v12  ;;  %v2036_v8 = vpop.f32.mrb[73].mxu0  ;;  %v2211_v63 = vpop.f32.mrb[109].mxu1  ;;  %v1722_v55 = vadd.f32 %v5013_v17, %v4842_v46  ;;  %v3704_v39 = vadd.f32 %v5013_v17, %v4888_v16 }
 0x1ee   :  { %v2212_v48 = vadd.f32 %v3698_v25, %v2211_v63  ;;  %v2037_v51 = vpop.f32.mrb[74].mxu0  ;;  %v3597_v47 = vpop.f32.mrb[110].mxu1  ;;  %v3702_v25 = vadd.f32 %v5013_v17, %v4866_v1  ;;  %v3703_v1 = vadd.f32 %v5013_v17, %v4876_v9  ;;  %v1730_v9 = vadd.f32 %v5013_v17, %v4864_v62 }
 0x1ef   :  { %v5138_v32 = vadd.f32 %v2037_v51, %v1717_v4  ;;  %v2223_v27 = vadd.f32 %v3701_v43, %v3597_v47  ;;  %v2039_v35 = vpop.f32.mrb[75].mxu0  ;;  %v2214_v23 = vpop.f32.mrb[111].mxu1  ;;  %v2500_v31 = vmax.f32 %v2220_v59, 0.0 }
 0x1f0   :  { %v2215_v38 = vadd.f32 %v3699_v30, %v2214_v23  ;;  %v2498_v56 = vmax.f32 %v2212_v48, 0.0  ;;  %v1725_v23 = vadd.f32 %v5013_v17, %v4852_v54 }
 0x1f1   :  { %v2501_v29 = vmax.f32 %v2223_v27, 0.0  ;;  %v3705_v27 = vadd.f32 %v5013_v17, %v4898_v26 }
 0x1f2   :  { %v2499_v20 = vmax.f32 %v2215_v38, 0.0 }
 0x1f3   :  { %v3339_v40 = vpack.c.bf16 %v2501_v29, %v2500_v31 }
 0x1f4   :  { %v3334_v51 = vpack.c.bf16 %v2499_v20, %v2498_v56  ;;  %v2042_v12 = vpop.f32.mrb[76].mxu0  ;;  %v3600_v47 = vpop.f32.mrb[112].mxu1  ;;  %v3708_v20 = vadd.f32 %v5013_v17, %v4932_v61 }
 0x1f5   :  { %3511 = vst [vmem:[%s5439_s3 + $0x8] sm:$0xff] %v3339_v40   ;;  %v5153_v46 = vadd.f32 %v2042_v12, %v1722_v55  ;;  %v2236_v16 = vadd.f32 %v3704_v39, %v3600_v47  ;;  %v2044_v29 = vpop.f32.mrb[77].mxu0  ;;  %v2227_v31 = vpop.f32.mrb[113].mxu1  ;;  %v3706_v39 = vadd.f32 %v5013_v17, %v4910_v37  ;;  %v1733_v12 = vadd.f32 %v5013_v17, %v4874_v7 }
 0x1f6   :  { %3335 = vst [vmem:[%s5439_s3] sm:$0xff] %v3334_v51   ;;  %v2228_v54 = vadd.f32 %v3702_v25, %v2227_v31  ;;  %v2045_v35 = vpop.f32.mrb[78].mxu0  ;;  %v3601_v4 = vpop.f32.mrb[114].mxu1  ;;  %v3709_v47 = vadd.f32 %v5013_v17, %v4942_v11  ;;  %v3707_v37 = vadd.f32 %v5013_v17, %v4920_v50  ;;  %v1738_v50 = vadd.f32 %v5013_v17, %v4886_v14 }
 0x1f7   :  { %v5160_v26 = vadd.f32 %v2045_v35, %v1725_v23  ;;  %v2239_v43 = vadd.f32 %v3705_v27, %v3601_v4  ;;  %v2047_v59 = vpop.f32.mrb[79].mxu0  ;;  %v2230_v8 = vpop.f32.mrb[115].mxu1  ;;  %v2504_v30 = vmax.f32 %v2236_v16, 0.0 }
 0x1f8   :  { %v2231_v63 = vadd.f32 %v3703_v1, %v2230_v8  ;;  %v2502_v38 = vmax.f32 %v2228_v54, 0.0 }
 0x1f9   :  { %v2505_v48 = vmax.f32 %v2239_v43, 0.0 }
 0x1fa   :  { %v2503_v56 = vmax.f32 %v2231_v63, 0.0  ;;  %v3712_v63 = vadd.f32 %v5013_v17, %v4976_v58 }
 0x1fb   :  { %v3349_v55 = vpack.c.bf16 %v2505_v48, %v2504_v30  ;;  %v3710_v48 = vadd.f32 %v5013_v17, %v4954_v22  ;;  %v3711_v22 = vadd.f32 %v5013_v17, %v4964_v42  ;;  %v1746_v42 = vadd.f32 %v5013_v17, %v4908_v36 }
 0x1fc   :  { %v3344_v40 = vpack.c.bf16 %v2503_v56, %v2502_v38  ;;  %v2050_v25 = vpop.f32.mrb[80].mxu0  ;;  %v3604_v51 = vpop.f32.mrb[116].mxu1 }
 0x1fd   :  { %3513 = vst [vmem:[%s5439_s3 + $0x18] sm:$0xff] %v3349_v55   ;;  %v5175_v62 = vadd.f32 %v2050_v25, %v1730_v9  ;;  %v2252_v61 = vadd.f32 %v3708_v20, %v3604_v51  ;;  %v2052_v23 = vpop.f32.mrb[81].mxu0  ;;  %v2243_v27 = vpop.f32.mrb[117].mxu1  ;;  %v1741_v20 = vadd.f32 %v5013_v17, %v4896_v24  ;;  %v3713_v55 = vadd.f32 %v5013_v17, %v4986_v13 }
 0x1fe   :  { %3512 = vst [vmem:[%s5439_s3 + $0x10] sm:$0xff] %v3344_v40   ;;  %v2244_v7 = vadd.f32 %v3706_v39, %v2243_v27  ;;  %v2053_v16 = vpop.f32.mrb[82].mxu0  ;;  %v3605_v29 = vpop.f32.mrb[118].mxu1 }
 0x1ff   :  { %v5182_v11 = vadd.f32 %v2053_v16, %v1733_v12  ;;  %v2255_v31 = vadd.f32 %v3709_v47, %v3605_v29  ;;  %v2055_v1 = vpop.f32.mrb[83].mxu0  ;;  %v2246_v54 = vpop.f32.mrb[119].mxu1  ;;  %v2508_v4 = vmax.f32 %v2252_v61, 0.0 }
 0x200   :  { %v2247_v35 = vadd.f32 %v3707_v37, %v2246_v54  ;;  %v2506_v59 = vmax.f32 %v2244_v7, 0.0 }
 0x201   :  { %v2509_v43 = vmax.f32 %v2255_v31, 0.0  ;;  %v3714_v31 = vadd.f32 %v5013_v17, %v4998_v34 }
 0x202   :  { %v2507_v8 = vmax.f32 %v2247_v35, 0.0 }
 0x203   :  { %v3359_v30 = vpack.c.bf16 %v2509_v43, %v2508_v4  ;;  %v1749_v4 = vadd.f32 %v5013_v17, %v4918_v49 }
 0x204   :  { %v3354_v38 = vpack.c.bf16 %v2507_v8, %v2506_v59  ;;  %v2058_v56 = vpop.f32.mrb[84].mxu0  ;;  %v3608_v9 = vpop.f32.mrb[120].mxu1 }
 0x205   :  { %3515 = vst [vmem:[%s5439_s3 + $0x28] sm:$0xff] %v3359_v30   ;;  %v5197_v14 = vadd.f32 %v2058_v56, %v1738_v50  ;;  %v2268_v58 = vadd.f32 %v3712_v63, %v3608_v9  ;;  %v2060_v39 = vpop.f32.mrb[85].mxu0  ;;  %v2259_v40 = vpop.f32.mrb[121].mxu1  ;;  %v3715_v50 = vadd.f32 %v5013_v17, %v5008_v3  ;;  %v1754_v3 = vadd.f32 %v5013_v17, %v4930_v60 }
 0x206   :  { %3514 = vst [vmem:[%s5439_s3 + $0x20] sm:$0xff] %v3354_v38   ;;  %v2260_v24 = vadd.f32 %v3710_v48, %v2259_v40  ;;  %v2061_v25 = vpop.f32.mrb[86].mxu0  ;;  %v3609_v51 = vpop.f32.mrb[122].mxu1 }
 0x207   :  { %v5204_v13 = vadd.f32 %v2061_v25, %v1741_v20  ;;  %v2271_v12 = vadd.f32 %v3713_v55, %v3609_v51  ;;  %v2063_v47 = vpop.f32.mrb[87].mxu0  ;;  %v2262_v61 = vpop.f32.mrb[123].mxu1  ;;  %v2512_v27 = vmax.f32 %v2268_v58, 0.0  ;;  %v1757_v25 = vadd.f32 %v5013_v17, %v4940_v10 }
 0x208   :  { %v2263_v23 = vadd.f32 %v3711_v22, %v2262_v61  ;;  %v2510_v7 = vmax.f32 %v2260_v24, 0.0 }
 0x209   :  { %v2513_v37 = vmax.f32 %v2271_v12, 0.0 }
 0x20a   :  { %v2511_v16 = vmax.f32 %v2263_v23, 0.0 }
 0x20b   :  { %v3369_v29 = vpack.c.bf16 %v2513_v37, %v2512_v27 }
 0x20c   :  { %v3364_v1 = vpack.c.bf16 %v2511_v16, %v2510_v7  ;;  %v2066_v54 = vpop.f32.mrb[88].mxu0  ;;  %v3612_v35 = vpop.f32.mrb[124].mxu1 }
 0x20d   :  { %3517 = vst [vmem:[%s5439_s3 + $0x38] sm:$0xff] %v3369_v29   ;;  %v5215_v43 = vadd.f32 %v2066_v54, %v1746_v42  ;;  %v2284_v59 = vadd.f32 %v3612_v35, %v5022_v45  ;;  %v2068_v8 = vpop.f32.mrb[89].mxu0  ;;  %v2275_v36 = vpop.f32.mrb[125].mxu1 }
 0x20e   :  { %3516 = vst [vmem:[%s5439_s3 + $0x30] sm:$0xff] %v3364_v1   ;;  %v2276_v34 = vadd.f32 %v3714_v31, %v2275_v36  ;;  %v2069_v63 = vpop.f32.mrb[90].mxu0  ;;  %v3613_v49 = vpop.f32.mrb[126].mxu1  ;;  %v1762_v1 = vadd.f32 %v5013_v17, %v4952_v21 }
 0x20f   :  { %v5223_v30 = vadd.f32 %v2069_v63, %v1749_v4  ;;  %v2287_v48 = vadd.f32 %v3613_v49, %v5026_v0  ;;  %v2071_v38 = vpop.f32.mrb[91].mxu0  ;;  %v2278_v56 = vpop.f32.mrb[127].mxu1  ;;  %v2516_v45 = vmax.f32 %v2284_v59, 0.0  ;;  %v1765_v59 = vadd.f32 %v5013_v17, %v4962_v41 }
 0x210   :  { %v2279_v9 = vadd.f32 %v3715_v50, %v2278_v56  ;;  %v2514_v55 = vmax.f32 %v2276_v34, 0.0 }
 0x211   :  { %v2517_v20 = vmax.f32 %v2287_v48, 0.0 }
 0x212   :  { %v2515_v58 = vmax.f32 %v2279_v9, 0.0 }
 0x213   :  { %v3379_v39 = vpack.c.bf16 %v2517_v20, %v2516_v45  ;;  %v5467_v20 = vld [vmem:[#allocation2_spill] sm:$0xff] }
 0x214   :  { %v3374_v40 = vpack.c.bf16 %v2515_v58, %v2514_v55  ;;  %v2074_v22 = vpop.f32.mrb[92].mxu0  ;;  %v3616_v24 = vpop.f32.mrb[128].mxu1  ;;  %v1770_v55 = vadd.f32 %v5013_v17, %v5467_v20 }
 0x215   :  { %3519 = vst [vmem:[%s5439_s3 + $0x48] sm:$0xff] %v3379_v39   ;;  %v5233_v0 = vadd.f32 %v2074_v22, %v1754_v3  ;;  %v2300_v51 = vadd.f32 %v3616_v24, %v5046_v28  ;;  %v2076_v12 = vpop.f32.mrb[93].mxu0  ;;  %v2291_v47 = vpop.f32.mrb[129].mxu1 }
 0x216   :  { %3518 = vst [vmem:[%s5439_s3 + $0x40] sm:$0xff] %v3374_v40   ;;  %v2292_v60 = vadd.f32 %v2291_v47, %v5034_v18  ;;  %v2077_v61 = vpop.f32.mrb[94].mxu0  ;;  %v3617_v23 = vpop.f32.mrb[130].mxu1  ;;  %v5468_v40 = vld [vmem:[#allocation3_spill] sm:$0xff] }
 0x217   :  { %v5240_v27 = vadd.f32 %v2077_v61, %v1757_v25  ;;  %v2303_v10 = vadd.f32 %v3617_v23, %v5050_v2  ;;  %v2079_v37 = vpop.f32.mrb[95].mxu0  ;;  %v2294_v7 = vpop.f32.mrb[131].mxu1  ;;  %v2520_v42 = vmax.f32 %v2300_v51, 0.0  ;;  %v1773_v22 = vadd.f32 %v5013_v17, %v5468_v40 }
 0x218   :  { %v2295_v16 = vadd.f32 %v2294_v7, %v5038_v33  ;;  %v2518_v29 = vmax.f32 %v2292_v60, 0.0  ;;  %v5469_v37 = vld [vmem:[#allocation18_spill] sm:$0xff] }
 0x219   :  { %v2521_v28 = vmax.f32 %v2303_v10, 0.0 }
 0x21a   :  { %v2519_v31 = vmax.f32 %v2295_v16, 0.0 }
 0x21b   :  { %v3389_v54 = vpack.c.bf16 %v2521_v28, %v2520_v42 }
 0x21c   :  { %v3384_v35 = vpack.c.bf16 %v2519_v31, %v2518_v29  ;;  %v2082_v18 = vpop.f32.mrb[96].mxu0  ;;  %v3620_v4 = vpop.f32.mrb[132].mxu1  ;;  %v5470_v29 = vld [vmem:[#allocation4_spill] sm:$0xff] }
 0x21d   :  { %3521 = vst [vmem:[%s5439_s3 + $0x58] sm:$0xff] %v3389_v54   ;;  %v5251_v2 = vadd.f32 %v2082_v18, %v1762_v1  ;;  %v2316_v33 = vadd.f32 %v3620_v4, %v5070_v53  ;;  %v2084_v8 = vpop.f32.mrb[97].mxu0  ;;  %v2307_v36 = vpop.f32.mrb[133].mxu1  ;;  %v1778_v31 = vadd.f32 %v5013_v17, %v5470_v29  ;;  %v5471_v18 = vld [vmem:[#allocation5_spill] sm:$0xff] }
 0x21e   :  { %3520 = vst [vmem:[%s5439_s3 + $0x50] sm:$0xff] %v3384_v35   ;;  %v2308_v21 = vadd.f32 %v2307_v36, %v5058_v57  ;;  %v2085_v50 = vpop.f32.mrb[98].mxu0  ;;  %v3621_v34 = vpop.f32.mrb[134].mxu1  ;;  %v1781_v4 = vadd.f32 %v5013_v17, %v5471_v18 }
 0x21f   :  { %v5258_v63 = vadd.f32 %v2085_v50, %v1765_v59  ;;  %v2319_v41 = vadd.f32 %v3621_v34, %v5074_v5  ;;  %v2087_v49 = vpop.f32.mrb[99].mxu0  ;;  %v2310_v48 = vpop.f32.mrb[135].mxu1  ;;  %v2524_v56 = vmax.f32 %v2316_v33, 0.0  ;;  %v5472_v59 = vld [vmem:[#allocation26_spill] sm:$0xff] }
 0x220   :  { %v2311_v38 = vadd.f32 %v2310_v48, %v5062_v6  ;;  %v2522_v9 = vmax.f32 %v2308_v21, 0.0  ;;  %v5473_v21 = vld [vmem:[#allocation22_spill] sm:$0xff]  ;;  %v5474_v48 = vld [vmem:[#allocation28_spill] sm:$0xff] }
 0x221   :  { %v2525_v53 = vmax.f32 %v2319_v41, 0.0 }
 0x222   :  { %v2523_v45 = vmax.f32 %v2311_v38, 0.0 }
 0x223   :  { %v3399_v58 = vpack.c.bf16 %v2525_v53, %v2524_v56 }
 0x224   :  { %v3394_v3 = vpack.c.bf16 %v2523_v45, %v2522_v9  ;;  %v2090_v57 = vpop.f32.mrb[100].mxu0  ;;  %v3624_v39 = vpop.f32.mrb[136].mxu1  ;;  %v5475_v9 = vld [vmem:[#allocation24_spill] sm:$0xff] }
 0x225   :  { %3523 = vst [vmem:[%s5439_s3 + $0x68] sm:$0xff] %v3399_v58   ;;  %v5269_v5 = vadd.f32 %v2090_v57, %v1770_v55  ;;  %v2332_v6 = vadd.f32 %v3624_v39, %v5094_v44  ;;  %v2092_v24 = vpop.f32.mrb[101].mxu0  ;;  %v2323_v25 = vpop.f32.mrb[137].mxu1  ;;  %v5476_v57 = vld [vmem:[#allocation6_spill] sm:$0xff] }
 0x226   :  { %3522 = vst [vmem:[%s5439_s3 + $0x60] sm:$0xff] %v3394_v3   ;;  %v2324_v51 = vadd.f32 %v2323_v25, %v5082_v52  ;;  %v2093_v12 = vpop.f32.mrb[102].mxu0  ;;  %v3625_v47 = vpop.f32.mrb[138].mxu1  ;;  %v1786_v39 = vadd.f32 %v5013_v17, %v5476_v57  ;;  %v5477_v25 = vld [vmem:[#allocation7_spill] sm:$0xff] }
 0x227   :  { %v5276_v60 = vadd.f32 %v2093_v12, %v1773_v22  ;;  %v2335_v61 = vadd.f32 %v3625_v47, %v5098_v19  ;;  %v2095_v23 = vpop.f32.mrb[103].mxu0  ;;  %v2326_v10 = vpop.f32.mrb[139].mxu1  ;;  %v2528_v16 = vmax.f32 %v2332_v6, 0.0 }
 0x228   :  { %v2327_v7 = vadd.f32 %v2326_v10, %v5469_v37  ;;  %v2526_v42 = vmax.f32 %v2324_v51, 0.0  ;;  %v1789_v51 = vadd.f32 %v5013_v17, %v5477_v25 }
 0x229   :  { %v2529_v44 = vmax.f32 %v2335_v61, 0.0 }
 0x22a   :  { %v2527_v28 = vmax.f32 %v2327_v7, 0.0 }
 0x22b   :  { %v3409_v1 = vpack.c.bf16 %v2529_v44, %v2528_v16 }
 0x22c   :  { %v3404_v54 = vpack.c.bf16 %v2527_v28, %v2526_v42  ;;  %v2098_v52 = vpop.f32.mrb[104].mxu0  ;;  %v3628_v35 = vpop.f32.mrb[140].mxu1 }
 0x22d   :  { %3525 = vst [vmem:[%s5439_s3 + $0x78] sm:$0xff] %v3409_v1   ;;  %v5287_v19 = vadd.f32 %v2098_v52, %v1778_v31  ;;  %v2348_v33 = vadd.f32 %v3628_v35, %v5472_v59  ;;  %v2100_v8 = vpop.f32.mrb[105].mxu0  ;;  %v2339_v36 = vpop.f32.mrb[141].mxu1  ;;  %v5478_v52 = vld [vmem:[#allocation8_spill] sm:$0xff] }
 0x22e   :  { %3524 = vst [vmem:[%s5439_s3 + $0x70] sm:$0xff] %v3404_v54   ;;  %v2340_v50 = vadd.f32 %v2339_v36, %v5473_v21  ;;  %v2101_v34 = vpop.f32.mrb[106].mxu0  ;;  %v3629_v41 = vpop.f32.mrb[142].mxu1  ;;  %v1794_v35 = vadd.f32 %v5013_v17, %v5478_v52 }
 0x22f   :  { %v5294_v49 = vadd.f32 %v2101_v34, %v1781_v4  ;;  %v2351_v38 = vadd.f32 %v3629_v41, %v5474_v48  ;;  %v2103_v56 = vpop.f32.mrb[107].mxu0  ;;  %v2342_v53 = vpop.f32.mrb[143].mxu1  ;;  %v2532_v20 = vmax.f32 %v2348_v33, 0.0  ;;  %v5479_v33 = vld [vmem:[#allocation9_spill] sm:$0xff] }
 0x230   :  { %v2343_v45 = vadd.f32 %v2342_v53, %v5475_v9  ;;  %v2530_v58 = vmax.f32 %v2340_v50, 0.0  ;;  %v1797_v8 = vadd.f32 %v5013_v17, %v5479_v33 }
 0x231   :  { %v2533_v55 = vmax.f32 %v2351_v38, 0.0 }
 0x232   :  { %v2531_v3 = vmax.f32 %v2343_v45, 0.0 }
 0x233   :  { %v3419_v40 = vpack.c.bf16 %v2533_v55, %v2532_v20 }
 0x234   :  { %v3414_v22 = vpack.c.bf16 %v2531_v3, %v2530_v58  ;;  %v2106_v6 = vpop.f32.mrb[108].mxu0  ;;  %v3632_v24 = vpop.f32.mrb[144].mxu1  ;;  %v5480_v58 = vld [vmem:[#allocation10_spill] sm:$0xff] }
 0x235   :  { %3527 = vst [vmem:[%s5439_s3 + $0x88] sm:$0xff] %v3419_v40   ;;  %v5305_v12 = vadd.f32 %v2106_v6, %v1786_v39  ;;  %v2364_v47 = vadd.f32 %v3632_v24, %v5153_v46  ;;  %v2108_v61 = vpop.f32.mrb[109].mxu0  ;;  %v2355_v23 = vpop.f32.mrb[145].mxu1  ;;  %v1802_v3 = vadd.f32 %v5013_v17, %v5480_v58 }
 0x236   :  { %3526 = vst [vmem:[%s5439_s3 + $0x80] sm:$0xff] %v3414_v22   ;;  %v2356_v10 = vadd.f32 %v2355_v23, %v5134_v15  ;;  %v2109_v37 = vpop.f32.mrb[110].mxu0  ;;  %v3633_v7 = vpop.f32.mrb[146].mxu1  ;;  %v5481_v22 = vld [vmem:[#allocation11_spill] sm:$0xff] }
 0x237   :  { %v5312_v16 = vadd.f32 %v2109_v37, %v1789_v51  ;;  %v2367_v44 = vadd.f32 %v3633_v7, %v5160_v26  ;;  %v2111_v42 = vpop.f32.mrb[111].mxu0  ;;  %v2358_v28 = vpop.f32.mrb[147].mxu1  ;;  %v2536_v31 = vmax.f32 %v2364_v47, 0.0  ;;  %v1805_v6 = vadd.f32 %v5013_v17, %v5481_v22 }
 0x238   :  { %v2359_v29 = vadd.f32 %v2358_v28, %v5138_v32  ;;  %v2534_v1 = vmax.f32 %v2356_v10, 0.0 }
 0x239   :  { %v2537_v46 = vmax.f32 %v2367_v44, 0.0 }
 0x23a   :  { %v2535_v54 = vmax.f32 %v2359_v29, 0.0 }
 0x23b   :  { %v3429_v18 = vpack.c.bf16 %v2537_v46, %v2536_v31  ;;  %v5482_v31 = vld [vmem:[#allocation12_spill] sm:$0xff] }
 0x23c   :  { %v3424_v4 = vpack.c.bf16 %v2535_v54, %v2534_v1  ;;  %v2114_v15 = vpop.f32.mrb[112].mxu0  ;;  %v3636_v59 = vpop.f32.mrb[148].mxu1  ;;  %v1810_v46 = vadd.f32 %v5013_v17, %v5482_v31 }
 0x23d   :  { %3529 = vst [vmem:[%s5439_s3 + $0x98] sm:$0xff] %v3429_v18   ;;  %v5323_v26 = vadd.f32 %v2114_v15, %v1794_v35  ;;  %v2380_v32 = vadd.f32 %v3636_v59, %v5197_v14  ;;  %v2116_v36 = vpop.f32.mrb[113].mxu0  ;;  %v2371_v21 = vpop.f32.mrb[149].mxu1  ;;  %v5483_v35 = vld [vmem:[#allocation13_spill] sm:$0xff] }
 0x23e   :  { %3528 = vst [vmem:[%s5439_s3 + $0x90] sm:$0xff] %v3424_v4   ;;  %v2372_v50 = vadd.f32 %v2371_v21, %v5175_v62  ;;  %v2117_v34 = vpop.f32.mrb[114].mxu0  ;;  %v3637_v41 = vpop.f32.mrb[150].mxu1  ;;  %v1813_v18 = vadd.f32 %v5013_v17, %v5483_v35 }
 0x23f   :  { %v5330_v48 = vadd.f32 %v2117_v34, %v1797_v8  ;;  %v2383_v38 = vadd.f32 %v3637_v41, %v5204_v13  ;;  %v2119_v56 = vpop.f32.mrb[115].mxu0  ;;  %v2374_v53 = vpop.f32.mrb[151].mxu1  ;;  %v2540_v45 = vmax.f32 %v2380_v32, 0.0 }
 0x240   :  { %v2375_v9 = vadd.f32 %v2374_v53, %v5182_v11  ;;  %v2538_v20 = vmax.f32 %v2372_v50, 0.0  ;;  %v5484_v53 = vld [vmem:[#allocation14_spill] sm:$0xff] }
 0x241   :  { %v2541_v14 = vmax.f32 %v2383_v38, 0.0 }
 0x242   :  { %v2539_v55 = vmax.f32 %v2375_v9, 0.0  ;;  %v1818_v9 = vadd.f32 %v5013_v17, %v5484_v53 }
 0x243   :  { %v3439_v57 = vpack.c.bf16 %v2541_v14, %v2540_v45 }
 0x244   :  { %v3434_v39 = vpack.c.bf16 %v2539_v55, %v2538_v20  ;;  %v2122_v62 = vpop.f32.mrb[116].mxu0  ;;  %v3640_v40 = vpop.f32.mrb[152].mxu1  ;;  %v5485_v55 = vld [vmem:[#allocation15_spill] sm:$0xff] }
 0x245   :  { %3531 = vst [vmem:[%s5439_s3 + $0xa8] sm:$0xff] %v3439_v57   ;;  %v5341_v13 = vadd.f32 %v2122_v62, %v1802_v3  ;;  %v2396_v11 = vadd.f32 %v3640_v40, %v5233_v0  ;;  %v2124_v24 = vpop.f32.mrb[117].mxu0  ;;  %v2387_v25 = vpop.f32.mrb[153].mxu1  ;;  %v1821_v58 = vadd.f32 %v5013_v17, %v5485_v55 }
 0x246   :  { %3530 = vst [vmem:[%s5439_s3 + $0xa0] sm:$0xff] %v3434_v39   ;;  %v2388_v51 = vadd.f32 %v2387_v25, %v5215_v43  ;;  %v2125_v47 = vpop.f32.mrb[118].mxu0  ;;  %v3641_v61 = vpop.f32.mrb[154].mxu1 }
 0x247   :  { %v5348_v23 = vadd.f32 %v2125_v47, %v1805_v6  ;;  %v2399_v10 = vadd.f32 %v3641_v61, %v5240_v27  ;;  %v2127_v37 = vpop.f32.mrb[119].mxu0  ;;  %v2390_v7 = vpop.f32.mrb[155].mxu1  ;;  %v2544_v42 = vmax.f32 %v2396_v11, 0.0 }
 0x248   :  { %v2391_v44 = vadd.f32 %v2390_v7, %v5223_v30  ;;  %v2542_v28 = vmax.f32 %v2388_v51, 0.0 }
 0x249   :  { %v2545_v0 = vmax.f32 %v2399_v10, 0.0  ;;  %v5486_v10 = vld [vmem:[#allocation16_spill] sm:$0xff] }
 0x24a   :  { %v2543_v29 = vmax.f32 %v2391_v44, 0.0  ;;  %v1826_v37 = vadd.f32 %v5013_v17, %v5486_v10 }
 0x24b   :  { %v3449_v1 = vpack.c.bf16 %v2545_v0, %v2544_v42  ;;  %v5487_v0 = vld [vmem:[#allocation17_spill] sm:$0xff] }
 0x24c   :  { %v3444_v54 = vpack.c.bf16 %v2543_v29, %v2542_v28  ;;  %v2130_v43 = vpop.f32.mrb[120].mxu0  ;;  %v3644_v52 = vpop.f32.mrb[156].mxu1  ;;  %v1829_v28 = vadd.f32 %v5013_v17, %v5487_v0 }
 0x24d   :  { %3533 = vst [vmem:[%s5439_s3 + $0xb8] sm:$0xff] %v3449_v1   ;;  %v5359_v27 = vadd.f32 %v2130_v43, %v1810_v46  ;;  %v2412_v30 = vadd.f32 %v3644_v52, %v5269_v5  ;;  %v2132_v4 = vpop.f32.mrb[121].mxu0  ;;  %v2403_v15 = vpop.f32.mrb[157].mxu1 }
 0x24e   :  { %3532 = vst [vmem:[%s5439_s3 + $0xb0] sm:$0xff] %v3444_v54   ;;  %v2404_v59 = vadd.f32 %v2403_v15, %v5251_v2  ;;  %v2133_v33 = vpop.f32.mrb[122].mxu0  ;;  %v3645_v8 = vpop.f32.mrb[158].mxu1 }
 0x24f   :  { %v5366_v32 = vadd.f32 %v2133_v33, %v1813_v18  ;;  %v2415_v36 = vadd.f32 %v3645_v8, %v5276_v60  ;;  %v2135_v21 = vpop.f32.mrb[123].mxu0  ;;  %v2406_v50 = vpop.f32.mrb[159].mxu1  ;;  %v2548_v41 = vmax.f32 %v2412_v30, 0.0  ;;  %v5488_v33 = vld [vmem:[#allocation19_spill] sm:$0xff] }
 0x250   :  { %v2407_v34 = vadd.f32 %v2406_v50, %v5258_v63  ;;  %v2546_v38 = vmax.f32 %v2404_v59, 0.0  ;;  %v1834_v8 = vadd.f32 %v5013_v17, %v5488_v33 }
 0x251   :  { %v2549_v5 = vmax.f32 %v2415_v36, 0.0 }
 0x252   :  { %v2547_v56 = vmax.f32 %v2407_v34, 0.0  ;;  %v5489_v34 = vld [vmem:[#allocation20_spill] sm:$0xff] }
 0x253   :  { %v3459_v45 = vpack.c.bf16 %v2549_v5, %v2548_v41  ;;  %v1837_v41 = vadd.f32 %v5013_v17, %v5489_v34 }
 0x254   :  { %v3454_v14 = vpack.c.bf16 %v2547_v56, %v2546_v38  ;;  %v2138_v2 = vpop.f32.mrb[124].mxu0  ;;  %v3648_v20 = vpop.f32.mrb[160].mxu1 }
 0x255   :  { %3535 = vst [vmem:[%s5439_s3 + $0xc8] sm:$0xff] %v3459_v45   ;;  %v2139_v60 = vadd.f32 %v2138_v2, %v1818_v9  ;;  %v2428_v63 = vadd.f32 %v3648_v20, %v5305_v12  ;;  %v2140_v3 = vpop.f32.mrb[125].mxu0  ;;  %v2419_v57 = vpop.f32.mrb[161].mxu1 }
 0x256   :  { %3534 = vst [vmem:[%s5439_s3 + $0xc0] sm:$0xff] %v3454_v14   ;;  %v2420_v39 = vadd.f32 %v2419_v57, %v5287_v19  ;;  %v2141_v62 = vpop.f32.mrb[126].mxu0  ;;  %v3649_v40 = vpop.f32.mrb[162].mxu1  ;;  %v5490_v57 = vld [vmem:[#allocation21_spill] sm:$0xff] }
 0x257   :  { %v2142_v22 = vadd.f32 %v2141_v62, %v1821_v58  ;;  %v2431_v6 = vadd.f32 %v3649_v40, %v5312_v16  ;;  %v2143_v11 = vpop.f32.mrb[127].mxu0  ;;  %v2422_v24 = vpop.f32.mrb[163].mxu1  ;;  %v2552_v51 = vmax.f32 %v2428_v63, 0.0 }
 0x258   :  { %v2423_v25 = vadd.f32 %v2422_v24, %v5294_v49  ;;  %v2550_v12 = vmax.f32 %v2420_v39, 0.0  ;;  %v1842_v39 = vadd.f32 %v5013_v17, %v5490_v57 }
 0x259   :  { %v2553_v47 = vmax.f32 %v2431_v6, 0.0 }
 0x25a   :  { %v2551_v61 = vmax.f32 %v2423_v25, 0.0 }
 0x25b   :  { %v3469_v7 = vpack.c.bf16 %v2553_v47, %v2552_v51 }
 0x25c   :  { %v3464_v44 = vpack.c.bf16 %v2551_v61, %v2550_v12  ;;  %v2146_v42 = vpop.f32.mrb[128].mxu0  ;;  %v3652_v19 = vpop.f32.mrb[164].mxu1 }
 0x25d   :  { %3537 = vst [vmem:[%s5439_s3 + $0xd8] sm:$0xff] %v3469_v7   ;;  %v2147_v16 = vadd.f32 %v2146_v42, %v1826_v37  ;;  %v2444_v49 = vadd.f32 %v3652_v19, %v5341_v13  ;;  %v2148_v29 = vpop.f32.mrb[129].mxu0  ;;  %v2435_v31 = vpop.f32.mrb[165].mxu1 }
 0x25e   :  { %3536 = vst [vmem:[%s5439_s3 + $0xd0] sm:$0xff] %v3464_v44   ;;  %v2436_v46 = vadd.f32 %v2435_v31, %v5323_v26  ;;  %v2149_v1 = vpop.f32.mrb[130].mxu0  ;;  %v3653_v54 = vpop.f32.mrb[166].mxu1  ;;  %v5492_v29 = vld [vmem:[#allocation25_spill] sm:$0xff] }
 0x25f   :  { %v2150_v43 = vadd.f32 %v2149_v1, %v1829_v28  ;;  %v2447_v52 = vadd.f32 %v3653_v54, %v5348_v23  ;;  %v2151_v35 = vpop.f32.mrb[131].mxu0  ;;  %v2438_v18 = vpop.f32.mrb[167].mxu1  ;;  %v2556_v4 = vmax.f32 %v2444_v49, 0.0 }
 0x260   :  { %v2439_v30 = vadd.f32 %v2438_v18, %v5330_v48  ;;  %v2554_v13 = vmax.f32 %v2436_v46, 0.0  ;;  %v5493_v35 = vld [vmem:[#allocation27_spill] sm:$0xff] }
 0x261   :  { %v2557_v15 = vmax.f32 %v2447_v52, 0.0 }
 0x262   :  { %v2555_v59 = vmax.f32 %v2439_v30, 0.0 }
 0x263   :  { %v3479_v36 = vpack.c.bf16 %v2557_v15, %v2556_v4 }
 0x264   :  { %v3474_v21 = vpack.c.bf16 %v2555_v59, %v2554_v13  ;;  %v2154_v50 = vpop.f32.mrb[132].mxu0  ;;  %v3656_v26 = vpop.f32.mrb[168].mxu1 }
 0x265   :  { %3539 = vst [vmem:[%s5439_s3 + $0xe8] sm:$0xff] %v3479_v36   ;;  %v2155_v23 = vadd.f32 %v2154_v50, %v1834_v8  ;;  %v2460_v48 = vadd.f32 %v3656_v26, %v2139_v60  ;;  %v2156_v5 = vpop.f32.mrb[133].mxu0  ;;  %v2451_v38 = vpop.f32.mrb[169].mxu1 }
 0x266   :  { %3538 = vst [vmem:[%s5439_s3 + $0xe0] sm:$0xff] %v3474_v21   ;;  %v2452_v56 = vadd.f32 %v2451_v38, %v5359_v27  ;;  %v2157_v53 = vpop.f32.mrb[134].mxu0  ;;  %v3657_v9 = vpop.f32.mrb[170].mxu1  ;;  %v4149_v27 = vld [vmem:[%s5438_s2] ss:$0 sm:$0xff] }
 0x267   :  { %v2158_v45 = vadd.f32 %v2157_v53, %v1837_v41  ;;  %v2463_v14 = vadd.f32 %v3657_v9, %v2142_v22  ;;  %v2159_v2 = vpop.f32.mrb[135].mxu0  ;;  %v2454_v20 = vpop.f32.mrb[171].mxu1  ;;  %v2560_v58 = vmax.f32 %v2460_v48, 0.0  ;;  %v5491_v22 = vld [vmem:[#allocation23_spill] sm:$0xff]  ;;  %v1850_v31 = vadd.f32 %v4149_v27, %v5492_v29 }
 0x268   :  { %v2455_v55 = vadd.f32 %v2454_v20, %v5366_v32  ;;  %v2558_v3 = vmax.f32 %v2452_v56, 0.0  ;;  %v1845_v24 = vadd.f32 %v4149_v27, %v5491_v22  ;;  %v1853_v18 = vadd.f32 %v4149_v27, %v5493_v35 }
 0x269   :  { %v2561_v63 = vmax.f32 %v2463_v14, 0.0 }
 0x26a   :  { %v2559_v60 = vmax.f32 %v2455_v55, 0.0 }
 0x26b   :  { %v3489_v62 = vpack.c.bf16 %v2561_v63, %v2560_v58 }
 0x26c   :  { %v3484_v40 = vpack.c.bf16 %v2559_v60, %v2558_v3  ;;  %v2162_v6 = vpop.f32.mrb[136].mxu0  ;;  %v3660_v11 = vpop.f32.mrb[172].mxu1 }
 0x26d   :  { %3541 = vst [vmem:[%s5439_s3 + $0xf8] sm:$0xff] %v3489_v62   ;;  %v2163_v32 = vadd.f32 %v2162_v6, %v1842_v39  ;;  %v2476_v25 = vadd.f32 %v3660_v11, %v2155_v23  ;;  %v2164_v51 = vpop.f32.mrb[137].mxu0  ;;  %v2467_v47 = vpop.f32.mrb[173].mxu1 }
 0x26e   :  { %3540 = vst [vmem:[%s5439_s3 + $0xf0] sm:$0xff] %v3484_v40   ;;  %v2468_v17 = vadd.f32 %v2467_v47, %v2147_v16  ;;  %v2165_v12 = vpop.f32.mrb[138].mxu0  ;;  %v3661_v61 = vpop.f32.mrb[174].mxu1 }
 0x26f   :  { %v2166_v10 = vadd.f32 %v2165_v12, %v1845_v24  ;;  %v2479_v37 = vadd.f32 %v3661_v61, %v2158_v45  ;;  %v2167_v7 = vpop.f32.mrb[139].mxu0  ;;  %v2470_v44 = vpop.f32.mrb[175].mxu1  ;;  %v2564_v19 = vmax.f32 %v2476_v25, 0.0 }
 0x270   :  { %v2471_v42 = vadd.f32 %v2470_v44, %v2150_v43  ;;  %v2562_v28 = vmax.f32 %v2468_v17, 0.0 }
 0x271   :  { %v2565_v0 = vmax.f32 %v2479_v37, 0.0 }
 0x272   :  { %v2563_v49 = vmax.f32 %v2471_v42, 0.0 }
 0x273   :  { %v3499_v46 = vpack.c.bf16 %v2565_v0, %v2564_v19 }
 0x274   :  { %v3494_v1 = vpack.c.bf16 %v2563_v49, %v2562_v28  ;;  %v2170_v54 = vpop.f32.mrb[140].mxu0  ;;  %v3664_v52 = vpop.f32.mrb[176].mxu1 }
 0x275   :  { %3543 = vst [vmem:[%s5439_s3 + $0x108] sm:$0xff] %v3499_v46   ;;  %v2171_v16 = vadd.f32 %v2170_v54, %v1850_v31  ;;  %v2172_v30 = vpop.f32.mrb[141].mxu0  ;;  %v2483_v4 = vpop.f32.mrb[177].mxu1 }
 0x276   :  { %3542 = vst [vmem:[%s5439_s3 + $0x100] sm:$0xff] %v3494_v1   ;;  %v2484_v43 = vadd.f32 %v2483_v4, %v2163_v32  ;;  %v2173_v15 = vpop.f32.mrb[142].mxu0  ;;  %v3665_v13 = vpop.f32.mrb[178].mxu1 }
 0x277   :  { %v2492_v59 = vadd.f32 %v3664_v52, %v2171_v16  ;;  %v2174_v33 = vadd.f32 %v2173_v15, %v1853_v18  ;;  %v2175_v8 = vpop.f32.mrb[143].mxu0  ;;  %v2486_v36 = vpop.f32.mrb[179].mxu1 }
 0x278   :  { %v2487_v21 = vadd.f32 %v2486_v36, %v2166_v10  ;;  %v2566_v26 = vmax.f32 %v2484_v43, 0.0 }
 0x279   :  { %v2495_v50 = vadd.f32 %v3665_v13, %v2174_v33  ;;  %v2568_v41 = vmax.f32 %v2492_v59, 0.0 }
 0x27a   :  { %v2567_v34 = vmax.f32 %v2487_v21, 0.0 }
 0x27b   :  { %v2569_v23 = vmax.f32 %v2495_v50, 0.0 }
 0x27c   :  { %v3504_v48 = vpack.c.bf16 %v2567_v34, %v2566_v26 }
 0x27d   :  { %v3509_v5 = vpack.c.bf16 %v2569_v23, %v2568_v41 }
 0x27e   :  { %3544 = vst [vmem:[%s5439_s3 + $0x110] sm:$0xff] %v3504_v48  }
 0x27f   :  { %3545 = vst [vmem:[%s5439_s3 + $0x118] sm:$0xff] %v3509_v5  }

// kernel: siamese_forward_pair.8
= control target key start
LH: loop header
LB: loop body
LE: loop exit
PB: predicated region body
PF: predicated region fallthrough
CT: control target
= control target key end

     0   :  { %vm2160_vm0 = vmmov 0   ;;  %s2695_s1 = inlined_call_operand.vmem [shape: bf16[1152,128], index: 1, kind: input, shape index: {}]   ;;  %s2696_s0 = inlined_call_operand.vmem [shape: bf16[104,1152], index: 0, kind: input, shape index: {}]   ;;  %s2697_s2 = inlined_call_operand.vmem [shape: f32[1,128], index: 2, kind: input, shape index: {}]   ;;  %s2698_s3 = inlined_call_operand.vmem [shape: bf16[104,128], index: 3, kind: output, shape index: {}]  }
   0x1   :  { %v2000_v0 = vld [vmem:[%s2695_s1 + $0x40] sm:$0xff]   ;;  %v2002_v2 = vld [vmem:[%s2695_s1 + $0x48] sm:$0xff]   ;;  %v2004_v4 = vld [vmem:[%s2695_s1 + $0x50] sm:$0xff]  }
   0x2   :  { %v2001_v1 = vld [vmem:[%s2695_s1] sm:$0xff]   ;;  %1982 = vmatprep.subr.bf16.mxu1 %v2000_v0  ;;  %1691 = vmatprep.subr.bf16.mxu0 %v2000_v0  ;;  %v2003_v3 = vld [vmem:[%s2695_s1 + $0x8] sm:$0xff]   ;;  %v2005_v5 = vld [vmem:[%s2695_s1 + $0x10] sm:$0xff]  }
   0x3   :  { %1990 = vmatpush3.bf16.msra.mxu1 %v2001_v1  ;;  %1692 = vmatpush3.bf16.msra.mxu0 %v2001_v1  ;;  %v2006_v6 = vld [vmem:[%s2695_s1 + $0x58] sm:$0xff]   ;;  %v2008_v8 = vld [vmem:[%s2695_s1 + $0x60] sm:$0xff]   ;;  %v2010_v10 = vld [vmem:[%s2695_s1 + $0x68] sm:$0xff]  }
   0x4   :  { %1983 = vmatprep.subr.bf16.mxu1 %v2002_v2  ;;  %1693 = vmatprep.subr.bf16.mxu0 %v2002_v2  ;;  %v2007_v7 = vld [vmem:[%s2695_s1 + $0x18] sm:$0xff]   ;;  %v2009_v9 = vld [vmem:[%s2695_s1 + $0x20] sm:$0xff]   ;;  %v2011_v12 = vld [vmem:[%s2695_s1 + $0x28] sm:$0xff]  }
   0x5   :  { %v2018_v11 = vld [vmem:[%s2696_s0 + $0x124] ss:$36 sps:$4 sm:$0xff]   ;;  %v2012_v14 = vld [vmem:[%s2695_s1 + $0x70] sm:$0xff]   ;;  %v2014_v16 = vld [vmem:[%s2695_s1 + $0x78] sm:$0xff]  }
   0x6   :  { %v2022_v13 = vld [vmem:[%s2696_s0 + $0x4] ss:$36 sps:$4 sm:$0xff]   ;;  %1035 = vmatprep.mubr.bf16.mxu1 %v2018_v11  ;;  %v2013_v15 = vld [vmem:[%s2695_s1 + $0x30] sm:$0xff]   ;;  %v2015_v17 = vld [vmem:[%s2695_s1 + $0x38] sm:$0xff]  }
   0x7   :  { %1991 = vmatpush3.bf16.msra.mxu1 %v2003_v3  ;;  %1694 = vmatpush3.bf16.msra.mxu0 %v2003_v3  ;;  %v2019_v18 = vld [vmem:[%s2695_s1 + $0xc0] sm:$0xff]   ;;  %v2026_v24 = vld [vmem:[%s2695_s1 + $0xc8] sm:$0xff]   ;;  %v2030_v30 = vld [vmem:[%s2695_s1 + $0xd0] sm:$0xff]  }
   0x8   :  { %1984 = vmatprep.subr.bf16.mxu1 %v2004_v4  ;;  %1695 = vmatprep.subr.bf16.mxu0 %v2004_v4  ;;  %v2016_v19 = vld [vmem:[%s2696_s0 + $0x120] ss:$36 sps:$4 sm:$0xff]   ;;  %v2028_v25 = vld [vmem:[%s2695_s1 + $0x148] sm:$0xff]   ;;  %v2035_v31 = vld [vmem:[%s2695_s1 + $0x150] sm:$0xff]  }
   0x9   :  { %1003 = vmatprep.mubr.bf16.mxu0 %v2022_v13  ;;  %v2020_v20 = vld [vmem:[%s2696_s0] ss:$36 sps:$4 sm:$0xff]   ;;  %v2031_v26 = vld [vmem:[%s2696_s0 + $0x4c] ss:$36 sps:$4 sm:$0xff]   ;;  %v2037_v36 = vld [vmem:[%s2695_s1 + $0xd8] sm:$0xff]  }
   0xa   :  { %v2024_v21 = vld [vmem:[%s2695_s1 + $0x140] sm:$0xff]   ;;  %v2027_v27 = vld [vmem:[%s2695_s1 + $0x88] sm:$0xff]   ;;  %v2033_v32 = vld [vmem:[%s2695_s1 + $0x90] sm:$0xff]  }
   0xb   :  { %1992 = vmatpush3.bf16.msra.mxu1 %v2005_v5  ;;  %1696 = vmatpush3.bf16.msra.mxu0 %v2005_v5  ;;  %v2023_v22 = vld [vmem:[%s2695_s1 + $0x80] sm:$0xff]   ;;  %v2038_v28 = vld [vmem:[%s2696_s0 + $0x16c] ss:$36 sps:$4 sm:$0xff]   ;;  %v2042_v37 = vld [vmem:[%s2695_s1 + $0x158] sm:$0xff]  }
   0xc   :  { %1985 = vmatprep.subr.bf16.mxu1 %v2006_v6  ;;  %1697 = vmatprep.subr.bf16.mxu0 %v2006_v6  ;;  %v2025_v23 = vld [vmem:[%s2695_s1 + $0x100] sm:$0xff]   ;;  %v2029_v29 = vld [vmem:[%s2695_s1 + $0x108] sm:$0xff]   ;;  %v2036_v35 = vld [vmem:[%s2695_s1 + $0x110] sm:$0xff]  }
   0xd   :  { %v2034_v33 = vld [vmem:[%s2696_s0 + $0x48] ss:$36 sps:$4 sm:$0xff]   ;;  %v2040_v38 = vld [vmem:[%s2695_s1 + $0x98] sm:$0xff]   ;;  %v2044_v41 = vld [vmem:[%s2695_s1 + $0xe0] sm:$0xff]  }
   0xe   :  { %v2041_v34 = vld [vmem:[%s2696_s0 + $0x168] ss:$36 sps:$4 sm:$0xff]   ;;  %v2045_v39 = vld [vmem:[%s2696_s0 + $0x94] ss:$36 sps:$4 sm:$0xff]   ;;  %v2049_v43 = vld [vmem:[%s2695_s1 + $0x160] sm:$0xff]  }
   0xf   :  { %1993 = vmatpush3.bf16.msra.mxu1 %v2007_v7  ;;  %1698 = vmatpush3.bf16.msra.mxu0 %v2007_v7  ;;  %v2043_v40 = vld [vmem:[%s2695_s1 + $0x118] sm:$0xff]   ;;  %v75_v42 = vld [vmem:[%s2696_s0 + $0x1b0] sm:$0xff]  ;;  %v2047_v45 = vld [vmem:[%s2695_s1 + $0xa0] sm:$0xff]   ;;  %v2159_v7 = vmov 0.0  }
  0x10   :  { %1986 = vmatprep.subr.bf16.mxu1 %v2008_v8  ;;  %1699 = vmatprep.subr.bf16.mxu0 %v2008_v8  ;;  %v1550_v44 = vcombine.high %v75_v42, %v75_v42  ;;  %v2048_v46 = vld [vmem:[%s2696_s0 + $0x90] ss:$36 sps:$4 sm:$0xff]   ;;  %v2050_v47 = vld [vmem:[%s2695_s1 + $0x120] sm:$0xff]   ;;  %v1549_v48 = vcombine.low %v75_v42, %v75_v42  ;;  %v2051_v49 = vld [vmem:[%s2695_s1 + $0xe8] sm:$0xff]  }
  0x11   :  { %v2055_v50 = vld [vmem:[%s2695_s1 + $0x168] sm:$0xff]   ;;  %v2058_v52 = vld [vmem:[%s2696_s0 + $0xdc] ss:$36 sps:$4 sm:$0xff]   ;;  %v2057_v54 = vld [vmem:[%s2695_s1 + $0xf0] sm:$0xff]  }
  0x12   :  { %v2053_v51 = vld [vmem:[%s2695_s1 + $0xa8] sm:$0xff]   ;;  %v2062_v55 = vld [vmem:[%s2695_s1 + $0x170] sm:$0xff]   ;;  %v2061_v57 = vld [vmem:[%s2696_s0 + $0xd8] ss:$36 sps:$4 sm:$0xff]  }
  0x13   :  { %1994 = vmatpush3.bf16.msra.mxu1 %v2009_v9  ;;  %1700 = vmatpush3.bf16.msra.mxu0 %v2009_v9  ;;  %v2056_v53 = vld [vmem:[%s2695_s1 + $0x128] sm:$0xff]   ;;  %v2060_v56 = vld [vmem:[%s2695_s1 + $0xb0] sm:$0xff]   ;;  %v2064_v59 = vld [vmem:[%s2695_s1 + $0xf8] sm:$0xff]  }
  0x14   :  { %1987 = vmatprep.subr.bf16.mxu1 %v2010_v10  ;;  %1701 = vmatprep.subr.bf16.mxu0 %v2010_v10  ;;  %v2063_v58 = vld [vmem:[%s2695_s1 + $0x130] sm:$0xff]   ;;  %v2066_v60 = vld [vmem:[%s2695_s1 + $0x178] sm:$0xff]   ;;  %v2071_v0 = vld [vmem:[%s2695_s1 + $0x1c0] sm:$0xff]  }
  0x15   :  { %v2069_v61 = vld [vmem:[%s2696_s0 + $0xc] ss:$36 sps:$4 sm:$0xff]   ;;  %v2065_v62 = vld [vmem:[%s2695_s1 + $0xb8] sm:$0xff]   ;;  %v2075_v4 = vld [vmem:[%s2695_s1 + $0x180] sm:$0xff]  }
  0x16   :  { %v2070_v63 = vld [vmem:[%s2695_s1 + $0x138] sm:$0xff]   ;;  %v2067_v2 = vld [vmem:[%s2696_s0 + $0x8] ss:$36 sps:$4 sm:$0xff]   ;;  %v2072_v3 = vld [vmem:[%s2696_s0 + $0x10] ss:$36 sps:$4 sm:$0xff]  }
  0x17   :  { %1995 = vmatpush3.bf16.msra.mxu1 %v2011_v12  ;;  %1702 = vmatpush3.bf16.msra.mxu0 %v2011_v12  ;;  %v2074_v1 = vld [vmem:[%s2696_s0 + $0x14] ss:$36 sps:$4 sm:$0xff]   ;;  %v2076_v5 = vld [vmem:[%s2695_s1 + $0x200] sm:$0xff]   ;;  %v2079_v8 = vld [vmem:[%s2695_s1 + $0x1c8] sm:$0xff]  }
  0x18   :  { %1988 = vmatprep.subr.bf16.mxu1 %v2012_v14  ;;  %1703 = vmatprep.subr.bf16.mxu0 %v2012_v14  ;;  %v2077_v6 = vld [vmem:[%s2696_s0 + $0x54] ss:$36 sps:$4 sm:$0xff]   ;;  %v2081_v9 = vld [vmem:[%s2695_s1 + $0x188] sm:$0xff]   ;;  %v2082_v10 = vld [vmem:[%s2696_s0 + $0x5c] ss:$36 sps:$4 sm:$0xff]  }
  0x19   :  { %v2085_v11 = vld [vmem:[%s2695_s1 + $0x208] sm:$0xff]   ;;  %v2086_v12 = vld [vmem:[%s2695_s1 + $0x1d0] sm:$0xff]   ;;  %v2084_v14 = vld [vmem:[%s2696_s0 + $0x58] ss:$36 sps:$4 sm:$0xff]  }
  0x1a   :  { %v2080_v13 = vld [vmem:[%s2696_s0 + $0x50] ss:$36 sps:$4 sm:$0xff]   ;;  %v2128_v42 = vld [vmem:[%s2695_s1 + $0x1f8] sm:$0xff]  }
  0x1b   :  { %1996 = vmatpush3.bf16.msra.mxu1 %v2013_v15  ;;  %1704 = vmatpush3.bf16.msra.mxu0 %v2013_v15  ;;  %v2087_v15 = vld [vmem:[%s2696_s0 + $0x9c] ss:$36 sps:$4 sm:$0xff]  }
  0x1c   :  { %1989 = vmatprep.subr.bf16.mxu1 %v2014_v16  ;;  %1705 = vmatprep.subr.bf16.mxu0 %v2014_v16  ;;  %v2089_v16 = vld [vmem:[%s2695_s1 + $0x190] sm:$0xff]  }
  0x1f   :  { %1997 = vmatpush3.bf16.msra.mxu1 %v2015_v17  ;;  %1706 = vmatpush3.bf16.msra.mxu0 %v2015_v17  ;;  %v2091_v17 = vld [vmem:[%s2696_s0 + $0xa4] ss:$36 sps:$4 sm:$0xff]  }
  0x20   :  { %1749 = vmatprep.subr.bf16.mxu1 %v2019_v18  ;;  %1807 = vmatprep.subr.bf16.mxu0 %v2024_v21  ;;  %v2094_v18 = vld [vmem:[%s2695_s1 + $0x210] sm:$0xff]   ;;  %v2090_v21 = vld [vmem:[%s2696_s0 + $0x98] ss:$36 sps:$4 sm:$0xff]  }
  0x22   :  { %1036 = vmatmul.mubr.bf16.vlgmr.msra.gmra.mrb[0].mxu1 %v2016_v19  ;;  %1004 = vmatmul.mubr.bf16.vlgmr.msra.gmra.mrb[0].mxu0 %v2020_v20  ;;  %v2095_v19 = vld [vmem:[%s2695_s1 + $0x1d8] sm:$0xff]  }
  0x23   :  { %1750 = vmatpush3.bf16.msra.mxu1 %v2023_v22  ;;  %1808 = vmatpush3.bf16.msra.mxu0 %v2025_v23  ;;  %v2096_v20 = vld [vmem:[%s2695_s1 + $0x198] sm:$0xff]   ;;  %v2093_v22 = vld [vmem:[%s2696_s0 + $0xa0] ss:$36 sps:$4 sm:$0xff]  }
  0x24   :  { %1751 = vmatprep.subr.bf16.mxu1 %v2026_v24  ;;  %1809 = vmatprep.subr.bf16.mxu0 %v2028_v25  ;;  %v2097_v23 = vld [vmem:[%s2696_s0 + $0xe4] ss:$36 sps:$4 sm:$0xff]   ;;  %v2100_v24 = vld [vmem:[%s2696_s0 + $0xec] ss:$36 sps:$4 sm:$0xff]   ;;  %v2103_v25 = vld [vmem:[%s2695_s1 + $0x218] sm:$0xff]  }
  0x25   :  { %1011 = vmatprep.mubr.bf16.mxu0 %v2031_v26  ;;  %1043 = vmatprep.mubr.bf16.mxu1 %v2038_v28  ;;  %v2104_v26 = vld [vmem:[%s2695_s1 + $0x1e0] sm:$0xff]  }
  0x26   :  { %v2099_v28 = vld [vmem:[%s2696_s0 + $0xe0] ss:$36 sps:$4 sm:$0xff]  }
  0x27   :  { %1752 = vmatpush3.bf16.msra.mxu1 %v2027_v27  ;;  %1810 = vmatpush3.bf16.msra.mxu0 %v2029_v29  ;;  %v2105_v27 = vld [vmem:[%s2695_s1 + $0x1a0] sm:$0xff]   ;;  %v2102_v29 = vld [vmem:[%s2696_s0 + $0xe8] ss:$36 sps:$4 sm:$0xff]  }
  0x28   :  { %1753 = vmatprep.subr.bf16.mxu1 %v2030_v30  ;;  %1811 = vmatprep.subr.bf16.mxu0 %v2035_v31  ;;  %v2112_v30 = vld [vmem:[%s2695_s1 + $0x220] sm:$0xff]   ;;  %v2113_v31 = vld [vmem:[%s2695_s1 + $0x1e8] sm:$0xff]  }
  0x2a   :  { %1012 = vmatmul.mubr.bf16.gmra.mrb[4].mxu0 %v2034_v33  ;;  %1044 = vmatmul.mubr.bf16.gmra.mrb[4].mxu1 %v2041_v34  ;;  %v2106_v33 = vld [vmem:[%s2696_s0 + $0x12c] ss:$36 sps:$4 sm:$0xff]   ;;  %v2109_v34 = vld [vmem:[%s2696_s0 + $0x134] ss:$36 sps:$4 sm:$0xff]  }
  0x2b   :  { %1754 = vmatpush3.bf16.msra.mxu1 %v2033_v32  ;;  %1812 = vmatpush3.bf16.msra.mxu0 %v2036_v35  ;;  %v2114_v32 = vld [vmem:[%s2695_s1 + $0x1a8] sm:$0xff]  }
  0x2c   :  { %1755 = vmatprep.subr.bf16.mxu1 %v2037_v36  ;;  %1813 = vmatprep.subr.bf16.mxu0 %v2042_v37  ;;  %v2120_v35 = vld [vmem:[%s2695_s1 + $0x228] sm:$0xff]   ;;  %v2122_v36 = vld [vmem:[%s2695_s1 + $0x1f0] sm:$0xff]  }
  0x2d   :  { %1019 = vmatprep.mubr.bf16.mxu0 %v2045_v39  ;;  %1051 = vmatprep.mubr.bf16.mxu1 %v1550_v44  ;;  %v2108_v37 = vld [vmem:[%s2696_s0 + $0x128] ss:$36 sps:$4 sm:$0xff]   ;;  %v2123_v39 = vld [vmem:[%s2695_s1 + $0x1b0] sm:$0xff]   ;;  %v2130_v44 = vld [vmem:[%s2695_s1 + $0x1b8] sm:$0xff]  }
  0x2f   :  { %1756 = vmatpush3.bf16.msra.mxu1 %v2040_v38  ;;  %1814 = vmatpush3.bf16.msra.mxu0 %v2043_v40  ;;  %v2111_v38 = vld [vmem:[%s2696_s0 + $0x130] ss:$36 sps:$4 sm:$0xff]  }
  0x30   :  { %1757 = vmatprep.subr.bf16.mxu1 %v2044_v41  ;;  %1815 = vmatprep.subr.bf16.mxu0 %v2049_v43  ;;  %v2115_v40 = vld [vmem:[%s2696_s0 + $0x174] ss:$36 sps:$4 sm:$0xff]   ;;  %v2118_v43 = vld [vmem:[%s2696_s0 + $0x17c] ss:$36 sps:$4 sm:$0xff]  }
  0x31   :  { %v2126_v41 = vld [vmem:[%s2695_s1 + $0x230] sm:$0xff]  }
  0x32   :  { %1020 = vmatmul.mubr.bf16.gmra.mrb[8].mxu0 %v2048_v46  ;;  %1052 = vmatmul.mubr.bf16.gmra.mrb[8].mxu1 %v1549_v48  ;;  %v76_v46 = vld [vmem:[%s2696_s0 + $0x1b8] sm:$0xff]  ;;  %v2117_v48 = vld [vmem:[%s2696_s0 + $0x170] ss:$36 sps:$4 sm:$0xff]  }
  0x33   :  { %1758 = vmatpush3.bf16.msra.mxu1 %v2047_v45  ;;  %1816 = vmatpush3.bf16.msra.mxu0 %v2050_v47  ;;  %v2134_v45 = vld [vmem:[%s2695_s1 + $0x238] sm:$0xff]   ;;  %v77_v47 = vld [vmem:[%s2696_s0 + $0x1c0] sm:$0xff] }
  0x34   :  { %1759 = vmatprep.subr.bf16.mxu1 %v2051_v49  ;;  %1817 = vmatprep.subr.bf16.mxu0 %v2055_v50  ;;  %v2121_v49 = vld [vmem:[%s2696_s0 + $0x178] ss:$36 sps:$4 sm:$0xff]   ;;  %v1552_v50 = vcombine.high %v76_v46, %v76_v46 }
  0x35   :  { %1027 = vmatprep.mubr.bf16.mxu0 %v2058_v52  ;;  %1091 = vmatprep.mubr.bf16.mxu1 %v2069_v61  ;;  %v1551_v52 = vcombine.low %v76_v46, %v76_v46  ;;  %v2142_v61 = vld [vmem:[%s2696_s0 + $0xa8] ss:$36 sps:$4 sm:$0xff]  }
  0x37   :  { %1760 = vmatpush3.bf16.msra.mxu1 %v2053_v51  ;;  %1818 = vmatpush3.bf16.msra.mxu0 %v2056_v53  ;;  %v1554_v51 = vcombine.high %v77_v47, %v77_v47  ;;  %v1553_v53 = vcombine.low %v77_v47, %v77_v47 }
  0x38   :  { %1761 = vmatprep.subr.bf16.mxu1 %v2057_v54  ;;  %1819 = vmatprep.subr.bf16.mxu0 %v2062_v55  ;;  %v2133_v54 = vld [vmem:[%s2696_s0 + $0x1c] ss:$36 sps:$4 sm:$0xff]  }
  0x39   :  { %v2131_v55 = vld [vmem:[%s2696_s0 + $0x18] ss:$36 sps:$4 sm:$0xff]  }
  0x3a   :  { %1028 = vmatmul.mubr.bf16.gmra.mrb[12].mxu0 %v2061_v57  ;;  %v2136_v57 = vld [vmem:[%s2696_s0 + $0x64] ss:$36 sps:$4 sm:$0xff]  }
  0x3b   :  { %1762 = vmatpush3.bf16.msra.mxu1 %v2060_v56  ;;  %1820 = vmatpush3.bf16.msra.mxu0 %v2063_v58  ;;  %v2135_v56 = vld [vmem:[%s2696_s0 + $0x20] ss:$36 sps:$4 sm:$0xff]  }
  0x3c   :  { %1763 = vmatprep.subr.bf16.mxu1 %v2064_v59  ;;  %1821 = vmatprep.subr.bf16.mxu0 %v2066_v60  ;;  %v2138_v58 = vld [vmem:[%s2696_s0 + $0x60] ss:$36 sps:$4 sm:$0xff]   ;;  %v2139_v59 = vld [vmem:[%s2696_s0 + $0x68] ss:$36 sps:$4 sm:$0xff]  }
  0x3d   :  { %1179 = vmatprep.mubr.bf16.mxu0 %v2074_v1  ;;  %v2140_v60 = vld [vmem:[%s2696_s0 + $0xac] ss:$36 sps:$4 sm:$0xff]   ;;  %v2147_v1 = vld [vmem:[%s2696_s0 + $0xf8] ss:$36 sps:$4 sm:$0xff]  }
  0x3f   :  { %1764 = vmatpush3.bf16.msra.mxu1 %v2065_v62  ;;  %1822 = vmatpush3.bf16.msra.mxu0 %v2070_v63  ;;  %v2143_v62 = vld [vmem:[%s2696_s0 + $0xb0] ss:$36 sps:$4 sm:$0xff]  }
  0x40   :  { %1865 = vmatprep.subr.bf16.mxu1 %v2071_v0  ;;  %1938 = vmatprep.subr.bf16.mxu0 %v2159_v7  ;;  %v2144_v63 = vld [vmem:[%s2696_s0 + $0xf4] ss:$36 sps:$4 sm:$0xff]  }
  0x41   :  { %v2146_v0 = vld [vmem:[%s2696_s0 + $0xf0] ss:$36 sps:$4 sm:$0xff]  }
  0x42   :  { %1092 = vmatmul.mubr.bf16.vlgmr.msra.gmra.mrb[12].mxu1 %v2067_v2  ;;  %1180 = vmatmul.mubr.bf16.vlgmr.msra.gmra.mrb[16].mxu0 %v2072_v3  ;;  %v2148_v2 = vld [vmem:[%s2696_s0 + $0x13c] ss:$36 sps:$4 sm:$0xff]  }
  0x43   :  { %1866 = vmatpush3.bf16.msra.mxu1 %v2075_v4  ;;  %1939 = vmatpush3.bf16.msra.mxu0 %v2076_v5  ;;  %v2150_v3 = vld [vmem:[%s2696_s0 + $0x138] ss:$36 sps:$4 sm:$0xff]   ;;  %v2151_v4 = vld [vmem:[%s2696_s0 + $0x140] ss:$36 sps:$4 sm:$0xff]  }
  0x44   :  { %1099 = vmatprep.mubr.bf16.mxu1 %v2077_v6  ;;  %1867 = vmatprep.subr.bf16.mxu1 %v2079_v8  ;;  %v2152_v5 = vld [vmem:[%s2696_s0 + $0x184] ss:$36 sps:$4 sm:$0xff]  }
  0x45   :  { %1187 = vmatprep.mubr.bf16.mxu0 %v2082_v10  ;;  %1940 = vmatprep.subr.bf16.mxu0 %v2159_v7  ;;  %v78_v6 = vld [vmem:[%s2696_s0 + $0x1c8] sm:$0xff]  ;;  %v2154_v8 = vld [vmem:[%s2696_s0 + $0x180] ss:$36 sps:$4 sm:$0xff]  }
  0x46   :  { %v1556_v10 = vcombine.high %v78_v6, %v78_v6 }
  0x47   :  { %1868 = vmatpush3.bf16.msra.mxu1 %v2081_v9  ;;  %1941 = vmatpush3.bf16.msra.mxu0 %v2085_v11  ;;  %v2155_v9 = vld [vmem:[%s2696_s0 + $0x188] ss:$36 sps:$4 sm:$0xff]   ;;  %v1555_v11 = vcombine.low %v78_v6, %v78_v6 }
  0x48   :  { %1869 = vmatprep.subr.bf16.mxu1 %v2086_v12  ;;  %1942 = vmatprep.subr.bf16.mxu0 %v2159_v7  ;;  %v2158_v12 = vld [vmem:[%s2696_s0 + $0x1d0] ss:$0 sps:$4 sm:$0xff]  }
  0x4a   :  { %1100 = vmatmul.mubr.bf16.gmra.mrb[16].mxu1 %v2080_v13  ;;  %1188 = vmatmul.mubr.bf16.gmra.mrb[20].mxu0 %v2084_v14 }
  0x4b   :  { %1107 = vmatprep.mubr.bf16.mxu1 %v2087_v15  ;;  %1870 = vmatpush3.bf16.msra.mxu1 %v2089_v16 }
  0x4c   :  { %1195 = vmatprep.mubr.bf16.mxu0 %v2091_v17  ;;  %1943 = vmatpush3.bf16.msra.mxu0 %v2094_v18 }
  0x4d   :  { %1871 = vmatprep.subr.bf16.mxu1 %v2095_v19  ;;  %1944 = vmatprep.subr.bf16.mxu0 %v2159_v7 }
  0x4f   :  { %1872 = vmatpush3.bf16.msra.mxu1 %v2096_v20 }
  0x50   :  { %1945 = vmatpush3.bf16.msra.mxu0 %v2103_v25  ;;  %1873 = vmatprep.subr.bf16.mxu1 %v2104_v26 }
  0x51   :  { %1946 = vmatprep.subr.bf16.mxu0 %v2159_v7 }
  0x52   :  { %1108 = vmatmul.mubr.bf16.gmra.mrb[20].mxu1 %v2090_v21  ;;  %1196 = vmatmul.mubr.bf16.gmra.mrb[24].mxu0 %v2093_v22 }
  0x53   :  { %1115 = vmatprep.mubr.bf16.mxu1 %v2097_v23  ;;  %1203 = vmatprep.mubr.bf16.mxu0 %v2100_v24 }
  0x54   :  { %1874 = vmatpush3.bf16.msra.mxu1 %v2105_v27  ;;  %1947 = vmatpush3.bf16.msra.mxu0 %v2112_v30 }
  0x55   :  { %1875 = vmatprep.subr.bf16.mxu1 %v2113_v31  ;;  %1948 = vmatprep.subr.bf16.mxu0 %v2159_v7 }
  0x58   :  { %1876 = vmatpush3.bf16.msra.mxu1 %v2114_v32  ;;  %1949 = vmatpush3.bf16.msra.mxu0 %v2120_v35 }
  0x59   :  { %1877 = vmatprep.subr.bf16.mxu1 %v2122_v36  ;;  %1950 = vmatprep.subr.bf16.mxu0 %v2159_v7 }
  0x5a   :  { %1116 = vmatmul.mubr.bf16.gmra.mrb[24].mxu1 %v2099_v28  ;;  %1204 = vmatmul.mubr.bf16.gmra.mrb[28].mxu0 %v2102_v29 }
  0x5b   :  { %1123 = vmatprep.mubr.bf16.mxu1 %v2106_v33  ;;  %1211 = vmatprep.mubr.bf16.mxu0 %v2109_v34 }
  0x5c   :  { %1878 = vmatpush3.bf16.msra.mxu1 %v2123_v39  ;;  %1951 = vmatpush3.bf16.msra.mxu0 %v2126_v41 }
  0x5d   :  { %1879 = vmatprep.subr.bf16.mxu1 %v2128_v42  ;;  %1952 = vmatprep.subr.bf16.mxu0 %v2159_v7 }
  0x60   :  { %1880 = vmatpush3.bf16.msra.mxu1 %v2130_v44  ;;  %1953 = vmatpush3.bf16.msra.mxu0 %v2134_v45 }
  0x62   :  { %1124 = vmatmul.mubr.bf16.gmra.mrb[28].mxu1 %v2108_v37  ;;  %1212 = vmatmul.mubr.bf16.gmra.mrb[32].mxu0 %v2111_v38 }
  0x63   :  { %1131 = vmatprep.mubr.bf16.mxu1 %v2115_v40  ;;  %1219 = vmatprep.mubr.bf16.mxu0 %v2118_v43 }
  0x6a   :  { %1132 = vmatmul.mubr.bf16.gmra.mrb[32].mxu1 %v2117_v48  ;;  %1220 = vmatmul.mubr.bf16.gmra.mrb[36].mxu0 %v2121_v49 }
  0x6b   :  { %1139 = vmatprep.mubr.bf16.mxu1 %v1552_v50  ;;  %1227 = vmatprep.mubr.bf16.mxu0 %v1554_v51 }
  0x72   :  { %1140 = vmatmul.mubr.bf16.gmra.mrb[36].mxu1 %v1551_v52  ;;  %1228 = vmatmul.mubr.bf16.gmra.mrb[40].mxu0 %v1553_v53 }
  0x73   :  { %1267 = vmatprep.mubr.bf16.mxu1 %v2133_v54  ;;  %1954 = vmatprep.mubr.msk.bf16.mxu0 %vm2160_vm0, %v2159_v7 }
  0x7a   :  { %1268 = vmatmul.mubr.bf16.vlgmr.msra.gmra.mrb[40].mxu1 %v2131_v55  ;;  %1955 = vmatmul.mubr.bf16.vlgmr.msra.gmra.mrb[44].mxu0 %v2135_v56  ;;  %v2613_v55 = vld [vmem:[%s2697_s2] ss:$0 sm:$0xff] }
  0x7b   :  { %1275 = vmatprep.mubr.bf16.mxu1 %v2136_v57  ;;  %1958 = vmatprep.mubr.msk.bf16.mxu0 %vm2160_vm0, %v2159_v7 }
  0x82   :  { %1276 = vmatmul.mubr.bf16.gmra.mrb[44].mxu1 %v2138_v58  ;;  %1959 = vmatmul.mubr.bf16.gmra.mrb[48].mxu0 %v2139_v59 }
  0x83   :  { %1283 = vmatprep.mubr.bf16.mxu1 %v2140_v60  ;;  %1962 = vmatprep.mubr.msk.bf16.mxu0 %vm2160_vm0, %v2159_v7 }
  0x8a   :  { %1284 = vmatmul.mubr.bf16.gmra.mrb[48].mxu1 %v2142_v61  ;;  %1963 = vmatmul.mubr.bf16.gmra.mrb[52].mxu0 %v2143_v62 }
  0x8b   :  { %1291 = vmatprep.mubr.bf16.mxu1 %v2144_v63  ;;  %1966 = vmatprep.mubr.msk.bf16.mxu0 %vm2160_vm0, %v2159_v7 }
  0x92   :  { %1292 = vmatmul.mubr.bf16.gmra.mrb[52].mxu1 %v2146_v0  ;;  %1967 = vmatmul.mubr.bf16.gmra.mrb[56].mxu0 %v2147_v1 }
  0x93   :  { %1299 = vmatprep.mubr.bf16.mxu1 %v2148_v2  ;;  %1970 = vmatprep.mubr.msk.bf16.mxu0 %vm2160_vm0, %v2159_v7 }
  0x9a   :  { %1300 = vmatmul.mubr.bf16.gmra.mrb[56].mxu1 %v2150_v3  ;;  %1971 = vmatmul.mubr.bf16.gmra.mrb[60].mxu0 %v2151_v4 }
  0x9b   :  { %1307 = vmatprep.mubr.bf16.mxu1 %v2152_v5  ;;  %1974 = vmatprep.mubr.msk.bf16.mxu0 %vm2160_vm0, %v2159_v7 }
  0xa2   :  { %1308 = vmatmul.mubr.bf16.gmra.mrb[60].mxu1 %v2154_v8  ;;  %1975 = vmatmul.mubr.bf16.gmra.mrb[64].mxu0 %v2155_v9 }
  0xa3   :  { %1315 = vmatprep.mubr.bf16.mxu1 %v1556_v10  ;;  %1978 = vmatprep.mubr.msk.bf16.mxu0 %vm2160_vm0, %v2159_v7 }
  0xaa   :  { %1316 = vmatmul.mubr.bf16.gmra.mrb[64].mxu1 %v1555_v11  ;;  %1979 = vmatmul.mubr.bf16.gmra.mrb[68].mxu0 %v2158_v12 }
  0xf5   :  { %v1731_v13 = vpop.f32.mrb[0].mxu1  ;;  %v1707_v14 = vpop.f32.mrb[0].mxu0 }
  0xf6   :  { %v1732_v15 = vpop.f32.mrb[1].mxu1  ;;  %v1708_v16 = vpop.f32.mrb[1].mxu0 }
  0xf7   :  { %v2596_v17 = vadd.f32 %v1732_v15, %v1731_v13  ;;  %v1734_v18 = vpop.f32.mrb[2].mxu1  ;;  %v1709_v19 = vadd.f32 %v1708_v16, %v1707_v14  ;;  %v1710_v20 = vpop.f32.mrb[2].mxu0 }
  0xf8   :  { %v1735_v21 = vpop.f32.mrb[3].mxu1  ;;  %v1711_v22 = vpop.f32.mrb[3].mxu0 }
  0xf9   :  { %v2598_v23 = vadd.f32 %v1735_v21, %v1734_v18  ;;  %v1712_v7 = vadd.f32 %v1711_v22, %v1710_v20  ;;  %v1006_v58 = vadd.f32 %v1709_v19, %v2613_v55 }
  0xfb   :  { %v1009_v1 = vadd.f32 %v1712_v7, %v2613_v55 }
  0xfd   :  { %v1713_v24 = vpop.f32.mrb[4].mxu0  ;;  %v1737_v25 = vpop.f32.mrb[4].mxu1 }
  0xfe   :  { %v1714_v26 = vpop.f32.mrb[5].mxu0  ;;  %v1738_v27 = vpop.f32.mrb[5].mxu1 }
  0xff   :  { %v1715_v28 = vadd.f32 %v1714_v26, %v1713_v24  ;;  %v1716_v29 = vpop.f32.mrb[6].mxu0  ;;  %v2600_v30 = vadd.f32 %v1738_v27, %v1737_v25  ;;  %v1740_v31 = vpop.f32.mrb[6].mxu1 }
 0x100   :  { %v1717_v32 = vpop.f32.mrb[7].mxu0  ;;  %v1741_v33 = vpop.f32.mrb[7].mxu1 }
 0x101   :  { %v1718_v34 = vadd.f32 %v1717_v32, %v1716_v29  ;;  %v2602_v35 = vadd.f32 %v1741_v33, %v1740_v31  ;;  %v1014_v13 = vadd.f32 %v1715_v28, %v2613_v55 }
 0x103   :  { %v1017_v21 = vadd.f32 %v1718_v34, %v2613_v55 }
 0x105   :  { %v1719_v36 = vpop.f32.mrb[8].mxu0  ;;  %v1743_v37 = vpop.f32.mrb[8].mxu1 }
 0x106   :  { %v1720_v38 = vpop.f32.mrb[9].mxu0  ;;  %v1744_v39 = vpop.f32.mrb[9].mxu1 }
 0x107   :  { %v1721_v40 = vadd.f32 %v1720_v38, %v1719_v36  ;;  %v1722_v41 = vpop.f32.mrb[10].mxu0  ;;  %v2604_v42 = vadd.f32 %v1744_v39, %v1743_v37  ;;  %v1746_v43 = vpop.f32.mrb[10].mxu1 }
 0x108   :  { %v1723_v44 = vpop.f32.mrb[11].mxu0  ;;  %v1747_v45 = vpop.f32.mrb[11].mxu1 }
 0x109   :  { %v1724_v46 = vadd.f32 %v1723_v44, %v1722_v41  ;;  %v1022_v33 = vadd.f32 %v1721_v40, %v2613_v55 }
 0x10b   :  { %v1025_v43 = vadd.f32 %v1724_v46, %v2613_v55 }
 0x10d   :  { %v1725_v47 = vpop.f32.mrb[12].mxu0 }
 0x10e   :  { %v1726_v48 = vpop.f32.mrb[13].mxu0 }
 0x10f   :  { %v2606_v49 = vadd.f32 %v1726_v48, %v1725_v47  ;;  %v1728_v50 = vpop.f32.mrb[14].mxu0 }
 0x110   :  { %v1729_v51 = vpop.f32.mrb[15].mxu0 }
 0x111   :  { %v2608_v52 = vadd.f32 %v1729_v51, %v1728_v50 }
 0x115   :  { %v1765_v53 = vpop.f32.mrb[12].mxu1  ;;  %v1823_v54 = vpop.f32.mrb[16].mxu0 }
 0x116   :  { %v1766_v56 = vpop.f32.mrb[13].mxu1  ;;  %v1824_v57 = vpop.f32.mrb[17].mxu0 }
 0x117   :  { %v1767_v59 = vadd.f32 %v1766_v56, %v1765_v53  ;;  %v1768_v60 = vpop.f32.mrb[14].mxu1  ;;  %v1825_v61 = vadd.f32 %v1824_v57, %v1823_v54  ;;  %v1826_v62 = vpop.f32.mrb[18].mxu0  ;;  %v1030_v57 = vadd.f32 %v2606_v49, %v2613_v55 }
 0x118   :  { %v1769_v63 = vpop.f32.mrb[15].mxu1  ;;  %v1827_v0 = vpop.f32.mrb[19].mxu0 }
 0x119   :  { %v1094_v2 = vadd.f32 %v1767_v59, %v1006_v58  ;;  %v1770_v3 = vadd.f32 %v1769_v63, %v1768_v60  ;;  %v1828_v4 = vadd.f32 %v1827_v0, %v1826_v62  ;;  %v1033_v63 = vadd.f32 %v2608_v52, %v2613_v55 }
 0x11b   :  { %v1097_v5 = vadd.f32 %v1770_v3, %v1009_v1  ;;  %v2617_v6 = vadd.f32 %v1825_v61, %v1094_v2 }
 0x11d   :  { %v2619_v8 = vadd.f32 %v1828_v4, %v1097_v5  ;;  %v1771_v9 = vpop.f32.mrb[16].mxu1  ;;  %v1829_v10 = vpop.f32.mrb[20].mxu0 }
 0x11e   :  { %v1772_v11 = vpop.f32.mrb[17].mxu1  ;;  %v1830_v12 = vpop.f32.mrb[21].mxu0 }
 0x11f   :  { %v1773_v14 = vadd.f32 %v1772_v11, %v1771_v9  ;;  %v1774_v15 = vpop.f32.mrb[18].mxu1  ;;  %v1831_v16 = vadd.f32 %v1830_v12, %v1829_v10  ;;  %v1832_v18 = vpop.f32.mrb[22].mxu0  ;;  %v1038_v12 = vadd.f32 %v2596_v17, %v2613_v55 }
 0x120   :  { %v1775_v19 = vpop.f32.mrb[19].mxu1  ;;  %v1833_v20 = vpop.f32.mrb[23].mxu0 }
 0x121   :  { %v1102_v22 = vadd.f32 %v1773_v14, %v1014_v13  ;;  %v1776_v7 = vadd.f32 %v1775_v19, %v1774_v15  ;;  %v1834_v24 = vadd.f32 %v1833_v20, %v1832_v18  ;;  %v1041_v19 = vadd.f32 %v2598_v23, %v2613_v55 }
 0x123   :  { %v1105_v25 = vadd.f32 %v1776_v7, %v1017_v21  ;;  %v2623_v26 = vadd.f32 %v1831_v16, %v1102_v22 }
 0x125   :  { %v2625_v27 = vadd.f32 %v1834_v24, %v1105_v25  ;;  %v1777_v29 = vpop.f32.mrb[20].mxu1  ;;  %v1835_v31 = vpop.f32.mrb[24].mxu0 }
 0x126   :  { %v1778_v32 = vpop.f32.mrb[21].mxu1  ;;  %v1836_v28 = vpop.f32.mrb[25].mxu0 }
 0x127   :  { %v1779_v36 = vadd.f32 %v1778_v32, %v1777_v29  ;;  %v1780_v37 = vpop.f32.mrb[22].mxu1  ;;  %v1837_v38 = vadd.f32 %v1836_v28, %v1835_v31  ;;  %v1838_v39 = vpop.f32.mrb[26].mxu0  ;;  %v1046_v28 = vadd.f32 %v2600_v30, %v2613_v55 }
 0x128   :  { %v1781_v41 = vpop.f32.mrb[23].mxu1  ;;  %v1839_v34 = vpop.f32.mrb[27].mxu0 }
 0x129   :  { %v1110_v44 = vadd.f32 %v1779_v36, %v1022_v33  ;;  %v1782_v45 = vadd.f32 %v1781_v41, %v1780_v37  ;;  %v1840_v47 = vadd.f32 %v1839_v34, %v1838_v39  ;;  %v1049_v41 = vadd.f32 %v2602_v35, %v2613_v55 }
 0x12b   :  { %v1113_v48 = vadd.f32 %v1782_v45, %v1025_v43  ;;  %v2629_v50 = vadd.f32 %v1837_v38, %v1110_v44 }
 0x12d   :  { %v2631_v51 = vadd.f32 %v1840_v47, %v1113_v48  ;;  %v1783_v53 = vpop.f32.mrb[24].mxu1  ;;  %v1841_v54 = vpop.f32.mrb[28].mxu0 }
 0x12e   :  { %v1784_v56 = vpop.f32.mrb[25].mxu1  ;;  %v1842_v40 = vpop.f32.mrb[29].mxu0 }
 0x12f   :  { %v1785_v58 = vadd.f32 %v1784_v56, %v1783_v53  ;;  %v1786_v59 = vpop.f32.mrb[26].mxu1  ;;  %v1843_v60 = vadd.f32 %v1842_v40, %v1841_v54  ;;  %v1844_v61 = vpop.f32.mrb[30].mxu0  ;;  %v1054_v40 = vadd.f32 %v2604_v42, %v2613_v55 }
 0x130   :  { %v1787_v46 = vpop.f32.mrb[27].mxu1  ;;  %v1845_v62 = vpop.f32.mrb[31].mxu0 }
 0x131   :  { %v1118_v0 = vadd.f32 %v1785_v58, %v1030_v57  ;;  %v1788_v1 = vadd.f32 %v1787_v46, %v1786_v59  ;;  %v1846_v2 = vadd.f32 %v1845_v62, %v1844_v61 }
 0x133   :  { %v1121_v3 = vadd.f32 %v1788_v1, %v1033_v63  ;;  %v2637_v4 = vadd.f32 %v1843_v60, %v1118_v0 }
 0x135   :  { %v2639_v5 = vadd.f32 %v1846_v2, %v1121_v3  ;;  %v1789_v9 = vpop.f32.mrb[28].mxu1  ;;  %v1847_v10 = vpop.f32.mrb[32].mxu0 }
 0x136   :  { %v1790_v49 = vpop.f32.mrb[29].mxu1  ;;  %v1848_v11 = vpop.f32.mrb[33].mxu0 }
 0x137   :  { %v1791_v13 = vadd.f32 %v1790_v49, %v1789_v9  ;;  %v1792_v14 = vpop.f32.mrb[30].mxu1  ;;  %v1849_v15 = vadd.f32 %v1848_v11, %v1847_v10  ;;  %v1850_v16 = vpop.f32.mrb[34].mxu0 }
 0x138   :  { %v1793_v52 = vpop.f32.mrb[31].mxu1  ;;  %v1851_v18 = vpop.f32.mrb[35].mxu0 }
 0x139   :  { %v1126_v20 = vadd.f32 %v1791_v13, %v1038_v12  ;;  %v1794_v21 = vadd.f32 %v1793_v52, %v1792_v14  ;;  %v1852_v22 = vadd.f32 %v1851_v18, %v1850_v16 }
 0x13b   :  { %v1129_v7 = vadd.f32 %v1794_v21, %v1041_v19  ;;  %v2645_v24 = vadd.f32 %v1849_v15, %v1126_v20 }
 0x13d   :  { %v2647_v25 = vadd.f32 %v1852_v22, %v1129_v7  ;;  %v1795_v29 = vpop.f32.mrb[32].mxu1  ;;  %v1853_v31 = vpop.f32.mrb[36].mxu0 }
 0x13e   :  { %v1796_v17 = vpop.f32.mrb[33].mxu1  ;;  %v1854_v32 = vpop.f32.mrb[37].mxu0 }
 0x13f   :  { %v1797_v33 = vadd.f32 %v1796_v17, %v1795_v29  ;;  %v1798_v36 = vpop.f32.mrb[34].mxu1  ;;  %v1855_v37 = vadd.f32 %v1854_v32, %v1853_v31  ;;  %v1856_v38 = vpop.f32.mrb[38].mxu0 }
 0x140   :  { %v1799_v23 = vpop.f32.mrb[35].mxu1  ;;  %v1857_v39 = vpop.f32.mrb[39].mxu0 }
 0x141   :  { %v1134_v34 = vadd.f32 %v1797_v33, %v1046_v28  ;;  %v1800_v43 = vadd.f32 %v1799_v23, %v1798_v36  ;;  %v1858_v44 = vadd.f32 %v1857_v39, %v1856_v38 }
 0x143   :  { %v1137_v45 = vadd.f32 %v1800_v43, %v1049_v41  ;;  %v2653_v47 = vadd.f32 %v1855_v37, %v1134_v34 }
 0x145   :  { %v2655_v48 = vadd.f32 %v1858_v44, %v1137_v45  ;;  %v1801_v53 = vpop.f32.mrb[36].mxu1  ;;  %v1859_v54 = vpop.f32.mrb[40].mxu0 }
 0x146   :  { %v1802_v30 = vpop.f32.mrb[37].mxu1  ;;  %v1860_v56 = vpop.f32.mrb[41].mxu0 }
 0x147   :  { %v1803_v57 = vadd.f32 %v1802_v30, %v1801_v53  ;;  %v1804_v58 = vpop.f32.mrb[38].mxu1  ;;  %v1861_v59 = vadd.f32 %v1860_v56, %v1859_v54  ;;  %v1862_v60 = vpop.f32.mrb[42].mxu0 }
 0x148   :  { %v1805_v35 = vpop.f32.mrb[39].mxu1  ;;  %v1863_v61 = vpop.f32.mrb[43].mxu0 }
 0x149   :  { %v1142_v46 = vadd.f32 %v1803_v57, %v1054_v40 }
 0x14b   :  { %v2659_v62 = vadd.f32 %v1861_v59, %v1142_v46 }
 0x14d   :  { %v1881_v63 = vpop.f32.mrb[40].mxu1  ;;  %v1357_v0 = vpop.f32.mrb[44].mxu0 }
 0x14e   :  { %v1882_v1 = vpop.f32.mrb[41].mxu1  ;;  %v1956_v2 = vpop.f32.mrb[45].mxu0 }
 0x14f   :  { %v1883_v3 = vadd.f32 %v1882_v1, %v1881_v63  ;;  %v1884_v9 = vpop.f32.mrb[42].mxu1  ;;  %v1360_v10 = vpop.f32.mrb[46].mxu0 }
 0x150   :  { %v1885_v49 = vpop.f32.mrb[43].mxu1  ;;  %v1957_v11 = vpop.f32.mrb[47].mxu0 }
 0x151   :  { %v1886_v12 = vadd.f32 %v1885_v49, %v1884_v9  ;;  %v1270_v42 = vadd.f32 %v1883_v3, %v2617_v6 }
 0x153   :  { %v1358_v55 = vadd.f32 %v1357_v0, %v1270_v42  ;;  %v1273_v13 = vadd.f32 %v1886_v12, %v2619_v8 }
 0x155   :  { %v1361_v14 = vadd.f32 %v1360_v10, %v1273_v13  ;;  %v1887_v15 = vpop.f32.mrb[44].mxu1  ;;  %v1365_v16 = vpop.f32.mrb[48].mxu0  ;;  %v1411_v19 = vmax.f32 %v1358_v55, 0.0 }
 0x156   :  { %v1888_v52 = vpop.f32.mrb[45].mxu1  ;;  %v1960_v18 = vpop.f32.mrb[49].mxu0 }
 0x157   :  { %v1412_v20 = vmax.f32 %v1361_v14, 0.0  ;;  %v1889_v21 = vadd.f32 %v1888_v52, %v1887_v15  ;;  %v1890_v22 = vpop.f32.mrb[46].mxu1  ;;  %v1368_v7 = vpop.f32.mrb[50].mxu0 }
 0x158   :  { %v1891_v29 = vpop.f32.mrb[47].mxu1  ;;  %v1961_v31 = vpop.f32.mrb[51].mxu0 }
 0x159   :  { %v1659_v17 = vpack.c.bf16 %v1412_v20, %v1411_v19  ;;  %v1892_v32 = vadd.f32 %v1891_v29, %v1890_v22  ;;  %v1278_v28 = vadd.f32 %v1889_v21, %v2623_v26 }
 0x15b   :  { %1660 = vst [vmem:[%s2698_s3] sm:$0xff] %v1659_v17   ;;  %v1366_v6 = vadd.f32 %v1365_v16, %v1278_v28  ;;  %v1281_v8 = vadd.f32 %v1892_v32, %v2625_v27 }
 0x15d   :  { %v1369_v33 = vadd.f32 %v1368_v7, %v1281_v8  ;;  %v1893_v36 = vpop.f32.mrb[48].mxu1  ;;  %v1373_v37 = vpop.f32.mrb[52].mxu0  ;;  %v1413_v39 = vmax.f32 %v1366_v6, 0.0 }
 0x15e   :  { %v1894_v38 = vpop.f32.mrb[49].mxu1  ;;  %v1964_v23 = vpop.f32.mrb[53].mxu0 }
 0x15f   :  { %v1414_v41 = vmax.f32 %v1369_v33, 0.0  ;;  %v1895_v34 = vadd.f32 %v1894_v38, %v1893_v36  ;;  %v1896_v43 = vpop.f32.mrb[50].mxu1  ;;  %v1376_v44 = vpop.f32.mrb[54].mxu0 }
 0x160   :  { %v1897_v45 = vpop.f32.mrb[51].mxu1  ;;  %v1965_v53 = vpop.f32.mrb[55].mxu0 }
 0x161   :  { %v1664_v26 = vpack.c.bf16 %v1414_v41, %v1413_v39  ;;  %v1898_v54 = vadd.f32 %v1897_v45, %v1896_v43  ;;  %v1286_v30 = vadd.f32 %v1895_v34, %v2629_v50 }
 0x163   :  { %1686 = vst [vmem:[%s2698_s3 + $0x8] sm:$0xff] %v1664_v26   ;;  %v1374_v27 = vadd.f32 %v1373_v37, %v1286_v30  ;;  %v1289_v56 = vadd.f32 %v1898_v54, %v2631_v51 }
 0x165   :  { %v1377_v40 = vadd.f32 %v1376_v44, %v1289_v56  ;;  %v1899_v57 = vpop.f32.mrb[52].mxu1  ;;  %v1381_v58 = vpop.f32.mrb[56].mxu0  ;;  %v1415_v35 = vmax.f32 %v1374_v27, 0.0 }
 0x166   :  { %v1900_v59 = vpop.f32.mrb[53].mxu1  ;;  %v1968_v60 = vpop.f32.mrb[57].mxu0 }
 0x167   :  { %v1416_v61 = vmax.f32 %v1377_v40, 0.0  ;;  %v1901_v46 = vadd.f32 %v1900_v59, %v1899_v57  ;;  %v1902_v63 = vpop.f32.mrb[54].mxu1  ;;  %v1384_v0 = vpop.f32.mrb[58].mxu0 }
 0x168   :  { %v1903_v1 = vpop.f32.mrb[55].mxu1  ;;  %v1969_v2 = vpop.f32.mrb[59].mxu0 }
 0x169   :  { %v1669_v50 = vpack.c.bf16 %v1416_v61, %v1415_v35  ;;  %v1904_v3 = vadd.f32 %v1903_v1, %v1902_v63  ;;  %v1294_v9 = vadd.f32 %v1901_v46, %v2637_v4 }
 0x16b   :  { %1687 = vst [vmem:[%s2698_s3 + $0x10] sm:$0xff] %v1669_v50   ;;  %v1382_v51 = vadd.f32 %v1381_v58, %v1294_v9  ;;  %v1297_v10 = vadd.f32 %v1904_v3, %v2639_v5 }
 0x16d   :  { %v1385_v49 = vadd.f32 %v1384_v0, %v1297_v10  ;;  %v1905_v11 = vpop.f32.mrb[56].mxu1  ;;  %v1389_v12 = vpop.f32.mrb[60].mxu0  ;;  %v1417_v13 = vmax.f32 %v1382_v51, 0.0 }
 0x16e   :  { %v1906_v42 = vpop.f32.mrb[57].mxu1  ;;  %v1972_v55 = vpop.f32.mrb[61].mxu0 }
 0x16f   :  { %v1418_v14 = vmax.f32 %v1385_v49, 0.0  ;;  %v1907_v15 = vadd.f32 %v1906_v42, %v1905_v11  ;;  %v1908_v16 = vpop.f32.mrb[58].mxu1  ;;  %v1392_v52 = vpop.f32.mrb[62].mxu0 }
 0x170   :  { %v1909_v18 = vpop.f32.mrb[59].mxu1  ;;  %v1973_v19 = vpop.f32.mrb[63].mxu0 }
 0x171   :  { %v1674_v4 = vpack.c.bf16 %v1418_v14, %v1417_v13  ;;  %v1910_v20 = vadd.f32 %v1909_v18, %v1908_v16  ;;  %v1302_v21 = vadd.f32 %v1907_v15, %v2645_v24 }
 0x173   :  { %1688 = vst [vmem:[%s2698_s3 + $0x18] sm:$0xff] %v1674_v4   ;;  %v1390_v5 = vadd.f32 %v1389_v12, %v1302_v21  ;;  %v1305_v22 = vadd.f32 %v1910_v20, %v2647_v25 }
 0x175   :  { %v1393_v7 = vadd.f32 %v1392_v52, %v1305_v22  ;;  %v1911_v29 = vpop.f32.mrb[60].mxu1  ;;  %v1397_v31 = vpop.f32.mrb[64].mxu0  ;;  %v1419_v28 = vmax.f32 %v1390_v5, 0.0 }
 0x176   :  { %v1912_v17 = vpop.f32.mrb[61].mxu1  ;;  %v1976_v32 = vpop.f32.mrb[65].mxu0 }
 0x177   :  { %v1420_v6 = vmax.f32 %v1393_v7, 0.0  ;;  %v1913_v8 = vadd.f32 %v1912_v17, %v1911_v29  ;;  %v1914_v33 = vpop.f32.mrb[62].mxu1  ;;  %v1400_v36 = vpop.f32.mrb[66].mxu0 }
 0x178   :  { %v1915_v37 = vpop.f32.mrb[63].mxu1  ;;  %v1977_v38 = vpop.f32.mrb[67].mxu0 }
 0x179   :  { %v1679_v24 = vpack.c.bf16 %v1420_v6, %v1419_v28  ;;  %v1916_v23 = vadd.f32 %v1915_v37, %v1914_v33  ;;  %v1310_v39 = vadd.f32 %v1913_v8, %v2653_v47 }
 0x17b   :  { %1689 = vst [vmem:[%s2698_s3 + $0x20] sm:$0xff] %v1679_v24   ;;  %v1398_v25 = vadd.f32 %v1397_v31, %v1310_v39  ;;  %v1313_v41 = vadd.f32 %v1916_v23, %v2655_v48 }
 0x17d   :  { %v1401_v34 = vadd.f32 %v1400_v36, %v1313_v41  ;;  %v1917_v43 = vpop.f32.mrb[64].mxu1  ;;  %v1405_v44 = vpop.f32.mrb[68].mxu0  ;;  %v1421_v26 = vmax.f32 %v1398_v25, 0.0 }
 0x17e   :  { %v1918_v45 = vpop.f32.mrb[65].mxu1  ;;  %v1980_v53 = vpop.f32.mrb[69].mxu0 }
 0x17f   :  { %v1422_v54 = vmax.f32 %v1401_v34, 0.0  ;;  %v1919_v30 = vadd.f32 %v1918_v45, %v1917_v43  ;;  %v1920_v27 = vpop.f32.mrb[66].mxu1  ;;  %v1408_v56 = vpop.f32.mrb[70].mxu0 }
 0x180   :  { %v1921_v40 = vpop.f32.mrb[67].mxu1  ;;  %v1981_v57 = vpop.f32.mrb[71].mxu0 }
 0x181   :  { %v1684_v47 = vpack.c.bf16 %v1422_v54, %v1421_v26  ;;  %v1318_v58 = vadd.f32 %v1919_v30, %v2659_v62 }
 0x183   :  { %1690 = vst [vmem:[%s2698_s3 + $0x28] sm:$0xff] %v1684_v47   ;;  %v1406_v48 = vadd.f32 %v1405_v44, %v1318_v58 }
 0x185   :  { %v1423_v59 = vmax.f32 %v1406_v48, 0.0 }
 0x187   :  { %v1655_v60 = vpack.c.bf16 %v1423_v59, %v1423_v59 }
 0x189   :  { %1489 = vst [vmem:[%s2698_s3 + $0x30] sm:$0xf] %v1655_v60 }

// kernel: siamese_forward_pair.9
= control target key start
LH: loop header
LB: loop body
LE: loop exit
PB: predicated region body
PF: predicated region fallthrough
CT: control target
= control target key end

     0   :  { %s16340_s0 = inlined_call_operand.vmem [shape: bf16[8,3200], index: 0, kind: input, shape index: {}]   ;;  %s16341_s1 = inlined_call_operand.vmem [shape: bf16[8,3200], index: 1, kind: input, shape index: {}]   ;;  %s16342_s2 = inlined_call_operand.vmem [shape: bf16[3200,512], index: 2, kind: input, shape index: {}]   ;;  %s16343_s3 = inlined_call_operand.vmem [shape: f32[1,512], index: 3, kind: input, shape index: {}]   ;;  %s16344_s4 = inlined_call_operand.vmem [shape: bf16[512,128], index: 4, kind: input, shape index: {}]   ;;  %s16345_s5 = inlined_call_operand.vmem [shape: f32[1,128], index: 5, kind: input, shape index: {}]   ;;  %s16346_s6 = inlined_call_operand.vmem [shape: f32[1,128], index: 6, kind: input, shape index: {}]   ;;  %s16347_s7 = inlined_call_operand.vmem [shape: f32[8,1], index: 7, kind: input, shape index: {}]   ;;  %s16348_s8 = inlined_call_operand.vmem [shape: f32[8,1], index: 8, kind: input, shape index: {}]   ;;  %s16349_s9 = inlined_call_operand.hbm [shape: f32[1,1], index: 9, kind: output, shape index: {}]  }
   0x1   :  { %v8876_v0 = vld [vmem:[%s16342_s2 + $0x4] ss:$16 sps:$4 sm:$0xff]   ;;  %v8878_v1 = vld [vmem:[%s16342_s2 + $0xc] ss:$16 sps:$4 sm:$0xff]   ;;  %v8880_v2 = vld [vmem:[%s16342_s2] ss:$16 sps:$4 sm:$0xff]  }
   0x2   :  { %4957 = vmatprep.subr.bf16.mxu0 %v8876_v0  ;;  %v8881_v3 = vld [vmem:[%s16342_s2 + $0x8] ss:$16 sps:$4 sm:$0xff]   ;;  %5490 = vmatprep.subr.bf16.mxu1 %v8878_v1  ;;  %v8882_v4 = vld [vmem:[%s16342_s2 + $0x24] ss:$16 sps:$4 sm:$0xff]   ;;  %v8884_v5 = vld [vmem:[%s16342_s2 + $0x2c] ss:$16 sps:$4 sm:$0xff]  }
   0x3   :  { %4958 = vmatpush1.bf16.msra.mxu0 %v8880_v2  ;;  %5491 = vmatpush1.bf16.msra.mxu1 %v8881_v3  ;;  %v8886_v6 = vld [vmem:[%s16342_s2 + $0x20] ss:$16 sps:$4 sm:$0xff]   ;;  %v8887_v7 = vld [vmem:[%s16342_s2 + $0x28] ss:$16 sps:$4 sm:$0xff]   ;;  %v8888_v8 = vld [vmem:[%s16342_s2 + $0x44] ss:$16 sps:$4 sm:$0xff]  }
   0x4   :  { %4959 = vmatprep.subr.bf16.mxu0 %v8882_v4  ;;  %5492 = vmatprep.subr.bf16.mxu1 %v8884_v5  ;;  %v8890_v9 = vld [vmem:[%s16342_s2 + $0x4c] ss:$16 sps:$4 sm:$0xff]   ;;  %v8892_v10 = vld [vmem:[%s16342_s2 + $0x40] ss:$16 sps:$4 sm:$0xff]   ;;  %v8893_v11 = vld [vmem:[%s16342_s2 + $0x48] ss:$16 sps:$4 sm:$0xff]  }
   0x5   :  { %v8894_v12 = vld [vmem:[%s16342_s2 + $0x64] ss:$16 sps:$4 sm:$0xff]   ;;  %v8896_v13 = vld [vmem:[%s16342_s2 + $0x6c] ss:$16 sps:$4 sm:$0xff]   ;;  %v8898_v14 = vld [vmem:[%s16342_s2 + $0x60] ss:$16 sps:$4 sm:$0xff]  }
   0x6   :  { %v8899_v15 = vld [vmem:[%s16342_s2 + $0x68] ss:$16 sps:$4 sm:$0xff]   ;;  %v8900_v16 = vld [vmem:[%s16342_s2 + $0x84] ss:$16 sps:$4 sm:$0xff]   ;;  %v8902_v17 = vld [vmem:[%s16342_s2 + $0x8c] ss:$16 sps:$4 sm:$0xff]  }
   0x7   :  { %4960 = vmatpush1.bf16.msra.mxu0 %v8886_v6  ;;  %5493 = vmatpush1.bf16.msra.mxu1 %v8887_v7  ;;  %v8904_v18 = vld [vmem:[%s16342_s2 + $0x80] ss:$16 sps:$4 sm:$0xff]   ;;  %v8905_v19 = vld [vmem:[%s16342_s2 + $0x88] ss:$16 sps:$4 sm:$0xff]   ;;  %v8906_v20 = vld [vmem:[%s16342_s2 + $0xa4] ss:$16 sps:$4 sm:$0xff]  }
   0x8   :  { %4961 = vmatprep.subr.bf16.mxu0 %v8888_v8  ;;  %5494 = vmatprep.subr.bf16.mxu1 %v8890_v9  ;;  %v8908_v21 = vld [vmem:[%s16342_s2 + $0xac] ss:$16 sps:$4 sm:$0xff]   ;;  %v8910_v22 = vld [vmem:[%s16342_s2 + $0xa0] ss:$16 sps:$4 sm:$0xff]   ;;  %v8911_v23 = vld [vmem:[%s16342_s2 + $0xa8] ss:$16 sps:$4 sm:$0xff]  }
   0x9   :  { %v8912_v24 = vld [vmem:[%s16342_s2 + $0xc4] ss:$16 sps:$4 sm:$0xff]   ;;  %v8914_v25 = vld [vmem:[%s16342_s2 + $0xcc] ss:$16 sps:$4 sm:$0xff]   ;;  %v8916_v26 = vld [vmem:[%s16342_s2 + $0xc0] ss:$16 sps:$4 sm:$0xff]  }
   0xa   :  { %v8917_v27 = vld [vmem:[%s16342_s2 + $0xc8] ss:$16 sps:$4 sm:$0xff]   ;;  %v8918_v28 = vld [vmem:[%s16342_s2 + $0xe4] ss:$16 sps:$4 sm:$0xff]   ;;  %v8920_v29 = vld [vmem:[%s16342_s2 + $0xec] ss:$16 sps:$4 sm:$0xff]  }
   0xb   :  { %4962 = vmatpush1.bf16.msra.mxu0 %v8892_v10  ;;  %5495 = vmatpush1.bf16.msra.mxu1 %v8893_v11  ;;  %v8922_v30 = vld [vmem:[%s16342_s2 + $0xe0] ss:$16 sps:$4 sm:$0xff]   ;;  %v8923_v31 = vld [vmem:[%s16342_s2 + $0xe8] ss:$16 sps:$4 sm:$0xff]   ;;  %v8924_v32 = vld [vmem:[%s16342_s2 + $0x104] ss:$16 sps:$4 sm:$0xff]  }
   0xc   :  { %4963 = vmatprep.subr.bf16.mxu0 %v8894_v12  ;;  %5496 = vmatprep.subr.bf16.mxu1 %v8896_v13  ;;  %v8926_v33 = vld [vmem:[%s16342_s2 + $0x10c] ss:$16 sps:$4 sm:$0xff]   ;;  %v8928_v34 = vld [vmem:[%s16342_s2 + $0x100] ss:$16 sps:$4 sm:$0xff]   ;;  %v8929_v35 = vld [vmem:[%s16342_s2 + $0x108] ss:$16 sps:$4 sm:$0xff]  }
   0xd   :  { %v8930_v36 = vld [vmem:[%s16342_s2 + $0x124] ss:$16 sps:$4 sm:$0xff]   ;;  %v8932_v37 = vld [vmem:[%s16342_s2 + $0x12c] ss:$16 sps:$4 sm:$0xff]   ;;  %v8934_v38 = vld [vmem:[%s16342_s2 + $0x120] ss:$16 sps:$4 sm:$0xff]  }
   0xe   :  { %v8935_v39 = vld [vmem:[%s16342_s2 + $0x128] ss:$16 sps:$4 sm:$0xff]   ;;  %v8936_v40 = vld [vmem:[%s16342_s2 + $0x144] ss:$16 sps:$4 sm:$0xff]   ;;  %v8938_v41 = vld [vmem:[%s16342_s2 + $0x14c] ss:$16 sps:$4 sm:$0xff]  }
   0xf   :  { %4964 = vmatpush1.bf16.msra.mxu0 %v8898_v14  ;;  %5497 = vmatpush1.bf16.msra.mxu1 %v8899_v15  ;;  %v8940_v42 = vld [vmem:[%s16342_s2 + $0x140] ss:$16 sps:$4 sm:$0xff]   ;;  %v8941_v43 = vld [vmem:[%s16342_s2 + $0x148] ss:$16 sps:$4 sm:$0xff]   ;;  %v8942_v44 = vld [vmem:[%s16342_s2 + $0x164] ss:$16 sps:$4 sm:$0xff]  }
  0x10   :  { %4965 = vmatprep.subr.bf16.mxu0 %v8900_v16  ;;  %5498 = vmatprep.subr.bf16.mxu1 %v8902_v17  ;;  %v8944_v45 = vld [vmem:[%s16342_s2 + $0x16c] ss:$16 sps:$4 sm:$0xff]   ;;  %v34_v46 = vld [vmem:[%s16340_s0] sm:$0xff]  ;;  %v8947_v49 = vld [vmem:[%s16342_s2 + $0x168] ss:$16 sps:$4 sm:$0xff]  }
  0x11   :  { %v8946_v47 = vld [vmem:[%s16342_s2 + $0x160] ss:$16 sps:$4 sm:$0xff]   ;;  %v7699_v48 = vcombine.high %v34_v46, %v34_v46  ;;  %v8948_v50 = vld [vmem:[%s16342_s2 + $0x184] ss:$16 sps:$4 sm:$0xff]   ;;  %v8950_v51 = vld [vmem:[%s16342_s2 + $0x18c] ss:$16 sps:$4 sm:$0xff]   ;;  %v7698_v4 = vcombine.low %v34_v46, %v34_v46 }
  0x12   :  { %v8952_v52 = vld [vmem:[%s16342_s2 + $0x180] ss:$16 sps:$4 sm:$0xff]   ;;  %v8953_v53 = vld [vmem:[%s16342_s2 + $0x188] ss:$16 sps:$4 sm:$0xff]   ;;  %v8954_v54 = vld [vmem:[%s16342_s2 + $0x1a4] ss:$16 sps:$4 sm:$0xff]  }
  0x13   :  { %4966 = vmatpush1.bf16.msra.mxu0 %v8904_v18  ;;  %5499 = vmatpush1.bf16.msra.mxu1 %v8905_v19  ;;  %v8956_v55 = vld [vmem:[%s16342_s2 + $0x1ac] ss:$16 sps:$4 sm:$0xff]   ;;  %v8958_v56 = vld [vmem:[%s16342_s2 + $0x1a0] ss:$16 sps:$4 sm:$0xff]   ;;  %v8959_v57 = vld [vmem:[%s16342_s2 + $0x1a8] ss:$16 sps:$4 sm:$0xff]  }
  0x14   :  { %4967 = vmatprep.subr.bf16.mxu0 %v8906_v20  ;;  %5500 = vmatprep.subr.bf16.mxu1 %v8908_v21  ;;  %v8960_v58 = vld [vmem:[%s16342_s2 + $0x1c4] ss:$16 sps:$4 sm:$0xff]   ;;  %v8962_v59 = vld [vmem:[%s16342_s2 + $0x1cc] ss:$16 sps:$4 sm:$0xff]   ;;  %v8964_v60 = vld [vmem:[%s16342_s2 + $0x1c0] ss:$16 sps:$4 sm:$0xff]  }
  0x15   :  { %4989 = vmatprep.mubr.bf16.mxu0 %v7699_v48  ;;  %5522 = vmatprep.mubr.bf16.mxu1 %v7699_v48  ;;  %v8965_v61 = vld [vmem:[%s16342_s2 + $0x1c8] ss:$16 sps:$4 sm:$0xff]   ;;  %v8966_v62 = vld [vmem:[%s16342_s2 + $0x1e4] ss:$16 sps:$4 sm:$0xff]   ;;  %v8968_v63 = vld [vmem:[%s16342_s2 + $0x1ec] ss:$16 sps:$4 sm:$0xff]  }
  0x16   :  { %v8970_v0 = vld [vmem:[%s16342_s2 + $0x1e0] ss:$16 sps:$4 sm:$0xff]   ;;  %v8971_v1 = vld [vmem:[%s16342_s2 + $0x1e8] ss:$16 sps:$4 sm:$0xff]   ;;  %v8976_v2 = vld [vmem:[%s16342_s2 + $0x204] ss:$16 sps:$4 sm:$0xff]  }
  0x17   :  { %4968 = vmatpush1.bf16.msra.mxu0 %v8910_v22  ;;  %5501 = vmatpush1.bf16.msra.mxu1 %v8911_v23  ;;  %v8979_v3 = vld [vmem:[%s16342_s2 + $0x20c] ss:$16 sps:$4 sm:$0xff]   ;;  %v8974_v5 = vld [vmem:[%s16342_s2 + $0x200] ss:$16 sps:$4 sm:$0xff]   ;;  %v8977_v6 = vld [vmem:[%s16342_s2 + $0x208] ss:$16 sps:$4 sm:$0xff]  }
  0x18   :  { %4969 = vmatprep.subr.bf16.mxu0 %v8912_v24  ;;  %5502 = vmatprep.subr.bf16.mxu1 %v8914_v25  ;;  %v8982_v7 = vld [vmem:[%s16342_s2 + $0x224] ss:$16 sps:$4 sm:$0xff]   ;;  %v8985_v8 = vld [vmem:[%s16342_s2 + $0x22c] ss:$16 sps:$4 sm:$0xff]   ;;  %v8980_v9 = vld [vmem:[%s16342_s2 + $0x220] ss:$16 sps:$4 sm:$0xff]  }
  0x19   :  { %v8983_v10 = vld [vmem:[%s16342_s2 + $0x228] ss:$16 sps:$4 sm:$0xff]   ;;  %v8988_v11 = vld [vmem:[%s16342_s2 + $0x244] ss:$16 sps:$4 sm:$0xff]   ;;  %v8991_v12 = vld [vmem:[%s16342_s2 + $0x24c] ss:$16 sps:$4 sm:$0xff]  }
  0x1a   :  { %v8986_v13 = vld [vmem:[%s16342_s2 + $0x240] ss:$16 sps:$4 sm:$0xff]   ;;  %v8989_v14 = vld [vmem:[%s16342_s2 + $0x248] ss:$16 sps:$4 sm:$0xff]   ;;  %v8994_v15 = vld [vmem:[%s16342_s2 + $0x264] ss:$16 sps:$4 sm:$0xff]  }
  0x1b   :  { %4970 = vmatpush1.bf16.msra.mxu0 %v8916_v26  ;;  %5503 = vmatpush1.bf16.msra.mxu1 %v8917_v27  ;;  %v8997_v16 = vld [vmem:[%s16342_s2 + $0x26c] ss:$16 sps:$4 sm:$0xff]   ;;  %v8992_v17 = vld [vmem:[%s16342_s2 + $0x260] ss:$16 sps:$4 sm:$0xff]   ;;  %v8995_v18 = vld [vmem:[%s16342_s2 + $0x268] ss:$16 sps:$4 sm:$0xff]  }
  0x1c   :  { %4971 = vmatprep.subr.bf16.mxu0 %v8918_v28  ;;  %5504 = vmatprep.subr.bf16.mxu1 %v8920_v29  ;;  %v9000_v19 = vld [vmem:[%s16342_s2 + $0x284] ss:$16 sps:$4 sm:$0xff]   ;;  %v9003_v20 = vld [vmem:[%s16342_s2 + $0x28c] ss:$16 sps:$4 sm:$0xff]   ;;  %v8998_v21 = vld [vmem:[%s16342_s2 + $0x280] ss:$16 sps:$4 sm:$0xff]  }
  0x1d   :  { %v9001_v22 = vld [vmem:[%s16342_s2 + $0x288] ss:$16 sps:$4 sm:$0xff]   ;;  %v9006_v23 = vld [vmem:[%s16342_s2 + $0x2a4] ss:$16 sps:$4 sm:$0xff]   ;;  %v9009_v24 = vld [vmem:[%s16342_s2 + $0x2ac] ss:$16 sps:$4 sm:$0xff]  }
  0x1e   :  { %v9004_v25 = vld [vmem:[%s16342_s2 + $0x2a0] ss:$16 sps:$4 sm:$0xff]   ;;  %v9007_v26 = vld [vmem:[%s16342_s2 + $0x2a8] ss:$16 sps:$4 sm:$0xff]   ;;  %v9012_v27 = vld [vmem:[%s16342_s2 + $0x2c4] ss:$16 sps:$4 sm:$0xff]  }
  0x1f   :  { %4972 = vmatpush1.bf16.msra.mxu0 %v8922_v30  ;;  %5505 = vmatpush1.bf16.msra.mxu1 %v8923_v31  ;;  %v9015_v28 = vld [vmem:[%s16342_s2 + $0x2cc] ss:$16 sps:$4 sm:$0xff]   ;;  %v9010_v31 = vld [vmem:[%s16342_s2 + $0x2c0] ss:$16 sps:$4 sm:$0xff]   ;;  %v9037_v48 = vld [vmem:[%s16342_s2 + $0x348] ss:$16 sps:$4 sm:$0xff]  }
  0x20   :  { %4973 = vmatprep.subr.bf16.mxu0 %v8924_v32  ;;  %5506 = vmatprep.subr.bf16.mxu1 %v8926_v33  ;;  %v11353_v29 = vld [vmem:[%s16340_s0 + $0x8] sm:$0xff]  ;;  %v9018_v33 = vld [vmem:[%s16342_s2 + $0x2e4] ss:$16 sps:$4 sm:$0xff]  }
  0x21   :  { %v7701_v30 = vcombine.high %v11353_v29, %v11353_v29  ;;  %v9013_v32 = vld [vmem:[%s16342_s2 + $0x2c8] ss:$16 sps:$4 sm:$0xff]   ;;  %v9039_v46 = vld [vmem:[%s16342_s2 + $0x34c] ss:$16 sps:$4 sm:$0xff]  }
  0x23   :  { %4974 = vmatpush1.bf16.msra.mxu0 %v8928_v34  ;;  %5507 = vmatpush1.bf16.msra.mxu1 %v8929_v35  ;;  %v9021_v34 = vld [vmem:[%s16342_s2 + $0x2ec] ss:$16 sps:$4 sm:$0xff]   ;;  %v9016_v35 = vld [vmem:[%s16342_s2 + $0x2e0] ss:$16 sps:$4 sm:$0xff]  }
  0x24   :  { %4975 = vmatprep.subr.bf16.mxu0 %v8930_v36  ;;  %5508 = vmatprep.subr.bf16.mxu1 %v8932_v37  ;;  %v9019_v36 = vld [vmem:[%s16342_s2 + $0x2e8] ss:$16 sps:$4 sm:$0xff]   ;;  %v9024_v37 = vld [vmem:[%s16342_s2 + $0x304] ss:$16 sps:$4 sm:$0xff]  }
  0x27   :  { %4976 = vmatpush1.bf16.msra.mxu0 %v8934_v38  ;;  %5509 = vmatpush1.bf16.msra.mxu1 %v8935_v39  ;;  %v9027_v38 = vld [vmem:[%s16342_s2 + $0x30c] ss:$16 sps:$4 sm:$0xff]   ;;  %v9022_v39 = vld [vmem:[%s16342_s2 + $0x300] ss:$16 sps:$4 sm:$0xff]  }
  0x28   :  { %4977 = vmatprep.subr.bf16.mxu0 %v8936_v40  ;;  %5510 = vmatprep.subr.bf16.mxu1 %v8938_v41  ;;  %v9025_v40 = vld [vmem:[%s16342_s2 + $0x308] ss:$16 sps:$4 sm:$0xff]   ;;  %v9030_v41 = vld [vmem:[%s16342_s2 + $0x324] ss:$16 sps:$4 sm:$0xff]  }
  0x2b   :  { %4978 = vmatpush1.bf16.msra.mxu0 %v8940_v42  ;;  %5511 = vmatpush1.bf16.msra.mxu1 %v8941_v43  ;;  %v9033_v42 = vld [vmem:[%s16342_s2 + $0x32c] ss:$16 sps:$4 sm:$0xff]   ;;  %v9028_v43 = vld [vmem:[%s16342_s2 + $0x320] ss:$16 sps:$4 sm:$0xff]  }
  0x2c   :  { %4979 = vmatprep.subr.bf16.mxu0 %v8942_v44  ;;  %5512 = vmatprep.subr.bf16.mxu1 %v8944_v45  ;;  %v9031_v44 = vld [vmem:[%s16342_s2 + $0x328] ss:$16 sps:$4 sm:$0xff]   ;;  %v9036_v45 = vld [vmem:[%s16342_s2 + $0x344] ss:$16 sps:$4 sm:$0xff]  }
  0x2f   :  { %4980 = vmatpush1.bf16.msra.mxu0 %v8946_v47  ;;  %5513 = vmatpush1.bf16.msra.mxu1 %v8947_v49  ;;  %v9034_v47 = vld [vmem:[%s16342_s2 + $0x340] ss:$16 sps:$4 sm:$0xff]   ;;  %v9042_v49 = vld [vmem:[%s16342_s2 + $0x364] ss:$16 sps:$4 sm:$0xff]  }
  0x30   :  { %4981 = vmatprep.subr.bf16.mxu0 %v8948_v50  ;;  %5514 = vmatprep.subr.bf16.mxu1 %v8950_v51  ;;  %v9045_v50 = vld [vmem:[%s16342_s2 + $0x36c] ss:$16 sps:$4 sm:$0xff]   ;;  %v9040_v51 = vld [vmem:[%s16342_s2 + $0x360] ss:$16 sps:$4 sm:$0xff]  }
  0x33   :  { %4982 = vmatpush1.bf16.msra.mxu0 %v8952_v52  ;;  %5515 = vmatpush1.bf16.msra.mxu1 %v8953_v53  ;;  %v9043_v52 = vld [vmem:[%s16342_s2 + $0x368] ss:$16 sps:$4 sm:$0xff]   ;;  %v9048_v53 = vld [vmem:[%s16342_s2 + $0x384] ss:$16 sps:$4 sm:$0xff]  }
  0x34   :  { %4983 = vmatprep.subr.bf16.mxu0 %v8954_v54  ;;  %5516 = vmatprep.subr.bf16.mxu1 %v8956_v55  ;;  %v9051_v54 = vld [vmem:[%s16342_s2 + $0x38c] ss:$16 sps:$4 sm:$0xff]   ;;  %v9046_v55 = vld [vmem:[%s16342_s2 + $0x380] ss:$16 sps:$4 sm:$0xff]  }
  0x37   :  { %4984 = vmatpush1.bf16.msra.mxu0 %v8958_v56  ;;  %5517 = vmatpush1.bf16.msra.mxu1 %v8959_v57  ;;  %v9049_v56 = vld [vmem:[%s16342_s2 + $0x388] ss:$16 sps:$4 sm:$0xff]   ;;  %v9054_v57 = vld [vmem:[%s16342_s2 + $0x3a4] ss:$16 sps:$4 sm:$0xff]  }
  0x38   :  { %4985 = vmatprep.subr.bf16.mxu0 %v8960_v58  ;;  %5518 = vmatprep.subr.bf16.mxu1 %v8962_v59  ;;  %v9057_v58 = vld [vmem:[%s16342_s2 + $0x3ac] ss:$16 sps:$4 sm:$0xff]   ;;  %v9052_v59 = vld [vmem:[%s16342_s2 + $0x3a0] ss:$16 sps:$4 sm:$0xff]  }
  0x3b   :  { %4986 = vmatpush1.bf16.msra.mxu0 %v8964_v60  ;;  %5519 = vmatpush1.bf16.msra.mxu1 %v8965_v61  ;;  %v9055_v60 = vld [vmem:[%s16342_s2 + $0x3a8] ss:$16 sps:$4 sm:$0xff]   ;;  %v9060_v61 = vld [vmem:[%s16342_s2 + $0x3c4] ss:$16 sps:$4 sm:$0xff]  }
  0x3c   :  { %4987 = vmatprep.subr.bf16.mxu0 %v8966_v62  ;;  %5520 = vmatprep.subr.bf16.mxu1 %v8968_v63  ;;  %v9063_v62 = vld [vmem:[%s16342_s2 + $0x3cc] ss:$16 sps:$4 sm:$0xff]   ;;  %v9058_v63 = vld [vmem:[%s16342_s2 + $0x3c0] ss:$16 sps:$4 sm:$0xff]  }
  0x3f   :  { %4988 = vmatpush1.bf16.msra.mxu0 %v8970_v0  ;;  %5521 = vmatpush1.bf16.msra.mxu1 %v8971_v1  ;;  %v9061_v0 = vld [vmem:[%s16342_s2 + $0x3c8] ss:$16 sps:$4 sm:$0xff]   ;;  %v9066_v1 = vld [vmem:[%s16342_s2 + $0x3e4] ss:$16 sps:$4 sm:$0xff]  }
  0x40   :  { %4998 = vmatprep.subr.bf16.mxu0 %v8976_v2  ;;  %5531 = vmatprep.subr.bf16.mxu1 %v8979_v3  ;;  %v9069_v2 = vld [vmem:[%s16342_s2 + $0x3ec] ss:$16 sps:$4 sm:$0xff]   ;;  %v9064_v3 = vld [vmem:[%s16342_s2 + $0x3e0] ss:$16 sps:$4 sm:$0xff]  }
  0x42   :  { %4990 = vmatmul.mubr.bf16.vlgmr.msra.gmra.mrb[0].mxu0 %v7698_v4  ;;  %5523 = vmatmul.mubr.bf16.vlgmr.msra.gmra.mrb[0].mxu1 %v7698_v4  ;;  %v9067_v4 = vld [vmem:[%s16342_s2 + $0x3e8] ss:$16 sps:$4 sm:$0xff]  }
  0x43   :  { %4999 = vmatpush1.bf16.msra.mxu0 %v8974_v5  ;;  %5532 = vmatpush1.bf16.msra.mxu1 %v8977_v6  ;;  %v9074_v5 = vld [vmem:[%s16342_s2 + $0x404] ss:$16 sps:$4 sm:$0xff]   ;;  %v9077_v6 = vld [vmem:[%s16342_s2 + $0x40c] ss:$16 sps:$4 sm:$0xff]  }
  0x44   :  { %5000 = vmatprep.subr.bf16.mxu0 %v8982_v7  ;;  %5533 = vmatprep.subr.bf16.mxu1 %v8985_v8  ;;  %v7700_v7 = vcombine.low %v11353_v29, %v11353_v29  ;;  %v9072_v8 = vld [vmem:[%s16342_s2 + $0x400] ss:$16 sps:$4 sm:$0xff]   ;;  %v9107_v29 = vld [vmem:[%s16342_s2 + $0x4ac] ss:$16 sps:$4 sm:$0xff]  }
  0x45   :  { %5030 = vmatprep.mubr.bf16.mxu0 %v7701_v30  ;;  %5563 = vmatprep.mubr.bf16.mxu1 %v7701_v30  ;;  %v9102_v30 = vld [vmem:[%s16342_s2 + $0x4a0] ss:$16 sps:$4 sm:$0xff]  }
  0x47   :  { %5001 = vmatpush1.bf16.msra.mxu0 %v8980_v9  ;;  %5534 = vmatpush1.bf16.msra.mxu1 %v8983_v10  ;;  %v9075_v9 = vld [vmem:[%s16342_s2 + $0x408] ss:$16 sps:$4 sm:$0xff]   ;;  %v9080_v10 = vld [vmem:[%s16342_s2 + $0x424] ss:$16 sps:$4 sm:$0xff]  }
  0x48   :  { %5002 = vmatprep.subr.bf16.mxu0 %v8988_v11  ;;  %5535 = vmatprep.subr.bf16.mxu1 %v8991_v12  ;;  %v11491_v11 = vld [vmem:[%s16340_s0 + $0x10] sm:$0xff]  ;;  %v9083_v12 = vld [vmem:[%s16342_s2 + $0x42c] ss:$16 sps:$4 sm:$0xff]  }
  0x4b   :  { %5003 = vmatpush1.bf16.msra.mxu0 %v8986_v13  ;;  %5536 = vmatpush1.bf16.msra.mxu1 %v8989_v14  ;;  %v7703_v13 = vcombine.high %v11491_v11, %v11491_v11  ;;  %v9078_v14 = vld [vmem:[%s16342_s2 + $0x420] ss:$16 sps:$4 sm:$0xff]  }
  0x4c   :  { %5004 = vmatprep.subr.bf16.mxu0 %v8994_v15  ;;  %5537 = vmatprep.subr.bf16.mxu1 %v8997_v16  ;;  %v9081_v15 = vld [vmem:[%s16342_s2 + $0x428] ss:$16 sps:$4 sm:$0xff]   ;;  %v9086_v16 = vld [vmem:[%s16342_s2 + $0x444] ss:$16 sps:$4 sm:$0xff]  }
  0x4f   :  { %5005 = vmatpush1.bf16.msra.mxu0 %v8992_v17  ;;  %5538 = vmatpush1.bf16.msra.mxu1 %v8995_v18  ;;  %v9089_v17 = vld [vmem:[%s16342_s2 + $0x44c] ss:$16 sps:$4 sm:$0xff]   ;;  %v9084_v18 = vld [vmem:[%s16342_s2 + $0x440] ss:$16 sps:$4 sm:$0xff]  }
  0x50   :  { %5006 = vmatprep.subr.bf16.mxu0 %v9000_v19  ;;  %5539 = vmatprep.subr.bf16.mxu1 %v9003_v20  ;;  %v9087_v19 = vld [vmem:[%s16342_s2 + $0x448] ss:$16 sps:$4 sm:$0xff]   ;;  %v9092_v20 = vld [vmem:[%s16342_s2 + $0x464] ss:$16 sps:$4 sm:$0xff]  }
  0x53   :  { %5007 = vmatpush1.bf16.msra.mxu0 %v8998_v21  ;;  %5540 = vmatpush1.bf16.msra.mxu1 %v9001_v22  ;;  %v9095_v21 = vld [vmem:[%s16342_s2 + $0x46c] ss:$16 sps:$4 sm:$0xff]   ;;  %v9090_v22 = vld [vmem:[%s16342_s2 + $0x460] ss:$16 sps:$4 sm:$0xff]  }
  0x54   :  { %5008 = vmatprep.subr.bf16.mxu0 %v9006_v23  ;;  %5541 = vmatprep.subr.bf16.mxu1 %v9009_v24  ;;  %v9093_v23 = vld [vmem:[%s16342_s2 + $0x468] ss:$16 sps:$4 sm:$0xff]   ;;  %v9098_v24 = vld [vmem:[%s16342_s2 + $0x484] ss:$16 sps:$4 sm:$0xff]  }
  0x57   :  { %5009 = vmatpush1.bf16.msra.mxu0 %v9004_v25  ;;  %5542 = vmatpush1.bf16.msra.mxu1 %v9007_v26  ;;  %v9101_v25 = vld [vmem:[%s16342_s2 + $0x48c] ss:$16 sps:$4 sm:$0xff]   ;;  %v9096_v26 = vld [vmem:[%s16342_s2 + $0x480] ss:$16 sps:$4 sm:$0xff]  }
  0x58   :  { %5010 = vmatprep.subr.bf16.mxu0 %v9012_v27  ;;  %5543 = vmatprep.subr.bf16.mxu1 %v9015_v28  ;;  %v9099_v27 = vld [vmem:[%s16342_s2 + $0x488] ss:$16 sps:$4 sm:$0xff]   ;;  %v9104_v28 = vld [vmem:[%s16342_s2 + $0x4a4] ss:$16 sps:$4 sm:$0xff]  }
  0x5b   :  { %5011 = vmatpush1.bf16.msra.mxu0 %v9010_v31  ;;  %5544 = vmatpush1.bf16.msra.mxu1 %v9013_v32  ;;  %v9105_v31 = vld [vmem:[%s16342_s2 + $0x4a8] ss:$16 sps:$4 sm:$0xff]   ;;  %v9110_v32 = vld [vmem:[%s16342_s2 + $0x4c4] ss:$16 sps:$4 sm:$0xff]  }
  0x5c   :  { %5012 = vmatprep.subr.bf16.mxu0 %v9018_v33  ;;  %5545 = vmatprep.subr.bf16.mxu1 %v9021_v34  ;;  %v9113_v33 = vld [vmem:[%s16342_s2 + $0x4cc] ss:$16 sps:$4 sm:$0xff]   ;;  %v9108_v34 = vld [vmem:[%s16342_s2 + $0x4c0] ss:$16 sps:$4 sm:$0xff]  }
  0x5f   :  { %5013 = vmatpush1.bf16.msra.mxu0 %v9016_v35  ;;  %5546 = vmatpush1.bf16.msra.mxu1 %v9019_v36  ;;  %v9111_v35 = vld [vmem:[%s16342_s2 + $0x4c8] ss:$16 sps:$4 sm:$0xff]   ;;  %v9116_v36 = vld [vmem:[%s16342_s2 + $0x4e4] ss:$16 sps:$4 sm:$0xff]  }
  0x60   :  { %5014 = vmatprep.subr.bf16.mxu0 %v9024_v37  ;;  %5547 = vmatprep.subr.bf16.mxu1 %v9027_v38  ;;  %v9119_v37 = vld [vmem:[%s16342_s2 + $0x4ec] ss:$16 sps:$4 sm:$0xff]   ;;  %v9114_v38 = vld [vmem:[%s16342_s2 + $0x4e0] ss:$16 sps:$4 sm:$0xff]  }
  0x63   :  { %5015 = vmatpush1.bf16.msra.mxu0 %v9022_v39  ;;  %5548 = vmatpush1.bf16.msra.mxu1 %v9025_v40  ;;  %v9117_v39 = vld [vmem:[%s16342_s2 + $0x4e8] ss:$16 sps:$4 sm:$0xff]   ;;  %v9122_v40 = vld [vmem:[%s16342_s2 + $0x504] ss:$16 sps:$4 sm:$0xff]  }
  0x64   :  { %5016 = vmatprep.subr.bf16.mxu0 %v9030_v41  ;;  %5549 = vmatprep.subr.bf16.mxu1 %v9033_v42  ;;  %v9125_v41 = vld [vmem:[%s16342_s2 + $0x50c] ss:$16 sps:$4 sm:$0xff]   ;;  %v9120_v42 = vld [vmem:[%s16342_s2 + $0x500] ss:$16 sps:$4 sm:$0xff]  }
  0x67   :  { %5017 = vmatpush1.bf16.msra.mxu0 %v9028_v43  ;;  %5550 = vmatpush1.bf16.msra.mxu1 %v9031_v44  ;;  %v9123_v43 = vld [vmem:[%s16342_s2 + $0x508] ss:$16 sps:$4 sm:$0xff]   ;;  %v9128_v44 = vld [vmem:[%s16342_s2 + $0x524] ss:$16 sps:$4 sm:$0xff]  }
  0x68   :  { %5018 = vmatprep.subr.bf16.mxu0 %v9036_v45  ;;  %5551 = vmatprep.subr.bf16.mxu1 %v9039_v46  ;;  %v9131_v45 = vld [vmem:[%s16342_s2 + $0x52c] ss:$16 sps:$4 sm:$0xff]   ;;  %v9126_v46 = vld [vmem:[%s16342_s2 + $0x520] ss:$16 sps:$4 sm:$0xff]  }
  0x6b   :  { %5019 = vmatpush1.bf16.msra.mxu0 %v9034_v47  ;;  %5552 = vmatpush1.bf16.msra.mxu1 %v9037_v48  ;;  %v9129_v47 = vld [vmem:[%s16342_s2 + $0x528] ss:$16 sps:$4 sm:$0xff]   ;;  %v9134_v48 = vld [vmem:[%s16342_s2 + $0x544] ss:$16 sps:$4 sm:$0xff]  }
  0x6c   :  { %5020 = vmatprep.subr.bf16.mxu0 %v9042_v49  ;;  %5553 = vmatprep.subr.bf16.mxu1 %v9045_v50  ;;  %v9137_v49 = vld [vmem:[%s16342_s2 + $0x54c] ss:$16 sps:$4 sm:$0xff]   ;;  %v9132_v50 = vld [vmem:[%s16342_s2 + $0x540] ss:$16 sps:$4 sm:$0xff]  }
  0x6f   :  { %5021 = vmatpush1.bf16.msra.mxu0 %v9040_v51  ;;  %5554 = vmatpush1.bf16.msra.mxu1 %v9043_v52  ;;  %v9135_v51 = vld [vmem:[%s16342_s2 + $0x548] ss:$16 sps:$4 sm:$0xff]   ;;  %v9140_v52 = vld [vmem:[%s16342_s2 + $0x564] ss:$16 sps:$4 sm:$0xff]  }
  0x70   :  { %5022 = vmatprep.subr.bf16.mxu0 %v9048_v53  ;;  %5555 = vmatprep.subr.bf16.mxu1 %v9051_v54  ;;  %v9143_v53 = vld [vmem:[%s16342_s2 + $0x56c] ss:$16 sps:$4 sm:$0xff]   ;;  %v9138_v54 = vld [vmem:[%s16342_s2 + $0x560] ss:$16 sps:$4 sm:$0xff]  }
  0x73   :  { %5023 = vmatpush1.bf16.msra.mxu0 %v9046_v55  ;;  %5556 = vmatpush1.bf16.msra.mxu1 %v9049_v56  ;;  %v9141_v55 = vld [vmem:[%s16342_s2 + $0x568] ss:$16 sps:$4 sm:$0xff]   ;;  %v9146_v56 = vld [vmem:[%s16342_s2 + $0x584] ss:$16 sps:$4 sm:$0xff]  }
  0x74   :  { %5024 = vmatprep.subr.bf16.mxu0 %v9054_v57  ;;  %5557 = vmatprep.subr.bf16.mxu1 %v9057_v58  ;;  %v9149_v57 = vld [vmem:[%s16342_s2 + $0x58c] ss:$16 sps:$4 sm:$0xff]   ;;  %v9144_v58 = vld [vmem:[%s16342_s2 + $0x580] ss:$16 sps:$4 sm:$0xff]  }
  0x77   :  { %5025 = vmatpush1.bf16.msra.mxu0 %v9052_v59  ;;  %5558 = vmatpush1.bf16.msra.mxu1 %v9055_v60  ;;  %v9147_v59 = vld [vmem:[%s16342_s2 + $0x588] ss:$16 sps:$4 sm:$0xff]   ;;  %v9152_v60 = vld [vmem:[%s16342_s2 + $0x5a4] ss:$16 sps:$4 sm:$0xff]  }
  0x78   :  { %5026 = vmatprep.subr.bf16.mxu0 %v9060_v61  ;;  %5559 = vmatprep.subr.bf16.mxu1 %v9063_v62  ;;  %v9155_v61 = vld [vmem:[%s16342_s2 + $0x5ac] ss:$16 sps:$4 sm:$0xff]   ;;  %v9150_v62 = vld [vmem:[%s16342_s2 + $0x5a0] ss:$16 sps:$4 sm:$0xff]  }
  0x7b   :  { %5027 = vmatpush1.bf16.msra.mxu0 %v9058_v63  ;;  %5560 = vmatpush1.bf16.msra.mxu1 %v9061_v0  ;;  %v9153_v63 = vld [vmem:[%s16342_s2 + $0x5a8] ss:$16 sps:$4 sm:$0xff]   ;;  %v9158_v0 = vld [vmem:[%s16342_s2 + $0x5c4] ss:$16 sps:$4 sm:$0xff]  }
  0x7c   :  { %5028 = vmatprep.subr.bf16.mxu0 %v9066_v1  ;;  %5561 = vmatprep.subr.bf16.mxu1 %v9069_v2  ;;  %v9161_v1 = vld [vmem:[%s16342_s2 + $0x5cc] ss:$16 sps:$4 sm:$0xff]   ;;  %v9156_v2 = vld [vmem:[%s16342_s2 + $0x5c0] ss:$16 sps:$4 sm:$0xff]  }
  0x7f   :  { %5029 = vmatpush1.bf16.msra.mxu0 %v9064_v3  ;;  %5562 = vmatpush1.bf16.msra.mxu1 %v9067_v4  ;;  %v9159_v3 = vld [vmem:[%s16342_s2 + $0x5c8] ss:$16 sps:$4 sm:$0xff]   ;;  %v9164_v4 = vld [vmem:[%s16342_s2 + $0x5e4] ss:$16 sps:$4 sm:$0xff]  }
  0x80   :  { %5039 = vmatprep.subr.bf16.mxu0 %v9074_v5  ;;  %5572 = vmatprep.subr.bf16.mxu1 %v9077_v6  ;;  %v9167_v5 = vld [vmem:[%s16342_s2 + $0x5ec] ss:$16 sps:$4 sm:$0xff]   ;;  %v9162_v6 = vld [vmem:[%s16342_s2 + $0x5e0] ss:$16 sps:$4 sm:$0xff]  }
  0x82   :  { %5031 = vmatmul.mubr.bf16.vlgmr.msra.gmra.mrb[0].mxu0 %v7700_v7  ;;  %5564 = vmatmul.mubr.bf16.vlgmr.msra.gmra.mrb[0].mxu1 %v7700_v7  ;;  %v9165_v7 = vld [vmem:[%s16342_s2 + $0x5e8] ss:$16 sps:$4 sm:$0xff]  }
  0x83   :  { %5040 = vmatpush1.bf16.msra.mxu0 %v9072_v8  ;;  %5573 = vmatpush1.bf16.msra.mxu1 %v9075_v9  ;;  %v9172_v8 = vld [vmem:[%s16342_s2 + $0x604] ss:$16 sps:$4 sm:$0xff]   ;;  %v9175_v9 = vld [vmem:[%s16342_s2 + $0x60c] ss:$16 sps:$4 sm:$0xff]  }
  0x84   :  { %5041 = vmatprep.subr.bf16.mxu0 %v9080_v10  ;;  %5574 = vmatprep.subr.bf16.mxu1 %v9083_v12  ;;  %v9170_v10 = vld [vmem:[%s16342_s2 + $0x600] ss:$16 sps:$4 sm:$0xff]   ;;  %v7702_v12 = vcombine.low %v11491_v11, %v11491_v11  ;;  %v9181_v11 = vld [vmem:[%s16342_s2 + $0x62c] ss:$16 sps:$4 sm:$0xff]  }
  0x85   :  { %5071 = vmatprep.mubr.bf16.mxu0 %v7703_v13  ;;  %5604 = vmatprep.mubr.bf16.mxu1 %v7703_v13  ;;  %v9173_v13 = vld [vmem:[%s16342_s2 + $0x608] ss:$16 sps:$4 sm:$0xff]  }
  0x87   :  { %5042 = vmatpush1.bf16.msra.mxu0 %v9078_v14  ;;  %5575 = vmatpush1.bf16.msra.mxu1 %v9081_v15  ;;  %v11689_v14 = vld [vmem:[%s16340_s0 + $0x18] sm:$0xff]  ;;  %v9178_v15 = vld [vmem:[%s16342_s2 + $0x624] ss:$16 sps:$4 sm:$0xff]  }
  0x88   :  { %5043 = vmatprep.subr.bf16.mxu0 %v9086_v16  ;;  %5576 = vmatprep.subr.bf16.mxu1 %v9089_v17  ;;  %v7705_v16 = vcombine.high %v11689_v14, %v11689_v14  ;;  %v9176_v17 = vld [vmem:[%s16342_s2 + $0x620] ss:$16 sps:$4 sm:$0xff]  }
  0x8b   :  { %5044 = vmatpush1.bf16.msra.mxu0 %v9084_v18  ;;  %5577 = vmatpush1.bf16.msra.mxu1 %v9087_v19  ;;  %v9179_v18 = vld [vmem:[%s16342_s2 + $0x628] ss:$16 sps:$4 sm:$0xff]   ;;  %v9184_v19 = vld [vmem:[%s16342_s2 + $0x644] ss:$16 sps:$4 sm:$0xff]  }
  0x8c   :  { %5045 = vmatprep.subr.bf16.mxu0 %v9092_v20  ;;  %5578 = vmatprep.subr.bf16.mxu1 %v9095_v21  ;;  %v9187_v20 = vld [vmem:[%s16342_s2 + $0x64c] ss:$16 sps:$4 sm:$0xff]   ;;  %v9182_v21 = vld [vmem:[%s16342_s2 + $0x640] ss:$16 sps:$4 sm:$0xff]  }
  0x8f   :  { %5046 = vmatpush1.bf16.msra.mxu0 %v9090_v22  ;;  %5579 = vmatpush1.bf16.msra.mxu1 %v9093_v23  ;;  %v9185_v22 = vld [vmem:[%s16342_s2 + $0x648] ss:$16 sps:$4 sm:$0xff]   ;;  %v9190_v23 = vld [vmem:[%s16342_s2 + $0x664] ss:$16 sps:$4 sm:$0xff]  }
  0x90   :  { %5047 = vmatprep.subr.bf16.mxu0 %v9098_v24  ;;  %5580 = vmatprep.subr.bf16.mxu1 %v9101_v25  ;;  %v9193_v24 = vld [vmem:[%s16342_s2 + $0x66c] ss:$16 sps:$4 sm:$0xff]   ;;  %v9188_v25 = vld [vmem:[%s16342_s2 + $0x660] ss:$16 sps:$4 sm:$0xff]  }
  0x93   :  { %5048 = vmatpush1.bf16.msra.mxu0 %v9096_v26  ;;  %5581 = vmatpush1.bf16.msra.mxu1 %v9099_v27  ;;  %v9191_v26 = vld [vmem:[%s16342_s2 + $0x668] ss:$16 sps:$4 sm:$0xff]   ;;  %v9196_v27 = vld [vmem:[%s16342_s2 + $0x684] ss:$16 sps:$4 sm:$0xff]  }
  0x94   :  { %5049 = vmatprep.subr.bf16.mxu0 %v9104_v28  ;;  %5582 = vmatprep.subr.bf16.mxu1 %v9107_v29  ;;  %v9199_v28 = vld [vmem:[%s16342_s2 + $0x68c] ss:$16 sps:$4 sm:$0xff]   ;;  %v9194_v29 = vld [vmem:[%s16342_s2 + $0x680] ss:$16 sps:$4 sm:$0xff]  }
  0x97   :  { %5050 = vmatpush1.bf16.msra.mxu0 %v9102_v30  ;;  %5583 = vmatpush1.bf16.msra.mxu1 %v9105_v31  ;;  %v9197_v30 = vld [vmem:[%s16342_s2 + $0x688] ss:$16 sps:$4 sm:$0xff]   ;;  %v9202_v31 = vld [vmem:[%s16342_s2 + $0x6a4] ss:$16 sps:$4 sm:$0xff]  }
  0x98   :  { %5051 = vmatprep.subr.bf16.mxu0 %v9110_v32  ;;  %5584 = vmatprep.subr.bf16.mxu1 %v9113_v33  ;;  %v9205_v32 = vld [vmem:[%s16342_s2 + $0x6ac] ss:$16 sps:$4 sm:$0xff]   ;;  %v9200_v33 = vld [vmem:[%s16342_s2 + $0x6a0] ss:$16 sps:$4 sm:$0xff]  }
  0x9b   :  { %5052 = vmatpush1.bf16.msra.mxu0 %v9108_v34  ;;  %5585 = vmatpush1.bf16.msra.mxu1 %v9111_v35  ;;  %v9203_v34 = vld [vmem:[%s16342_s2 + $0x6a8] ss:$16 sps:$4 sm:$0xff]   ;;  %v9208_v35 = vld [vmem:[%s16342_s2 + $0x6c4] ss:$16 sps:$4 sm:$0xff]  }
  0x9c   :  { %5053 = vmatprep.subr.bf16.mxu0 %v9116_v36  ;;  %5586 = vmatprep.subr.bf16.mxu1 %v9119_v37  ;;  %v9211_v36 = vld [vmem:[%s16342_s2 + $0x6cc] ss:$16 sps:$4 sm:$0xff]   ;;  %v9206_v37 = vld [vmem:[%s16342_s2 + $0x6c0] ss:$16 sps:$4 sm:$0xff]  }
  0x9f   :  { %5054 = vmatpush1.bf16.msra.mxu0 %v9114_v38  ;;  %5587 = vmatpush1.bf16.msra.mxu1 %v9117_v39  ;;  %v9209_v38 = vld [vmem:[%s16342_s2 + $0x6c8] ss:$16 sps:$4 sm:$0xff]   ;;  %v9214_v39 = vld [vmem:[%s16342_s2 + $0x6e4] ss:$16 sps:$4 sm:$0xff]  }
  0xa0   :  { %5055 = vmatprep.subr.bf16.mxu0 %v9122_v40  ;;  %5588 = vmatprep.subr.bf16.mxu1 %v9125_v41  ;;  %v9217_v40 = vld [vmem:[%s16342_s2 + $0x6ec] ss:$16 sps:$4 sm:$0xff]   ;;  %v9212_v41 = vld [vmem:[%s16342_s2 + $0x6e0] ss:$16 sps:$4 sm:$0xff]  }
  0xa3   :  { %5056 = vmatpush1.bf16.msra.mxu0 %v9120_v42  ;;  %5589 = vmatpush1.bf16.msra.mxu1 %v9123_v43  ;;  %v9215_v42 = vld [vmem:[%s16342_s2 + $0x6e8] ss:$16 sps:$4 sm:$0xff]   ;;  %v9220_v43 = vld [vmem:[%s16342_s2 + $0x704] ss:$16 sps:$4 sm:$0xff]  }
  0xa4   :  { %5057 = vmatprep.subr.bf16.mxu0 %v9128_v44  ;;  %5590 = vmatprep.subr.bf16.mxu1 %v9131_v45  ;;  %v9223_v44 = vld [vmem:[%s16342_s2 + $0x70c] ss:$16 sps:$4 sm:$0xff]   ;;  %v9218_v45 = vld [vmem:[%s16342_s2 + $0x700] ss:$16 sps:$4 sm:$0xff]  }
  0xa7   :  { %5058 = vmatpush1.bf16.msra.mxu0 %v9126_v46  ;;  %5591 = vmatpush1.bf16.msra.mxu1 %v9129_v47  ;;  %v9221_v46 = vld [vmem:[%s16342_s2 + $0x708] ss:$16 sps:$4 sm:$0xff]   ;;  %v9226_v47 = vld [vmem:[%s16342_s2 + $0x724] ss:$16 sps:$4 sm:$0xff]  }
  0xa8   :  { %5059 = vmatprep.subr.bf16.mxu0 %v9134_v48  ;;  %5592 = vmatprep.subr.bf16.mxu1 %v9137_v49  ;;  %v9229_v48 = vld [vmem:[%s16342_s2 + $0x72c] ss:$16 sps:$4 sm:$0xff]   ;;  %v9224_v49 = vld [vmem:[%s16342_s2 + $0x720] ss:$16 sps:$4 sm:$0xff]  }
  0xab   :  { %5060 = vmatpush1.bf16.msra.mxu0 %v9132_v50  ;;  %5593 = vmatpush1.bf16.msra.mxu1 %v9135_v51  ;;  %v9227_v50 = vld [vmem:[%s16342_s2 + $0x728] ss:$16 sps:$4 sm:$0xff]   ;;  %v9232_v51 = vld [vmem:[%s16342_s2 + $0x744] ss:$16 sps:$4 sm:$0xff]  }
  0xac   :  { %5061 = vmatprep.subr.bf16.mxu0 %v9140_v52  ;;  %5594 = vmatprep.subr.bf16.mxu1 %v9143_v53  ;;  %v9235_v52 = vld [vmem:[%s16342_s2 + $0x74c] ss:$16 sps:$4 sm:$0xff]   ;;  %v9230_v53 = vld [vmem:[%s16342_s2 + $0x740] ss:$16 sps:$4 sm:$0xff]  }
  0xaf   :  { %5062 = vmatpush1.bf16.msra.mxu0 %v9138_v54  ;;  %5595 = vmatpush1.bf16.msra.mxu1 %v9141_v55  ;;  %v9233_v54 = vld [vmem:[%s16342_s2 + $0x748] ss:$16 sps:$4 sm:$0xff]   ;;  %v9238_v55 = vld [vmem:[%s16342_s2 + $0x764] ss:$16 sps:$4 sm:$0xff]  }
  0xb0   :  { %5063 = vmatprep.subr.bf16.mxu0 %v9146_v56  ;;  %5596 = vmatprep.subr.bf16.mxu1 %v9149_v57  ;;  %v9241_v56 = vld [vmem:[%s16342_s2 + $0x76c] ss:$16 sps:$4 sm:$0xff]   ;;  %v9236_v57 = vld [vmem:[%s16342_s2 + $0x760] ss:$16 sps:$4 sm:$0xff]  }
  0xb3   :  { %5064 = vmatpush1.bf16.msra.mxu0 %v9144_v58  ;;  %5597 = vmatpush1.bf16.msra.mxu1 %v9147_v59  ;;  %v9239_v58 = vld [vmem:[%s16342_s2 + $0x768] ss:$16 sps:$4 sm:$0xff]   ;;  %v9244_v59 = vld [vmem:[%s16342_s2 + $0x784] ss:$16 sps:$4 sm:$0xff]  }
  0xb4   :  { %5065 = vmatprep.subr.bf16.mxu0 %v9152_v60  ;;  %5598 = vmatprep.subr.bf16.mxu1 %v9155_v61  ;;  %v9247_v60 = vld [vmem:[%s16342_s2 + $0x78c] ss:$16 sps:$4 sm:$0xff]   ;;  %v9242_v61 = vld [vmem:[%s16342_s2 + $0x780] ss:$16 sps:$4 sm:$0xff]  }
  0xb7   :  { %5066 = vmatpush1.bf16.msra.mxu0 %v9150_v62  ;;  %5599 = vmatpush1.bf16.msra.mxu1 %v9153_v63  ;;  %v9245_v62 = vld [vmem:[%s16342_s2 + $0x788] ss:$16 sps:$4 sm:$0xff]   ;;  %v9250_v63 = vld [vmem:[%s16342_s2 + $0x7a4] ss:$16 sps:$4 sm:$0xff]  }
  0xb8   :  { %5067 = vmatprep.subr.bf16.mxu0 %v9158_v0  ;;  %5600 = vmatprep.subr.bf16.mxu1 %v9161_v1  ;;  %v9253_v0 = vld [vmem:[%s16342_s2 + $0x7ac] ss:$16 sps:$4 sm:$0xff]   ;;  %v9248_v1 = vld [vmem:[%s16342_s2 + $0x7a0] ss:$16 sps:$4 sm:$0xff]  }
  0xbb   :  { %5068 = vmatpush1.bf16.msra.mxu0 %v9156_v2  ;;  %5601 = vmatpush1.bf16.msra.mxu1 %v9159_v3  ;;  %v9251_v2 = vld [vmem:[%s16342_s2 + $0x7a8] ss:$16 sps:$4 sm:$0xff]   ;;  %v9256_v3 = vld [vmem:[%s16342_s2 + $0x7c4] ss:$16 sps:$4 sm:$0xff]  }
  0xbc   :  { %5069 = vmatprep.subr.bf16.mxu0 %v9164_v4  ;;  %5602 = vmatprep.subr.bf16.mxu1 %v9167_v5  ;;  %v9259_v4 = vld [vmem:[%s16342_s2 + $0x7cc] ss:$16 sps:$4 sm:$0xff]   ;;  %v9254_v5 = vld [vmem:[%s16342_s2 + $0x7c0] ss:$16 sps:$4 sm:$0xff]  }
  0xbf   :  { %5070 = vmatpush1.bf16.msra.mxu0 %v9162_v6  ;;  %5603 = vmatpush1.bf16.msra.mxu1 %v9165_v7  ;;  %v9257_v6 = vld [vmem:[%s16342_s2 + $0x7c8] ss:$16 sps:$4 sm:$0xff]   ;;  %v9262_v7 = vld [vmem:[%s16342_s2 + $0x7e4] ss:$16 sps:$4 sm:$0xff]  }
  0xc0   :  { %5080 = vmatprep.subr.bf16.mxu0 %v9172_v8  ;;  %5613 = vmatprep.subr.bf16.mxu1 %v9175_v9  ;;  %v9265_v8 = vld [vmem:[%s16342_s2 + $0x7ec] ss:$16 sps:$4 sm:$0xff]   ;;  %v9260_v9 = vld [vmem:[%s16342_s2 + $0x7e0] ss:$16 sps:$4 sm:$0xff]  }
  0xc2   :  { %5072 = vmatmul.mubr.bf16.vlgmr.msra.gmra.mrb[0].mxu0 %v7702_v12  ;;  %5605 = vmatmul.mubr.bf16.vlgmr.msra.gmra.mrb[0].mxu1 %v7702_v12  ;;  %v9270_v12 = vld [vmem:[%s16342_s2 + $0x804] ss:$16 sps:$4 sm:$0xff]  }
  0xc3   :  { %5081 = vmatpush1.bf16.msra.mxu0 %v9170_v10  ;;  %5614 = vmatpush1.bf16.msra.mxu1 %v9173_v13  ;;  %v9263_v10 = vld [vmem:[%s16342_s2 + $0x7e8] ss:$16 sps:$4 sm:$0xff]   ;;  %v9273_v13 = vld [vmem:[%s16342_s2 + $0x80c] ss:$16 sps:$4 sm:$0xff]  }
  0xc4   :  { %5082 = vmatprep.subr.bf16.mxu0 %v9178_v15  ;;  %5615 = vmatprep.subr.bf16.mxu1 %v9181_v11  ;;  %v9268_v15 = vld [vmem:[%s16342_s2 + $0x800] ss:$16 sps:$4 sm:$0xff]   ;;  %v7704_v11 = vcombine.low %v11689_v14, %v11689_v14  ;;  %v9279_v14 = vld [vmem:[%s16342_s2 + $0x82c] ss:$16 sps:$4 sm:$0xff]  }
  0xc5   :  { %5112 = vmatprep.mubr.bf16.mxu0 %v7705_v16  ;;  %5645 = vmatprep.mubr.bf16.mxu1 %v7705_v16  ;;  %v11887_v16 = vld [vmem:[%s16340_s0 + $0x20] sm:$0xff] }
  0xc7   :  { %5083 = vmatpush1.bf16.msra.mxu0 %v9176_v17  ;;  %5616 = vmatpush1.bf16.msra.mxu1 %v9179_v18  ;;  %v9271_v17 = vld [vmem:[%s16342_s2 + $0x808] ss:$16 sps:$4 sm:$0xff]   ;;  %v9276_v18 = vld [vmem:[%s16342_s2 + $0x824] ss:$16 sps:$4 sm:$0xff]  }
  0xc8   :  { %5084 = vmatprep.subr.bf16.mxu0 %v9184_v19  ;;  %5617 = vmatprep.subr.bf16.mxu1 %v9187_v20  ;;  %v7707_v19 = vcombine.high %v11887_v16, %v11887_v16  ;;  %v9274_v20 = vld [vmem:[%s16342_s2 + $0x820] ss:$16 sps:$4 sm:$0xff]  }
  0xcb   :  { %5085 = vmatpush1.bf16.msra.mxu0 %v9182_v21  ;;  %5618 = vmatpush1.bf16.msra.mxu1 %v9185_v22  ;;  %v9277_v21 = vld [vmem:[%s16342_s2 + $0x828] ss:$16 sps:$4 sm:$0xff]   ;;  %v9282_v22 = vld [vmem:[%s16342_s2 + $0x844] ss:$16 sps:$4 sm:$0xff]  }
  0xcc   :  { %5086 = vmatprep.subr.bf16.mxu0 %v9190_v23  ;;  %5619 = vmatprep.subr.bf16.mxu1 %v9193_v24  ;;  %v9285_v23 = vld [vmem:[%s16342_s2 + $0x84c] ss:$16 sps:$4 sm:$0xff]   ;;  %v9280_v24 = vld [vmem:[%s16342_s2 + $0x840] ss:$16 sps:$4 sm:$0xff]  }
  0xcf   :  { %5087 = vmatpush1.bf16.msra.mxu0 %v9188_v25  ;;  %5620 = vmatpush1.bf16.msra.mxu1 %v9191_v26  ;;  %v9283_v25 = vld [vmem:[%s16342_s2 + $0x848] ss:$16 sps:$4 sm:$0xff]   ;;  %v9288_v26 = vld [vmem:[%s16342_s2 + $0x864] ss:$16 sps:$4 sm:$0xff]  }
  0xd0   :  { %5088 = vmatprep.subr.bf16.mxu0 %v9196_v27  ;;  %5621 = vmatprep.subr.bf16.mxu1 %v9199_v28  ;;  %v9291_v27 = vld [vmem:[%s16342_s2 + $0x86c] ss:$16 sps:$4 sm:$0xff]   ;;  %v9286_v28 = vld [vmem:[%s16342_s2 + $0x860] ss:$16 sps:$4 sm:$0xff]  }
  0xd3   :  { %5089 = vmatpush1.bf16.msra.mxu0 %v9194_v29  ;;  %5622 = vmatpush1.bf16.msra.mxu1 %v9197_v30  ;;  %v9289_v29 = vld [vmem:[%s16342_s2 + $0x868] ss:$16 sps:$4 sm:$0xff]   ;;  %v9294_v30 = vld [vmem:[%s16342_s2 + $0x884] ss:$16 sps:$4 sm:$0xff]  }
  0xd4   :  { %5090 = vmatprep.subr.bf16.mxu0 %v9202_v31  ;;  %5623 = vmatprep.subr.bf16.mxu1 %v9205_v32  ;;  %v9297_v31 = vld [vmem:[%s16342_s2 + $0x88c] ss:$16 sps:$4 sm:$0xff]   ;;  %v9292_v32 = vld [vmem:[%s16342_s2 + $0x880] ss:$16 sps:$4 sm:$0xff]  }
  0xd7   :  { %5091 = vmatpush1.bf16.msra.mxu0 %v9200_v33  ;;  %5624 = vmatpush1.bf16.msra.mxu1 %v9203_v34  ;;  %v9295_v33 = vld [vmem:[%s16342_s2 + $0x888] ss:$16 sps:$4 sm:$0xff]   ;;  %v9300_v34 = vld [vmem:[%s16342_s2 + $0x8a4] ss:$16 sps:$4 sm:$0xff]  }
  0xd8   :  { %5092 = vmatprep.subr.bf16.mxu0 %v9208_v35  ;;  %5625 = vmatprep.subr.bf16.mxu1 %v9211_v36  ;;  %v9303_v35 = vld [vmem:[%s16342_s2 + $0x8ac] ss:$16 sps:$4 sm:$0xff]   ;;  %v9298_v36 = vld [vmem:[%s16342_s2 + $0x8a0] ss:$16 sps:$4 sm:$0xff]  }
  0xdb   :  { %5093 = vmatpush1.bf16.msra.mxu0 %v9206_v37  ;;  %5626 = vmatpush1.bf16.msra.mxu1 %v9209_v38  ;;  %v9301_v37 = vld [vmem:[%s16342_s2 + $0x8a8] ss:$16 sps:$4 sm:$0xff]   ;;  %v9306_v38 = vld [vmem:[%s16342_s2 + $0x8c4] ss:$16 sps:$4 sm:$0xff]  }
  0xdc   :  { %5094 = vmatprep.subr.bf16.mxu0 %v9214_v39  ;;  %5627 = vmatprep.subr.bf16.mxu1 %v9217_v40  ;;  %v9309_v39 = vld [vmem:[%s16342_s2 + $0x8cc] ss:$16 sps:$4 sm:$0xff]   ;;  %v9304_v40 = vld [vmem:[%s16342_s2 + $0x8c0] ss:$16 sps:$4 sm:$0xff]  }
  0xdf   :  { %5095 = vmatpush1.bf16.msra.mxu0 %v9212_v41  ;;  %5628 = vmatpush1.bf16.msra.mxu1 %v9215_v42  ;;  %v9307_v41 = vld [vmem:[%s16342_s2 + $0x8c8] ss:$16 sps:$4 sm:$0xff]   ;;  %v9312_v42 = vld [vmem:[%s16342_s2 + $0x8e4] ss:$16 sps:$4 sm:$0xff]  }
  0xe0   :  { %5096 = vmatprep.subr.bf16.mxu0 %v9220_v43  ;;  %5629 = vmatprep.subr.bf16.mxu1 %v9223_v44  ;;  %v9315_v43 = vld [vmem:[%s16342_s2 + $0x8ec] ss:$16 sps:$4 sm:$0xff]   ;;  %v9310_v44 = vld [vmem:[%s16342_s2 + $0x8e0] ss:$16 sps:$4 sm:$0xff]  }
  0xe3   :  { %5097 = vmatpush1.bf16.msra.mxu0 %v9218_v45  ;;  %5630 = vmatpush1.bf16.msra.mxu1 %v9221_v46  ;;  %v9313_v45 = vld [vmem:[%s16342_s2 + $0x8e8] ss:$16 sps:$4 sm:$0xff]   ;;  %v9318_v46 = vld [vmem:[%s16342_s2 + $0x904] ss:$16 sps:$4 sm:$0xff]  }
  0xe4   :  { %5098 = vmatprep.subr.bf16.mxu0 %v9226_v47  ;;  %5631 = vmatprep.subr.bf16.mxu1 %v9229_v48  ;;  %v9321_v47 = vld [vmem:[%s16342_s2 + $0x90c] ss:$16 sps:$4 sm:$0xff]   ;;  %v9316_v48 = vld [vmem:[%s16342_s2 + $0x900] ss:$16 sps:$4 sm:$0xff]  }
  0xe7   :  { %5099 = vmatpush1.bf16.msra.mxu0 %v9224_v49  ;;  %5632 = vmatpush1.bf16.msra.mxu1 %v9227_v50  ;;  %v9319_v49 = vld [vmem:[%s16342_s2 + $0x908] ss:$16 sps:$4 sm:$0xff]   ;;  %v9324_v50 = vld [vmem:[%s16342_s2 + $0x924] ss:$16 sps:$4 sm:$0xff]  }
  0xe8   :  { %5100 = vmatprep.subr.bf16.mxu0 %v9232_v51  ;;  %5633 = vmatprep.subr.bf16.mxu1 %v9235_v52  ;;  %v9327_v51 = vld [vmem:[%s16342_s2 + $0x92c] ss:$16 sps:$4 sm:$0xff]   ;;  %v9322_v52 = vld [vmem:[%s16342_s2 + $0x920] ss:$16 sps:$4 sm:$0xff]  }
  0xeb   :  { %5101 = vmatpush1.bf16.msra.mxu0 %v9230_v53  ;;  %5634 = vmatpush1.bf16.msra.mxu1 %v9233_v54  ;;  %v9325_v53 = vld [vmem:[%s16342_s2 + $0x928] ss:$16 sps:$4 sm:$0xff]   ;;  %v9330_v54 = vld [vmem:[%s16342_s2 + $0x944] ss:$16 sps:$4 sm:$0xff]  }
  0xec   :  { %5102 = vmatprep.subr.bf16.mxu0 %v9238_v55  ;;  %5635 = vmatprep.subr.bf16.mxu1 %v9241_v56  ;;  %v9333_v55 = vld [vmem:[%s16342_s2 + $0x94c] ss:$16 sps:$4 sm:$0xff]   ;;  %v9328_v56 = vld [vmem:[%s16342_s2 + $0x940] ss:$16 sps:$4 sm:$0xff]  }
  0xef   :  { %5103 = vmatpush1.bf16.msra.mxu0 %v9236_v57  ;;  %5636 = vmatpush1.bf16.msra.mxu1 %v9239_v58  ;;  %v9331_v57 = vld [vmem:[%s16342_s2 + $0x948] ss:$16 sps:$4 sm:$0xff]   ;;  %v9336_v58 = vld [vmem:[%s16342_s2 + $0x964] ss:$16 sps:$4 sm:$0xff]  }
  0xf0   :  { %5104 = vmatprep.subr.bf16.mxu0 %v9244_v59  ;;  %5637 = vmatprep.subr.bf16.mxu1 %v9247_v60  ;;  %v9339_v59 = vld [vmem:[%s16342_s2 + $0x96c] ss:$16 sps:$4 sm:$0xff]   ;;  %v9334_v60 = vld [vmem:[%s16342_s2 + $0x960] ss:$16 sps:$4 sm:$0xff]  }
  0xf3   :  { %5105 = vmatpush1.bf16.msra.mxu0 %v9242_v61  ;;  %5638 = vmatpush1.bf16.msra.mxu1 %v9245_v62  ;;  %v9337_v61 = vld [vmem:[%s16342_s2 + $0x968] ss:$16 sps:$4 sm:$0xff]   ;;  %v9342_v62 = vld [vmem:[%s16342_s2 + $0x984] ss:$16 sps:$4 sm:$0xff]  }
  0xf4   :  { %5106 = vmatprep.subr.bf16.mxu0 %v9250_v63  ;;  %5639 = vmatprep.subr.bf16.mxu1 %v9253_v0  ;;  %v9345_v63 = vld [vmem:[%s16342_s2 + $0x98c] ss:$16 sps:$4 sm:$0xff]   ;;  %v9340_v0 = vld [vmem:[%s16342_s2 + $0x980] ss:$16 sps:$4 sm:$0xff]  }
  0xf7   :  { %5107 = vmatpush1.bf16.msra.mxu0 %v9248_v1  ;;  %5640 = vmatpush1.bf16.msra.mxu1 %v9251_v2  ;;  %v9343_v1 = vld [vmem:[%s16342_s2 + $0x988] ss:$16 sps:$4 sm:$0xff]   ;;  %v9348_v2 = vld [vmem:[%s16342_s2 + $0x9a4] ss:$16 sps:$4 sm:$0xff]  }
  0xf8   :  { %5108 = vmatprep.subr.bf16.mxu0 %v9256_v3  ;;  %5641 = vmatprep.subr.bf16.mxu1 %v9259_v4  ;;  %v9351_v3 = vld [vmem:[%s16342_s2 + $0x9ac] ss:$16 sps:$4 sm:$0xff]   ;;  %v9346_v4 = vld [vmem:[%s16342_s2 + $0x9a0] ss:$16 sps:$4 sm:$0xff]  }
  0xfb   :  { %5109 = vmatpush1.bf16.msra.mxu0 %v9254_v5  ;;  %5642 = vmatpush1.bf16.msra.mxu1 %v9257_v6  ;;  %v9349_v5 = vld [vmem:[%s16342_s2 + $0x9a8] ss:$16 sps:$4 sm:$0xff]   ;;  %v9354_v6 = vld [vmem:[%s16342_s2 + $0x9c4] ss:$16 sps:$4 sm:$0xff]  }
  0xfc   :  { %5110 = vmatprep.subr.bf16.mxu0 %v9262_v7  ;;  %5643 = vmatprep.subr.bf16.mxu1 %v9265_v8  ;;  %v9357_v7 = vld [vmem:[%s16342_s2 + $0x9cc] ss:$16 sps:$4 sm:$0xff]   ;;  %v9352_v8 = vld [vmem:[%s16342_s2 + $0x9c0] ss:$16 sps:$4 sm:$0xff]  }
  0xff   :  { %5111 = vmatpush1.bf16.msra.mxu0 %v9260_v9  ;;  %5644 = vmatpush1.bf16.msra.mxu1 %v9263_v10  ;;  %v9355_v9 = vld [vmem:[%s16342_s2 + $0x9c8] ss:$16 sps:$4 sm:$0xff]   ;;  %v9360_v10 = vld [vmem:[%s16342_s2 + $0x9e4] ss:$16 sps:$4 sm:$0xff]  }
 0x100   :  { %5121 = vmatprep.subr.bf16.mxu0 %v9270_v12  ;;  %5654 = vmatprep.subr.bf16.mxu1 %v9273_v13  ;;  %v9363_v12 = vld [vmem:[%s16342_s2 + $0x9ec] ss:$16 sps:$4 sm:$0xff]   ;;  %v9358_v13 = vld [vmem:[%s16342_s2 + $0x9e0] ss:$16 sps:$4 sm:$0xff]  }
 0x102   :  { %5113 = vmatmul.mubr.bf16.vlgmr.msra.gmra.mrb[0].mxu0 %v7704_v11  ;;  %5646 = vmatmul.mubr.bf16.vlgmr.msra.gmra.mrb[0].mxu1 %v7704_v11  ;;  %v9368_v11 = vld [vmem:[%s16342_s2 + $0xa04] ss:$16 sps:$4 sm:$0xff]  }
 0x103   :  { %5122 = vmatpush1.bf16.msra.mxu0 %v9268_v15  ;;  %5655 = vmatpush1.bf16.msra.mxu1 %v9271_v17  ;;  %v9361_v15 = vld [vmem:[%s16342_s2 + $0x9e8] ss:$16 sps:$4 sm:$0xff]   ;;  %v9371_v17 = vld [vmem:[%s16342_s2 + $0xa0c] ss:$16 sps:$4 sm:$0xff]  }
 0x104   :  { %5123 = vmatprep.subr.bf16.mxu0 %v9276_v18  ;;  %5656 = vmatprep.subr.bf16.mxu1 %v9279_v14  ;;  %v12083_v18 = vld [vmem:[%s16340_s0 + $0x28] sm:$0xff]  ;;  %v7706_v14 = vcombine.low %v11887_v16, %v11887_v16 }
 0x105   :  { %5153 = vmatprep.mubr.bf16.mxu0 %v7707_v19  ;;  %5686 = vmatprep.mubr.bf16.mxu1 %v7707_v19  ;;  %v9366_v19 = vld [vmem:[%s16342_s2 + $0xa00] ss:$16 sps:$4 sm:$0xff]   ;;  %v9377_v16 = vld [vmem:[%s16342_s2 + $0xa2c] ss:$16 sps:$4 sm:$0xff]  }
 0x107   :  { %5124 = vmatpush1.bf16.msra.mxu0 %v9274_v20  ;;  %5657 = vmatpush1.bf16.msra.mxu1 %v9277_v21  ;;  %v9369_v20 = vld [vmem:[%s16342_s2 + $0xa08] ss:$16 sps:$4 sm:$0xff]   ;;  %v9374_v21 = vld [vmem:[%s16342_s2 + $0xa24] ss:$16 sps:$4 sm:$0xff]  }
 0x108   :  { %5125 = vmatprep.subr.bf16.mxu0 %v9282_v22  ;;  %5658 = vmatprep.subr.bf16.mxu1 %v9285_v23  ;;  %v7709_v22 = vcombine.high %v12083_v18, %v12083_v18  ;;  %v9372_v23 = vld [vmem:[%s16342_s2 + $0xa20] ss:$16 sps:$4 sm:$0xff]  }
 0x10b   :  { %5126 = vmatpush1.bf16.msra.mxu0 %v9280_v24  ;;  %5659 = vmatpush1.bf16.msra.mxu1 %v9283_v25  ;;  %v9375_v24 = vld [vmem:[%s16342_s2 + $0xa28] ss:$16 sps:$4 sm:$0xff]   ;;  %v9380_v25 = vld [vmem:[%s16342_s2 + $0xa44] ss:$16 sps:$4 sm:$0xff]  }
 0x10c   :  { %5127 = vmatprep.subr.bf16.mxu0 %v9288_v26  ;;  %5660 = vmatprep.subr.bf16.mxu1 %v9291_v27  ;;  %v9383_v26 = vld [vmem:[%s16342_s2 + $0xa4c] ss:$16 sps:$4 sm:$0xff]   ;;  %v9378_v27 = vld [vmem:[%s16342_s2 + $0xa40] ss:$16 sps:$4 sm:$0xff]  }
 0x10f   :  { %5128 = vmatpush1.bf16.msra.mxu0 %v9286_v28  ;;  %5661 = vmatpush1.bf16.msra.mxu1 %v9289_v29  ;;  %v9381_v28 = vld [vmem:[%s16342_s2 + $0xa48] ss:$16 sps:$4 sm:$0xff]   ;;  %v9386_v29 = vld [vmem:[%s16342_s2 + $0xa64] ss:$16 sps:$4 sm:$0xff]  }
 0x110   :  { %5129 = vmatprep.subr.bf16.mxu0 %v9294_v30  ;;  %5662 = vmatprep.subr.bf16.mxu1 %v9297_v31  ;;  %v9389_v30 = vld [vmem:[%s16342_s2 + $0xa6c] ss:$16 sps:$4 sm:$0xff]   ;;  %v9384_v31 = vld [vmem:[%s16342_s2 + $0xa60] ss:$16 sps:$4 sm:$0xff]  }
 0x113   :  { %5130 = vmatpush1.bf16.msra.mxu0 %v9292_v32  ;;  %5663 = vmatpush1.bf16.msra.mxu1 %v9295_v33  ;;  %v9387_v32 = vld [vmem:[%s16342_s2 + $0xa68] ss:$16 sps:$4 sm:$0xff]   ;;  %v9392_v33 = vld [vmem:[%s16342_s2 + $0xa84] ss:$16 sps:$4 sm:$0xff]  }
 0x114   :  { %5131 = vmatprep.subr.bf16.mxu0 %v9300_v34  ;;  %5664 = vmatprep.subr.bf16.mxu1 %v9303_v35  ;;  %v9395_v34 = vld [vmem:[%s16342_s2 + $0xa8c] ss:$16 sps:$4 sm:$0xff]   ;;  %v9390_v35 = vld [vmem:[%s16342_s2 + $0xa80] ss:$16 sps:$4 sm:$0xff]  }
 0x117   :  { %5132 = vmatpush1.bf16.msra.mxu0 %v9298_v36  ;;  %5665 = vmatpush1.bf16.msra.mxu1 %v9301_v37  ;;  %v9393_v36 = vld [vmem:[%s16342_s2 + $0xa88] ss:$16 sps:$4 sm:$0xff]   ;;  %v9398_v37 = vld [vmem:[%s16342_s2 + $0xaa4] ss:$16 sps:$4 sm:$0xff]  }
 0x118   :  { %5133 = vmatprep.subr.bf16.mxu0 %v9306_v38  ;;  %5666 = vmatprep.subr.bf16.mxu1 %v9309_v39  ;;  %v9401_v38 = vld [vmem:[%s16342_s2 + $0xaac] ss:$16 sps:$4 sm:$0xff]   ;;  %v9396_v39 = vld [vmem:[%s16342_s2 + $0xaa0] ss:$16 sps:$4 sm:$0xff]  }
 0x11b   :  { %5134 = vmatpush1.bf16.msra.mxu0 %v9304_v40  ;;  %5667 = vmatpush1.bf16.msra.mxu1 %v9307_v41  ;;  %v9399_v40 = vld [vmem:[%s16342_s2 + $0xaa8] ss:$16 sps:$4 sm:$0xff]   ;;  %v9404_v41 = vld [vmem:[%s16342_s2 + $0xac4] ss:$16 sps:$4 sm:$0xff]  }
 0x11c   :  { %5135 = vmatprep.subr.bf16.mxu0 %v9312_v42  ;;  %5668 = vmatprep.subr.bf16.mxu1 %v9315_v43  ;;  %v9407_v42 = vld [vmem:[%s16342_s2 + $0xacc] ss:$16 sps:$4 sm:$0xff]   ;;  %v9402_v43 = vld [vmem:[%s16342_s2 + $0xac0] ss:$16 sps:$4 sm:$0xff]  }
 0x11f   :  { %5136 = vmatpush1.bf16.msra.mxu0 %v9310_v44  ;;  %5669 = vmatpush1.bf16.msra.mxu1 %v9313_v45  ;;  %v9405_v44 = vld [vmem:[%s16342_s2 + $0xac8] ss:$16 sps:$4 sm:$0xff]   ;;  %v9410_v45 = vld [vmem:[%s16342_s2 + $0xae4] ss:$16 sps:$4 sm:$0xff]  }
 0x120   :  { %5137 = vmatprep.subr.bf16.mxu0 %v9318_v46  ;;  %5670 = vmatprep.subr.bf16.mxu1 %v9321_v47  ;;  %v9413_v46 = vld [vmem:[%s16342_s2 + $0xaec] ss:$16 sps:$4 sm:$0xff]   ;;  %v9408_v47 = vld [vmem:[%s16342_s2 + $0xae0] ss:$16 sps:$4 sm:$0xff]  }
 0x123   :  { %5138 = vmatpush1.bf16.msra.mxu0 %v9316_v48  ;;  %5671 = vmatpush1.bf16.msra.mxu1 %v9319_v49  ;;  %v9411_v48 = vld [vmem:[%s16342_s2 + $0xae8] ss:$16 sps:$4 sm:$0xff]   ;;  %v9416_v49 = vld [vmem:[%s16342_s2 + $0xb04] ss:$16 sps:$4 sm:$0xff]  }
 0x124   :  { %5139 = vmatprep.subr.bf16.mxu0 %v9324_v50  ;;  %5672 = vmatprep.subr.bf16.mxu1 %v9327_v51  ;;  %v9419_v50 = vld [vmem:[%s16342_s2 + $0xb0c] ss:$16 sps:$4 sm:$0xff]   ;;  %v9414_v51 = vld [vmem:[%s16342_s2 + $0xb00] ss:$16 sps:$4 sm:$0xff]  }
 0x127   :  { %5140 = vmatpush1.bf16.msra.mxu0 %v9322_v52  ;;  %5673 = vmatpush1.bf16.msra.mxu1 %v9325_v53  ;;  %v9417_v52 = vld [vmem:[%s16342_s2 + $0xb08] ss:$16 sps:$4 sm:$0xff]   ;;  %v9422_v53 = vld [vmem:[%s16342_s2 + $0xb24] ss:$16 sps:$4 sm:$0xff]  }
 0x128   :  { %5141 = vmatprep.subr.bf16.mxu0 %v9330_v54  ;;  %5674 = vmatprep.subr.bf16.mxu1 %v9333_v55  ;;  %v9425_v54 = vld [vmem:[%s16342_s2 + $0xb2c] ss:$16 sps:$4 sm:$0xff]   ;;  %v9420_v55 = vld [vmem:[%s16342_s2 + $0xb20] ss:$16 sps:$4 sm:$0xff]  }
 0x12b   :  { %5142 = vmatpush1.bf16.msra.mxu0 %v9328_v56  ;;  %5675 = vmatpush1.bf16.msra.mxu1 %v9331_v57  ;;  %v9423_v56 = vld [vmem:[%s16342_s2 + $0xb28] ss:$16 sps:$4 sm:$0xff]   ;;  %v9428_v57 = vld [vmem:[%s16342_s2 + $0xb44] ss:$16 sps:$4 sm:$0xff]  }
 0x12c   :  { %5143 = vmatprep.subr.bf16.mxu0 %v9336_v58  ;;  %5676 = vmatprep.subr.bf16.mxu1 %v9339_v59  ;;  %v9431_v58 = vld [vmem:[%s16342_s2 + $0xb4c] ss:$16 sps:$4 sm:$0xff]   ;;  %v9426_v59 = vld [vmem:[%s16342_s2 + $0xb40] ss:$16 sps:$4 sm:$0xff]  }
 0x12f   :  { %5144 = vmatpush1.bf16.msra.mxu0 %v9334_v60  ;;  %5677 = vmatpush1.bf16.msra.mxu1 %v9337_v61  ;;  %v9429_v60 = vld [vmem:[%s16342_s2 + $0xb48] ss:$16 sps:$4 sm:$0xff]   ;;  %v9434_v61 = vld [vmem:[%s16342_s2 + $0xb64] ss:$16 sps:$4 sm:$0xff]  }
 0x130   :  { %5145 = vmatprep.subr.bf16.mxu0 %v9342_v62  ;;  %5678 = vmatprep.subr.bf16.mxu1 %v9345_v63  ;;  %v9437_v62 = vld [vmem:[%s16342_s2 + $0xb6c] ss:$16 sps:$4 sm:$0xff]   ;;  %v9432_v63 = vld [vmem:[%s16342_s2 + $0xb60] ss:$16 sps:$4 sm:$0xff]  }
 0x133   :  { %5146 = vmatpush1.bf16.msra.mxu0 %v9340_v0  ;;  %5679 = vmatpush1.bf16.msra.mxu1 %v9343_v1  ;;  %v9435_v0 = vld [vmem:[%s16342_s2 + $0xb68] ss:$16 sps:$4 sm:$0xff]   ;;  %v9440_v1 = vld [vmem:[%s16342_s2 + $0xb84] ss:$16 sps:$4 sm:$0xff]  }
 0x134   :  { %5147 = vmatprep.subr.bf16.mxu0 %v9348_v2  ;;  %5680 = vmatprep.subr.bf16.mxu1 %v9351_v3  ;;  %v9443_v2 = vld [vmem:[%s16342_s2 + $0xb8c] ss:$16 sps:$4 sm:$0xff]   ;;  %v9438_v3 = vld [vmem:[%s16342_s2 + $0xb80] ss:$16 sps:$4 sm:$0xff]  }
 0x137   :  { %5148 = vmatpush1.bf16.msra.mxu0 %v9346_v4  ;;  %5681 = vmatpush1.bf16.msra.mxu1 %v9349_v5  ;;  %v9441_v4 = vld [vmem:[%s16342_s2 + $0xb88] ss:$16 sps:$4 sm:$0xff]   ;;  %v9446_v5 = vld [vmem:[%s16342_s2 + $0xba4] ss:$16 sps:$4 sm:$0xff]  }
 0x138   :  { %5149 = vmatprep.subr.bf16.mxu0 %v9354_v6  ;;  %5682 = vmatprep.subr.bf16.mxu1 %v9357_v7  ;;  %v9449_v6 = vld [vmem:[%s16342_s2 + $0xbac] ss:$16 sps:$4 sm:$0xff]   ;;  %v9444_v7 = vld [vmem:[%s16342_s2 + $0xba0] ss:$16 sps:$4 sm:$0xff]  }
 0x13b   :  { %5150 = vmatpush1.bf16.msra.mxu0 %v9352_v8  ;;  %5683 = vmatpush1.bf16.msra.mxu1 %v9355_v9  ;;  %v9447_v8 = vld [vmem:[%s16342_s2 + $0xba8] ss:$16 sps:$4 sm:$0xff]   ;;  %v9452_v9 = vld [vmem:[%s16342_s2 + $0xbc4] ss:$16 sps:$4 sm:$0xff]  }
 0x13c   :  { %5151 = vmatprep.subr.bf16.mxu0 %v9360_v10  ;;  %5684 = vmatprep.subr.bf16.mxu1 %v9363_v12  ;;  %v9455_v10 = vld [vmem:[%s16342_s2 + $0xbcc] ss:$16 sps:$4 sm:$0xff]   ;;  %v9450_v12 = vld [vmem:[%s16342_s2 + $0xbc0] ss:$16 sps:$4 sm:$0xff]  }
 0x13f   :  { %5152 = vmatpush1.bf16.msra.mxu0 %v9358_v13  ;;  %5685 = vmatpush1.bf16.msra.mxu1 %v9361_v15  ;;  %v9453_v13 = vld [vmem:[%s16342_s2 + $0xbc8] ss:$16 sps:$4 sm:$0xff]   ;;  %v9458_v15 = vld [vmem:[%s16342_s2 + $0xbe4] ss:$16 sps:$4 sm:$0xff]  }
 0x140   :  { %5162 = vmatprep.subr.bf16.mxu0 %v9368_v11  ;;  %5695 = vmatprep.subr.bf16.mxu1 %v9371_v17  ;;  %v9461_v11 = vld [vmem:[%s16342_s2 + $0xbec] ss:$16 sps:$4 sm:$0xff]   ;;  %v9456_v17 = vld [vmem:[%s16342_s2 + $0xbe0] ss:$16 sps:$4 sm:$0xff]  }
 0x142   :  { %5154 = vmatmul.mubr.bf16.vlgmr.msra.gmra.mrb[0].mxu0 %v7706_v14  ;;  %5687 = vmatmul.mubr.bf16.vlgmr.msra.gmra.mrb[0].mxu1 %v7706_v14  ;;  %v9459_v14 = vld [vmem:[%s16342_s2 + $0xbe8] ss:$16 sps:$4 sm:$0xff]  }
 0x143   :  { %5163 = vmatpush1.bf16.msra.mxu0 %v9366_v19  ;;  %5696 = vmatpush1.bf16.msra.mxu1 %v9369_v20  ;;  %v9466_v19 = vld [vmem:[%s16342_s2 + $0xc04] ss:$16 sps:$4 sm:$0xff]   ;;  %v9469_v20 = vld [vmem:[%s16342_s2 + $0xc0c] ss:$16 sps:$4 sm:$0xff]  }
 0x144   :  { %5164 = vmatprep.subr.bf16.mxu0 %v9374_v21  ;;  %5697 = vmatprep.subr.bf16.mxu1 %v9377_v16  ;;  %v12284_v21 = vld [vmem:[%s16340_s0 + $0x30] sm:$0xff]  ;;  %v7708_v16 = vcombine.low %v12083_v18, %v12083_v18  ;;  %v9475_v18 = vld [vmem:[%s16342_s2 + $0xc2c] ss:$16 sps:$4 sm:$0xff]  }
 0x145   :  { %5194 = vmatprep.mubr.bf16.mxu0 %v7709_v22  ;;  %5727 = vmatprep.mubr.bf16.mxu1 %v7709_v22  ;;  %v9464_v22 = vld [vmem:[%s16342_s2 + $0xc00] ss:$16 sps:$4 sm:$0xff]  }
 0x147   :  { %5165 = vmatpush1.bf16.msra.mxu0 %v9372_v23  ;;  %5698 = vmatpush1.bf16.msra.mxu1 %v9375_v24  ;;  %v9467_v23 = vld [vmem:[%s16342_s2 + $0xc08] ss:$16 sps:$4 sm:$0xff]   ;;  %v9472_v24 = vld [vmem:[%s16342_s2 + $0xc24] ss:$16 sps:$4 sm:$0xff]  }
 0x148   :  { %5166 = vmatprep.subr.bf16.mxu0 %v9380_v25  ;;  %5699 = vmatprep.subr.bf16.mxu1 %v9383_v26  ;;  %v7711_v25 = vcombine.high %v12284_v21, %v12284_v21  ;;  %v9470_v26 = vld [vmem:[%s16342_s2 + $0xc20] ss:$16 sps:$4 sm:$0xff]  }
 0x14b   :  { %5167 = vmatpush1.bf16.msra.mxu0 %v9378_v27  ;;  %5700 = vmatpush1.bf16.msra.mxu1 %v9381_v28  ;;  %v9473_v27 = vld [vmem:[%s16342_s2 + $0xc28] ss:$16 sps:$4 sm:$0xff]   ;;  %v9478_v28 = vld [vmem:[%s16342_s2 + $0xc44] ss:$16 sps:$4 sm:$0xff]  }
 0x14c   :  { %5168 = vmatprep.subr.bf16.mxu0 %v9386_v29  ;;  %5701 = vmatprep.subr.bf16.mxu1 %v9389_v30  ;;  %v9481_v29 = vld [vmem:[%s16342_s2 + $0xc4c] ss:$16 sps:$4 sm:$0xff]   ;;  %v9476_v30 = vld [vmem:[%s16342_s2 + $0xc40] ss:$16 sps:$4 sm:$0xff]  }
 0x14f   :  { %5169 = vmatpush1.bf16.msra.mxu0 %v9384_v31  ;;  %5702 = vmatpush1.bf16.msra.mxu1 %v9387_v32  ;;  %v9479_v31 = vld [vmem:[%s16342_s2 + $0xc48] ss:$16 sps:$4 sm:$0xff]   ;;  %v9484_v32 = vld [vmem:[%s16342_s2 + $0xc64] ss:$16 sps:$4 sm:$0xff]  }
 0x150   :  { %5170 = vmatprep.subr.bf16.mxu0 %v9392_v33  ;;  %5703 = vmatprep.subr.bf16.mxu1 %v9395_v34  ;;  %v9487_v33 = vld [vmem:[%s16342_s2 + $0xc6c] ss:$16 sps:$4 sm:$0xff]   ;;  %v9482_v34 = vld [vmem:[%s16342_s2 + $0xc60] ss:$16 sps:$4 sm:$0xff]  }
 0x153   :  { %5171 = vmatpush1.bf16.msra.mxu0 %v9390_v35  ;;  %5704 = vmatpush1.bf16.msra.mxu1 %v9393_v36  ;;  %v9485_v35 = vld [vmem:[%s16342_s2 + $0xc68] ss:$16 sps:$4 sm:$0xff]   ;;  %v9490_v36 = vld [vmem:[%s16342_s2 + $0xc84] ss:$16 sps:$4 sm:$0xff]  }
 0x154   :  { %5172 = vmatprep.subr.bf16.mxu0 %v9398_v37  ;;  %5705 = vmatprep.subr.bf16.mxu1 %v9401_v38  ;;  %v9493_v37 = vld [vmem:[%s16342_s2 + $0xc8c] ss:$16 sps:$4 sm:$0xff]   ;;  %v9488_v38 = vld [vmem:[%s16342_s2 + $0xc80] ss:$16 sps:$4 sm:$0xff]  }
 0x157   :  { %5173 = vmatpush1.bf16.msra.mxu0 %v9396_v39  ;;  %5706 = vmatpush1.bf16.msra.mxu1 %v9399_v40  ;;  %v9491_v39 = vld [vmem:[%s16342_s2 + $0xc88] ss:$16 sps:$4 sm:$0xff]   ;;  %v9496_v40 = vld [vmem:[%s16342_s2 + $0xca4] ss:$16 sps:$4 sm:$0xff]  }
 0x158   :  { %5174 = vmatprep.subr.bf16.mxu0 %v9404_v41  ;;  %5707 = vmatprep.subr.bf16.mxu1 %v9407_v42  ;;  %v9499_v41 = vld [vmem:[%s16342_s2 + $0xcac] ss:$16 sps:$4 sm:$0xff]   ;;  %v9494_v42 = vld [vmem:[%s16342_s2 + $0xca0] ss:$16 sps:$4 sm:$0xff]  }
 0x15b   :  { %5175 = vmatpush1.bf16.msra.mxu0 %v9402_v43  ;;  %5708 = vmatpush1.bf16.msra.mxu1 %v9405_v44  ;;  %v9497_v43 = vld [vmem:[%s16342_s2 + $0xca8] ss:$16 sps:$4 sm:$0xff]   ;;  %v9502_v44 = vld [vmem:[%s16342_s2 + $0xcc4] ss:$16 sps:$4 sm:$0xff]  }
 0x15c   :  { %5176 = vmatprep.subr.bf16.mxu0 %v9410_v45  ;;  %5709 = vmatprep.subr.bf16.mxu1 %v9413_v46  ;;  %v9505_v45 = vld [vmem:[%s16342_s2 + $0xccc] ss:$16 sps:$4 sm:$0xff]   ;;  %v9500_v46 = vld [vmem:[%s16342_s2 + $0xcc0] ss:$16 sps:$4 sm:$0xff]  }
 0x15f   :  { %5177 = vmatpush1.bf16.msra.mxu0 %v9408_v47  ;;  %5710 = vmatpush1.bf16.msra.mxu1 %v9411_v48  ;;  %v9503_v47 = vld [vmem:[%s16342_s2 + $0xcc8] ss:$16 sps:$4 sm:$0xff]   ;;  %v9508_v48 = vld [vmem:[%s16342_s2 + $0xce4] ss:$16 sps:$4 sm:$0xff]  }
 0x160   :  { %5178 = vmatprep.subr.bf16.mxu0 %v9416_v49  ;;  %5711 = vmatprep.subr.bf16.mxu1 %v9419_v50  ;;  %v9511_v49 = vld [vmem:[%s16342_s2 + $0xcec] ss:$16 sps:$4 sm:$0xff]   ;;  %v9506_v50 = vld [vmem:[%s16342_s2 + $0xce0] ss:$16 sps:$4 sm:$0xff]  }
 0x163   :  { %5179 = vmatpush1.bf16.msra.mxu0 %v9414_v51  ;;  %5712 = vmatpush1.bf16.msra.mxu1 %v9417_v52  ;;  %v9509_v51 = vld [vmem:[%s16342_s2 + $0xce8] ss:$16 sps:$4 sm:$0xff]   ;;  %v9514_v52 = vld [vmem:[%s16342_s2 + $0xd04] ss:$16 sps:$4 sm:$0xff]  }
 0x164   :  { %5180 = vmatprep.subr.bf16.mxu0 %v9422_v53  ;;  %5713 = vmatprep.subr.bf16.mxu1 %v9425_v54  ;;  %v9517_v53 = vld [vmem:[%s16342_s2 + $0xd0c] ss:$16 sps:$4 sm:$0xff]   ;;  %v9512_v54 = vld [vmem:[%s16342_s2 + $0xd00] ss:$16 sps:$4 sm:$0xff]  }
 0x167   :  { %5181 = vmatpush1.bf16.msra.mxu0 %v9420_v55  ;;  %5714 = vmatpush1.bf16.msra.mxu1 %v9423_v56  ;;  %v9515_v55 = vld [vmem:[%s16342_s2 + $0xd08] ss:$16 sps:$4 sm:$0xff]   ;;  %v9520_v56 = vld [vmem:[%s16342_s2 + $0xd24] ss:$16 sps:$4 sm:$0xff]  }
 0x168   :  { %5182 = vmatprep.subr.bf16.mxu0 %v9428_v57  ;;  %5715 = vmatprep.subr.bf16.mxu1 %v9431_v58  ;;  %v9523_v57 = vld [vmem:[%s16342_s2 + $0xd2c] ss:$16 sps:$4 sm:$0xff]   ;;  %v9518_v58 = vld [vmem:[%s16342_s2 + $0xd20] ss:$16 sps:$4 sm:$0xff]  }
 0x16b   :  { %5183 = vmatpush1.bf16.msra.mxu0 %v9426_v59  ;;  %5716 = vmatpush1.bf16.msra.mxu1 %v9429_v60  ;;  %v9521_v59 = vld [vmem:[%s16342_s2 + $0xd28] ss:$16 sps:$4 sm:$0xff]   ;;  %v9526_v60 = vld [vmem:[%s16342_s2 + $0xd44] ss:$16 sps:$4 sm:$0xff]  }
 0x16c   :  { %5184 = vmatprep.subr.bf16.mxu0 %v9434_v61  ;;  %5717 = vmatprep.subr.bf16.mxu1 %v9437_v62  ;;  %v9529_v61 = vld [vmem:[%s16342_s2 + $0xd4c] ss:$16 sps:$4 sm:$0xff]   ;;  %v9524_v62 = vld [vmem:[%s16342_s2 + $0xd40] ss:$16 sps:$4 sm:$0xff]  }
 0x16f   :  { %5185 = vmatpush1.bf16.msra.mxu0 %v9432_v63  ;;  %5718 = vmatpush1.bf16.msra.mxu1 %v9435_v0  ;;  %v9527_v63 = vld [vmem:[%s16342_s2 + $0xd48] ss:$16 sps:$4 sm:$0xff]   ;;  %v9532_v0 = vld [vmem:[%s16342_s2 + $0xd64] ss:$16 sps:$4 sm:$0xff]  }
 0x170   :  { %5186 = vmatprep.subr.bf16.mxu0 %v9440_v1  ;;  %5719 = vmatprep.subr.bf16.mxu1 %v9443_v2  ;;  %v9535_v1 = vld [vmem:[%s16342_s2 + $0xd6c] ss:$16 sps:$4 sm:$0xff]   ;;  %v9530_v2 = vld [vmem:[%s16342_s2 + $0xd60] ss:$16 sps:$4 sm:$0xff]  }
 0x173   :  { %5187 = vmatpush1.bf16.msra.mxu0 %v9438_v3  ;;  %5720 = vmatpush1.bf16.msra.mxu1 %v9441_v4  ;;  %v9533_v3 = vld [vmem:[%s16342_s2 + $0xd68] ss:$16 sps:$4 sm:$0xff]   ;;  %v9538_v4 = vld [vmem:[%s16342_s2 + $0xd84] ss:$16 sps:$4 sm:$0xff]  }
 0x174   :  { %5188 = vmatprep.subr.bf16.mxu0 %v9446_v5  ;;  %5721 = vmatprep.subr.bf16.mxu1 %v9449_v6  ;;  %v9541_v5 = vld [vmem:[%s16342_s2 + $0xd8c] ss:$16 sps:$4 sm:$0xff]   ;;  %v9536_v6 = vld [vmem:[%s16342_s2 + $0xd80] ss:$16 sps:$4 sm:$0xff]  }
 0x177   :  { %5189 = vmatpush1.bf16.msra.mxu0 %v9444_v7  ;;  %5722 = vmatpush1.bf16.msra.mxu1 %v9447_v8  ;;  %v9539_v7 = vld [vmem:[%s16342_s2 + $0xd88] ss:$16 sps:$4 sm:$0xff]   ;;  %v9544_v8 = vld [vmem:[%s16342_s2 + $0xda4] ss:$16 sps:$4 sm:$0xff]  }
 0x178   :  { %5190 = vmatprep.subr.bf16.mxu0 %v9452_v9  ;;  %5723 = vmatprep.subr.bf16.mxu1 %v9455_v10  ;;  %v9547_v9 = vld [vmem:[%s16342_s2 + $0xdac] ss:$16 sps:$4 sm:$0xff]   ;;  %v9542_v10 = vld [vmem:[%s16342_s2 + $0xda0] ss:$16 sps:$4 sm:$0xff]  }
 0x17b   :  { %5191 = vmatpush1.bf16.msra.mxu0 %v9450_v12  ;;  %5724 = vmatpush1.bf16.msra.mxu1 %v9453_v13  ;;  %v9545_v12 = vld [vmem:[%s16342_s2 + $0xda8] ss:$16 sps:$4 sm:$0xff]   ;;  %v9550_v13 = vld [vmem:[%s16342_s2 + $0xdc4] ss:$16 sps:$4 sm:$0xff]  }
 0x17c   :  { %5192 = vmatprep.subr.bf16.mxu0 %v9458_v15  ;;  %5725 = vmatprep.subr.bf16.mxu1 %v9461_v11  ;;  %v9553_v15 = vld [vmem:[%s16342_s2 + $0xdcc] ss:$16 sps:$4 sm:$0xff]   ;;  %v9548_v11 = vld [vmem:[%s16342_s2 + $0xdc0] ss:$16 sps:$4 sm:$0xff]  }
 0x17f   :  { %5193 = vmatpush1.bf16.msra.mxu0 %v9456_v17  ;;  %5726 = vmatpush1.bf16.msra.mxu1 %v9459_v14  ;;  %v9551_v17 = vld [vmem:[%s16342_s2 + $0xdc8] ss:$16 sps:$4 sm:$0xff]   ;;  %v9556_v14 = vld [vmem:[%s16342_s2 + $0xde4] ss:$16 sps:$4 sm:$0xff]  }
 0x180   :  { %5203 = vmatprep.subr.bf16.mxu0 %v9466_v19  ;;  %5736 = vmatprep.subr.bf16.mxu1 %v9469_v20  ;;  %v9559_v19 = vld [vmem:[%s16342_s2 + $0xdec] ss:$16 sps:$4 sm:$0xff]   ;;  %v9554_v20 = vld [vmem:[%s16342_s2 + $0xde0] ss:$16 sps:$4 sm:$0xff]  }
 0x182   :  { %5195 = vmatmul.mubr.bf16.vlgmr.msra.gmra.mrb[0].mxu0 %v7708_v16  ;;  %5728 = vmatmul.mubr.bf16.vlgmr.msra.gmra.mrb[0].mxu1 %v7708_v16  ;;  %v9557_v16 = vld [vmem:[%s16342_s2 + $0xde8] ss:$16 sps:$4 sm:$0xff]  }
 0x183   :  { %5204 = vmatpush1.bf16.msra.mxu0 %v9464_v22  ;;  %5737 = vmatpush1.bf16.msra.mxu1 %v9467_v23  ;;  %v9564_v22 = vld [vmem:[%s16342_s2 + $0xe04] ss:$16 sps:$4 sm:$0xff]   ;;  %v9567_v23 = vld [vmem:[%s16342_s2 + $0xe0c] ss:$16 sps:$4 sm:$0xff]  }
 0x184   :  { %5205 = vmatprep.subr.bf16.mxu0 %v9472_v24  ;;  %5738 = vmatprep.subr.bf16.mxu1 %v9475_v18  ;;  %v12485_v24 = vld [vmem:[%s16340_s0 + $0x38] sm:$0xff]  ;;  %v7710_v18 = vcombine.low %v12284_v21, %v12284_v21 }
 0x185   :  { %5235 = vmatprep.mubr.bf16.mxu0 %v7711_v25  ;;  %5768 = vmatprep.mubr.bf16.mxu1 %v7711_v25  ;;  %v9562_v25 = vld [vmem:[%s16342_s2 + $0xe00] ss:$16 sps:$4 sm:$0xff]   ;;  %v9573_v21 = vld [vmem:[%s16342_s2 + $0xe2c] ss:$16 sps:$4 sm:$0xff]  }
 0x187   :  { %5206 = vmatpush1.bf16.msra.mxu0 %v9470_v26  ;;  %5739 = vmatpush1.bf16.msra.mxu1 %v9473_v27  ;;  %v9565_v26 = vld [vmem:[%s16342_s2 + $0xe08] ss:$16 sps:$4 sm:$0xff]   ;;  %v9570_v27 = vld [vmem:[%s16342_s2 + $0xe24] ss:$16 sps:$4 sm:$0xff]  }
 0x188   :  { %5207 = vmatprep.subr.bf16.mxu0 %v9478_v28  ;;  %5740 = vmatprep.subr.bf16.mxu1 %v9481_v29  ;;  %v7713_v28 = vcombine.high %v12485_v24, %v12485_v24  ;;  %v9568_v29 = vld [vmem:[%s16342_s2 + $0xe20] ss:$16 sps:$4 sm:$0xff]  }
 0x18b   :  { %5208 = vmatpush1.bf16.msra.mxu0 %v9476_v30  ;;  %5741 = vmatpush1.bf16.msra.mxu1 %v9479_v31  ;;  %v9571_v30 = vld [vmem:[%s16342_s2 + $0xe28] ss:$16 sps:$4 sm:$0xff]   ;;  %v9576_v31 = vld [vmem:[%s16342_s2 + $0xe44] ss:$16 sps:$4 sm:$0xff]  }
 0x18c   :  { %5209 = vmatprep.subr.bf16.mxu0 %v9484_v32  ;;  %5742 = vmatprep.subr.bf16.mxu1 %v9487_v33  ;;  %v9579_v32 = vld [vmem:[%s16342_s2 + $0xe4c] ss:$16 sps:$4 sm:$0xff]   ;;  %v9574_v33 = vld [vmem:[%s16342_s2 + $0xe40] ss:$16 sps:$4 sm:$0xff]  }
 0x18f   :  { %5210 = vmatpush1.bf16.msra.mxu0 %v9482_v34  ;;  %5743 = vmatpush1.bf16.msra.mxu1 %v9485_v35  ;;  %v9577_v34 = vld [vmem:[%s16342_s2 + $0xe48] ss:$16 sps:$4 sm:$0xff]   ;;  %v9582_v35 = vld [vmem:[%s16342_s2 + $0xe64] ss:$16 sps:$4 sm:$0xff]  }
 0x190   :  { %5211 = vmatprep.subr.bf16.mxu0 %v9490_v36  ;;  %5744 = vmatprep.subr.bf16.mxu1 %v9493_v37  ;;  %v9585_v36 = vld [vmem:[%s16342_s2 + $0xe6c] ss:$16 sps:$4 sm:$0xff]   ;;  %v9580_v37 = vld [vmem:[%s16342_s2 + $0xe60] ss:$16 sps:$4 sm:$0xff]  }
 0x193   :  { %5212 = vmatpush1.bf16.msra.mxu0 %v9488_v38  ;;  %5745 = vmatpush1.bf16.msra.mxu1 %v9491_v39  ;;  %v9583_v38 = vld [vmem:[%s16342_s2 + $0xe68] ss:$16 sps:$4 sm:$0xff]   ;;  %v9588_v39 = vld [vmem:[%s16342_s2 + $0xe84] ss:$16 sps:$4 sm:$0xff]  }
 0x194   :  { %5213 = vmatprep.subr.bf16.mxu0 %v9496_v40  ;;  %5746 = vmatprep.subr.bf16.mxu1 %v9499_v41  ;;  %v9591_v40 = vld [vmem:[%s16342_s2 + $0xe8c] ss:$16 sps:$4 sm:$0xff]   ;;  %v9586_v41 = vld [vmem:[%s16342_s2 + $0xe80] ss:$16 sps:$4 sm:$0xff]  }
 0x197   :  { %5214 = vmatpush1.bf16.msra.mxu0 %v9494_v42  ;;  %5747 = vmatpush1.bf16.msra.mxu1 %v9497_v43  ;;  %v9589_v42 = vld [vmem:[%s16342_s2 + $0xe88] ss:$16 sps:$4 sm:$0xff]   ;;  %v9594_v43 = vld [vmem:[%s16342_s2 + $0xea4] ss:$16 sps:$4 sm:$0xff]  }
 0x198   :  { %5215 = vmatprep.subr.bf16.mxu0 %v9502_v44  ;;  %5748 = vmatprep.subr.bf16.mxu1 %v9505_v45  ;;  %v9597_v44 = vld [vmem:[%s16342_s2 + $0xeac] ss:$16 sps:$4 sm:$0xff]   ;;  %v9592_v45 = vld [vmem:[%s16342_s2 + $0xea0] ss:$16 sps:$4 sm:$0xff]  }
 0x19b   :  { %5216 = vmatpush1.bf16.msra.mxu0 %v9500_v46  ;;  %5749 = vmatpush1.bf16.msra.mxu1 %v9503_v47  ;;  %v9595_v46 = vld [vmem:[%s16342_s2 + $0xea8] ss:$16 sps:$4 sm:$0xff]   ;;  %v9600_v47 = vld [vmem:[%s16342_s2 + $0xec4] ss:$16 sps:$4 sm:$0xff]  }
 0x19c   :  { %5217 = vmatprep.subr.bf16.mxu0 %v9508_v48  ;;  %5750 = vmatprep.subr.bf16.mxu1 %v9511_v49  ;;  %v9603_v48 = vld [vmem:[%s16342_s2 + $0xecc] ss:$16 sps:$4 sm:$0xff]   ;;  %v9598_v49 = vld [vmem:[%s16342_s2 + $0xec0] ss:$16 sps:$4 sm:$0xff]  }
 0x19f   :  { %5218 = vmatpush1.bf16.msra.mxu0 %v9506_v50  ;;  %5751 = vmatpush1.bf16.msra.mxu1 %v9509_v51  ;;  %v9601_v50 = vld [vmem:[%s16342_s2 + $0xec8] ss:$16 sps:$4 sm:$0xff]   ;;  %v9606_v51 = vld [vmem:[%s16342_s2 + $0xee4] ss:$16 sps:$4 sm:$0xff]  }
 0x1a0   :  { %5219 = vmatprep.subr.bf16.mxu0 %v9514_v52  ;;  %5752 = vmatprep.subr.bf16.mxu1 %v9517_v53  ;;  %v9609_v52 = vld [vmem:[%s16342_s2 + $0xeec] ss:$16 sps:$4 sm:$0xff]   ;;  %v9604_v53 = vld [vmem:[%s16342_s2 + $0xee0] ss:$16 sps:$4 sm:$0xff]  }
 0x1a3   :  { %5220 = vmatpush1.bf16.msra.mxu0 %v9512_v54  ;;  %5753 = vmatpush1.bf16.msra.mxu1 %v9515_v55  ;;  %v9607_v54 = vld [vmem:[%s16342_s2 + $0xee8] ss:$16 sps:$4 sm:$0xff]   ;;  %v9612_v55 = vld [vmem:[%s16342_s2 + $0xf04] ss:$16 sps:$4 sm:$0xff]  }
 0x1a4   :  { %5221 = vmatprep.subr.bf16.mxu0 %v9520_v56  ;;  %5754 = vmatprep.subr.bf16.mxu1 %v9523_v57  ;;  %v9615_v56 = vld [vmem:[%s16342_s2 + $0xf0c] ss:$16 sps:$4 sm:$0xff]   ;;  %v9610_v57 = vld [vmem:[%s16342_s2 + $0xf00] ss:$16 sps:$4 sm:$0xff]  }
 0x1a7   :  { %5222 = vmatpush1.bf16.msra.mxu0 %v9518_v58  ;;  %5755 = vmatpush1.bf16.msra.mxu1 %v9521_v59  ;;  %v9613_v58 = vld [vmem:[%s16342_s2 + $0xf08] ss:$16 sps:$4 sm:$0xff]   ;;  %v9618_v59 = vld [vmem:[%s16342_s2 + $0xf24] ss:$16 sps:$4 sm:$0xff]  }
 0x1a8   :  { %5223 = vmatprep.subr.bf16.mxu0 %v9526_v60  ;;  %5756 = vmatprep.subr.bf16.mxu1 %v9529_v61  ;;  %v9621_v60 = vld [vmem:[%s16342_s2 + $0xf2c] ss:$16 sps:$4 sm:$0xff]   ;;  %v9616_v61 = vld [vmem:[%s16342_s2 + $0xf20] ss:$16 sps:$4 sm:$0xff]  }
 0x1ab   :  { %5224 = vmatpush1.bf16.msra.mxu0 %v9524_v62  ;;  %5757 = vmatpush1.bf16.msra.mxu1 %v9527_v63  ;;  %v9619_v62 = vld [vmem:[%s16342_s2 + $0xf28] ss:$16 sps:$4 sm:$0xff]   ;;  %v9624_v63 = vld [vmem:[%s16342_s2 + $0xf44] ss:$16 sps:$4 sm:$0xff]  }
 0x1ac   :  { %5225 = vmatprep.subr.bf16.mxu0 %v9532_v0  ;;  %5758 = vmatprep.subr.bf16.mxu1 %v9535_v1  ;;  %v9627_v0 = vld [vmem:[%s16342_s2 + $0xf4c] ss:$16 sps:$4 sm:$0xff]   ;;  %v9622_v1 = vld [vmem:[%s16342_s2 + $0xf40] ss:$16 sps:$4 sm:$0xff]  }
 0x1af   :  { %5226 = vmatpush1.bf16.msra.mxu0 %v9530_v2  ;;  %5759 = vmatpush1.bf16.msra.mxu1 %v9533_v3  ;;  %v9625_v2 = vld [vmem:[%s16342_s2 + $0xf48] ss:$16 sps:$4 sm:$0xff]   ;;  %v9630_v3 = vld [vmem:[%s16342_s2 + $0xf64] ss:$16 sps:$4 sm:$0xff]  }
 0x1b0   :  { %5227 = vmatprep.subr.bf16.mxu0 %v9538_v4  ;;  %5760 = vmatprep.subr.bf16.mxu1 %v9541_v5  ;;  %v9633_v4 = vld [vmem:[%s16342_s2 + $0xf6c] ss:$16 sps:$4 sm:$0xff]   ;;  %v9628_v5 = vld [vmem:[%s16342_s2 + $0xf60] ss:$16 sps:$4 sm:$0xff]  }
 0x1b3   :  { %5228 = vmatpush1.bf16.msra.mxu0 %v9536_v6  ;;  %5761 = vmatpush1.bf16.msra.mxu1 %v9539_v7  ;;  %v9631_v6 = vld [vmem:[%s16342_s2 + $0xf68] ss:$16 sps:$4 sm:$0xff]   ;;  %v9636_v7 = vld [vmem:[%s16342_s2 + $0xf84] ss:$16 sps:$4 sm:$0xff]  }
 0x1b4   :  { %5229 = vmatprep.subr.bf16.mxu0 %v9544_v8  ;;  %5762 = vmatprep.subr.bf16.mxu1 %v9547_v9  ;;  %v9639_v8 = vld [vmem:[%s16342_s2 + $0xf8c] ss:$16 sps:$4 sm:$0xff]   ;;  %v9634_v9 = vld [vmem:[%s16342_s2 + $0xf80] ss:$16 sps:$4 sm:$0xff]  }
 0x1b7   :  { %5230 = vmatpush1.bf16.msra.mxu0 %v9542_v10  ;;  %5763 = vmatpush1.bf16.msra.mxu1 %v9545_v12  ;;  %v9637_v10 = vld [vmem:[%s16342_s2 + $0xf88] ss:$16 sps:$4 sm:$0xff]   ;;  %v9642_v12 = vld [vmem:[%s16342_s2 + $0xfa4] ss:$16 sps:$4 sm:$0xff]  }
 0x1b8   :  { %5231 = vmatprep.subr.bf16.mxu0 %v9550_v13  ;;  %5764 = vmatprep.subr.bf16.mxu1 %v9553_v15  ;;  %v9645_v13 = vld [vmem:[%s16342_s2 + $0xfac] ss:$16 sps:$4 sm:$0xff]   ;;  %v9640_v15 = vld [vmem:[%s16342_s2 + $0xfa0] ss:$16 sps:$4 sm:$0xff]  }
 0x1bb   :  { %5232 = vmatpush1.bf16.msra.mxu0 %v9548_v11  ;;  %5765 = vmatpush1.bf16.msra.mxu1 %v9551_v17  ;;  %v9643_v11 = vld [vmem:[%s16342_s2 + $0xfa8] ss:$16 sps:$4 sm:$0xff]   ;;  %v9648_v17 = vld [vmem:[%s16342_s2 + $0xfc4] ss:$16 sps:$4 sm:$0xff]  }
 0x1bc   :  { %5233 = vmatprep.subr.bf16.mxu0 %v9556_v14  ;;  %5766 = vmatprep.subr.bf16.mxu1 %v9559_v19  ;;  %v9651_v14 = vld [vmem:[%s16342_s2 + $0xfcc] ss:$16 sps:$4 sm:$0xff]  }
 0x1bf   :  { %5234 = vmatpush1.bf16.msra.mxu0 %v9554_v20  ;;  %5767 = vmatpush1.bf16.msra.mxu1 %v9557_v16 }
 0x1c0   :  { %5244 = vmatprep.subr.bf16.mxu0 %v9564_v22  ;;  %5777 = vmatprep.subr.bf16.mxu1 %v9567_v23 }
 0x1c2   :  { %5236 = vmatmul.mubr.bf16.vlgmr.msra.gmra.mrb[0].mxu0 %v7710_v18  ;;  %5769 = vmatmul.mubr.bf16.vlgmr.msra.gmra.mrb[0].mxu1 %v7710_v18 }
 0x1c3   :  { %5245 = vmatpush1.bf16.msra.mxu0 %v9562_v25  ;;  %5778 = vmatpush1.bf16.msra.mxu1 %v9565_v26 }
 0x1c4   :  { %5246 = vmatprep.subr.bf16.mxu0 %v9570_v27  ;;  %5779 = vmatprep.subr.bf16.mxu1 %v9573_v21 }
 0x1c5   :  { %5276 = vmatprep.mubr.bf16.mxu0 %v7713_v28  ;;  %5809 = vmatprep.mubr.bf16.mxu1 %v7713_v28 }
 0x1c7   :  { %5247 = vmatpush1.bf16.msra.mxu0 %v9568_v29  ;;  %5780 = vmatpush1.bf16.msra.mxu1 %v9571_v30 }
 0x1c8   :  { %5248 = vmatprep.subr.bf16.mxu0 %v9576_v31  ;;  %5781 = vmatprep.subr.bf16.mxu1 %v9579_v32 }
 0x1cb   :  { %5249 = vmatpush1.bf16.msra.mxu0 %v9574_v33  ;;  %5782 = vmatpush1.bf16.msra.mxu1 %v9577_v34 }
 0x1cc   :  { %5250 = vmatprep.subr.bf16.mxu0 %v9582_v35  ;;  %5783 = vmatprep.subr.bf16.mxu1 %v9585_v36 }
 0x1cf   :  { %5251 = vmatpush1.bf16.msra.mxu0 %v9580_v37  ;;  %5784 = vmatpush1.bf16.msra.mxu1 %v9583_v38 }
 0x1d0   :  { %5252 = vmatprep.subr.bf16.mxu0 %v9588_v39  ;;  %5785 = vmatprep.subr.bf16.mxu1 %v9591_v40 }
 0x1d3   :  { %5253 = vmatpush1.bf16.msra.mxu0 %v9586_v41  ;;  %5786 = vmatpush1.bf16.msra.mxu1 %v9589_v42 }
 0x1d4   :  { %5254 = vmatprep.subr.bf16.mxu0 %v9594_v43  ;;  %5787 = vmatprep.subr.bf16.mxu1 %v9597_v44 }
 0x1d7   :  { %5255 = vmatpush1.bf16.msra.mxu0 %v9592_v45  ;;  %5788 = vmatpush1.bf16.msra.mxu1 %v9595_v46 }
 0x1d8   :  { %5256 = vmatprep.subr.bf16.mxu0 %v9600_v47  ;;  %5789 = vmatprep.subr.bf16.mxu1 %v9603_v48 }
 0x1db   :  { %5257 = vmatpush1.bf16.msra.mxu0 %v9598_v49  ;;  %5790 = vmatpush1.bf16.msra.mxu1 %v9601_v50 }
 0x1dc   :  { %5258 = vmatprep.subr.bf16.mxu0 %v9606_v51  ;;  %5791 = vmatprep.subr.bf16.mxu1 %v9609_v52 }
 0x1df   :  { %5259 = vmatpush1.bf16.msra.mxu0 %v9604_v53  ;;  %5792 = vmatpush1.bf16.msra.mxu1 %v9607_v54 }
 0x1e0   :  { %5260 = vmatprep.subr.bf16.mxu0 %v9612_v55  ;;  %5793 = vmatprep.subr.bf16.mxu1 %v9615_v56 }
 0x1e3   :  { %5261 = vmatpush1.bf16.msra.mxu0 %v9610_v57  ;;  %5794 = vmatpush1.bf16.msra.mxu1 %v9613_v58 }
 0x1e4   :  { %5262 = vmatprep.subr.bf16.mxu0 %v9618_v59  ;;  %5795 = vmatprep.subr.bf16.mxu1 %v9621_v60 }
 0x1e7   :  { %5263 = vmatpush1.bf16.msra.mxu0 %v9616_v61  ;;  %5796 = vmatpush1.bf16.msra.mxu1 %v9619_v62 }
 0x1e8   :  { %5264 = vmatprep.subr.bf16.mxu0 %v9624_v63  ;;  %5797 = vmatprep.subr.bf16.mxu1 %v9627_v0 }
 0x1eb   :  { %5265 = vmatpush1.bf16.msra.mxu0 %v9622_v1  ;;  %5798 = vmatpush1.bf16.msra.mxu1 %v9625_v2 }
 0x1ec   :  { %5266 = vmatprep.subr.bf16.mxu0 %v9630_v3  ;;  %5799 = vmatprep.subr.bf16.mxu1 %v9633_v4 }
 0x1ef   :  { %5267 = vmatpush1.bf16.msra.mxu0 %v9628_v5  ;;  %5800 = vmatpush1.bf16.msra.mxu1 %v9631_v6 }
 0x1f0   :  { %5268 = vmatprep.subr.bf16.mxu0 %v9636_v7  ;;  %5801 = vmatprep.subr.bf16.mxu1 %v9639_v8 }
 0x1f3   :  { %5269 = vmatpush1.bf16.msra.mxu0 %v9634_v9  ;;  %5802 = vmatpush1.bf16.msra.mxu1 %v9637_v10 }
 0x1f4   :  { %5270 = vmatprep.subr.bf16.mxu0 %v9642_v12  ;;  %5803 = vmatprep.subr.bf16.mxu1 %v9645_v13 }
 0x1f5   :  { %14 = vsyncpa [#allocation3], 0  ;;  %v9646_v19 = vld [vmem:[%s16342_s2 + $0xfc0] ss:$16 sps:$4 sm:$0xff]   ;;  %v9649_v20 = vld [vmem:[%s16342_s2 + $0xfc8] ss:$16 sps:$4 sm:$0xff]   ;;  %v7712_v27 = vcombine.low %v12485_v24, %v12485_v24 }
 0x1f6   :  { %v9654_v16 = vld [vmem:[%s16342_s2 + $0xfe4] ss:$16 sps:$4 sm:$0xff]   ;;  %v9657_v22 = vld [vmem:[%s16342_s2 + $0xfec] ss:$16 sps:$4 sm:$0xff]   ;;  %v9652_v23 = vld [vmem:[%s16342_s2 + $0xfe0] ss:$16 sps:$4 sm:$0xff]  }
 0x1f7   :  { %5271 = vmatpush1.bf16.msra.mxu0 %v9640_v15  ;;  %5804 = vmatpush1.bf16.msra.mxu1 %v9643_v11  ;;  %v9655_v18 = vld [vmem:[%s16342_s2 + $0xfe8] ss:$16 sps:$4 sm:$0xff]   ;;  %v9662_v25 = vld [vmem:[%s16342_s2 + $0x1004] ss:$16 sps:$4 sm:$0xff]   ;;  %v9665_v26 = vld [vmem:[%s16342_s2 + $0x100c] ss:$16 sps:$4 sm:$0xff]  }
 0x1f8   :  { %5272 = vmatprep.subr.bf16.mxu0 %v9648_v17  ;;  %5805 = vmatprep.subr.bf16.mxu1 %v9651_v14  ;;  %v12688_v21 = vld [vmem:[%s16340_s0 + $0x40] sm:$0xff]  ;;  %v9663_v29 = vld [vmem:[%s16342_s2 + $0x1008] ss:$16 sps:$4 sm:$0xff]   ;;  %v9671_v30 = vld [vmem:[%s16342_s2 + $0x102c] ss:$16 sps:$4 sm:$0xff]   ;;  %vm7657_vm0 = vcmask 7168  }
 0x1f9   :  { %v9660_v28 = vld [vmem:[%s16342_s2 + $0x1000] ss:$16 sps:$4 sm:$0xff]   ;;  %v9668_v24 = vld [vmem:[%s16342_s2 + $0x1024] ss:$16 sps:$4 sm:$0xff]   ;;  %v7715_v31 = vcombine.high %v12688_v21, %v12688_v21  ;;  %v9669_v33 = vld [vmem:[%s16342_s2 + $0x1028] ss:$16 sps:$4 sm:$0xff]  }
 0x1fa   :  { %v9666_v32 = vld [vmem:[%s16342_s2 + $0x1020] ss:$16 sps:$4 sm:$0xff]   ;;  %v9674_v34 = vld [vmem:[%s16342_s2 + $0x1044] ss:$16 sps:$4 sm:$0xff]   ;;  %v9677_v35 = vld [vmem:[%s16342_s2 + $0x104c] ss:$16 sps:$4 sm:$0xff]  }
 0x1fb   :  { %5273 = vmatpush1.bf16.msra.mxu0 %v9646_v19  ;;  %5806 = vmatpush1.bf16.msra.mxu1 %v9649_v20  ;;  %v9672_v36 = vld [vmem:[%s16342_s2 + $0x1040] ss:$16 sps:$4 sm:$0xff]   ;;  %v9675_v37 = vld [vmem:[%s16342_s2 + $0x1048] ss:$16 sps:$4 sm:$0xff]   ;;  %v9680_v38 = vld [vmem:[%s16342_s2 + $0x1064] ss:$16 sps:$4 sm:$0xff]  }
 0x1fc   :  { %5274 = vmatprep.subr.bf16.mxu0 %v9654_v16  ;;  %5807 = vmatprep.subr.bf16.mxu1 %v9657_v22  ;;  %v9683_v39 = vld [vmem:[%s16342_s2 + $0x106c] ss:$16 sps:$4 sm:$0xff]   ;;  %v9678_v40 = vld [vmem:[%s16342_s2 + $0x1060] ss:$16 sps:$4 sm:$0xff]   ;;  %v9681_v41 = vld [vmem:[%s16342_s2 + $0x1068] ss:$16 sps:$4 sm:$0xff]  }
 0x1fd   :  { %v9686_v42 = vld [vmem:[%s16342_s2 + $0x1084] ss:$16 sps:$4 sm:$0xff]   ;;  %v9689_v43 = vld [vmem:[%s16342_s2 + $0x108c] ss:$16 sps:$4 sm:$0xff]   ;;  %v9684_v44 = vld [vmem:[%s16342_s2 + $0x1080] ss:$16 sps:$4 sm:$0xff]  }
 0x1fe   :  { %v9687_v45 = vld [vmem:[%s16342_s2 + $0x1088] ss:$16 sps:$4 sm:$0xff]   ;;  %v9692_v46 = vld [vmem:[%s16342_s2 + $0x10a4] ss:$16 sps:$4 sm:$0xff]   ;;  %v9695_v47 = vld [vmem:[%s16342_s2 + $0x10ac] ss:$16 sps:$4 sm:$0xff]  }
 0x1ff   :  { %5275 = vmatpush1.bf16.msra.mxu0 %v9652_v23  ;;  %5808 = vmatpush1.bf16.msra.mxu1 %v9655_v18  ;;  %v9690_v48 = vld [vmem:[%s16342_s2 + $0x10a0] ss:$16 sps:$4 sm:$0xff]   ;;  %v9693_v49 = vld [vmem:[%s16342_s2 + $0x10a8] ss:$16 sps:$4 sm:$0xff]   ;;  %v9698_v50 = vld [vmem:[%s16342_s2 + $0x10c4] ss:$16 sps:$4 sm:$0xff]  }
 0x200   :  { %5285 = vmatprep.subr.bf16.mxu0 %v9662_v25  ;;  %5818 = vmatprep.subr.bf16.mxu1 %v9665_v26  ;;  %v9701_v51 = vld [vmem:[%s16342_s2 + $0x10cc] ss:$16 sps:$4 sm:$0xff]   ;;  %v9696_v52 = vld [vmem:[%s16342_s2 + $0x10c0] ss:$16 sps:$4 sm:$0xff]   ;;  %v9699_v53 = vld [vmem:[%s16342_s2 + $0x10c8] ss:$16 sps:$4 sm:$0xff]  }
 0x201   :  { %v9704_v54 = vld [vmem:[%s16342_s2 + $0x10e4] ss:$16 sps:$4 sm:$0xff]   ;;  %v9707_v55 = vld [vmem:[%s16342_s2 + $0x10ec] ss:$16 sps:$4 sm:$0xff]   ;;  %v9702_v56 = vld [vmem:[%s16342_s2 + $0x10e0] ss:$16 sps:$4 sm:$0xff]  }
 0x202   :  { %5277 = vmatmul.mubr.bf16.vlgmr.msra.gmra.mrb[0].mxu0 %v7712_v27  ;;  %5810 = vmatmul.mubr.bf16.vlgmr.msra.gmra.mrb[0].mxu1 %v7712_v27  ;;  %v9705_v57 = vld [vmem:[%s16342_s2 + $0x10e8] ss:$16 sps:$4 sm:$0xff]   ;;  %v9710_v58 = vld [vmem:[%s16342_s2 + $0x1104] ss:$16 sps:$4 sm:$0xff]   ;;  %v9713_v59 = vld [vmem:[%s16342_s2 + $0x110c] ss:$16 sps:$4 sm:$0xff]  }
 0x203   :  { %5286 = vmatpush1.bf16.msra.mxu0 %v9660_v28  ;;  %5819 = vmatpush1.bf16.msra.mxu1 %v9663_v29  ;;  %v9708_v60 = vld [vmem:[%s16342_s2 + $0x1100] ss:$16 sps:$4 sm:$0xff]   ;;  %v9711_v61 = vld [vmem:[%s16342_s2 + $0x1108] ss:$16 sps:$4 sm:$0xff]   ;;  %v9716_v62 = vld [vmem:[%s16342_s2 + $0x1124] ss:$16 sps:$4 sm:$0xff]  }
 0x204   :  { %5287 = vmatprep.subr.bf16.mxu0 %v9668_v24  ;;  %5820 = vmatprep.subr.bf16.mxu1 %v9671_v30  ;;  %v9719_v63 = vld [vmem:[%s16342_s2 + $0x112c] ss:$16 sps:$4 sm:$0xff]   ;;  %v9714_v0 = vld [vmem:[%s16342_s2 + $0x1120] ss:$16 sps:$4 sm:$0xff]   ;;  %v9717_v1 = vld [vmem:[%s16342_s2 + $0x1128] ss:$16 sps:$4 sm:$0xff]   ;;  %v7714_v24 = vcombine.low %v12688_v21, %v12688_v21 }
 0x205   :  { %5317 = vmatprep.mubr.bf16.mxu0 %v7715_v31  ;;  %5850 = vmatprep.mubr.bf16.mxu1 %v7715_v31  ;;  %v9722_v2 = vld [vmem:[%s16342_s2 + $0x1144] ss:$16 sps:$4 sm:$0xff]   ;;  %v9725_v3 = vld [vmem:[%s16342_s2 + $0x114c] ss:$16 sps:$4 sm:$0xff]   ;;  %v9720_v4 = vld [vmem:[%s16342_s2 + $0x1140] ss:$16 sps:$4 sm:$0xff]  }
 0x206   :  { %v9723_v5 = vld [vmem:[%s16342_s2 + $0x1148] ss:$16 sps:$4 sm:$0xff]   ;;  %v9728_v6 = vld [vmem:[%s16342_s2 + $0x1164] ss:$16 sps:$4 sm:$0xff]   ;;  %v9731_v7 = vld [vmem:[%s16342_s2 + $0x116c] ss:$16 sps:$4 sm:$0xff]  }
 0x207   :  { %5288 = vmatpush1.bf16.msra.mxu0 %v9666_v32  ;;  %5821 = vmatpush1.bf16.msra.mxu1 %v9669_v33  ;;  %v9726_v8 = vld [vmem:[%s16342_s2 + $0x1160] ss:$16 sps:$4 sm:$0xff]   ;;  %v9729_v9 = vld [vmem:[%s16342_s2 + $0x1168] ss:$16 sps:$4 sm:$0xff]   ;;  %v9734_v10 = vld [vmem:[%s16342_s2 + $0x1184] ss:$16 sps:$4 sm:$0xff]  }
 0x208   :  { %5289 = vmatprep.subr.bf16.mxu0 %v9674_v34  ;;  %5822 = vmatprep.subr.bf16.mxu1 %v9677_v35  ;;  %v9737_v12 = vld [vmem:[%s16342_s2 + $0x118c] ss:$16 sps:$4 sm:$0xff]   ;;  %v9732_v13 = vld [vmem:[%s16342_s2 + $0x1180] ss:$16 sps:$4 sm:$0xff]   ;;  %v9735_v15 = vld [vmem:[%s16342_s2 + $0x1188] ss:$16 sps:$4 sm:$0xff]  }
 0x209   :  { %v9740_v11 = vld [vmem:[%s16342_s2 + $0x11a4] ss:$16 sps:$4 sm:$0xff]   ;;  %v9743_v17 = vld [vmem:[%s16342_s2 + $0x11ac] ss:$16 sps:$4 sm:$0xff]   ;;  %v9738_v14 = vld [vmem:[%s16342_s2 + $0x11a0] ss:$16 sps:$4 sm:$0xff]  }
 0x20a   :  { %v9741_v19 = vld [vmem:[%s16342_s2 + $0x11a8] ss:$16 sps:$4 sm:$0xff]   ;;  %v9746_v20 = vld [vmem:[%s16342_s2 + $0x11c4] ss:$16 sps:$4 sm:$0xff]   ;;  %v9749_v16 = vld [vmem:[%s16342_s2 + $0x11cc] ss:$16 sps:$4 sm:$0xff]  }
 0x20b   :  { %5290 = vmatpush1.bf16.msra.mxu0 %v9672_v36  ;;  %5823 = vmatpush1.bf16.msra.mxu1 %v9675_v37  ;;  %v9744_v22 = vld [vmem:[%s16342_s2 + $0x11c0] ss:$16 sps:$4 sm:$0xff]   ;;  %v9747_v23 = vld [vmem:[%s16342_s2 + $0x11c8] ss:$16 sps:$4 sm:$0xff]   ;;  %v9752_v18 = vld [vmem:[%s16342_s2 + $0x11e4] ss:$16 sps:$4 sm:$0xff]  }
 0x20c   :  { %5291 = vmatprep.subr.bf16.mxu0 %v9680_v38  ;;  %5824 = vmatprep.subr.bf16.mxu1 %v9683_v39  ;;  %v9755_v25 = vld [vmem:[%s16342_s2 + $0x11ec] ss:$16 sps:$4 sm:$0xff]   ;;  %v9750_v26 = vld [vmem:[%s16342_s2 + $0x11e0] ss:$16 sps:$4 sm:$0xff]   ;;  %v9753_v27 = vld [vmem:[%s16342_s2 + $0x11e8] ss:$16 sps:$4 sm:$0xff]  }
 0x20d   :  { %v9760_v28 = vld [vmem:[%s16342_s2 + $0x1204] ss:$16 sps:$4 sm:$0xff]   ;;  %v9763_v29 = vld [vmem:[%s16342_s2 + $0x120c] ss:$16 sps:$4 sm:$0xff]   ;;  %v9758_v31 = vld [vmem:[%s16342_s2 + $0x1200] ss:$16 sps:$4 sm:$0xff]  }
 0x20e   :  { %v12889_v30 = vld [vmem:[%s16340_s0 + $0x48] sm:$0xff]  ;;  %v9766_v21 = vld [vmem:[%s16342_s2 + $0x1224] ss:$16 sps:$4 sm:$0xff]   ;;  %v9764_v35 = vld [vmem:[%s16342_s2 + $0x1220] ss:$16 sps:$4 sm:$0xff]   ;;  %s11026_s29 = smov [#allocation2]  }
 0x20f   :  { %5292 = vmatpush1.bf16.msra.mxu0 %v9678_v40  ;;  %5825 = vmatpush1.bf16.msra.mxu1 %v9681_v41  ;;  %v9761_v32 = vld [vmem:[%s16342_s2 + $0x1208] ss:$16 sps:$4 sm:$0xff]   ;;  %v9769_v33 = vld [vmem:[%s16342_s2 + $0x122c] ss:$16 sps:$4 sm:$0xff]   ;;  %v7717_v34 = vcombine.high %v12889_v30, %v12889_v30  ;;  %v9772_v37 = vld [vmem:[%s16342_s2 + $0x1244] ss:$16 sps:$4 sm:$0xff]  }
 0x210   :  { %5293 = vmatprep.subr.bf16.mxu0 %v9686_v42  ;;  %5826 = vmatprep.subr.bf16.mxu1 %v9689_v43  ;;  %v9767_v36 = vld [vmem:[%s16342_s2 + $0x1228] ss:$16 sps:$4 sm:$0xff]   ;;  %v9775_v38 = vld [vmem:[%s16342_s2 + $0x124c] ss:$16 sps:$4 sm:$0xff]   ;;  %v9770_v39 = vld [vmem:[%s16342_s2 + $0x1240] ss:$16 sps:$4 sm:$0xff]  }
 0x211   :  { %v9773_v40 = vld [vmem:[%s16342_s2 + $0x1248] ss:$16 sps:$4 sm:$0xff]   ;;  %v9778_v41 = vld [vmem:[%s16342_s2 + $0x1264] ss:$16 sps:$4 sm:$0xff]   ;;  %v9781_v42 = vld [vmem:[%s16342_s2 + $0x126c] ss:$16 sps:$4 sm:$0xff]  }
 0x212   :  { %v9776_v43 = vld [vmem:[%s16342_s2 + $0x1260] ss:$16 sps:$4 sm:$0xff]   ;;  %vm7682_vm1 = vcmask 0  }
 0x213   :  { %5294 = vmatpush1.bf16.msra.mxu0 %v9684_v44  ;;  %5827 = vmatpush1.bf16.msra.mxu1 %v9687_v45  ;;  %v9779_v44 = vld [vmem:[%s16342_s2 + $0x1268] ss:$16 sps:$4 sm:$0xff]   ;;  %v9784_v45 = vld [vmem:[%s16342_s2 + $0x1284] ss:$16 sps:$4 sm:$0xff]  }
 0x214   :  { %5295 = vmatprep.subr.bf16.mxu0 %v9692_v46  ;;  %5828 = vmatprep.subr.bf16.mxu1 %v9695_v47  ;;  %v9787_v46 = vld [vmem:[%s16342_s2 + $0x128c] ss:$16 sps:$4 sm:$0xff]   ;;  %v9782_v47 = vld [vmem:[%s16342_s2 + $0x1280] ss:$16 sps:$4 sm:$0xff]  }
 0x217   :  { %5296 = vmatpush1.bf16.msra.mxu0 %v9690_v48  ;;  %5829 = vmatpush1.bf16.msra.mxu1 %v9693_v49  ;;  %v9785_v48 = vld [vmem:[%s16342_s2 + $0x1288] ss:$16 sps:$4 sm:$0xff]   ;;  %v9790_v49 = vld [vmem:[%s16342_s2 + $0x12a4] ss:$16 sps:$4 sm:$0xff]  }
 0x218   :  { %5297 = vmatprep.subr.bf16.mxu0 %v9698_v50  ;;  %5830 = vmatprep.subr.bf16.mxu1 %v9701_v51  ;;  %v9793_v50 = vld [vmem:[%s16342_s2 + $0x12ac] ss:$16 sps:$4 sm:$0xff]   ;;  %v9788_v51 = vld [vmem:[%s16342_s2 + $0x12a0] ss:$16 sps:$4 sm:$0xff]  }
 0x21b   :  { %5298 = vmatpush1.bf16.msra.mxu0 %v9696_v52  ;;  %5831 = vmatpush1.bf16.msra.mxu1 %v9699_v53  ;;  %v9791_v52 = vld [vmem:[%s16342_s2 + $0x12a8] ss:$16 sps:$4 sm:$0xff]   ;;  %v9796_v53 = vld [vmem:[%s16342_s2 + $0x12c4] ss:$16 sps:$4 sm:$0xff]  }
 0x21c   :  { %5299 = vmatprep.subr.bf16.mxu0 %v9704_v54  ;;  %5832 = vmatprep.subr.bf16.mxu1 %v9707_v55  ;;  %v9799_v54 = vld [vmem:[%s16342_s2 + $0x12cc] ss:$16 sps:$4 sm:$0xff]   ;;  %v9794_v55 = vld [vmem:[%s16342_s2 + $0x12c0] ss:$16 sps:$4 sm:$0xff]  }
 0x21f   :  { %5300 = vmatpush1.bf16.msra.mxu0 %v9702_v56  ;;  %5833 = vmatpush1.bf16.msra.mxu1 %v9705_v57  ;;  %v9797_v56 = vld [vmem:[%s16342_s2 + $0x12c8] ss:$16 sps:$4 sm:$0xff]   ;;  %v9802_v57 = vld [vmem:[%s16342_s2 + $0x12e4] ss:$16 sps:$4 sm:$0xff]  }
 0x220   :  { %5301 = vmatprep.subr.bf16.mxu0 %v9710_v58  ;;  %5834 = vmatprep.subr.bf16.mxu1 %v9713_v59  ;;  %v9805_v58 = vld [vmem:[%s16342_s2 + $0x12ec] ss:$16 sps:$4 sm:$0xff]   ;;  %v9800_v59 = vld [vmem:[%s16342_s2 + $0x12e0] ss:$16 sps:$4 sm:$0xff]  }
 0x223   :  { %5302 = vmatpush1.bf16.msra.mxu0 %v9708_v60  ;;  %5835 = vmatpush1.bf16.msra.mxu1 %v9711_v61  ;;  %v9803_v60 = vld [vmem:[%s16342_s2 + $0x12e8] ss:$16 sps:$4 sm:$0xff]   ;;  %v9808_v61 = vld [vmem:[%s16342_s2 + $0x1304] ss:$16 sps:$4 sm:$0xff]  }
 0x224   :  { %5303 = vmatprep.subr.bf16.mxu0 %v9716_v62  ;;  %5836 = vmatprep.subr.bf16.mxu1 %v9719_v63  ;;  %v9811_v62 = vld [vmem:[%s16342_s2 + $0x130c] ss:$16 sps:$4 sm:$0xff]   ;;  %v9806_v63 = vld [vmem:[%s16342_s2 + $0x1300] ss:$16 sps:$4 sm:$0xff]  }
 0x227   :  { %5304 = vmatpush1.bf16.msra.mxu0 %v9714_v0  ;;  %5837 = vmatpush1.bf16.msra.mxu1 %v9717_v1  ;;  %v9809_v0 = vld [vmem:[%s16342_s2 + $0x1308] ss:$16 sps:$4 sm:$0xff]   ;;  %v9814_v1 = vld [vmem:[%s16342_s2 + $0x1324] ss:$16 sps:$4 sm:$0xff]  }
 0x228   :  { %5305 = vmatprep.subr.bf16.mxu0 %v9722_v2  ;;  %5838 = vmatprep.subr.bf16.mxu1 %v9725_v3  ;;  %v9817_v2 = vld [vmem:[%s16342_s2 + $0x132c] ss:$16 sps:$4 sm:$0xff]   ;;  %v9812_v3 = vld [vmem:[%s16342_s2 + $0x1320] ss:$16 sps:$4 sm:$0xff]  }
 0x22b   :  { %5306 = vmatpush1.bf16.msra.mxu0 %v9720_v4  ;;  %5839 = vmatpush1.bf16.msra.mxu1 %v9723_v5  ;;  %v9815_v4 = vld [vmem:[%s16342_s2 + $0x1328] ss:$16 sps:$4 sm:$0xff]   ;;  %v9820_v5 = vld [vmem:[%s16342_s2 + $0x1344] ss:$16 sps:$4 sm:$0xff]  }
 0x22c   :  { %5307 = vmatprep.subr.bf16.mxu0 %v9728_v6  ;;  %5840 = vmatprep.subr.bf16.mxu1 %v9731_v7  ;;  %v9823_v6 = vld [vmem:[%s16342_s2 + $0x134c] ss:$16 sps:$4 sm:$0xff]   ;;  %v9818_v7 = vld [vmem:[%s16342_s2 + $0x1340] ss:$16 sps:$4 sm:$0xff]  }
 0x22f   :  { %5308 = vmatpush1.bf16.msra.mxu0 %v9726_v8  ;;  %5841 = vmatpush1.bf16.msra.mxu1 %v9729_v9  ;;  %v9821_v8 = vld [vmem:[%s16342_s2 + $0x1348] ss:$16 sps:$4 sm:$0xff]   ;;  %v9826_v9 = vld [vmem:[%s16342_s2 + $0x1364] ss:$16 sps:$4 sm:$0xff]  }
 0x230   :  { %5309 = vmatprep.subr.bf16.mxu0 %v9734_v10  ;;  %5842 = vmatprep.subr.bf16.mxu1 %v9737_v12  ;;  %v9829_v10 = vld [vmem:[%s16342_s2 + $0x136c] ss:$16 sps:$4 sm:$0xff]   ;;  %v9824_v12 = vld [vmem:[%s16342_s2 + $0x1360] ss:$16 sps:$4 sm:$0xff]  }
 0x233   :  { %5310 = vmatpush1.bf16.msra.mxu0 %v9732_v13  ;;  %5843 = vmatpush1.bf16.msra.mxu1 %v9735_v15  ;;  %v9827_v13 = vld [vmem:[%s16342_s2 + $0x1368] ss:$16 sps:$4 sm:$0xff]   ;;  %v9832_v15 = vld [vmem:[%s16342_s2 + $0x1384] ss:$16 sps:$4 sm:$0xff]  }
 0x234   :  { %5311 = vmatprep.subr.bf16.mxu0 %v9740_v11  ;;  %5844 = vmatprep.subr.bf16.mxu1 %v9743_v17  ;;  %v9835_v11 = vld [vmem:[%s16342_s2 + $0x138c] ss:$16 sps:$4 sm:$0xff]   ;;  %v9830_v17 = vld [vmem:[%s16342_s2 + $0x1380] ss:$16 sps:$4 sm:$0xff]  }
 0x237   :  { %5312 = vmatpush1.bf16.msra.mxu0 %v9738_v14  ;;  %5845 = vmatpush1.bf16.msra.mxu1 %v9741_v19  ;;  %v9833_v14 = vld [vmem:[%s16342_s2 + $0x1388] ss:$16 sps:$4 sm:$0xff]   ;;  %v9838_v19 = vld [vmem:[%s16342_s2 + $0x13a4] ss:$16 sps:$4 sm:$0xff]  }
 0x238   :  { %5313 = vmatprep.subr.bf16.mxu0 %v9746_v20  ;;  %5846 = vmatprep.subr.bf16.mxu1 %v9749_v16  ;;  %v9841_v20 = vld [vmem:[%s16342_s2 + $0x13ac] ss:$16 sps:$4 sm:$0xff]   ;;  %v9836_v16 = vld [vmem:[%s16342_s2 + $0x13a0] ss:$16 sps:$4 sm:$0xff]  }
 0x23b   :  { %5314 = vmatpush1.bf16.msra.mxu0 %v9744_v22  ;;  %5847 = vmatpush1.bf16.msra.mxu1 %v9747_v23  ;;  %v9839_v22 = vld [vmem:[%s16342_s2 + $0x13a8] ss:$16 sps:$4 sm:$0xff]   ;;  %v9844_v23 = vld [vmem:[%s16342_s2 + $0x13c4] ss:$16 sps:$4 sm:$0xff]  }
 0x23c   :  { %5315 = vmatprep.subr.bf16.mxu0 %v9752_v18  ;;  %5848 = vmatprep.subr.bf16.mxu1 %v9755_v25  ;;  %v9847_v18 = vld [vmem:[%s16342_s2 + $0x13cc] ss:$16 sps:$4 sm:$0xff]   ;;  %v9842_v25 = vld [vmem:[%s16342_s2 + $0x13c0] ss:$16 sps:$4 sm:$0xff]  }
 0x23f   :  { %5316 = vmatpush1.bf16.msra.mxu0 %v9750_v26  ;;  %5849 = vmatpush1.bf16.msra.mxu1 %v9753_v27  ;;  %v9845_v26 = vld [vmem:[%s16342_s2 + $0x13c8] ss:$16 sps:$4 sm:$0xff]   ;;  %v9850_v27 = vld [vmem:[%s16342_s2 + $0x13e4] ss:$16 sps:$4 sm:$0xff]  }
 0x240   :  { %5326 = vmatprep.subr.bf16.mxu0 %v9760_v28  ;;  %5859 = vmatprep.subr.bf16.mxu1 %v9763_v29  ;;  %v9853_v28 = vld [vmem:[%s16342_s2 + $0x13ec] ss:$16 sps:$4 sm:$0xff]   ;;  %v9848_v29 = vld [vmem:[%s16342_s2 + $0x13e0] ss:$16 sps:$4 sm:$0xff]  }
 0x242   :  { %5318 = vmatmul.mubr.bf16.vlgmr.msra.gmra.mrb[0].mxu0 %v7714_v24  ;;  %5851 = vmatmul.mubr.bf16.vlgmr.msra.gmra.mrb[0].mxu1 %v7714_v24  ;;  %v9851_v24 = vld [vmem:[%s16342_s2 + $0x13e8] ss:$16 sps:$4 sm:$0xff]  }
 0x243   :  { %5327 = vmatpush1.bf16.msra.mxu0 %v9758_v31  ;;  %5860 = vmatpush1.bf16.msra.mxu1 %v9761_v32  ;;  %v9858_v31 = vld [vmem:[%s16342_s2 + $0x1404] ss:$16 sps:$4 sm:$0xff]   ;;  %v9861_v32 = vld [vmem:[%s16342_s2 + $0x140c] ss:$16 sps:$4 sm:$0xff]  }
 0x244   :  { %5328 = vmatprep.subr.bf16.mxu0 %v9766_v21  ;;  %5861 = vmatprep.subr.bf16.mxu1 %v9769_v33  ;;  %v7716_v21 = vcombine.low %v12889_v30, %v12889_v30  ;;  %v13090_v33 = vld [vmem:[%s16340_s0 + $0x50] sm:$0xff] }
 0x245   :  { %5358 = vmatprep.mubr.bf16.mxu0 %v7717_v34  ;;  %5891 = vmatprep.mubr.bf16.mxu1 %v7717_v34  ;;  %v9856_v34 = vld [vmem:[%s16342_s2 + $0x1400] ss:$16 sps:$4 sm:$0xff]   ;;  %v9864_v30 = vld [vmem:[%s16342_s2 + $0x1424] ss:$16 sps:$4 sm:$0xff]  }
 0x247   :  { %5329 = vmatpush1.bf16.msra.mxu0 %v9764_v35  ;;  %5862 = vmatpush1.bf16.msra.mxu1 %v9767_v36  ;;  %v9859_v35 = vld [vmem:[%s16342_s2 + $0x1408] ss:$16 sps:$4 sm:$0xff]   ;;  %v9867_v36 = vld [vmem:[%s16342_s2 + $0x142c] ss:$16 sps:$4 sm:$0xff]  }
 0x248   :  { %5330 = vmatprep.subr.bf16.mxu0 %v9772_v37  ;;  %5863 = vmatprep.subr.bf16.mxu1 %v9775_v38  ;;  %v7719_v37 = vcombine.high %v13090_v33, %v13090_v33  ;;  %v9862_v38 = vld [vmem:[%s16342_s2 + $0x1420] ss:$16 sps:$4 sm:$0xff]  }
 0x24b   :  { %5331 = vmatpush1.bf16.msra.mxu0 %v9770_v39  ;;  %5864 = vmatpush1.bf16.msra.mxu1 %v9773_v40  ;;  %v9865_v39 = vld [vmem:[%s16342_s2 + $0x1428] ss:$16 sps:$4 sm:$0xff]   ;;  %v9870_v40 = vld [vmem:[%s16342_s2 + $0x1444] ss:$16 sps:$4 sm:$0xff]  }
 0x24c   :  { %5332 = vmatprep.subr.bf16.mxu0 %v9778_v41  ;;  %5865 = vmatprep.subr.bf16.mxu1 %v9781_v42  ;;  %v9873_v41 = vld [vmem:[%s16342_s2 + $0x144c] ss:$16 sps:$4 sm:$0xff]   ;;  %v9868_v42 = vld [vmem:[%s16342_s2 + $0x1440] ss:$16 sps:$4 sm:$0xff]  }
 0x24f   :  { %5333 = vmatpush1.bf16.msra.mxu0 %v9776_v43  ;;  %5866 = vmatpush1.bf16.msra.mxu1 %v9779_v44  ;;  %v9871_v43 = vld [vmem:[%s16342_s2 + $0x1448] ss:$16 sps:$4 sm:$0xff]   ;;  %v9876_v44 = vld [vmem:[%s16342_s2 + $0x1464] ss:$16 sps:$4 sm:$0xff]  }
 0x250   :  { %5334 = vmatprep.subr.bf16.mxu0 %v9784_v45  ;;  %5867 = vmatprep.subr.bf16.mxu1 %v9787_v46  ;;  %v9879_v45 = vld [vmem:[%s16342_s2 + $0x146c] ss:$16 sps:$4 sm:$0xff]   ;;  %v9874_v46 = vld [vmem:[%s16342_s2 + $0x1460] ss:$16 sps:$4 sm:$0xff]  }
 0x253   :  { %5335 = vmatpush1.bf16.msra.mxu0 %v9782_v47  ;;  %5868 = vmatpush1.bf16.msra.mxu1 %v9785_v48  ;;  %v9877_v47 = vld [vmem:[%s16342_s2 + $0x1468] ss:$16 sps:$4 sm:$0xff]   ;;  %v9882_v48 = vld [vmem:[%s16342_s2 + $0x1484] ss:$16 sps:$4 sm:$0xff]  }
 0x254   :  { %5336 = vmatprep.subr.bf16.mxu0 %v9790_v49  ;;  %5869 = vmatprep.subr.bf16.mxu1 %v9793_v50  ;;  %v9885_v49 = vld [vmem:[%s16342_s2 + $0x148c] ss:$16 sps:$4 sm:$0xff]   ;;  %v9880_v50 = vld [vmem:[%s16342_s2 + $0x1480] ss:$16 sps:$4 sm:$0xff]  }
 0x257   :  { %5337 = vmatpush1.bf16.msra.mxu0 %v9788_v51  ;;  %5870 = vmatpush1.bf16.msra.mxu1 %v9791_v52  ;;  %v9883_v51 = vld [vmem:[%s16342_s2 + $0x1488] ss:$16 sps:$4 sm:$0xff]   ;;  %v9888_v52 = vld [vmem:[%s16342_s2 + $0x14a4] ss:$16 sps:$4 sm:$0xff]  }
 0x258   :  { %5338 = vmatprep.subr.bf16.mxu0 %v9796_v53  ;;  %5871 = vmatprep.subr.bf16.mxu1 %v9799_v54  ;;  %v9891_v53 = vld [vmem:[%s16342_s2 + $0x14ac] ss:$16 sps:$4 sm:$0xff]   ;;  %v9886_v54 = vld [vmem:[%s16342_s2 + $0x14a0] ss:$16 sps:$4 sm:$0xff]  }
 0x25b   :  { %5339 = vmatpush1.bf16.msra.mxu0 %v9794_v55  ;;  %5872 = vmatpush1.bf16.msra.mxu1 %v9797_v56  ;;  %v9889_v55 = vld [vmem:[%s16342_s2 + $0x14a8] ss:$16 sps:$4 sm:$0xff]   ;;  %v9894_v56 = vld [vmem:[%s16342_s2 + $0x14c4] ss:$16 sps:$4 sm:$0xff]  }
 0x25c   :  { %5340 = vmatprep.subr.bf16.mxu0 %v9802_v57  ;;  %5873 = vmatprep.subr.bf16.mxu1 %v9805_v58  ;;  %v9897_v57 = vld [vmem:[%s16342_s2 + $0x14cc] ss:$16 sps:$4 sm:$0xff]   ;;  %v9892_v58 = vld [vmem:[%s16342_s2 + $0x14c0] ss:$16 sps:$4 sm:$0xff]  }
 0x25f   :  { %5341 = vmatpush1.bf16.msra.mxu0 %v9800_v59  ;;  %5874 = vmatpush1.bf16.msra.mxu1 %v9803_v60  ;;  %v9895_v59 = vld [vmem:[%s16342_s2 + $0x14c8] ss:$16 sps:$4 sm:$0xff]   ;;  %v9900_v60 = vld [vmem:[%s16342_s2 + $0x14e4] ss:$16 sps:$4 sm:$0xff]  }
 0x260   :  { %5342 = vmatprep.subr.bf16.mxu0 %v9808_v61  ;;  %5875 = vmatprep.subr.bf16.mxu1 %v9811_v62  ;;  %v9903_v61 = vld [vmem:[%s16342_s2 + $0x14ec] ss:$16 sps:$4 sm:$0xff]   ;;  %v9898_v62 = vld [vmem:[%s16342_s2 + $0x14e0] ss:$16 sps:$4 sm:$0xff]  }
 0x263   :  { %5343 = vmatpush1.bf16.msra.mxu0 %v9806_v63  ;;  %5876 = vmatpush1.bf16.msra.mxu1 %v9809_v0  ;;  %v9901_v63 = vld [vmem:[%s16342_s2 + $0x14e8] ss:$16 sps:$4 sm:$0xff]   ;;  %v9906_v0 = vld [vmem:[%s16342_s2 + $0x1504] ss:$16 sps:$4 sm:$0xff]  }
 0x264   :  { %5344 = vmatprep.subr.bf16.mxu0 %v9814_v1  ;;  %5877 = vmatprep.subr.bf16.mxu1 %v9817_v2  ;;  %v9909_v1 = vld [vmem:[%s16342_s2 + $0x150c] ss:$16 sps:$4 sm:$0xff]   ;;  %v9904_v2 = vld [vmem:[%s16342_s2 + $0x1500] ss:$16 sps:$4 sm:$0xff]  }
 0x267   :  { %5345 = vmatpush1.bf16.msra.mxu0 %v9812_v3  ;;  %5878 = vmatpush1.bf16.msra.mxu1 %v9815_v4  ;;  %v9907_v3 = vld [vmem:[%s16342_s2 + $0x1508] ss:$16 sps:$4 sm:$0xff]   ;;  %v9912_v4 = vld [vmem:[%s16342_s2 + $0x1524] ss:$16 sps:$4 sm:$0xff]  }
 0x268   :  { %5346 = vmatprep.subr.bf16.mxu0 %v9820_v5  ;;  %5879 = vmatprep.subr.bf16.mxu1 %v9823_v6  ;;  %v9915_v5 = vld [vmem:[%s16342_s2 + $0x152c] ss:$16 sps:$4 sm:$0xff]   ;;  %v9910_v6 = vld [vmem:[%s16342_s2 + $0x1520] ss:$16 sps:$4 sm:$0xff]  }
 0x26b   :  { %5347 = vmatpush1.bf16.msra.mxu0 %v9818_v7  ;;  %5880 = vmatpush1.bf16.msra.mxu1 %v9821_v8  ;;  %v9913_v7 = vld [vmem:[%s16342_s2 + $0x1528] ss:$16 sps:$4 sm:$0xff]   ;;  %v9918_v8 = vld [vmem:[%s16342_s2 + $0x1544] ss:$16 sps:$4 sm:$0xff]  }
 0x26c   :  { %5348 = vmatprep.subr.bf16.mxu0 %v9826_v9  ;;  %5881 = vmatprep.subr.bf16.mxu1 %v9829_v10  ;;  %v9921_v9 = vld [vmem:[%s16342_s2 + $0x154c] ss:$16 sps:$4 sm:$0xff]   ;;  %v9916_v10 = vld [vmem:[%s16342_s2 + $0x1540] ss:$16 sps:$4 sm:$0xff]  }
 0x26f   :  { %5349 = vmatpush1.bf16.msra.mxu0 %v9824_v12  ;;  %5882 = vmatpush1.bf16.msra.mxu1 %v9827_v13  ;;  %v9919_v12 = vld [vmem:[%s16342_s2 + $0x1548] ss:$16 sps:$4 sm:$0xff]   ;;  %v9924_v13 = vld [vmem:[%s16342_s2 + $0x1564] ss:$16 sps:$4 sm:$0xff]  }
 0x270   :  { %5350 = vmatprep.subr.bf16.mxu0 %v9832_v15  ;;  %5883 = vmatprep.subr.bf16.mxu1 %v9835_v11  ;;  %v9927_v15 = vld [vmem:[%s16342_s2 + $0x156c] ss:$16 sps:$4 sm:$0xff]   ;;  %v9922_v11 = vld [vmem:[%s16342_s2 + $0x1560] ss:$16 sps:$4 sm:$0xff]  }
 0x273   :  { %5351 = vmatpush1.bf16.msra.mxu0 %v9830_v17  ;;  %5884 = vmatpush1.bf16.msra.mxu1 %v9833_v14  ;;  %v9925_v17 = vld [vmem:[%s16342_s2 + $0x1568] ss:$16 sps:$4 sm:$0xff]   ;;  %v9930_v14 = vld [vmem:[%s16342_s2 + $0x1584] ss:$16 sps:$4 sm:$0xff]  }
 0x274   :  { %5352 = vmatprep.subr.bf16.mxu0 %v9838_v19  ;;  %5885 = vmatprep.subr.bf16.mxu1 %v9841_v20  ;;  %v9933_v19 = vld [vmem:[%s16342_s2 + $0x158c] ss:$16 sps:$4 sm:$0xff]   ;;  %v9928_v20 = vld [vmem:[%s16342_s2 + $0x1580] ss:$16 sps:$4 sm:$0xff]  }
 0x277   :  { %5353 = vmatpush1.bf16.msra.mxu0 %v9836_v16  ;;  %5886 = vmatpush1.bf16.msra.mxu1 %v9839_v22  ;;  %v9931_v16 = vld [vmem:[%s16342_s2 + $0x1588] ss:$16 sps:$4 sm:$0xff]   ;;  %v9936_v22 = vld [vmem:[%s16342_s2 + $0x15a4] ss:$16 sps:$4 sm:$0xff]  }
 0x278   :  { %5354 = vmatprep.subr.bf16.mxu0 %v9844_v23  ;;  %5887 = vmatprep.subr.bf16.mxu1 %v9847_v18  ;;  %v9939_v23 = vld [vmem:[%s16342_s2 + $0x15ac] ss:$16 sps:$4 sm:$0xff]   ;;  %v9934_v18 = vld [vmem:[%s16342_s2 + $0x15a0] ss:$16 sps:$4 sm:$0xff]  }
 0x27b   :  { %5355 = vmatpush1.bf16.msra.mxu0 %v9842_v25  ;;  %5888 = vmatpush1.bf16.msra.mxu1 %v9845_v26  ;;  %v9937_v25 = vld [vmem:[%s16342_s2 + $0x15a8] ss:$16 sps:$4 sm:$0xff]   ;;  %v9942_v26 = vld [vmem:[%s16342_s2 + $0x15c4] ss:$16 sps:$4 sm:$0xff]  }
 0x27c   :  { %5356 = vmatprep.subr.bf16.mxu0 %v9850_v27  ;;  %5889 = vmatprep.subr.bf16.mxu1 %v9853_v28  ;;  %v9945_v27 = vld [vmem:[%s16342_s2 + $0x15cc] ss:$16 sps:$4 sm:$0xff]   ;;  %v9940_v28 = vld [vmem:[%s16342_s2 + $0x15c0] ss:$16 sps:$4 sm:$0xff]  }
 0x27f   :  { %5357 = vmatpush1.bf16.msra.mxu0 %v9848_v29  ;;  %5890 = vmatpush1.bf16.msra.mxu1 %v9851_v24  ;;  %v9943_v29 = vld [vmem:[%s16342_s2 + $0x15c8] ss:$16 sps:$4 sm:$0xff]   ;;  %v9948_v24 = vld [vmem:[%s16342_s2 + $0x15e4] ss:$16 sps:$4 sm:$0xff]  }
 0x280   :  { %5367 = vmatprep.subr.bf16.mxu0 %v9858_v31  ;;  %5900 = vmatprep.subr.bf16.mxu1 %v9861_v32  ;;  %v9951_v31 = vld [vmem:[%s16342_s2 + $0x15ec] ss:$16 sps:$4 sm:$0xff]   ;;  %v9946_v32 = vld [vmem:[%s16342_s2 + $0x15e0] ss:$16 sps:$4 sm:$0xff]  }
 0x282   :  { %5359 = vmatmul.mubr.bf16.vlgmr.msra.gmra.mrb[0].mxu0 %v7716_v21  ;;  %5892 = vmatmul.mubr.bf16.vlgmr.msra.gmra.mrb[0].mxu1 %v7716_v21  ;;  %v9949_v21 = vld [vmem:[%s16342_s2 + $0x15e8] ss:$16 sps:$4 sm:$0xff]  }
 0x283   :  { %5368 = vmatpush1.bf16.msra.mxu0 %v9856_v34  ;;  %5901 = vmatpush1.bf16.msra.mxu1 %v9859_v35  ;;  %v9956_v34 = vld [vmem:[%s16342_s2 + $0x1604] ss:$16 sps:$4 sm:$0xff]   ;;  %v9959_v35 = vld [vmem:[%s16342_s2 + $0x160c] ss:$16 sps:$4 sm:$0xff]  }
 0x284   :  { %5369 = vmatprep.subr.bf16.mxu0 %v9864_v30  ;;  %5902 = vmatprep.subr.bf16.mxu1 %v9867_v36  ;;  %v7718_v30 = vcombine.low %v13090_v33, %v13090_v33  ;;  %v13291_v36 = vld [vmem:[%s16340_s0 + $0x58] sm:$0xff]  ;;  %v9962_v33 = vld [vmem:[%s16342_s2 + $0x1624] ss:$16 sps:$4 sm:$0xff]  }
 0x285   :  { %5399 = vmatprep.mubr.bf16.mxu0 %v7719_v37  ;;  %5932 = vmatprep.mubr.bf16.mxu1 %v7719_v37  ;;  %v9954_v37 = vld [vmem:[%s16342_s2 + $0x1600] ss:$16 sps:$4 sm:$0xff]  }
 0x287   :  { %5370 = vmatpush1.bf16.msra.mxu0 %v9862_v38  ;;  %5903 = vmatpush1.bf16.msra.mxu1 %v9865_v39  ;;  %v9957_v38 = vld [vmem:[%s16342_s2 + $0x1608] ss:$16 sps:$4 sm:$0xff]   ;;  %v9965_v39 = vld [vmem:[%s16342_s2 + $0x162c] ss:$16 sps:$4 sm:$0xff]  }
 0x288   :  { %5371 = vmatprep.subr.bf16.mxu0 %v9870_v40  ;;  %5904 = vmatprep.subr.bf16.mxu1 %v9873_v41  ;;  %v7721_v40 = vcombine.high %v13291_v36, %v13291_v36  ;;  %v9960_v41 = vld [vmem:[%s16342_s2 + $0x1620] ss:$16 sps:$4 sm:$0xff]  }
 0x28b   :  { %5372 = vmatpush1.bf16.msra.mxu0 %v9868_v42  ;;  %5905 = vmatpush1.bf16.msra.mxu1 %v9871_v43  ;;  %v9963_v42 = vld [vmem:[%s16342_s2 + $0x1628] ss:$16 sps:$4 sm:$0xff]   ;;  %v9968_v43 = vld [vmem:[%s16342_s2 + $0x1644] ss:$16 sps:$4 sm:$0xff]  }
 0x28c   :  { %5373 = vmatprep.subr.bf16.mxu0 %v9876_v44  ;;  %5906 = vmatprep.subr.bf16.mxu1 %v9879_v45  ;;  %v9971_v44 = vld [vmem:[%s16342_s2 + $0x164c] ss:$16 sps:$4 sm:$0xff]   ;;  %v9966_v45 = vld [vmem:[%s16342_s2 + $0x1640] ss:$16 sps:$4 sm:$0xff]  }
 0x28f   :  { %5374 = vmatpush1.bf16.msra.mxu0 %v9874_v46  ;;  %5907 = vmatpush1.bf16.msra.mxu1 %v9877_v47  ;;  %v9969_v46 = vld [vmem:[%s16342_s2 + $0x1648] ss:$16 sps:$4 sm:$0xff]   ;;  %v9974_v47 = vld [vmem:[%s16342_s2 + $0x1664] ss:$16 sps:$4 sm:$0xff]  }
 0x290   :  { %5375 = vmatprep.subr.bf16.mxu0 %v9882_v48  ;;  %5908 = vmatprep.subr.bf16.mxu1 %v9885_v49  ;;  %v9977_v48 = vld [vmem:[%s16342_s2 + $0x166c] ss:$16 sps:$4 sm:$0xff]   ;;  %v9972_v49 = vld [vmem:[%s16342_s2 + $0x1660] ss:$16 sps:$4 sm:$0xff]  }
 0x293   :  { %5376 = vmatpush1.bf16.msra.mxu0 %v9880_v50  ;;  %5909 = vmatpush1.bf16.msra.mxu1 %v9883_v51  ;;  %v9975_v50 = vld [vmem:[%s16342_s2 + $0x1668] ss:$16 sps:$4 sm:$0xff]   ;;  %v9980_v51 = vld [vmem:[%s16342_s2 + $0x1684] ss:$16 sps:$4 sm:$0xff]  }
 0x294   :  { %5377 = vmatprep.subr.bf16.mxu0 %v9888_v52  ;;  %5910 = vmatprep.subr.bf16.mxu1 %v9891_v53  ;;  %v9983_v52 = vld [vmem:[%s16342_s2 + $0x168c] ss:$16 sps:$4 sm:$0xff]   ;;  %v9978_v53 = vld [vmem:[%s16342_s2 + $0x1680] ss:$16 sps:$4 sm:$0xff]  }
 0x297   :  { %5378 = vmatpush1.bf16.msra.mxu0 %v9886_v54  ;;  %5911 = vmatpush1.bf16.msra.mxu1 %v9889_v55  ;;  %v9981_v54 = vld [vmem:[%s16342_s2 + $0x1688] ss:$16 sps:$4 sm:$0xff]   ;;  %v9986_v55 = vld [vmem:[%s16342_s2 + $0x16a4] ss:$16 sps:$4 sm:$0xff]  }
 0x298   :  { %5379 = vmatprep.subr.bf16.mxu0 %v9894_v56  ;;  %5912 = vmatprep.subr.bf16.mxu1 %v9897_v57  ;;  %v9989_v56 = vld [vmem:[%s16342_s2 + $0x16ac] ss:$16 sps:$4 sm:$0xff]   ;;  %v9984_v57 = vld [vmem:[%s16342_s2 + $0x16a0] ss:$16 sps:$4 sm:$0xff]  }
 0x29b   :  { %5380 = vmatpush1.bf16.msra.mxu0 %v9892_v58  ;;  %5913 = vmatpush1.bf16.msra.mxu1 %v9895_v59  ;;  %v9987_v58 = vld [vmem:[%s16342_s2 + $0x16a8] ss:$16 sps:$4 sm:$0xff]   ;;  %v9992_v59 = vld [vmem:[%s16342_s2 + $0x16c4] ss:$16 sps:$4 sm:$0xff]  }
 0x29c   :  { %5381 = vmatprep.subr.bf16.mxu0 %v9900_v60  ;;  %5914 = vmatprep.subr.bf16.mxu1 %v9903_v61  ;;  %v9995_v60 = vld [vmem:[%s16342_s2 + $0x16cc] ss:$16 sps:$4 sm:$0xff]   ;;  %v9990_v61 = vld [vmem:[%s16342_s2 + $0x16c0] ss:$16 sps:$4 sm:$0xff]  }
 0x29f   :  { %5382 = vmatpush1.bf16.msra.mxu0 %v9898_v62  ;;  %5915 = vmatpush1.bf16.msra.mxu1 %v9901_v63  ;;  %v9993_v62 = vld [vmem:[%s16342_s2 + $0x16c8] ss:$16 sps:$4 sm:$0xff]   ;;  %v9998_v63 = vld [vmem:[%s16342_s2 + $0x16e4] ss:$16 sps:$4 sm:$0xff]  }
 0x2a0   :  { %5383 = vmatprep.subr.bf16.mxu0 %v9906_v0  ;;  %5916 = vmatprep.subr.bf16.mxu1 %v9909_v1  ;;  %v10001_v0 = vld [vmem:[%s16342_s2 + $0x16ec] ss:$16 sps:$4 sm:$0xff]   ;;  %v9996_v1 = vld [vmem:[%s16342_s2 + $0x16e0] ss:$16 sps:$4 sm:$0xff]  }
 0x2a3   :  { %5384 = vmatpush1.bf16.msra.mxu0 %v9904_v2  ;;  %5917 = vmatpush1.bf16.msra.mxu1 %v9907_v3  ;;  %v9999_v2 = vld [vmem:[%s16342_s2 + $0x16e8] ss:$16 sps:$4 sm:$0xff]   ;;  %v10004_v3 = vld [vmem:[%s16342_s2 + $0x1704] ss:$16 sps:$4 sm:$0xff]  }
 0x2a4   :  { %5385 = vmatprep.subr.bf16.mxu0 %v9912_v4  ;;  %5918 = vmatprep.subr.bf16.mxu1 %v9915_v5  ;;  %v10007_v4 = vld [vmem:[%s16342_s2 + $0x170c] ss:$16 sps:$4 sm:$0xff]   ;;  %v10002_v5 = vld [vmem:[%s16342_s2 + $0x1700] ss:$16 sps:$4 sm:$0xff]  }
 0x2a7   :  { %5386 = vmatpush1.bf16.msra.mxu0 %v9910_v6  ;;  %5919 = vmatpush1.bf16.msra.mxu1 %v9913_v7  ;;  %v10005_v6 = vld [vmem:[%s16342_s2 + $0x1708] ss:$16 sps:$4 sm:$0xff]   ;;  %v10010_v7 = vld [vmem:[%s16342_s2 + $0x1724] ss:$16 sps:$4 sm:$0xff]  }
 0x2a8   :  { %5387 = vmatprep.subr.bf16.mxu0 %v9918_v8  ;;  %5920 = vmatprep.subr.bf16.mxu1 %v9921_v9  ;;  %v10013_v8 = vld [vmem:[%s16342_s2 + $0x172c] ss:$16 sps:$4 sm:$0xff]   ;;  %v10008_v9 = vld [vmem:[%s16342_s2 + $0x1720] ss:$16 sps:$4 sm:$0xff]  }
 0x2ab   :  { %5388 = vmatpush1.bf16.msra.mxu0 %v9916_v10  ;;  %5921 = vmatpush1.bf16.msra.mxu1 %v9919_v12  ;;  %v10011_v10 = vld [vmem:[%s16342_s2 + $0x1728] ss:$16 sps:$4 sm:$0xff]   ;;  %v10016_v12 = vld [vmem:[%s16342_s2 + $0x1744] ss:$16 sps:$4 sm:$0xff]  }
 0x2ac   :  { %5389 = vmatprep.subr.bf16.mxu0 %v9924_v13  ;;  %5922 = vmatprep.subr.bf16.mxu1 %v9927_v15  ;;  %v10019_v13 = vld [vmem:[%s16342_s2 + $0x174c] ss:$16 sps:$4 sm:$0xff]   ;;  %v10014_v15 = vld [vmem:[%s16342_s2 + $0x1740] ss:$16 sps:$4 sm:$0xff]  }
 0x2af   :  { %5390 = vmatpush1.bf16.msra.mxu0 %v9922_v11  ;;  %5923 = vmatpush1.bf16.msra.mxu1 %v9925_v17  ;;  %v10017_v11 = vld [vmem:[%s16342_s2 + $0x1748] ss:$16 sps:$4 sm:$0xff]   ;;  %v10022_v17 = vld [vmem:[%s16342_s2 + $0x1764] ss:$16 sps:$4 sm:$0xff]  }
 0x2b0   :  { %5391 = vmatprep.subr.bf16.mxu0 %v9930_v14  ;;  %5924 = vmatprep.subr.bf16.mxu1 %v9933_v19  ;;  %v10025_v14 = vld [vmem:[%s16342_s2 + $0x176c] ss:$16 sps:$4 sm:$0xff]   ;;  %v10020_v19 = vld [vmem:[%s16342_s2 + $0x1760] ss:$16 sps:$4 sm:$0xff]  }
 0x2b3   :  { %5392 = vmatpush1.bf16.msra.mxu0 %v9928_v20  ;;  %5925 = vmatpush1.bf16.msra.mxu1 %v9931_v16  ;;  %v10023_v20 = vld [vmem:[%s16342_s2 + $0x1768] ss:$16 sps:$4 sm:$0xff]   ;;  %v10028_v16 = vld [vmem:[%s16342_s2 + $0x1784] ss:$16 sps:$4 sm:$0xff]  }
 0x2b4   :  { %5393 = vmatprep.subr.bf16.mxu0 %v9936_v22  ;;  %5926 = vmatprep.subr.bf16.mxu1 %v9939_v23  ;;  %v10031_v22 = vld [vmem:[%s16342_s2 + $0x178c] ss:$16 sps:$4 sm:$0xff]   ;;  %v10026_v23 = vld [vmem:[%s16342_s2 + $0x1780] ss:$16 sps:$4 sm:$0xff]  }
 0x2b7   :  { %5394 = vmatpush1.bf16.msra.mxu0 %v9934_v18  ;;  %5927 = vmatpush1.bf16.msra.mxu1 %v9937_v25  ;;  %v10029_v18 = vld [vmem:[%s16342_s2 + $0x1788] ss:$16 sps:$4 sm:$0xff]   ;;  %v10034_v25 = vld [vmem:[%s16342_s2 + $0x17a4] ss:$16 sps:$4 sm:$0xff]  }
 0x2b8   :  { %5395 = vmatprep.subr.bf16.mxu0 %v9942_v26  ;;  %5928 = vmatprep.subr.bf16.mxu1 %v9945_v27  ;;  %v10037_v26 = vld [vmem:[%s16342_s2 + $0x17ac] ss:$16 sps:$4 sm:$0xff]   ;;  %v10032_v27 = vld [vmem:[%s16342_s2 + $0x17a0] ss:$16 sps:$4 sm:$0xff]  }
 0x2bb   :  { %5396 = vmatpush1.bf16.msra.mxu0 %v9940_v28  ;;  %5929 = vmatpush1.bf16.msra.mxu1 %v9943_v29  ;;  %v10035_v28 = vld [vmem:[%s16342_s2 + $0x17a8] ss:$16 sps:$4 sm:$0xff]   ;;  %v10040_v29 = vld [vmem:[%s16342_s2 + $0x17c4] ss:$16 sps:$4 sm:$0xff]  }
 0x2bc   :  { %5397 = vmatprep.subr.bf16.mxu0 %v9948_v24  ;;  %5930 = vmatprep.subr.bf16.mxu1 %v9951_v31  ;;  %v10043_v24 = vld [vmem:[%s16342_s2 + $0x17cc] ss:$16 sps:$4 sm:$0xff]   ;;  %v10038_v31 = vld [vmem:[%s16342_s2 + $0x17c0] ss:$16 sps:$4 sm:$0xff]  }
 0x2bf   :  { %5398 = vmatpush1.bf16.msra.mxu0 %v9946_v32  ;;  %5931 = vmatpush1.bf16.msra.mxu1 %v9949_v21  ;;  %v10041_v32 = vld [vmem:[%s16342_s2 + $0x17c8] ss:$16 sps:$4 sm:$0xff]   ;;  %v10046_v21 = vld [vmem:[%s16342_s2 + $0x17e4] ss:$16 sps:$4 sm:$0xff]  }
 0x2c0   :  { %5408 = vmatprep.subr.bf16.mxu0 %v9956_v34  ;;  %5941 = vmatprep.subr.bf16.mxu1 %v9959_v35  ;;  %v10049_v34 = vld [vmem:[%s16342_s2 + $0x17ec] ss:$16 sps:$4 sm:$0xff]   ;;  %v10044_v35 = vld [vmem:[%s16342_s2 + $0x17e0] ss:$16 sps:$4 sm:$0xff]  }
 0x2c2   :  { %5400 = vmatmul.mubr.bf16.vlgmr.msra.gmra.mrb[0].mxu0 %v7718_v30  ;;  %5933 = vmatmul.mubr.bf16.vlgmr.msra.gmra.mrb[0].mxu1 %v7718_v30  ;;  %v10047_v30 = vld [vmem:[%s16342_s2 + $0x17e8] ss:$16 sps:$4 sm:$0xff]  }
 0x2c3   :  { %5409 = vmatpush1.bf16.msra.mxu0 %v9954_v37  ;;  %5942 = vmatpush1.bf16.msra.mxu1 %v9957_v38  ;;  %v10054_v37 = vld [vmem:[%s16342_s2 + $0x1804] ss:$16 sps:$4 sm:$0xff]   ;;  %v10057_v38 = vld [vmem:[%s16342_s2 + $0x180c] ss:$16 sps:$4 sm:$0xff]  }
 0x2c4   :  { %5410 = vmatprep.subr.bf16.mxu0 %v9962_v33  ;;  %5943 = vmatprep.subr.bf16.mxu1 %v9965_v39  ;;  %v7720_v33 = vcombine.low %v13291_v36, %v13291_v36  ;;  %v10052_v39 = vld [vmem:[%s16342_s2 + $0x1800] ss:$16 sps:$4 sm:$0xff]   ;;  %v10063_v36 = vld [vmem:[%s16342_s2 + $0x182c] ss:$16 sps:$4 sm:$0xff]  }
 0x2c5   :  { %5440 = vmatprep.mubr.bf16.mxu0 %v7721_v40  ;;  %5973 = vmatprep.mubr.bf16.mxu1 %v7721_v40  ;;  %v10055_v40 = vld [vmem:[%s16342_s2 + $0x1808] ss:$16 sps:$4 sm:$0xff]  }
 0x2c7   :  { %5411 = vmatpush1.bf16.msra.mxu0 %v9960_v41  ;;  %5944 = vmatpush1.bf16.msra.mxu1 %v9963_v42  ;;  %v10060_v41 = vld [vmem:[%s16342_s2 + $0x1824] ss:$16 sps:$4 sm:$0xff]   ;;  %v10058_v42 = vld [vmem:[%s16342_s2 + $0x1820] ss:$16 sps:$4 sm:$0xff]  }
 0x2c8   :  { %5412 = vmatprep.subr.bf16.mxu0 %v9968_v43  ;;  %5945 = vmatprep.subr.bf16.mxu1 %v9971_v44  ;;  %v10061_v43 = vld [vmem:[%s16342_s2 + $0x1828] ss:$16 sps:$4 sm:$0xff]   ;;  %v10066_v44 = vld [vmem:[%s16342_s2 + $0x1844] ss:$16 sps:$4 sm:$0xff]  }
 0x2cb   :  { %5413 = vmatpush1.bf16.msra.mxu0 %v9966_v45  ;;  %5946 = vmatpush1.bf16.msra.mxu1 %v9969_v46  ;;  %v10069_v45 = vld [vmem:[%s16342_s2 + $0x184c] ss:$16 sps:$4 sm:$0xff]   ;;  %v11025_v46 = vmov 0  }
 0x2cc   :  { %5414 = vmatprep.subr.bf16.mxu0 %v9974_v47  ;;  %5947 = vmatprep.subr.bf16.mxu1 %v9977_v48  ;;  %v10064_v47 = vld [vmem:[%s16342_s2 + $0x1840] ss:$16 sps:$4 sm:$0xff]   ;;  %v10067_v48 = vld [vmem:[%s16342_s2 + $0x1848] ss:$16 sps:$4 sm:$0xff]  }
 0x2cf   :  { %5415 = vmatpush1.bf16.msra.mxu0 %v9972_v49  ;;  %5948 = vmatpush1.bf16.msra.mxu1 %v9975_v50  ;;  %v10072_v49 = vld [vmem:[%s16342_s2 + $0x1864] ss:$16 sps:$4 sm:$0xff]   ;;  %v10075_v50 = vld [vmem:[%s16342_s2 + $0x186c] ss:$16 sps:$4 sm:$0xff]  }
 0x2d0   :  { %5416 = vmatprep.subr.bf16.mxu0 %v9980_v51  ;;  %5949 = vmatprep.subr.bf16.mxu1 %v9983_v52  ;;  %v10070_v51 = vld [vmem:[%s16342_s2 + $0x1860] ss:$16 sps:$4 sm:$0xff]   ;;  %v10073_v52 = vld [vmem:[%s16342_s2 + $0x1868] ss:$16 sps:$4 sm:$0xff]  }
 0x2d3   :  { %5417 = vmatpush1.bf16.msra.mxu0 %v9978_v53  ;;  %5950 = vmatpush1.bf16.msra.mxu1 %v9981_v54  ;;  %v10078_v53 = vld [vmem:[%s16342_s2 + $0x1884] ss:$16 sps:$4 sm:$0xff]   ;;  %v10081_v54 = vld [vmem:[%s16342_s2 + $0x188c] ss:$16 sps:$4 sm:$0xff]  }
 0x2d4   :  { %5418 = vmatprep.subr.bf16.mxu0 %v9986_v55  ;;  %5951 = vmatprep.subr.bf16.mxu1 %v9989_v56  ;;  %v10076_v55 = vld [vmem:[%s16342_s2 + $0x1880] ss:$16 sps:$4 sm:$0xff]   ;;  %v10079_v56 = vld [vmem:[%s16342_s2 + $0x1888] ss:$16 sps:$4 sm:$0xff]  }
 0x2d7   :  { %5419 = vmatpush1.bf16.msra.mxu0 %v9984_v57  ;;  %5952 = vmatpush1.bf16.msra.mxu1 %v9987_v58  ;;  %v10084_v57 = vld [vmem:[%s16342_s2 + $0x18a4] ss:$16 sps:$4 sm:$0xff]   ;;  %v10087_v58 = vld [vmem:[%s16342_s2 + $0x18ac] ss:$16 sps:$4 sm:$0xff]  }
 0x2d8   :  { %5420 = vmatprep.subr.bf16.mxu0 %v9992_v59  ;;  %5953 = vmatprep.subr.bf16.mxu1 %v9995_v60  ;;  %v10082_v59 = vld [vmem:[%s16342_s2 + $0x18a0] ss:$16 sps:$4 sm:$0xff]   ;;  %v10085_v60 = vld [vmem:[%s16342_s2 + $0x18a8] ss:$16 sps:$4 sm:$0xff]  }
 0x2db   :  { %5421 = vmatpush1.bf16.msra.mxu0 %v9990_v61  ;;  %5954 = vmatpush1.bf16.msra.mxu1 %v9993_v62  ;;  %v10090_v61 = vld [vmem:[%s16342_s2 + $0x18c4] ss:$16 sps:$4 sm:$0xff]   ;;  %v10093_v62 = vld [vmem:[%s16342_s2 + $0x18cc] ss:$16 sps:$4 sm:$0xff]  }
 0x2dc   :  { %5422 = vmatprep.subr.bf16.mxu0 %v9998_v63  ;;  %5955 = vmatprep.subr.bf16.mxu1 %v10001_v0  ;;  %v10088_v63 = vld [vmem:[%s16342_s2 + $0x18c0] ss:$16 sps:$4 sm:$0xff]   ;;  %v10091_v0 = vld [vmem:[%s16342_s2 + $0x18c8] ss:$16 sps:$4 sm:$0xff]  }
 0x2df   :  { %5423 = vmatpush1.bf16.msra.mxu0 %v9996_v1  ;;  %5956 = vmatpush1.bf16.msra.mxu1 %v9999_v2  ;;  %v10096_v1 = vld [vmem:[%s16342_s2 + $0x18e4] ss:$16 sps:$4 sm:$0xff]   ;;  %v10099_v2 = vld [vmem:[%s16342_s2 + $0x18ec] ss:$16 sps:$4 sm:$0xff]  }
 0x2e0   :  { %5424 = vmatprep.subr.bf16.mxu0 %v10004_v3  ;;  %5957 = vmatprep.subr.bf16.mxu1 %v10007_v4  ;;  %v10094_v3 = vld [vmem:[%s16342_s2 + $0x18e0] ss:$16 sps:$4 sm:$0xff]   ;;  %v10097_v4 = vld [vmem:[%s16342_s2 + $0x18e8] ss:$16 sps:$4 sm:$0xff]  }
 0x2e3   :  { %5425 = vmatpush1.bf16.msra.mxu0 %v10002_v5  ;;  %5958 = vmatpush1.bf16.msra.mxu1 %v10005_v6  ;;  %v10101_v5 = vld [vmem:[%s16344_s4 + $0x40] sm:$0xff]  }
 0x2e4   :  { %5426 = vmatprep.subr.bf16.mxu0 %v10010_v7  ;;  %5959 = vmatprep.subr.bf16.mxu1 %v10013_v8  ;;  %v10102_v6 = vld [vmem:[%s16344_s4 + $0xc0] sm:$0xff]  }
 0x2e5   :  { %v10100_v7 = vld [vmem:[%s16340_s0 + $0x60] ss:$0 sps:$4 sm:$0xff]   ;;  %s7690_s0 = sshll.u32 %s11026_s29, 4  ;;  %s7691_s0 = int_to_ptr.vmem [resolvable:$true] %s7690_s0 }
 0x2e6   :  { %v10103_v8 = vld [vmem:[%s16344_s4] sm:$0xff]   ;;  %s11001_s30 = scalar_lea.vmem %s7691_s0, 16  ;;  %s11005_s10 = scalar_lea.vmem %s7691_s0, 32 }
 0x2e7   :  { %5427 = vmatpush1.bf16.msra.mxu0 %v10008_v9  ;;  %5960 = vmatpush1.bf16.msra.mxu1 %v10011_v10  ;;  %v10104_v9 = vld [vmem:[%s16344_s4 + $0x80] sm:$0xff]   ;;  %v10105_v10 = vld [vmem:[%s16344_s4 + $0x48] sm:$0xff]   ;;  %p11002_p0 = scmp.ne.s32.totalorder %s7691_s0, %s11001_s30  ;;  %p11006_p1 = scmp.lt.s32.totalorder %s7691_s0, %s7691_s0 }
 0x2e8   :  { %5428 = vmatprep.subr.bf16.mxu0 %v10016_v12  ;;  %5961 = vmatprep.subr.bf16.mxu1 %v10019_v13  ;;  %v10106_v12 = vld [vmem:[%s16344_s4 + $0xc8] sm:$0xff]   ;;  %p11007_p2 = scmp.lt.s32.totalorder %s11005_s10, %s11001_s30 }
 0x2e9   :  { %v10107_v13 = vld [vmem:[%s16344_s4 + $0x8] sm:$0xff]  }
 0x2ea   :  { %p11008_p3 = por %p11007_p2, %p11006_p1 }
 0x2eb   :  { %5429 = vmatpush1.bf16.msra.mxu0 %v10014_v15  ;;  %5962 = vmatpush1.bf16.msra.mxu1 %v10017_v11  ;;  %v10108_v15 = vld [vmem:[%s16344_s4 + $0x88] sm:$0xff]   ;;  %v10109_v11 = vld [vmem:[%s16344_s4 + $0x50] sm:$0xff]  }
 0x2ec   :  { %5430 = vmatprep.subr.bf16.mxu0 %v10022_v17  ;;  %5963 = vmatprep.subr.bf16.mxu1 %v10025_v14  ;;  %v10110_v17 = vld [vmem:[%s16344_s4 + $0xd0] sm:$0xff]   ;;  %p11009_p4 = pnand %p11008_p3, %p11002_p0 }
 0x2ed   :  { %v10111_v14 = vld [vmem:[%s16344_s4 + $0x10] sm:$0xff]  }
 0x2ef   :  { %5431 = vmatpush1.bf16.msra.mxu0 %v10020_v19  ;;  %5964 = vmatpush1.bf16.msra.mxu1 %v10023_v20  ;;  %v10112_v19 = vld [vmem:[%s16344_s4 + $0x90] sm:$0xff]   ;;  %v10113_v20 = vld [vmem:[%s16344_s4 + $0x58] sm:$0xff]  }
 0x2f0   :  { %5432 = vmatprep.subr.bf16.mxu0 %v10028_v16  ;;  %5965 = vmatprep.subr.bf16.mxu1 %v10031_v22  ;;  %v10114_v16 = vld [vmem:[%s16344_s4 + $0xd8] sm:$0xff]  }
 0x2f1   :  { %v10115_v22 = vld [vmem:[%s16344_s4 + $0x18] sm:$0xff]  }
 0x2f3   :  { %5433 = vmatpush1.bf16.msra.mxu0 %v10026_v23  ;;  %5966 = vmatpush1.bf16.msra.mxu1 %v10029_v18  ;;  %v10116_v23 = vld [vmem:[%s16344_s4 + $0x98] sm:$0xff]   ;;  %v10117_v18 = vld [vmem:[%s16344_s4 + $0x60] sm:$0xff]  }
 0x2f4   :  { %5434 = vmatprep.subr.bf16.mxu0 %v10034_v25  ;;  %5967 = vmatprep.subr.bf16.mxu1 %v10037_v26  ;;  %v10118_v25 = vld [vmem:[%s16344_s4 + $0xe0] sm:$0xff]  }
 0x2f5   :  { %v10119_v26 = vld [vmem:[%s16344_s4 + $0x20] sm:$0xff]  }
 0x2f7   :  { %5435 = vmatpush1.bf16.msra.mxu0 %v10032_v27  ;;  %5968 = vmatpush1.bf16.msra.mxu1 %v10035_v28  ;;  %v10120_v27 = vld [vmem:[%s16344_s4 + $0xa0] sm:$0xff]   ;;  %v10121_v28 = vld [vmem:[%s16344_s4 + $0x68] sm:$0xff]  }
 0x2f8   :  { %5436 = vmatprep.subr.bf16.mxu0 %v10040_v29  ;;  %5969 = vmatprep.subr.bf16.mxu1 %v10043_v24  ;;  %v10122_v29 = vld [vmem:[%s16344_s4 + $0xe8] sm:$0xff]  }
 0x2f9   :  { %v10123_v24 = vld [vmem:[%s16344_s4 + $0x28] sm:$0xff]  }
 0x2fb   :  { %5437 = vmatpush1.bf16.msra.mxu0 %v10038_v31  ;;  %5970 = vmatpush1.bf16.msra.mxu1 %v10041_v32  ;;  %v10124_v31 = vld [vmem:[%s16344_s4 + $0xa8] sm:$0xff]   ;;  %v10125_v32 = vld [vmem:[%s16344_s4 + $0x70] sm:$0xff]  }
 0x2fc   :  { %5438 = vmatprep.subr.bf16.mxu0 %v10046_v21  ;;  %5971 = vmatprep.subr.bf16.mxu1 %v10049_v34  ;;  %v10126_v21 = vld [vmem:[%s16344_s4 + $0xf0] sm:$0xff]  }
 0x2fd   :  { %v10127_v34 = vld [vmem:[%s16344_s4 + $0x30] sm:$0xff]  }
 0x2ff   :  { %5439 = vmatpush1.bf16.msra.mxu0 %v10044_v35  ;;  %5972 = vmatpush1.bf16.msra.mxu1 %v10047_v30  ;;  %v10128_v35 = vld [vmem:[%s16344_s4 + $0xb0] sm:$0xff]   ;;  %v10129_v30 = vld [vmem:[%s16344_s4 + $0x78] sm:$0xff]  }
 0x300   :  { %5449 = vmatprep.subr.bf16.mxu0 %v10054_v37  ;;  %5982 = vmatprep.subr.bf16.mxu1 %v10057_v38  ;;  %v10130_v37 = vld [vmem:[%s16344_s4 + $0xf8] sm:$0xff]  }
 0x301   :  { %v10131_v38 = vld [vmem:[%s16344_s4 + $0x38] sm:$0xff]  }
 0x302   :  { %5441 = vmatmul.mubr.bf16.vlgmr.msra.gmra.mrb[0].mxu0 %v7720_v33  ;;  %5974 = vmatmul.mubr.bf16.vlgmr.msra.gmra.mrb[0].mxu1 %v7720_v33  ;;  %v10132_v33 = vld [vmem:[%s16344_s4 + $0xb8] sm:$0xff]  }
 0x303   :  { %5450 = vmatpush1.bf16.msra.mxu0 %v10052_v39  ;;  %5983 = vmatpush1.bf16.msra.mxu1 %v10055_v40  ;;  %v10168_v39 = vld [vmem:[%s16342_s2 + $0x4] ss:$16 sps:$4 sm:$0xff]   ;;  %v10169_v40 = vld [vmem:[%s16342_s2 + $0xc] ss:$16 sps:$4 sm:$0xff]  }
 0x304   :  { %5451 = vmatprep.subr.bf16.mxu0 %v10060_v41  ;;  %5984 = vmatprep.subr.bf16.mxu1 %v10063_v36  ;;  %v849_v41 = vlaneseq }
 0x305   :  { %5481 = vmatprep.mubr.bf16.mxu0 %v11025_v46  ;;  %6014 = vmatprep.mubr.bf16.mxu1 %v11025_v46 }
 0x306   :  { %v850_v36 = vshrl.u32 %v849_v41, 7  ;;  %v10200_v41 = vld [vmem:[%s16342_s2 + $0x104] ss:$16 sps:$4 sm:$0xff]  }
 0x307   :  { %5452 = vmatpush1.bf16.msra.mxu0 %v10058_v42  ;;  %5985 = vmatpush1.bf16.msra.mxu1 %v10061_v43 }
 0x308   :  { %5453 = vmatprep.subr.bf16.mxu0 %v10066_v44  ;;  %5986 = vmatprep.subr.bf16.mxu1 %v10069_v45  ;;  %v851_v42 = vsub.s32 0, %v850_v36  ;;  %v859_v43 = vsub.s32 2, %v850_v36  ;;  %v847_v44 = vld [vmem:[%s16343_s3] sm:$0xf]  ;;  %v855_v45 = vsub.s32 1, %v850_v36 }
 0x30b   :  { %5454 = vmatpush1.bf16.msra.mxu0 %v10064_v47  ;;  %5987 = vmatpush1.bf16.msra.mxu1 %v10067_v48  ;;  %v863_v47 = vsub.s32 3, %v850_v36  ;;  %v13689_v48 = vrot.slane %v847_v44, %v851_v42  ;;  %v10201_v36 = vld [vmem:[%s16342_s2 + $0x10c] ss:$16 sps:$4 sm:$0xff]   ;;  %v10202_v42 = vld [vmem:[%s16342_s2 + $0x100] ss:$16 sps:$4 sm:$0xff]  }
 0x30c   :  { %5455 = vmatprep.subr.bf16.mxu0 %v10072_v49  ;;  %5988 = vmatprep.subr.bf16.mxu1 %v10075_v50  ;;  %v13691_v49 = vrot.slane %v847_v44, %v859_v43  ;;  %v13693_v50 = vrot.slane %v847_v44, %v855_v45  ;;  %v10203_v43 = vld [vmem:[%s16342_s2 + $0x108] ss:$16 sps:$4 sm:$0xff]   ;;  %v10205_v45 = vld [vmem:[%s16342_s2 + $0x12c] ss:$16 sps:$4 sm:$0xff]  }
 0x30f   :  { %5456 = vmatpush1.bf16.msra.mxu0 %v10070_v51  ;;  %5989 = vmatpush1.bf16.msra.mxu1 %v10073_v52  ;;  %v13695_v51 = vrot.slane %v847_v44, %v863_v47  ;;  %v10204_v44 = vld [vmem:[%s16342_s2 + $0x124] ss:$16 sps:$4 sm:$0xff]   ;;  %v10206_v47 = vld [vmem:[%s16342_s2 + $0x120] ss:$16 sps:$4 sm:$0xff]  }
 0x310   :  { %5457 = vmatprep.subr.bf16.mxu0 %v10078_v53  ;;  %5990 = vmatprep.subr.bf16.mxu1 %v10081_v54 }
 0x313   :  { %5458 = vmatpush1.bf16.msra.mxu0 %v10076_v55  ;;  %5991 = vmatpush1.bf16.msra.mxu1 %v10079_v56 }
 0x314   :  { %5459 = vmatprep.subr.bf16.mxu0 %v10084_v57  ;;  %5992 = vmatprep.subr.bf16.mxu1 %v10087_v58 }
 0x317   :  { %5460 = vmatpush1.bf16.msra.mxu0 %v10082_v59  ;;  %5993 = vmatpush1.bf16.msra.mxu1 %v10085_v60 }
 0x318   :  { %5461 = vmatprep.subr.bf16.mxu0 %v10090_v61  ;;  %5994 = vmatprep.subr.bf16.mxu1 %v10093_v62 }
 0x31b   :  { %5462 = vmatpush1.bf16.msra.mxu0 %v10088_v63  ;;  %5995 = vmatpush1.bf16.msra.mxu1 %v10091_v0 }
 0x31c   :  { %5463 = vmatprep.subr.bf16.mxu0 %v10096_v1  ;;  %5996 = vmatprep.subr.bf16.mxu1 %v10099_v2 }
 0x31f   :  { %5464 = vmatpush1.bf16.msra.mxu0 %v10094_v3  ;;  %5997 = vmatpush1.bf16.msra.mxu1 %v10097_v4  ;;  %v13704_v4 = vld [vmem:[%s16341_s1] sm:$0xff] }
 0x320   :  { %8582 = vmatprep.subr.bf16.mxu0 %v10101_v5  ;;  %8604 = vmatprep.subr.bf16.mxu1 %v10102_v6 }
 0x322   :  { %5482 = vmatmul.mubr.bf16.vlgmr.msra.gmra.mrb[0].mxu0 %v10100_v7  ;;  %6015 = vmatmul.mubr.bf16.vlgmr.msra.gmra.mrb[0].mxu1 %v10100_v7 }
 0x323   :  { %8583 = vmatpush3.bf16.msra.mxu0 %v10103_v8  ;;  %8605 = vmatpush3.bf16.msra.mxu1 %v10104_v9  ;;  %v8557_v9 = vcombine.high %v13704_v4, %v13704_v4 }
 0x324   :  { %8584 = vmatprep.subr.bf16.mxu0 %v10105_v10  ;;  %8606 = vmatprep.subr.bf16.mxu1 %v10106_v12  ;;  %v10170_v10 = vld [vmem:[%s16342_s2] ss:$16 sps:$4 sm:$0xff]   ;;  %v10171_v12 = vld [vmem:[%s16342_s2 + $0x8] ss:$16 sps:$4 sm:$0xff]  }
 0x327   :  { %8585 = vmatpush3.bf16.msra.mxu0 %v10107_v13  ;;  %8607 = vmatpush3.bf16.msra.mxu1 %v10108_v15  ;;  %v10172_v13 = vld [vmem:[%s16342_s2 + $0x24] ss:$16 sps:$4 sm:$0xff]   ;;  %v10173_v15 = vld [vmem:[%s16342_s2 + $0x2c] ss:$16 sps:$4 sm:$0xff]  }
 0x328   :  { %8586 = vmatprep.subr.bf16.mxu0 %v10109_v11  ;;  %8608 = vmatprep.subr.bf16.mxu1 %v10110_v17  ;;  %v10174_v11 = vld [vmem:[%s16342_s2 + $0x20] ss:$16 sps:$4 sm:$0xff]   ;;  %v10175_v17 = vld [vmem:[%s16342_s2 + $0x28] ss:$16 sps:$4 sm:$0xff]  }
 0x32b   :  { %8587 = vmatpush3.bf16.msra.mxu0 %v10111_v14  ;;  %8609 = vmatpush3.bf16.msra.mxu1 %v10112_v19  ;;  %v10176_v14 = vld [vmem:[%s16342_s2 + $0x44] ss:$16 sps:$4 sm:$0xff]   ;;  %v10177_v19 = vld [vmem:[%s16342_s2 + $0x4c] ss:$16 sps:$4 sm:$0xff]  }
 0x32c   :  { %8588 = vmatprep.subr.bf16.mxu0 %v10113_v20  ;;  %8610 = vmatprep.subr.bf16.mxu1 %v10114_v16  ;;  %v10178_v20 = vld [vmem:[%s16342_s2 + $0x40] ss:$16 sps:$4 sm:$0xff]   ;;  %v10179_v16 = vld [vmem:[%s16342_s2 + $0x48] ss:$16 sps:$4 sm:$0xff]  }
 0x32f   :  { %8589 = vmatpush3.bf16.msra.mxu0 %v10115_v22  ;;  %8611 = vmatpush3.bf16.msra.mxu1 %v10116_v23  ;;  %v10180_v22 = vld [vmem:[%s16342_s2 + $0x64] ss:$16 sps:$4 sm:$0xff]   ;;  %v10181_v23 = vld [vmem:[%s16342_s2 + $0x6c] ss:$16 sps:$4 sm:$0xff]  }
 0x330   :  { %8590 = vmatprep.subr.bf16.mxu0 %v10117_v18  ;;  %8612 = vmatprep.subr.bf16.mxu1 %v10118_v25  ;;  %v10182_v18 = vld [vmem:[%s16342_s2 + $0x60] ss:$16 sps:$4 sm:$0xff]   ;;  %v10183_v25 = vld [vmem:[%s16342_s2 + $0x68] ss:$16 sps:$4 sm:$0xff]  }
 0x333   :  { %8591 = vmatpush3.bf16.msra.mxu0 %v10119_v26  ;;  %8613 = vmatpush3.bf16.msra.mxu1 %v10120_v27  ;;  %v10184_v26 = vld [vmem:[%s16342_s2 + $0x84] ss:$16 sps:$4 sm:$0xff]   ;;  %v10185_v27 = vld [vmem:[%s16342_s2 + $0x8c] ss:$16 sps:$4 sm:$0xff]  }
 0x334   :  { %8592 = vmatprep.subr.bf16.mxu0 %v10121_v28  ;;  %8614 = vmatprep.subr.bf16.mxu1 %v10122_v29  ;;  %v10186_v28 = vld [vmem:[%s16342_s2 + $0x80] ss:$16 sps:$4 sm:$0xff]   ;;  %v10187_v29 = vld [vmem:[%s16342_s2 + $0x88] ss:$16 sps:$4 sm:$0xff]  }
 0x337   :  { %8593 = vmatpush3.bf16.msra.mxu0 %v10123_v24  ;;  %8615 = vmatpush3.bf16.msra.mxu1 %v10124_v31  ;;  %v10188_v24 = vld [vmem:[%s16342_s2 + $0xa4] ss:$16 sps:$4 sm:$0xff]   ;;  %v10189_v31 = vld [vmem:[%s16342_s2 + $0xac] ss:$16 sps:$4 sm:$0xff]  }
 0x338   :  { %8594 = vmatprep.subr.bf16.mxu0 %v10125_v32  ;;  %8616 = vmatprep.subr.bf16.mxu1 %v10126_v21  ;;  %v10190_v32 = vld [vmem:[%s16342_s2 + $0xa0] ss:$16 sps:$4 sm:$0xff]   ;;  %v10191_v21 = vld [vmem:[%s16342_s2 + $0xa8] ss:$16 sps:$4 sm:$0xff]  }
 0x33b   :  { %8595 = vmatpush3.bf16.msra.mxu0 %v10127_v34  ;;  %8617 = vmatpush3.bf16.msra.mxu1 %v10128_v35  ;;  %v10192_v34 = vld [vmem:[%s16342_s2 + $0xc4] ss:$16 sps:$4 sm:$0xff]   ;;  %v10193_v35 = vld [vmem:[%s16342_s2 + $0xcc] ss:$16 sps:$4 sm:$0xff]  }
 0x33c   :  { %8596 = vmatprep.subr.bf16.mxu0 %v10129_v30  ;;  %8618 = vmatprep.subr.bf16.mxu1 %v10130_v37  ;;  %v10194_v30 = vld [vmem:[%s16342_s2 + $0xc0] ss:$16 sps:$4 sm:$0xff]   ;;  %v10195_v37 = vld [vmem:[%s16342_s2 + $0xc8] ss:$16 sps:$4 sm:$0xff]  }
 0x33f   :  { %8597 = vmatpush3.bf16.msra.mxu0 %v10131_v38  ;;  %8619 = vmatpush3.bf16.msra.mxu1 %v10132_v33  ;;  %v10196_v38 = vld [vmem:[%s16342_s2 + $0xe4] ss:$16 sps:$4 sm:$0xff]   ;;  %v10197_v33 = vld [vmem:[%s16342_s2 + $0xec] ss:$16 sps:$4 sm:$0xff]  }
 0x340   :  { %6476 = vmatprep.subr.bf16.mxu0 %v10168_v39  ;;  %7009 = vmatprep.subr.bf16.mxu1 %v10169_v40  ;;  %v10198_v39 = vld [vmem:[%s16342_s2 + $0xe0] ss:$16 sps:$4 sm:$0xff]   ;;  %v10199_v40 = vld [vmem:[%s16342_s2 + $0xe8] ss:$16 sps:$4 sm:$0xff]  }
 0x3f5   :  { %v5483_v52 = vpop.f32.mrb[0].mxu0  ;;  %v6016_v53 = vpop.f32.mrb[0].mxu1 }
 0x3f6   :  { %v8670_v54 = vadd.f32 %v5483_v52, %v13689_v48  ;;  %v8672_v55 = vadd.f32 %v6016_v53, %v13691_v49  ;;  %v5485_v56 = vpop.f32.mrb[1].mxu0  ;;  %v6018_v57 = vpop.f32.mrb[1].mxu1  ;;  %v10207_v52 = vld [vmem:[%s16342_s2 + $0x128] ss:$16 sps:$4 sm:$0xff]   ;;  %v10208_v53 = vld [vmem:[%s16342_s2 + $0x144] ss:$16 sps:$4 sm:$0xff]  }
 0x3f7   :  { %v8671_v58 = vadd.f32 %v5485_v56, %v13693_v50  ;;  %v8673_v59 = vadd.f32 %v6018_v57, %v13695_v51  ;;  %v5487_v60 = vpop.f32.mrb[2].mxu0  ;;  %v6020_v61 = vpop.f32.mrb[2].mxu1  ;;  %v10211_v56 = vld [vmem:[%s16342_s2 + $0x148] ss:$16 sps:$4 sm:$0xff]   ;;  %v10212_v57 = vld [vmem:[%s16342_s2 + $0x164] ss:$16 sps:$4 sm:$0xff]  }
 0x3f8   :  { %v6023_v62 = vmax.f32 %v8670_v54, 0.0  ;;  %v6025_v63 = vmax.f32 %v8672_v55, 0.0  ;;  %v5488_v0 = vpop.f32.mrb[3].mxu0  ;;  %v6021_v1 = vpop.f32.mrb[3].mxu1  ;;  %v10209_v54 = vld [vmem:[%s16342_s2 + $0x14c] ss:$16 sps:$4 sm:$0xff]  }
 0x3f9   :  { %v6024_v2 = vmax.f32 %v8671_v58, 0.0  ;;  %v6026_v3 = vmax.f32 %v8673_v59, 0.0  ;;  %v10210_v55 = vld [vmem:[%s16342_s2 + $0x140] ss:$16 sps:$4 sm:$0xff]   ;;  %v10213_v58 = vld [vmem:[%s16342_s2 + $0x16c] ss:$16 sps:$4 sm:$0xff]  }
 0x3fa   :  { %v6027_v7 = vpack.c.bf16 %v6023_v62, %v6023_v62  ;;  %v6029_v8 = vpack.c.bf16 %v6025_v63, %v6025_v63  ;;  %v10214_v59 = vld [vmem:[%s16342_s2 + $0x160] ss:$16 sps:$4 sm:$0xff]   ;;  %v10215_v60 = vld [vmem:[%s16342_s2 + $0x168] ss:$16 sps:$4 sm:$0xff]   ;;  %v10216_v61 = vld [vmem:[%s16342_s2 + $0x184] ss:$16 sps:$4 sm:$0xff]  }
 0x3fb   :  { %v6028_v5 = vpack.c.bf16 %v6024_v2, %v6024_v2  ;;  %v6030_v6 = vpack.c.bf16 %v6026_v3, %v6026_v3  ;;  %v10217_v62 = vld [vmem:[%s16342_s2 + $0x18c] ss:$16 sps:$4 sm:$0xff]   ;;  %v10218_v63 = vld [vmem:[%s16342_s2 + $0x180] ss:$16 sps:$4 sm:$0xff]   ;;  %v10219_v0 = vld [vmem:[%s16342_s2 + $0x188] ss:$16 sps:$4 sm:$0xff]  }
 0x3fc   :  { %v10220_v1 = vld [vmem:[%s16342_s2 + $0x1a4] ss:$16 sps:$4 sm:$0xff]   ;;  %v10221_v2 = vld [vmem:[%s16342_s2 + $0x1ac] ss:$16 sps:$4 sm:$0xff]   ;;  %v10222_v3 = vld [vmem:[%s16342_s2 + $0x1a0] ss:$16 sps:$4 sm:$0xff]  }
 0x3fd   :  { %6326 = vmatprep.mubr.bf16.mxu0 %v6028_v5  ;;  %6366 = vmatprep.mubr.bf16.mxu1 %v6030_v6  ;;  %v10223_v5 = vld [vmem:[%s16342_s2 + $0x1a8] ss:$16 sps:$4 sm:$0xff]   ;;  %v10224_v6 = vld [vmem:[%s16342_s2 + $0x1c4] ss:$16 sps:$4 sm:$0xff]  }
 0x3fe   :  { %6327 = vmatmul.mubr.bf16.vlgmr.msra.gmra.mrb[4].mxu0 %v6027_v7  ;;  %6367 = vmatmul.mubr.bf16.vlgmr.msra.gmra.mrb[4].mxu1 %v6029_v8  ;;  %v10225_v7 = vld [vmem:[%s16342_s2 + $0x1cc] ss:$16 sps:$4 sm:$0xff]   ;;  %v10226_v8 = vld [vmem:[%s16342_s2 + $0x1c0] ss:$16 sps:$4 sm:$0xff]  }
 0x3ff   :  { %6477 = vmatpush1.bf16.msra.mxu0 %v10170_v10  ;;  %7010 = vmatpush1.bf16.msra.mxu1 %v10171_v12  ;;  %v10228_v10 = vld [vmem:[%s16342_s2 + $0x1e4] ss:$16 sps:$4 sm:$0xff]   ;;  %v10229_v12 = vld [vmem:[%s16342_s2 + $0x1ec] ss:$16 sps:$4 sm:$0xff]  }
 0x400   :  { %6478 = vmatprep.subr.bf16.mxu0 %v10172_v13  ;;  %7011 = vmatprep.subr.bf16.mxu1 %v10173_v15  ;;  %v8556_v13 = vcombine.low %v13704_v4, %v13704_v4  ;;  %v13893_v15 = vld [vmem:[%s16341_s1 + $0x8] sm:$0xff] }
 0x401   :  { %6508 = vmatprep.mubr.bf16.mxu0 %v8557_v9  ;;  %7041 = vmatprep.mubr.bf16.mxu1 %v8557_v9  ;;  %v10227_v9 = vld [vmem:[%s16342_s2 + $0x1c8] ss:$16 sps:$4 sm:$0xff]   ;;  %v10233_v4 = vld [vmem:[%s16342_s2 + $0x20c] ss:$16 sps:$4 sm:$0xff]  }
 0x403   :  { %6479 = vmatpush1.bf16.msra.mxu0 %v10174_v11  ;;  %7012 = vmatpush1.bf16.msra.mxu1 %v10175_v17  ;;  %v10230_v11 = vld [vmem:[%s16342_s2 + $0x1e0] ss:$16 sps:$4 sm:$0xff]   ;;  %v10231_v17 = vld [vmem:[%s16342_s2 + $0x1e8] ss:$16 sps:$4 sm:$0xff]  }
 0x404   :  { %6480 = vmatprep.subr.bf16.mxu0 %v10176_v14  ;;  %7013 = vmatprep.subr.bf16.mxu1 %v10177_v19  ;;  %v10232_v14 = vld [vmem:[%s16342_s2 + $0x204] ss:$16 sps:$4 sm:$0xff]   ;;  %v8559_v19 = vcombine.high %v13893_v15, %v13893_v15 }
 0x407   :  { %6481 = vmatpush1.bf16.msra.mxu0 %v10178_v20  ;;  %7014 = vmatpush1.bf16.msra.mxu1 %v10179_v16  ;;  %v10234_v20 = vld [vmem:[%s16342_s2 + $0x200] ss:$16 sps:$4 sm:$0xff]   ;;  %v10235_v16 = vld [vmem:[%s16342_s2 + $0x208] ss:$16 sps:$4 sm:$0xff]  }
 0x408   :  { %6482 = vmatprep.subr.bf16.mxu0 %v10180_v22  ;;  %7015 = vmatprep.subr.bf16.mxu1 %v10181_v23  ;;  %v10236_v22 = vld [vmem:[%s16342_s2 + $0x224] ss:$16 sps:$4 sm:$0xff]   ;;  %v10237_v23 = vld [vmem:[%s16342_s2 + $0x22c] ss:$16 sps:$4 sm:$0xff]  }
 0x40b   :  { %6483 = vmatpush1.bf16.msra.mxu0 %v10182_v18  ;;  %7016 = vmatpush1.bf16.msra.mxu1 %v10183_v25  ;;  %v10238_v18 = vld [vmem:[%s16342_s2 + $0x220] ss:$16 sps:$4 sm:$0xff]   ;;  %v10239_v25 = vld [vmem:[%s16342_s2 + $0x228] ss:$16 sps:$4 sm:$0xff]  }
 0x40c   :  { %6484 = vmatprep.subr.bf16.mxu0 %v10184_v26  ;;  %7017 = vmatprep.subr.bf16.mxu1 %v10185_v27  ;;  %v10240_v26 = vld [vmem:[%s16342_s2 + $0x244] ss:$16 sps:$4 sm:$0xff]   ;;  %v10241_v27 = vld [vmem:[%s16342_s2 + $0x24c] ss:$16 sps:$4 sm:$0xff]  }
 0x40f   :  { %6485 = vmatpush1.bf16.msra.mxu0 %v10186_v28  ;;  %7018 = vmatpush1.bf16.msra.mxu1 %v10187_v29  ;;  %v10242_v28 = vld [vmem:[%s16342_s2 + $0x240] ss:$16 sps:$4 sm:$0xff]   ;;  %v10243_v29 = vld [vmem:[%s16342_s2 + $0x248] ss:$16 sps:$4 sm:$0xff]  }
 0x410   :  { %6486 = vmatprep.subr.bf16.mxu0 %v10188_v24  ;;  %7019 = vmatprep.subr.bf16.mxu1 %v10189_v31  ;;  %v10244_v24 = vld [vmem:[%s16342_s2 + $0x264] ss:$16 sps:$4 sm:$0xff]   ;;  %v10245_v31 = vld [vmem:[%s16342_s2 + $0x26c] ss:$16 sps:$4 sm:$0xff]  }
 0x413   :  { %6487 = vmatpush1.bf16.msra.mxu0 %v10190_v32  ;;  %7020 = vmatpush1.bf16.msra.mxu1 %v10191_v21  ;;  %v10246_v32 = vld [vmem:[%s16342_s2 + $0x260] ss:$16 sps:$4 sm:$0xff]   ;;  %v10247_v21 = vld [vmem:[%s16342_s2 + $0x268] ss:$16 sps:$4 sm:$0xff]  }
 0x414   :  { %6488 = vmatprep.subr.bf16.mxu0 %v10192_v34  ;;  %7021 = vmatprep.subr.bf16.mxu1 %v10193_v35  ;;  %v10248_v34 = vld [vmem:[%s16342_s2 + $0x284] ss:$16 sps:$4 sm:$0xff]   ;;  %v10249_v35 = vld [vmem:[%s16342_s2 + $0x28c] ss:$16 sps:$4 sm:$0xff]  }
 0x417   :  { %6489 = vmatpush1.bf16.msra.mxu0 %v10194_v30  ;;  %7022 = vmatpush1.bf16.msra.mxu1 %v10195_v37  ;;  %v10250_v30 = vld [vmem:[%s16342_s2 + $0x280] ss:$16 sps:$4 sm:$0xff]   ;;  %v10251_v37 = vld [vmem:[%s16342_s2 + $0x288] ss:$16 sps:$4 sm:$0xff]  }
 0x418   :  { %6490 = vmatprep.subr.bf16.mxu0 %v10196_v38  ;;  %7023 = vmatprep.subr.bf16.mxu1 %v10197_v33  ;;  %v10252_v38 = vld [vmem:[%s16342_s2 + $0x2a4] ss:$16 sps:$4 sm:$0xff]   ;;  %v10253_v33 = vld [vmem:[%s16342_s2 + $0x2ac] ss:$16 sps:$4 sm:$0xff]  }
 0x41b   :  { %6491 = vmatpush1.bf16.msra.mxu0 %v10198_v39  ;;  %7024 = vmatpush1.bf16.msra.mxu1 %v10199_v40  ;;  %v10254_v39 = vld [vmem:[%s16342_s2 + $0x2a0] ss:$16 sps:$4 sm:$0xff]   ;;  %v10255_v40 = vld [vmem:[%s16342_s2 + $0x2a8] ss:$16 sps:$4 sm:$0xff]  }
 0x41c   :  { %6492 = vmatprep.subr.bf16.mxu0 %v10200_v41  ;;  %7025 = vmatprep.subr.bf16.mxu1 %v10201_v36  ;;  %v10256_v41 = vld [vmem:[%s16342_s2 + $0x2c4] ss:$16 sps:$4 sm:$0xff]   ;;  %v10257_v36 = vld [vmem:[%s16342_s2 + $0x2cc] ss:$16 sps:$4 sm:$0xff]  }
 0x41f   :  { %6493 = vmatpush1.bf16.msra.mxu0 %v10202_v42  ;;  %7026 = vmatpush1.bf16.msra.mxu1 %v10203_v43  ;;  %v10258_v42 = vld [vmem:[%s16342_s2 + $0x2c0] ss:$16 sps:$4 sm:$0xff]   ;;  %v10259_v43 = vld [vmem:[%s16342_s2 + $0x2c8] ss:$16 sps:$4 sm:$0xff]  }
 0x420   :  { %6494 = vmatprep.subr.bf16.mxu0 %v10204_v44  ;;  %7027 = vmatprep.subr.bf16.mxu1 %v10205_v45  ;;  %v10260_v44 = vld [vmem:[%s16342_s2 + $0x2e4] ss:$16 sps:$4 sm:$0xff]   ;;  %v10261_v45 = vld [vmem:[%s16342_s2 + $0x2ec] ss:$16 sps:$4 sm:$0xff]  }
 0x423   :  { %6495 = vmatpush1.bf16.msra.mxu0 %v10206_v47  ;;  %7028 = vmatpush1.bf16.msra.mxu1 %v10207_v52  ;;  %v10262_v47 = vld [vmem:[%s16342_s2 + $0x2e0] ss:$16 sps:$4 sm:$0xff]   ;;  %v10263_v52 = vld [vmem:[%s16342_s2 + $0x2e8] ss:$16 sps:$4 sm:$0xff]  }
 0x424   :  { %6496 = vmatprep.subr.bf16.mxu0 %v10208_v53  ;;  %7029 = vmatprep.subr.bf16.mxu1 %v10209_v54  ;;  %v10264_v53 = vld [vmem:[%s16342_s2 + $0x304] ss:$16 sps:$4 sm:$0xff]   ;;  %v10265_v54 = vld [vmem:[%s16342_s2 + $0x30c] ss:$16 sps:$4 sm:$0xff]  }
 0x427   :  { %6497 = vmatpush1.bf16.msra.mxu0 %v10210_v55  ;;  %7030 = vmatpush1.bf16.msra.mxu1 %v10211_v56  ;;  %v10266_v55 = vld [vmem:[%s16342_s2 + $0x300] ss:$16 sps:$4 sm:$0xff]   ;;  %v10267_v56 = vld [vmem:[%s16342_s2 + $0x308] ss:$16 sps:$4 sm:$0xff]  }
 0x428   :  { %6498 = vmatprep.subr.bf16.mxu0 %v10212_v57  ;;  %7031 = vmatprep.subr.bf16.mxu1 %v10213_v58  ;;  %v10268_v57 = vld [vmem:[%s16342_s2 + $0x324] ss:$16 sps:$4 sm:$0xff]   ;;  %v10269_v58 = vld [vmem:[%s16342_s2 + $0x32c] ss:$16 sps:$4 sm:$0xff]  }
 0x42b   :  { %6499 = vmatpush1.bf16.msra.mxu0 %v10214_v59  ;;  %7032 = vmatpush1.bf16.msra.mxu1 %v10215_v60  ;;  %v10270_v59 = vld [vmem:[%s16342_s2 + $0x320] ss:$16 sps:$4 sm:$0xff]   ;;  %v10271_v60 = vld [vmem:[%s16342_s2 + $0x328] ss:$16 sps:$4 sm:$0xff]  }
 0x42c   :  { %6500 = vmatprep.subr.bf16.mxu0 %v10216_v61  ;;  %7033 = vmatprep.subr.bf16.mxu1 %v10217_v62  ;;  %v10272_v61 = vld [vmem:[%s16342_s2 + $0x344] ss:$16 sps:$4 sm:$0xff]   ;;  %v10273_v62 = vld [vmem:[%s16342_s2 + $0x34c] ss:$16 sps:$4 sm:$0xff]  }
 0x42f   :  { %6501 = vmatpush1.bf16.msra.mxu0 %v10218_v63  ;;  %7034 = vmatpush1.bf16.msra.mxu1 %v10219_v0  ;;  %v10274_v63 = vld [vmem:[%s16342_s2 + $0x340] ss:$16 sps:$4 sm:$0xff]   ;;  %v10275_v0 = vld [vmem:[%s16342_s2 + $0x348] ss:$16 sps:$4 sm:$0xff]  }
 0x430   :  { %6502 = vmatprep.subr.bf16.mxu0 %v10220_v1  ;;  %7035 = vmatprep.subr.bf16.mxu1 %v10221_v2  ;;  %v10276_v1 = vld [vmem:[%s16342_s2 + $0x364] ss:$16 sps:$4 sm:$0xff]   ;;  %v10277_v2 = vld [vmem:[%s16342_s2 + $0x36c] ss:$16 sps:$4 sm:$0xff]  }
 0x433   :  { %6503 = vmatpush1.bf16.msra.mxu0 %v10222_v3  ;;  %7036 = vmatpush1.bf16.msra.mxu1 %v10223_v5  ;;  %v10278_v3 = vld [vmem:[%s16342_s2 + $0x360] ss:$16 sps:$4 sm:$0xff]   ;;  %v10279_v5 = vld [vmem:[%s16342_s2 + $0x368] ss:$16 sps:$4 sm:$0xff]  }
 0x434   :  { %6504 = vmatprep.subr.bf16.mxu0 %v10224_v6  ;;  %7037 = vmatprep.subr.bf16.mxu1 %v10225_v7  ;;  %v10280_v6 = vld [vmem:[%s16342_s2 + $0x384] ss:$16 sps:$4 sm:$0xff]   ;;  %v10281_v7 = vld [vmem:[%s16342_s2 + $0x38c] ss:$16 sps:$4 sm:$0xff]  }
 0x437   :  { %6505 = vmatpush1.bf16.msra.mxu0 %v10226_v8  ;;  %7038 = vmatpush1.bf16.msra.mxu1 %v10227_v9  ;;  %v10282_v8 = vld [vmem:[%s16342_s2 + $0x380] ss:$16 sps:$4 sm:$0xff]   ;;  %v10283_v9 = vld [vmem:[%s16342_s2 + $0x388] ss:$16 sps:$4 sm:$0xff]  }
 0x438   :  { %6506 = vmatprep.subr.bf16.mxu0 %v10228_v10  ;;  %7039 = vmatprep.subr.bf16.mxu1 %v10229_v12  ;;  %v10284_v10 = vld [vmem:[%s16342_s2 + $0x3a4] ss:$16 sps:$4 sm:$0xff]   ;;  %v10285_v12 = vld [vmem:[%s16342_s2 + $0x3ac] ss:$16 sps:$4 sm:$0xff]  }
 0x43b   :  { %6507 = vmatpush1.bf16.msra.mxu0 %v10230_v11  ;;  %7040 = vmatpush1.bf16.msra.mxu1 %v10231_v17  ;;  %v10287_v11 = vld [vmem:[%s16342_s2 + $0x3a8] ss:$16 sps:$4 sm:$0xff]   ;;  %v10288_v17 = vld [vmem:[%s16342_s2 + $0x3c4] ss:$16 sps:$4 sm:$0xff]  }
 0x43c   :  { %6517 = vmatprep.subr.bf16.mxu0 %v10232_v14  ;;  %7050 = vmatprep.subr.bf16.mxu1 %v10233_v4  ;;  %v10289_v14 = vld [vmem:[%s16342_s2 + $0x3cc] ss:$16 sps:$4 sm:$0xff]   ;;  %v10290_v4 = vld [vmem:[%s16342_s2 + $0x3c0] ss:$16 sps:$4 sm:$0xff]  }
 0x43e   :  { %6509 = vmatmul.mubr.bf16.vlgmr.msra.gmra.mrb[8].mxu0 %v8556_v13  ;;  %7042 = vmatmul.mubr.bf16.vlgmr.msra.gmra.mrb[8].mxu1 %v8556_v13  ;;  %v10286_v13 = vld [vmem:[%s16342_s2 + $0x3a0] ss:$16 sps:$4 sm:$0xff]  }
 0x43f   :  { %6518 = vmatpush1.bf16.msra.mxu0 %v10234_v20  ;;  %7051 = vmatpush1.bf16.msra.mxu1 %v10235_v16  ;;  %v10292_v20 = vld [vmem:[%s16342_s2 + $0x3e4] ss:$16 sps:$4 sm:$0xff]   ;;  %v10293_v16 = vld [vmem:[%s16342_s2 + $0x3ec] ss:$16 sps:$4 sm:$0xff]  }
 0x440   :  { %6519 = vmatprep.subr.bf16.mxu0 %v10236_v22  ;;  %7052 = vmatprep.subr.bf16.mxu1 %v10237_v23  ;;  %v8558_v22 = vcombine.low %v13893_v15, %v13893_v15  ;;  %v14094_v23 = vld [vmem:[%s16341_s1 + $0x10] sm:$0xff]  ;;  %v10297_v15 = vld [vmem:[%s16342_s2 + $0x40c] ss:$16 sps:$4 sm:$0xff]  }
 0x441   :  { %6549 = vmatprep.mubr.bf16.mxu0 %v8559_v19  ;;  %7082 = vmatprep.mubr.bf16.mxu1 %v8559_v19  ;;  %v10291_v19 = vld [vmem:[%s16342_s2 + $0x3c8] ss:$16 sps:$4 sm:$0xff]  }
 0x443   :  { %6520 = vmatpush1.bf16.msra.mxu0 %v10238_v18  ;;  %7053 = vmatpush1.bf16.msra.mxu1 %v10239_v25  ;;  %v10294_v18 = vld [vmem:[%s16342_s2 + $0x3e0] ss:$16 sps:$4 sm:$0xff]   ;;  %v10295_v25 = vld [vmem:[%s16342_s2 + $0x3e8] ss:$16 sps:$4 sm:$0xff]  }
 0x444   :  { %6521 = vmatprep.subr.bf16.mxu0 %v10240_v26  ;;  %7054 = vmatprep.subr.bf16.mxu1 %v10241_v27  ;;  %v10296_v26 = vld [vmem:[%s16342_s2 + $0x404] ss:$16 sps:$4 sm:$0xff]   ;;  %v8561_v27 = vcombine.high %v14094_v23, %v14094_v23 }
 0x447   :  { %6522 = vmatpush1.bf16.msra.mxu0 %v10242_v28  ;;  %7055 = vmatpush1.bf16.msra.mxu1 %v10243_v29  ;;  %v10298_v28 = vld [vmem:[%s16342_s2 + $0x400] ss:$16 sps:$4 sm:$0xff]   ;;  %v10299_v29 = vld [vmem:[%s16342_s2 + $0x408] ss:$16 sps:$4 sm:$0xff]  }
 0x448   :  { %6523 = vmatprep.subr.bf16.mxu0 %v10244_v24  ;;  %7056 = vmatprep.subr.bf16.mxu1 %v10245_v31  ;;  %v10300_v24 = vld [vmem:[%s16342_s2 + $0x424] ss:$16 sps:$4 sm:$0xff]   ;;  %v10301_v31 = vld [vmem:[%s16342_s2 + $0x42c] ss:$16 sps:$4 sm:$0xff]  }
 0x44b   :  { %6524 = vmatpush1.bf16.msra.mxu0 %v10246_v32  ;;  %7057 = vmatpush1.bf16.msra.mxu1 %v10247_v21  ;;  %v10302_v32 = vld [vmem:[%s16342_s2 + $0x420] ss:$16 sps:$4 sm:$0xff]   ;;  %v10303_v21 = vld [vmem:[%s16342_s2 + $0x428] ss:$16 sps:$4 sm:$0xff]  }
 0x44c   :  { %6525 = vmatprep.subr.bf16.mxu0 %v10248_v34  ;;  %7058 = vmatprep.subr.bf16.mxu1 %v10249_v35  ;;  %v10304_v34 = vld [vmem:[%s16342_s2 + $0x444] ss:$16 sps:$4 sm:$0xff]   ;;  %v10305_v35 = vld [vmem:[%s16342_s2 + $0x44c] ss:$16 sps:$4 sm:$0xff]  }
 0x44f   :  { %6526 = vmatpush1.bf16.msra.mxu0 %v10250_v30  ;;  %7059 = vmatpush1.bf16.msra.mxu1 %v10251_v37  ;;  %v10306_v30 = vld [vmem:[%s16342_s2 + $0x440] ss:$16 sps:$4 sm:$0xff]   ;;  %v10307_v37 = vld [vmem:[%s16342_s2 + $0x448] ss:$16 sps:$4 sm:$0xff]  }
 0x450   :  { %6527 = vmatprep.subr.bf16.mxu0 %v10252_v38  ;;  %7060 = vmatprep.subr.bf16.mxu1 %v10253_v33  ;;  %v10308_v38 = vld [vmem:[%s16342_s2 + $0x464] ss:$16 sps:$4 sm:$0xff]   ;;  %v10309_v33 = vld [vmem:[%s16342_s2 + $0x46c] ss:$16 sps:$4 sm:$0xff]  }
 0x453   :  { %6528 = vmatpush1.bf16.msra.mxu0 %v10254_v39  ;;  %7061 = vmatpush1.bf16.msra.mxu1 %v10255_v40  ;;  %v10310_v39 = vld [vmem:[%s16342_s2 + $0x460] ss:$16 sps:$4 sm:$0xff]   ;;  %v10311_v40 = vld [vmem:[%s16342_s2 + $0x468] ss:$16 sps:$4 sm:$0xff]  }
 0x454   :  { %6529 = vmatprep.subr.bf16.mxu0 %v10256_v41  ;;  %7062 = vmatprep.subr.bf16.mxu1 %v10257_v36  ;;  %v10312_v41 = vld [vmem:[%s16342_s2 + $0x484] ss:$16 sps:$4 sm:$0xff]   ;;  %v10313_v36 = vld [vmem:[%s16342_s2 + $0x48c] ss:$16 sps:$4 sm:$0xff]  }
 0x457   :  { %6530 = vmatpush1.bf16.msra.mxu0 %v10258_v42  ;;  %7063 = vmatpush1.bf16.msra.mxu1 %v10259_v43  ;;  %v10314_v42 = vld [vmem:[%s16342_s2 + $0x480] ss:$16 sps:$4 sm:$0xff]   ;;  %v10315_v43 = vld [vmem:[%s16342_s2 + $0x488] ss:$16 sps:$4 sm:$0xff]  }
 0x458   :  { %6531 = vmatprep.subr.bf16.mxu0 %v10260_v44  ;;  %7064 = vmatprep.subr.bf16.mxu1 %v10261_v45  ;;  %v10316_v44 = vld [vmem:[%s16342_s2 + $0x4a4] ss:$16 sps:$4 sm:$0xff]   ;;  %v10317_v45 = vld [vmem:[%s16342_s2 + $0x4ac] ss:$16 sps:$4 sm:$0xff]  }
 0x45b   :  { %6532 = vmatpush1.bf16.msra.mxu0 %v10262_v47  ;;  %7065 = vmatpush1.bf16.msra.mxu1 %v10263_v52  ;;  %v10318_v47 = vld [vmem:[%s16342_s2 + $0x4a0] ss:$16 sps:$4 sm:$0xff]   ;;  %v10319_v52 = vld [vmem:[%s16342_s2 + $0x4a8] ss:$16 sps:$4 sm:$0xff]  }
 0x45c   :  { %6533 = vmatprep.subr.bf16.mxu0 %v10264_v53  ;;  %7066 = vmatprep.subr.bf16.mxu1 %v10265_v54  ;;  %v10320_v53 = vld [vmem:[%s16342_s2 + $0x4c4] ss:$16 sps:$4 sm:$0xff]   ;;  %v10321_v54 = vld [vmem:[%s16342_s2 + $0x4cc] ss:$16 sps:$4 sm:$0xff]  }
 0x45f   :  { %6534 = vmatpush1.bf16.msra.mxu0 %v10266_v55  ;;  %7067 = vmatpush1.bf16.msra.mxu1 %v10267_v56  ;;  %v10322_v55 = vld [vmem:[%s16342_s2 + $0x4c0] ss:$16 sps:$4 sm:$0xff]   ;;  %v10323_v56 = vld [vmem:[%s16342_s2 + $0x4c8] ss:$16 sps:$4 sm:$0xff]  }
 0x460   :  { %6535 = vmatprep.subr.bf16.mxu0 %v10268_v57  ;;  %7068 = vmatprep.subr.bf16.mxu1 %v10269_v58  ;;  %v10324_v57 = vld [vmem:[%s16342_s2 + $0x4e4] ss:$16 sps:$4 sm:$0xff]   ;;  %v10325_v58 = vld [vmem:[%s16342_s2 + $0x4ec] ss:$16 sps:$4 sm:$0xff]  }
 0x463   :  { %6536 = vmatpush1.bf16.msra.mxu0 %v10270_v59  ;;  %7069 = vmatpush1.bf16.msra.mxu1 %v10271_v60  ;;  %v10326_v59 = vld [vmem:[%s16342_s2 + $0x4e0] ss:$16 sps:$4 sm:$0xff]   ;;  %v10327_v60 = vld [vmem:[%s16342_s2 + $0x4e8] ss:$16 sps:$4 sm:$0xff]  }
 0x464   :  { %6537 = vmatprep.subr.bf16.mxu0 %v10272_v61  ;;  %7070 = vmatprep.subr.bf16.mxu1 %v10273_v62  ;;  %v10328_v61 = vld [vmem:[%s16342_s2 + $0x504] ss:$16 sps:$4 sm:$0xff]   ;;  %v10329_v62 = vld [vmem:[%s16342_s2 + $0x50c] ss:$16 sps:$4 sm:$0xff]  }
 0x467   :  { %6538 = vmatpush1.bf16.msra.mxu0 %v10274_v63  ;;  %7071 = vmatpush1.bf16.msra.mxu1 %v10275_v0  ;;  %v10330_v63 = vld [vmem:[%s16342_s2 + $0x500] ss:$16 sps:$4 sm:$0xff]   ;;  %v10331_v0 = vld [vmem:[%s16342_s2 + $0x508] ss:$16 sps:$4 sm:$0xff]  }
 0x468   :  { %6539 = vmatprep.subr.bf16.mxu0 %v10276_v1  ;;  %7072 = vmatprep.subr.bf16.mxu1 %v10277_v2  ;;  %v10332_v1 = vld [vmem:[%s16342_s2 + $0x524] ss:$16 sps:$4 sm:$0xff]   ;;  %v10333_v2 = vld [vmem:[%s16342_s2 + $0x52c] ss:$16 sps:$4 sm:$0xff]  }
 0x46b   :  { %6540 = vmatpush1.bf16.msra.mxu0 %v10278_v3  ;;  %7073 = vmatpush1.bf16.msra.mxu1 %v10279_v5  ;;  %v10334_v3 = vld [vmem:[%s16342_s2 + $0x520] ss:$16 sps:$4 sm:$0xff]   ;;  %v10335_v5 = vld [vmem:[%s16342_s2 + $0x528] ss:$16 sps:$4 sm:$0xff]  }
 0x46c   :  { %6541 = vmatprep.subr.bf16.mxu0 %v10280_v6  ;;  %7074 = vmatprep.subr.bf16.mxu1 %v10281_v7  ;;  %v10336_v6 = vld [vmem:[%s16342_s2 + $0x544] ss:$16 sps:$4 sm:$0xff]   ;;  %v10337_v7 = vld [vmem:[%s16342_s2 + $0x54c] ss:$16 sps:$4 sm:$0xff]  }
 0x46f   :  { %6542 = vmatpush1.bf16.msra.mxu0 %v10282_v8  ;;  %7075 = vmatpush1.bf16.msra.mxu1 %v10283_v9  ;;  %v10338_v8 = vld [vmem:[%s16342_s2 + $0x540] ss:$16 sps:$4 sm:$0xff]   ;;  %v10339_v9 = vld [vmem:[%s16342_s2 + $0x548] ss:$16 sps:$4 sm:$0xff]  }
 0x470   :  { %6543 = vmatprep.subr.bf16.mxu0 %v10284_v10  ;;  %7076 = vmatprep.subr.bf16.mxu1 %v10285_v12  ;;  %v10340_v10 = vld [vmem:[%s16342_s2 + $0x564] ss:$16 sps:$4 sm:$0xff]   ;;  %v10341_v12 = vld [vmem:[%s16342_s2 + $0x56c] ss:$16 sps:$4 sm:$0xff]  }
 0x473   :  { %6544 = vmatpush1.bf16.msra.mxu0 %v10286_v13  ;;  %7077 = vmatpush1.bf16.msra.mxu1 %v10287_v11  ;;  %v10342_v13 = vld [vmem:[%s16342_s2 + $0x560] ss:$16 sps:$4 sm:$0xff]   ;;  %v10343_v11 = vld [vmem:[%s16342_s2 + $0x568] ss:$16 sps:$4 sm:$0xff]  }
 0x474   :  { %6545 = vmatprep.subr.bf16.mxu0 %v10288_v17  ;;  %7078 = vmatprep.subr.bf16.mxu1 %v10289_v14  ;;  %v10344_v17 = vld [vmem:[%s16342_s2 + $0x584] ss:$16 sps:$4 sm:$0xff]   ;;  %v10345_v14 = vld [vmem:[%s16342_s2 + $0x58c] ss:$16 sps:$4 sm:$0xff]  }
 0x477   :  { %6546 = vmatpush1.bf16.msra.mxu0 %v10290_v4  ;;  %7079 = vmatpush1.bf16.msra.mxu1 %v10291_v19  ;;  %v10346_v4 = vld [vmem:[%s16342_s2 + $0x580] ss:$16 sps:$4 sm:$0xff]   ;;  %v10347_v19 = vld [vmem:[%s16342_s2 + $0x588] ss:$16 sps:$4 sm:$0xff]  }
 0x478   :  { %6547 = vmatprep.subr.bf16.mxu0 %v10292_v20  ;;  %7080 = vmatprep.subr.bf16.mxu1 %v10293_v16  ;;  %v10348_v20 = vld [vmem:[%s16342_s2 + $0x5a4] ss:$16 sps:$4 sm:$0xff]   ;;  %v10349_v16 = vld [vmem:[%s16342_s2 + $0x5ac] ss:$16 sps:$4 sm:$0xff]  }
 0x47b   :  { %6548 = vmatpush1.bf16.msra.mxu0 %v10294_v18  ;;  %7081 = vmatpush1.bf16.msra.mxu1 %v10295_v25  ;;  %v10351_v18 = vld [vmem:[%s16342_s2 + $0x5a8] ss:$16 sps:$4 sm:$0xff]   ;;  %v10352_v25 = vld [vmem:[%s16342_s2 + $0x5c4] ss:$16 sps:$4 sm:$0xff]  }
 0x47c   :  { %6558 = vmatprep.subr.bf16.mxu0 %v10296_v26  ;;  %7091 = vmatprep.subr.bf16.mxu1 %v10297_v15  ;;  %v10353_v26 = vld [vmem:[%s16342_s2 + $0x5cc] ss:$16 sps:$4 sm:$0xff]   ;;  %v10354_v15 = vld [vmem:[%s16342_s2 + $0x5c0] ss:$16 sps:$4 sm:$0xff]  }
 0x47e   :  { %6550 = vmatmul.mubr.bf16.vlgmr.msra.gmra.mrb[8].mxu0 %v8558_v22  ;;  %7083 = vmatmul.mubr.bf16.vlgmr.msra.gmra.mrb[8].mxu1 %v8558_v22  ;;  %v10350_v22 = vld [vmem:[%s16342_s2 + $0x5a0] ss:$16 sps:$4 sm:$0xff]  }
 0x47f   :  { %6559 = vmatpush1.bf16.msra.mxu0 %v10298_v28  ;;  %7092 = vmatpush1.bf16.msra.mxu1 %v10299_v29  ;;  %v10356_v28 = vld [vmem:[%s16342_s2 + $0x5e4] ss:$16 sps:$4 sm:$0xff]   ;;  %v10357_v29 = vld [vmem:[%s16342_s2 + $0x5ec] ss:$16 sps:$4 sm:$0xff]  }
 0x480   :  { %6560 = vmatprep.subr.bf16.mxu0 %v10300_v24  ;;  %7093 = vmatprep.subr.bf16.mxu1 %v10301_v31  ;;  %v8560_v24 = vcombine.low %v14094_v23, %v14094_v23  ;;  %v14295_v31 = vld [vmem:[%s16341_s1 + $0x18] sm:$0xff] }
 0x481   :  { %6590 = vmatprep.mubr.bf16.mxu0 %v8561_v27  ;;  %7123 = vmatprep.mubr.bf16.mxu1 %v8561_v27  ;;  %v10355_v27 = vld [vmem:[%s16342_s2 + $0x5c8] ss:$16 sps:$4 sm:$0xff]   ;;  %v10361_v23 = vld [vmem:[%s16342_s2 + $0x60c] ss:$16 sps:$4 sm:$0xff]  }
 0x483   :  { %6561 = vmatpush1.bf16.msra.mxu0 %v10302_v32  ;;  %7094 = vmatpush1.bf16.msra.mxu1 %v10303_v21  ;;  %v10358_v32 = vld [vmem:[%s16342_s2 + $0x5e0] ss:$16 sps:$4 sm:$0xff]   ;;  %v10359_v21 = vld [vmem:[%s16342_s2 + $0x5e8] ss:$16 sps:$4 sm:$0xff]  }
 0x484   :  { %6562 = vmatprep.subr.bf16.mxu0 %v10304_v34  ;;  %7095 = vmatprep.subr.bf16.mxu1 %v10305_v35  ;;  %v10360_v34 = vld [vmem:[%s16342_s2 + $0x604] ss:$16 sps:$4 sm:$0xff]   ;;  %v8563_v35 = vcombine.high %v14295_v31, %v14295_v31 }
 0x487   :  { %6563 = vmatpush1.bf16.msra.mxu0 %v10306_v30  ;;  %7096 = vmatpush1.bf16.msra.mxu1 %v10307_v37  ;;  %v10362_v30 = vld [vmem:[%s16342_s2 + $0x600] ss:$16 sps:$4 sm:$0xff]   ;;  %v10363_v37 = vld [vmem:[%s16342_s2 + $0x608] ss:$16 sps:$4 sm:$0xff]  }
 0x488   :  { %6564 = vmatprep.subr.bf16.mxu0 %v10308_v38  ;;  %7097 = vmatprep.subr.bf16.mxu1 %v10309_v33  ;;  %v10364_v38 = vld [vmem:[%s16342_s2 + $0x624] ss:$16 sps:$4 sm:$0xff]   ;;  %v10365_v33 = vld [vmem:[%s16342_s2 + $0x62c] ss:$16 sps:$4 sm:$0xff]  }
 0x48b   :  { %6565 = vmatpush1.bf16.msra.mxu0 %v10310_v39  ;;  %7098 = vmatpush1.bf16.msra.mxu1 %v10311_v40  ;;  %v10366_v39 = vld [vmem:[%s16342_s2 + $0x620] ss:$16 sps:$4 sm:$0xff]   ;;  %v10367_v40 = vld [vmem:[%s16342_s2 + $0x628] ss:$16 sps:$4 sm:$0xff]  }
 0x48c   :  { %6566 = vmatprep.subr.bf16.mxu0 %v10312_v41  ;;  %7099 = vmatprep.subr.bf16.mxu1 %v10313_v36  ;;  %v10368_v41 = vld [vmem:[%s16342_s2 + $0x644] ss:$16 sps:$4 sm:$0xff]   ;;  %v10369_v36 = vld [vmem:[%s16342_s2 + $0x64c] ss:$16 sps:$4 sm:$0xff]  }
 0x48f   :  { %6567 = vmatpush1.bf16.msra.mxu0 %v10314_v42  ;;  %7100 = vmatpush1.bf16.msra.mxu1 %v10315_v43  ;;  %v10370_v42 = vld [vmem:[%s16342_s2 + $0x640] ss:$16 sps:$4 sm:$0xff]   ;;  %v10371_v43 = vld [vmem:[%s16342_s2 + $0x648] ss:$16 sps:$4 sm:$0xff]  }
 0x490   :  { %6568 = vmatprep.subr.bf16.mxu0 %v10316_v44  ;;  %7101 = vmatprep.subr.bf16.mxu1 %v10317_v45  ;;  %v10372_v44 = vld [vmem:[%s16342_s2 + $0x664] ss:$16 sps:$4 sm:$0xff]   ;;  %v10373_v45 = vld [vmem:[%s16342_s2 + $0x66c] ss:$16 sps:$4 sm:$0xff]  }
 0x493   :  { %6569 = vmatpush1.bf16.msra.mxu0 %v10318_v47  ;;  %7102 = vmatpush1.bf16.msra.mxu1 %v10319_v52  ;;  %v10374_v47 = vld [vmem:[%s16342_s2 + $0x660] ss:$16 sps:$4 sm:$0xff]   ;;  %v10375_v52 = vld [vmem:[%s16342_s2 + $0x668] ss:$16 sps:$4 sm:$0xff]  }
 0x494   :  { %6570 = vmatprep.subr.bf16.mxu0 %v10320_v53  ;;  %7103 = vmatprep.subr.bf16.mxu1 %v10321_v54  ;;  %v10376_v53 = vld [vmem:[%s16342_s2 + $0x684] ss:$16 sps:$4 sm:$0xff]   ;;  %v10377_v54 = vld [vmem:[%s16342_s2 + $0x68c] ss:$16 sps:$4 sm:$0xff]  }
 0x497   :  { %6571 = vmatpush1.bf16.msra.mxu0 %v10322_v55  ;;  %7104 = vmatpush1.bf16.msra.mxu1 %v10323_v56  ;;  %v10378_v55 = vld [vmem:[%s16342_s2 + $0x680] ss:$16 sps:$4 sm:$0xff]   ;;  %v10379_v56 = vld [vmem:[%s16342_s2 + $0x688] ss:$16 sps:$4 sm:$0xff]  }
 0x498   :  { %6572 = vmatprep.subr.bf16.mxu0 %v10324_v57  ;;  %7105 = vmatprep.subr.bf16.mxu1 %v10325_v58  ;;  %v10380_v57 = vld [vmem:[%s16342_s2 + $0x6a4] ss:$16 sps:$4 sm:$0xff]   ;;  %v10381_v58 = vld [vmem:[%s16342_s2 + $0x6ac] ss:$16 sps:$4 sm:$0xff]  }
 0x49b   :  { %6573 = vmatpush1.bf16.msra.mxu0 %v10326_v59  ;;  %7106 = vmatpush1.bf16.msra.mxu1 %v10327_v60 }
 0x49c   :  { %6574 = vmatprep.subr.bf16.mxu0 %v10328_v61  ;;  %7107 = vmatprep.subr.bf16.mxu1 %v10329_v62  ;;  %v8523_v61 = vld [vmem:[%s16345_s5] ss:$0 sm:$0xff] }
 0x49f   :  { %6575 = vmatpush1.bf16.msra.mxu0 %v10330_v63  ;;  %7108 = vmatpush1.bf16.msra.mxu1 %v10331_v0 }
 0x4a0   :  { %6576 = vmatprep.subr.bf16.mxu0 %v10332_v1  ;;  %7109 = vmatprep.subr.bf16.mxu1 %v10333_v2  ;;  %v10382_v2 = vld [vmem:[%s16342_s2 + $0x6a0] ss:$16 sps:$4 sm:$0xff]  }
 0x4a3   :  { %6577 = vmatpush1.bf16.msra.mxu0 %v10334_v3  ;;  %7110 = vmatpush1.bf16.msra.mxu1 %v10335_v5  ;;  %v10383_v3 = vld [vmem:[%s16342_s2 + $0x6a8] ss:$16 sps:$4 sm:$0xff]  }
 0x4a4   :  { %6578 = vmatprep.subr.bf16.mxu0 %v10336_v6  ;;  %7111 = vmatprep.subr.bf16.mxu1 %v10337_v7 }
 0x4a7   :  { %6579 = vmatpush1.bf16.msra.mxu0 %v10338_v8  ;;  %7112 = vmatpush1.bf16.msra.mxu1 %v10339_v9  ;;  %v10384_v9 = vld [vmem:[%s16342_s2 + $0x6c4] ss:$16 sps:$4 sm:$0xff]  }
 0x4a8   :  { %6580 = vmatprep.subr.bf16.mxu0 %v10340_v10  ;;  %7113 = vmatprep.subr.bf16.mxu1 %v10341_v12  ;;  %v10385_v10 = vld [vmem:[%s16342_s2 + $0x6cc] ss:$16 sps:$4 sm:$0xff]  }
 0x4ab   :  { %6581 = vmatpush1.bf16.msra.mxu0 %v10342_v13  ;;  %7114 = vmatpush1.bf16.msra.mxu1 %v10343_v11  ;;  %v10386_v11 = vld [vmem:[%s16342_s2 + $0x6c0] ss:$16 sps:$4 sm:$0xff]  }
 0x4ac   :  { %6582 = vmatprep.subr.bf16.mxu0 %v10344_v17  ;;  %7115 = vmatprep.subr.bf16.mxu1 %v10345_v14  ;;  %v10387_v17 = vld [vmem:[%s16342_s2 + $0x6c8] ss:$16 sps:$4 sm:$0xff]   ;;  %v10388_v14 = vld [vmem:[%s16342_s2 + $0x6e4] ss:$16 sps:$4 sm:$0xff]  }
 0x4af   :  { %6583 = vmatpush1.bf16.msra.mxu0 %v10346_v4  ;;  %7116 = vmatpush1.bf16.msra.mxu1 %v10347_v19  ;;  %v10389_v4 = vld [vmem:[%s16342_s2 + $0x6ec] ss:$16 sps:$4 sm:$0xff]   ;;  %v10390_v19 = vld [vmem:[%s16342_s2 + $0x6e0] ss:$16 sps:$4 sm:$0xff]  }
 0x4b0   :  { %6584 = vmatprep.subr.bf16.mxu0 %v10348_v20  ;;  %7117 = vmatprep.subr.bf16.mxu1 %v10349_v16  ;;  %v10391_v20 = vld [vmem:[%s16342_s2 + $0x6e8] ss:$16 sps:$4 sm:$0xff]   ;;  %v10392_v16 = vld [vmem:[%s16342_s2 + $0x704] ss:$16 sps:$4 sm:$0xff]  }
 0x4b3   :  { %6585 = vmatpush1.bf16.msra.mxu0 %v10350_v22  ;;  %7118 = vmatpush1.bf16.msra.mxu1 %v10351_v18  ;;  %v10393_v22 = vld [vmem:[%s16342_s2 + $0x70c] ss:$16 sps:$4 sm:$0xff]   ;;  %v10394_v18 = vld [vmem:[%s16342_s2 + $0x700] ss:$16 sps:$4 sm:$0xff]  }
 0x4b4   :  { %6586 = vmatprep.subr.bf16.mxu0 %v10352_v25  ;;  %7119 = vmatprep.subr.bf16.mxu1 %v10353_v26  ;;  %v10395_v25 = vld [vmem:[%s16342_s2 + $0x708] ss:$16 sps:$4 sm:$0xff]   ;;  %v10396_v26 = vld [vmem:[%s16342_s2 + $0x724] ss:$16 sps:$4 sm:$0xff]  }
 0x4b7   :  { %6587 = vmatpush1.bf16.msra.mxu0 %v10354_v15  ;;  %7120 = vmatpush1.bf16.msra.mxu1 %v10355_v27  ;;  %v10397_v15 = vld [vmem:[%s16342_s2 + $0x72c] ss:$16 sps:$4 sm:$0xff]   ;;  %v10398_v27 = vld [vmem:[%s16342_s2 + $0x720] ss:$16 sps:$4 sm:$0xff]  }
 0x4b8   :  { %6588 = vmatprep.subr.bf16.mxu0 %v10356_v28  ;;  %7121 = vmatprep.subr.bf16.mxu1 %v10357_v29  ;;  %v10399_v28 = vld [vmem:[%s16342_s2 + $0x728] ss:$16 sps:$4 sm:$0xff]   ;;  %v10400_v29 = vld [vmem:[%s16342_s2 + $0x744] ss:$16 sps:$4 sm:$0xff]  }
 0x4bb   :  { %6589 = vmatpush1.bf16.msra.mxu0 %v10358_v32  ;;  %7122 = vmatpush1.bf16.msra.mxu1 %v10359_v21  ;;  %v10402_v32 = vld [vmem:[%s16342_s2 + $0x740] ss:$16 sps:$4 sm:$0xff]   ;;  %v10403_v21 = vld [vmem:[%s16342_s2 + $0x748] ss:$16 sps:$4 sm:$0xff]  }
 0x4bc   :  { %6599 = vmatprep.subr.bf16.mxu0 %v10360_v34  ;;  %7132 = vmatprep.subr.bf16.mxu1 %v10361_v23  ;;  %v10404_v34 = vld [vmem:[%s16342_s2 + $0x764] ss:$16 sps:$4 sm:$0xff]   ;;  %v10405_v23 = vld [vmem:[%s16342_s2 + $0x76c] ss:$16 sps:$4 sm:$0xff]  }
 0x4be   :  { %6591 = vmatmul.mubr.bf16.vlgmr.msra.gmra.mrb[8].mxu0 %v8560_v24  ;;  %7124 = vmatmul.mubr.bf16.vlgmr.msra.gmra.mrb[8].mxu1 %v8560_v24  ;;  %v10401_v24 = vld [vmem:[%s16342_s2 + $0x74c] ss:$16 sps:$4 sm:$0xff]  }
 0x4bf   :  { %6600 = vmatpush1.bf16.msra.mxu0 %v10362_v30  ;;  %7133 = vmatpush1.bf16.msra.mxu1 %v10363_v37  ;;  %v10407_v30 = vld [vmem:[%s16342_s2 + $0x768] ss:$16 sps:$4 sm:$0xff]   ;;  %v10408_v37 = vld [vmem:[%s16342_s2 + $0x784] ss:$16 sps:$4 sm:$0xff]  }
 0x4c0   :  { %6601 = vmatprep.subr.bf16.mxu0 %v10364_v38  ;;  %7134 = vmatprep.subr.bf16.mxu1 %v10365_v33  ;;  %v10409_v38 = vld [vmem:[%s16342_s2 + $0x78c] ss:$16 sps:$4 sm:$0xff]   ;;  %v10410_v33 = vld [vmem:[%s16342_s2 + $0x780] ss:$16 sps:$4 sm:$0xff]  }
 0x4c1   :  { %6631 = vmatprep.mubr.bf16.mxu0 %v8563_v35  ;;  %7164 = vmatprep.mubr.bf16.mxu1 %v8563_v35  ;;  %v10406_v35 = vld [vmem:[%s16342_s2 + $0x760] ss:$16 sps:$4 sm:$0xff]  }
 0x4c3   :  { %6602 = vmatpush1.bf16.msra.mxu0 %v10366_v39  ;;  %7135 = vmatpush1.bf16.msra.mxu1 %v10367_v40  ;;  %v10411_v39 = vld [vmem:[%s16342_s2 + $0x788] ss:$16 sps:$4 sm:$0xff]   ;;  %v10412_v40 = vld [vmem:[%s16342_s2 + $0x7a4] ss:$16 sps:$4 sm:$0xff]  }
 0x4c4   :  { %6603 = vmatprep.subr.bf16.mxu0 %v10368_v41  ;;  %7136 = vmatprep.subr.bf16.mxu1 %v10369_v36  ;;  %v10413_v41 = vld [vmem:[%s16342_s2 + $0x7ac] ss:$16 sps:$4 sm:$0xff]   ;;  %v10414_v36 = vld [vmem:[%s16342_s2 + $0x7a0] ss:$16 sps:$4 sm:$0xff]  }
 0x4c7   :  { %6604 = vmatpush1.bf16.msra.mxu0 %v10370_v42  ;;  %7137 = vmatpush1.bf16.msra.mxu1 %v10371_v43  ;;  %v10415_v42 = vld [vmem:[%s16342_s2 + $0x7a8] ss:$16 sps:$4 sm:$0xff]   ;;  %v10416_v43 = vld [vmem:[%s16342_s2 + $0x7c4] ss:$16 sps:$4 sm:$0xff]  }
 0x4c8   :  { %6605 = vmatprep.subr.bf16.mxu0 %v10372_v44  ;;  %7138 = vmatprep.subr.bf16.mxu1 %v10373_v45  ;;  %v10417_v44 = vld [vmem:[%s16342_s2 + $0x7cc] ss:$16 sps:$4 sm:$0xff]   ;;  %v10418_v45 = vld [vmem:[%s16342_s2 + $0x7c0] ss:$16 sps:$4 sm:$0xff]  }
 0x4cb   :  { %6606 = vmatpush1.bf16.msra.mxu0 %v10374_v47  ;;  %7139 = vmatpush1.bf16.msra.mxu1 %v10375_v52  ;;  %v10419_v47 = vld [vmem:[%s16342_s2 + $0x7c8] ss:$16 sps:$4 sm:$0xff]   ;;  %v10420_v52 = vld [vmem:[%s16342_s2 + $0x7e4] ss:$16 sps:$4 sm:$0xff]  }
 0x4cc   :  { %6607 = vmatprep.subr.bf16.mxu0 %v10376_v53  ;;  %7140 = vmatprep.subr.bf16.mxu1 %v10377_v54  ;;  %v10421_v53 = vld [vmem:[%s16342_s2 + $0x7ec] ss:$16 sps:$4 sm:$0xff]   ;;  %v8562_v54 = vcombine.low %v14295_v31, %v14295_v31 }
 0x4cd   :  { %v10425_v31 = vld [vmem:[%s16342_s2 + $0x80c] ss:$16 sps:$4 sm:$0xff]  }
 0x4cf   :  { %6608 = vmatpush1.bf16.msra.mxu0 %v10378_v55  ;;  %7141 = vmatpush1.bf16.msra.mxu1 %v10379_v56  ;;  %v14501_v55 = vld [vmem:[%s16341_s1 + $0x20] sm:$0xff] }
 0x4d0   :  { %6609 = vmatprep.subr.bf16.mxu0 %v10380_v57  ;;  %7142 = vmatprep.subr.bf16.mxu1 %v10381_v58  ;;  %v10422_v56 = vld [vmem:[%s16342_s2 + $0x7e0] ss:$16 sps:$4 sm:$0xff]   ;;  %v10423_v57 = vld [vmem:[%s16342_s2 + $0x7e8] ss:$16 sps:$4 sm:$0xff]   ;;  %v10424_v58 = vld [vmem:[%s16342_s2 + $0x804] ss:$16 sps:$4 sm:$0xff]  }
 0x4d1   :  { %v8598_v59 = vpop.f32.mrb[4].mxu0  ;;  %v8620_v60 = vpop.f32.mrb[4].mxu1 }
 0x4d2   :  { %v8599_v62 = vpop.f32.mrb[5].mxu0  ;;  %v8621_v63 = vpop.f32.mrb[5].mxu1 }
 0x4d3   :  { %v8600_v0 = vadd.f32 %v8599_v62, %v8598_v59  ;;  %v8622_v1 = vadd.f32 %v8621_v63, %v8620_v60  ;;  %6610 = vmatpush1.bf16.msra.mxu0 %v10382_v2  ;;  %7143 = vmatpush1.bf16.msra.mxu1 %v10383_v3  ;;  %v8601_v5 = vpop.f32.mrb[6].mxu0  ;;  %v8623_v6 = vpop.f32.mrb[6].mxu1  ;;  %v8565_v59 = vcombine.high %v14501_v55, %v14501_v55  ;;  %v10426_v60 = vld [vmem:[%s16342_s2 + $0x800] ss:$16 sps:$4 sm:$0xff]   ;;  %v10428_v62 = vld [vmem:[%s16342_s2 + $0x824] ss:$16 sps:$4 sm:$0xff]  }
 0x4d4   :  { %v8602_v7 = vpop.f32.mrb[7].mxu0  ;;  %v8624_v8 = vpop.f32.mrb[7].mxu1  ;;  %6611 = vmatprep.subr.bf16.mxu0 %v10384_v9  ;;  %7144 = vmatprep.subr.bf16.mxu1 %v10385_v10  ;;  %v10429_v63 = vld [vmem:[%s16342_s2 + $0x82c] ss:$16 sps:$4 sm:$0xff]   ;;  %v10432_v2 = vld [vmem:[%s16342_s2 + $0x844] ss:$16 sps:$4 sm:$0xff]  }
 0x4d5   :  { %v6329_v12 = vadd.f32 %v8600_v0, %v8523_v61  ;;  %v10427_v61 = vld [vmem:[%s16342_s2 + $0x808] ss:$16 sps:$4 sm:$0xff]   ;;  %v10430_v0 = vld [vmem:[%s16342_s2 + $0x820] ss:$16 sps:$4 sm:$0xff]   ;;  %v10433_v3 = vld [vmem:[%s16342_s2 + $0x84c] ss:$16 sps:$4 sm:$0xff]  }
 0x4d6   :  { %v10434_v5 = vld [vmem:[%s16342_s2 + $0x840] ss:$16 sps:$4 sm:$0xff]   ;;  %v10435_v6 = vld [vmem:[%s16342_s2 + $0x848] ss:$16 sps:$4 sm:$0xff]   ;;  %v10436_v7 = vld [vmem:[%s16342_s2 + $0x864] ss:$16 sps:$4 sm:$0xff]  }
 0x4d7   :  { %v14386_v13 = vadd.f32 %v8622_v1, %v6329_v12  ;;  %6612 = vmatpush1.bf16.msra.mxu0 %v10386_v11  ;;  %7145 = vmatpush1.bf16.msra.mxu1 %v10387_v17  ;;  %v10431_v1 = vld [vmem:[%s16342_s2 + $0x828] ss:$16 sps:$4 sm:$0xff]   ;;  %v10437_v8 = vld [vmem:[%s16342_s2 + $0x86c] ss:$16 sps:$4 sm:$0xff]   ;;  %v10438_v9 = vld [vmem:[%s16342_s2 + $0x860] ss:$16 sps:$4 sm:$0xff]  }
 0x4d8   :  { %6613 = vmatprep.subr.bf16.mxu0 %v10388_v14  ;;  %7146 = vmatprep.subr.bf16.mxu1 %v10389_v4  ;;  %v10439_v10 = vld [vmem:[%s16342_s2 + $0x868] ss:$16 sps:$4 sm:$0xff]   ;;  %v10440_v12 = vld [vmem:[%s16342_s2 + $0x884] ss:$16 sps:$4 sm:$0xff]   ;;  %v10441_v11 = vld [vmem:[%s16342_s2 + $0x88c] ss:$16 sps:$4 sm:$0xff]  }
 0x4d9   :  { %v10442_v17 = vld [vmem:[%s16342_s2 + $0x880] ss:$16 sps:$4 sm:$0xff]   ;;  %v10443_v14 = vld [vmem:[%s16342_s2 + $0x888] ss:$16 sps:$4 sm:$0xff]   ;;  %v10444_v4 = vld [vmem:[%s16342_s2 + $0x8a4] ss:$16 sps:$4 sm:$0xff]   ;;  %10158 = vtanh.f32 %v14386_v13 }
 0x4db   :  { %6614 = vmatpush1.bf16.msra.mxu0 %v10390_v19  ;;  %7147 = vmatpush1.bf16.msra.mxu1 %v10391_v20  ;;  %v10445_v19 = vld [vmem:[%s16342_s2 + $0x8ac] ss:$16 sps:$4 sm:$0xff]   ;;  %v10446_v20 = vld [vmem:[%s16342_s2 + $0x8a0] ss:$16 sps:$4 sm:$0xff]  }
 0x4dc   :  { %6615 = vmatprep.subr.bf16.mxu0 %v10392_v16  ;;  %7148 = vmatprep.subr.bf16.mxu1 %v10393_v22  ;;  %v10447_v16 = vld [vmem:[%s16342_s2 + $0x8a8] ss:$16 sps:$4 sm:$0xff]   ;;  %v10448_v22 = vld [vmem:[%s16342_s2 + $0x8c4] ss:$16 sps:$4 sm:$0xff]  }
 0x4df   :  { %6616 = vmatpush1.bf16.msra.mxu0 %v10394_v18  ;;  %7149 = vmatpush1.bf16.msra.mxu1 %v10395_v25  ;;  %v10449_v18 = vld [vmem:[%s16342_s2 + $0x8cc] ss:$16 sps:$4 sm:$0xff]   ;;  %v10450_v25 = vld [vmem:[%s16342_s2 + $0x8c0] ss:$16 sps:$4 sm:$0xff]  }
 0x4e0   :  { %6617 = vmatprep.subr.bf16.mxu0 %v10396_v26  ;;  %7150 = vmatprep.subr.bf16.mxu1 %v10397_v15  ;;  %v10451_v26 = vld [vmem:[%s16342_s2 + $0x8c8] ss:$16 sps:$4 sm:$0xff]   ;;  %v10452_v15 = vld [vmem:[%s16342_s2 + $0x8e4] ss:$16 sps:$4 sm:$0xff]  }
 0x4e3   :  { %6618 = vmatpush1.bf16.msra.mxu0 %v10398_v27  ;;  %7151 = vmatpush1.bf16.msra.mxu1 %v10399_v28  ;;  %v10453_v27 = vld [vmem:[%s16342_s2 + $0x8ec] ss:$16 sps:$4 sm:$0xff]   ;;  %v10454_v28 = vld [vmem:[%s16342_s2 + $0x8e0] ss:$16 sps:$4 sm:$0xff]  }
 0x4e4   :  { %6619 = vmatprep.subr.bf16.mxu0 %v10400_v29  ;;  %7152 = vmatprep.subr.bf16.mxu1 %v10401_v24  ;;  %v10455_v29 = vld [vmem:[%s16342_s2 + $0x8e8] ss:$16 sps:$4 sm:$0xff]   ;;  %v10456_v24 = vld [vmem:[%s16342_s2 + $0x904] ss:$16 sps:$4 sm:$0xff]  }
 0x4e7   :  { %6620 = vmatpush1.bf16.msra.mxu0 %v10402_v32  ;;  %7153 = vmatpush1.bf16.msra.mxu1 %v10403_v21  ;;  %v10457_v32 = vld [vmem:[%s16342_s2 + $0x90c] ss:$16 sps:$4 sm:$0xff]   ;;  %v10458_v21 = vld [vmem:[%s16342_s2 + $0x900] ss:$16 sps:$4 sm:$0xff]  }
 0x4e8   :  { %6621 = vmatprep.subr.bf16.mxu0 %v10404_v34  ;;  %7154 = vmatprep.subr.bf16.mxu1 %v10405_v23  ;;  %v10459_v34 = vld [vmem:[%s16342_s2 + $0x908] ss:$16 sps:$4 sm:$0xff]   ;;  %v10460_v23 = vld [vmem:[%s16342_s2 + $0x924] ss:$16 sps:$4 sm:$0xff]  }
 0x4eb   :  { %6622 = vmatpush1.bf16.msra.mxu0 %v10406_v35  ;;  %7155 = vmatpush1.bf16.msra.mxu1 %v10407_v30  ;;  %v10461_v35 = vld [vmem:[%s16342_s2 + $0x92c] ss:$16 sps:$4 sm:$0xff]   ;;  %v10462_v30 = vld [vmem:[%s16342_s2 + $0x920] ss:$16 sps:$4 sm:$0xff]  }
 0x4ec   :  { %6623 = vmatprep.subr.bf16.mxu0 %v10408_v37  ;;  %7156 = vmatprep.subr.bf16.mxu1 %v10409_v38  ;;  %v10463_v37 = vld [vmem:[%s16342_s2 + $0x928] ss:$16 sps:$4 sm:$0xff]   ;;  %v10464_v38 = vld [vmem:[%s16342_s2 + $0x944] ss:$16 sps:$4 sm:$0xff]  }
 0x4ef   :  { %6624 = vmatpush1.bf16.msra.mxu0 %v10410_v33  ;;  %7157 = vmatpush1.bf16.msra.mxu1 %v10411_v39  ;;  %v10465_v33 = vld [vmem:[%s16342_s2 + $0x94c] ss:$16 sps:$4 sm:$0xff]   ;;  %v10466_v39 = vld [vmem:[%s16342_s2 + $0x940] ss:$16 sps:$4 sm:$0xff]  }
 0x4f0   :  { %6625 = vmatprep.subr.bf16.mxu0 %v10412_v40  ;;  %7158 = vmatprep.subr.bf16.mxu1 %v10413_v41  ;;  %v10467_v40 = vld [vmem:[%s16342_s2 + $0x948] ss:$16 sps:$4 sm:$0xff]   ;;  %v10468_v41 = vld [vmem:[%s16342_s2 + $0x964] ss:$16 sps:$4 sm:$0xff]  }
 0x4f3   :  { %6626 = vmatpush1.bf16.msra.mxu0 %v10414_v36  ;;  %7159 = vmatpush1.bf16.msra.mxu1 %v10415_v42  ;;  %v10469_v36 = vld [vmem:[%s16342_s2 + $0x96c] ss:$16 sps:$4 sm:$0xff]   ;;  %v10470_v42 = vld [vmem:[%s16342_s2 + $0x960] ss:$16 sps:$4 sm:$0xff]  }
 0x4f4   :  { %6627 = vmatprep.subr.bf16.mxu0 %v10416_v43  ;;  %7160 = vmatprep.subr.bf16.mxu1 %v10417_v44  ;;  %v10471_v43 = vld [vmem:[%s16342_s2 + $0x968] ss:$16 sps:$4 sm:$0xff]   ;;  %v10472_v44 = vld [vmem:[%s16342_s2 + $0x984] ss:$16 sps:$4 sm:$0xff]  }
 0x4f7   :  { %6628 = vmatpush1.bf16.msra.mxu0 %v10418_v45  ;;  %7161 = vmatpush1.bf16.msra.mxu1 %v10419_v47  ;;  %v10473_v45 = vld [vmem:[%s16342_s2 + $0x98c] ss:$16 sps:$4 sm:$0xff]   ;;  %v10474_v47 = vld [vmem:[%s16342_s2 + $0x980] ss:$16 sps:$4 sm:$0xff]  }
 0x4f8   :  { %6629 = vmatprep.subr.bf16.mxu0 %v10420_v52  ;;  %7162 = vmatprep.subr.bf16.mxu1 %v10421_v53  ;;  %v10475_v52 = vld [vmem:[%s16342_s2 + $0x988] ss:$16 sps:$4 sm:$0xff]   ;;  %v10476_v53 = vld [vmem:[%s16342_s2 + $0x9a4] ss:$16 sps:$4 sm:$0xff]  }
 0x4fb   :  { %6630 = vmatpush1.bf16.msra.mxu0 %v10422_v56  ;;  %7163 = vmatpush1.bf16.msra.mxu1 %v10423_v57  ;;  %v10478_v56 = vld [vmem:[%s16342_s2 + $0x9a0] ss:$16 sps:$4 sm:$0xff]   ;;  %v10479_v57 = vld [vmem:[%s16342_s2 + $0x9a8] ss:$16 sps:$4 sm:$0xff]  }
 0x4fc   :  { %6640 = vmatprep.subr.bf16.mxu0 %v10424_v58  ;;  %7173 = vmatprep.subr.bf16.mxu1 %v10425_v31  ;;  %v10480_v58 = vld [vmem:[%s16342_s2 + $0x9c4] ss:$16 sps:$4 sm:$0xff]   ;;  %v10481_v31 = vld [vmem:[%s16342_s2 + $0x9cc] ss:$16 sps:$4 sm:$0xff]  }
 0x4fe   :  { %6632 = vmatmul.mubr.bf16.vlgmr.msra.gmra.mrb[8].mxu0 %v8562_v54  ;;  %7165 = vmatmul.mubr.bf16.vlgmr.msra.gmra.mrb[8].mxu1 %v8562_v54  ;;  %v10477_v54 = vld [vmem:[%s16342_s2 + $0x9ac] ss:$16 sps:$4 sm:$0xff]  }
 0x4ff   :  { %6641 = vmatpush1.bf16.msra.mxu0 %v10426_v60  ;;  %7174 = vmatpush1.bf16.msra.mxu1 %v10427_v61  ;;  %v10483_v60 = vld [vmem:[%s16342_s2 + $0x9c8] ss:$16 sps:$4 sm:$0xff]   ;;  %v10484_v61 = vld [vmem:[%s16342_s2 + $0x9e4] ss:$16 sps:$4 sm:$0xff]  }
 0x500   :  { %6642 = vmatprep.subr.bf16.mxu0 %v10428_v62  ;;  %7175 = vmatprep.subr.bf16.mxu1 %v10429_v63  ;;  %v10485_v62 = vld [vmem:[%s16342_s2 + $0x9ec] ss:$16 sps:$4 sm:$0xff]   ;;  %v8564_v63 = vcombine.low %v14501_v55, %v14501_v55 }
 0x501   :  { %6672 = vmatprep.mubr.bf16.mxu0 %v8565_v59  ;;  %7205 = vmatprep.mubr.bf16.mxu1 %v8565_v59  ;;  %v10482_v59 = vld [vmem:[%s16342_s2 + $0x9c0] ss:$16 sps:$4 sm:$0xff]   ;;  %v10489_v55 = vld [vmem:[%s16342_s2 + $0xa0c] ss:$16 sps:$4 sm:$0xff]  }
 0x503   :  { %6643 = vmatpush1.bf16.msra.mxu0 %v10430_v0  ;;  %7176 = vmatpush1.bf16.msra.mxu1 %v10431_v1  ;;  %v14702_v0 = vld [vmem:[%s16341_s1 + $0x28] sm:$0xff]  ;;  %v10486_v1 = vld [vmem:[%s16342_s2 + $0x9e0] ss:$16 sps:$4 sm:$0xff]  }
 0x504   :  { %6644 = vmatprep.subr.bf16.mxu0 %v10432_v2  ;;  %7177 = vmatprep.subr.bf16.mxu1 %v10433_v3  ;;  %v10487_v2 = vld [vmem:[%s16342_s2 + $0x9e8] ss:$16 sps:$4 sm:$0xff]   ;;  %v10488_v3 = vld [vmem:[%s16342_s2 + $0xa04] ss:$16 sps:$4 sm:$0xff]  }
 0x507   :  { %6645 = vmatpush1.bf16.msra.mxu0 %v10434_v5  ;;  %7178 = vmatpush1.bf16.msra.mxu1 %v10435_v6  ;;  %v8567_v5 = vcombine.high %v14702_v0, %v14702_v0  ;;  %v10490_v6 = vld [vmem:[%s16342_s2 + $0xa00] ss:$16 sps:$4 sm:$0xff]  }
 0x508   :  { %6646 = vmatprep.subr.bf16.mxu0 %v10436_v7  ;;  %7179 = vmatprep.subr.bf16.mxu1 %v10437_v8  ;;  %v10491_v7 = vld [vmem:[%s16342_s2 + $0xa08] ss:$16 sps:$4 sm:$0xff]   ;;  %v10492_v8 = vld [vmem:[%s16342_s2 + $0xa24] ss:$16 sps:$4 sm:$0xff]  }
 0x50b   :  { %6647 = vmatpush1.bf16.msra.mxu0 %v10438_v9  ;;  %7180 = vmatpush1.bf16.msra.mxu1 %v10439_v10  ;;  %v10493_v9 = vld [vmem:[%s16342_s2 + $0xa2c] ss:$16 sps:$4 sm:$0xff]   ;;  %v10494_v10 = vld [vmem:[%s16342_s2 + $0xa20] ss:$16 sps:$4 sm:$0xff]  }
 0x50c   :  { %6648 = vmatprep.subr.bf16.mxu0 %v10440_v12  ;;  %7181 = vmatprep.subr.bf16.mxu1 %v10441_v11  ;;  %v10495_v12 = vld [vmem:[%s16342_s2 + $0xa28] ss:$16 sps:$4 sm:$0xff]   ;;  %v10496_v11 = vld [vmem:[%s16342_s2 + $0xa44] ss:$16 sps:$4 sm:$0xff]  }
 0x50f   :  { %6649 = vmatpush1.bf16.msra.mxu0 %v10442_v17  ;;  %7182 = vmatpush1.bf16.msra.mxu1 %v10443_v14  ;;  %v10497_v17 = vld [vmem:[%s16342_s2 + $0xa4c] ss:$16 sps:$4 sm:$0xff]   ;;  %v10498_v14 = vld [vmem:[%s16342_s2 + $0xa40] ss:$16 sps:$4 sm:$0xff]  }
 0x510   :  { %6650 = vmatprep.subr.bf16.mxu0 %v10444_v4  ;;  %7183 = vmatprep.subr.bf16.mxu1 %v10445_v19  ;;  %v10499_v4 = vld [vmem:[%s16342_s2 + $0xa48] ss:$16 sps:$4 sm:$0xff]   ;;  %v10500_v19 = vld [vmem:[%s16342_s2 + $0xa64] ss:$16 sps:$4 sm:$0xff]  }
 0x513   :  { %6651 = vmatpush1.bf16.msra.mxu0 %v10446_v20  ;;  %7184 = vmatpush1.bf16.msra.mxu1 %v10447_v16  ;;  %v10501_v20 = vld [vmem:[%s16342_s2 + $0xa6c] ss:$16 sps:$4 sm:$0xff]   ;;  %v10502_v16 = vld [vmem:[%s16342_s2 + $0xa60] ss:$16 sps:$4 sm:$0xff]  }
 0x514   :  { %6652 = vmatprep.subr.bf16.mxu0 %v10448_v22  ;;  %7185 = vmatprep.subr.bf16.mxu1 %v10449_v18  ;;  %v10503_v22 = vld [vmem:[%s16342_s2 + $0xa68] ss:$16 sps:$4 sm:$0xff]   ;;  %v10504_v18 = vld [vmem:[%s16342_s2 + $0xa84] ss:$16 sps:$4 sm:$0xff]  }
 0x517   :  { %6653 = vmatpush1.bf16.msra.mxu0 %v10450_v25  ;;  %7186 = vmatpush1.bf16.msra.mxu1 %v10451_v26  ;;  %v10505_v25 = vld [vmem:[%s16342_s2 + $0xa8c] ss:$16 sps:$4 sm:$0xff]   ;;  %v10506_v26 = vld [vmem:[%s16342_s2 + $0xa80] ss:$16 sps:$4 sm:$0xff]  }
 0x518   :  { %6654 = vmatprep.subr.bf16.mxu0 %v10452_v15  ;;  %7187 = vmatprep.subr.bf16.mxu1 %v10453_v27  ;;  %v10507_v15 = vld [vmem:[%s16342_s2 + $0xa88] ss:$16 sps:$4 sm:$0xff]   ;;  %v10508_v27 = vld [vmem:[%s16342_s2 + $0xaa4] ss:$16 sps:$4 sm:$0xff]  }
 0x51b   :  { %6655 = vmatpush1.bf16.msra.mxu0 %v10454_v28  ;;  %7188 = vmatpush1.bf16.msra.mxu1 %v10455_v29  ;;  %v10509_v28 = vld [vmem:[%s16342_s2 + $0xaac] ss:$16 sps:$4 sm:$0xff]   ;;  %v10510_v29 = vld [vmem:[%s16342_s2 + $0xaa0] ss:$16 sps:$4 sm:$0xff]  }
 0x51c   :  { %6656 = vmatprep.subr.bf16.mxu0 %v10456_v24  ;;  %7189 = vmatprep.subr.bf16.mxu1 %v10457_v32  ;;  %v10511_v24 = vld [vmem:[%s16342_s2 + $0xaa8] ss:$16 sps:$4 sm:$0xff]   ;;  %v10512_v32 = vld [vmem:[%s16342_s2 + $0xac4] ss:$16 sps:$4 sm:$0xff]  }
 0x51f   :  { %6657 = vmatpush1.bf16.msra.mxu0 %v10458_v21  ;;  %7190 = vmatpush1.bf16.msra.mxu1 %v10459_v34  ;;  %v10513_v21 = vld [vmem:[%s16342_s2 + $0xacc] ss:$16 sps:$4 sm:$0xff]   ;;  %v10514_v34 = vld [vmem:[%s16342_s2 + $0xac0] ss:$16 sps:$4 sm:$0xff]  }
 0x520   :  { %6658 = vmatprep.subr.bf16.mxu0 %v10460_v23  ;;  %7191 = vmatprep.subr.bf16.mxu1 %v10461_v35  ;;  %v10515_v23 = vld [vmem:[%s16342_s2 + $0xac8] ss:$16 sps:$4 sm:$0xff]   ;;  %v10516_v35 = vld [vmem:[%s16342_s2 + $0xae4] ss:$16 sps:$4 sm:$0xff]  }
 0x523   :  { %6659 = vmatpush1.bf16.msra.mxu0 %v10462_v30  ;;  %7192 = vmatpush1.bf16.msra.mxu1 %v10463_v37  ;;  %v10517_v30 = vld [vmem:[%s16342_s2 + $0xaec] ss:$16 sps:$4 sm:$0xff]   ;;  %v10518_v37 = vld [vmem:[%s16342_s2 + $0xae0] ss:$16 sps:$4 sm:$0xff]  }
 0x524   :  { %6660 = vmatprep.subr.bf16.mxu0 %v10464_v38  ;;  %7193 = vmatprep.subr.bf16.mxu1 %v10465_v33  ;;  %v10519_v38 = vld [vmem:[%s16342_s2 + $0xae8] ss:$16 sps:$4 sm:$0xff]   ;;  %v10520_v33 = vld [vmem:[%s16342_s2 + $0xb04] ss:$16 sps:$4 sm:$0xff]  }
 0x527   :  { %6661 = vmatpush1.bf16.msra.mxu0 %v10466_v39  ;;  %7194 = vmatpush1.bf16.msra.mxu1 %v10467_v40  ;;  %v10521_v39 = vld [vmem:[%s16342_s2 + $0xb0c] ss:$16 sps:$4 sm:$0xff]   ;;  %v10522_v40 = vld [vmem:[%s16342_s2 + $0xb00] ss:$16 sps:$4 sm:$0xff]  }
 0x528   :  { %6662 = vmatprep.subr.bf16.mxu0 %v10468_v41  ;;  %7195 = vmatprep.subr.bf16.mxu1 %v10469_v36  ;;  %v10523_v41 = vld [vmem:[%s16342_s2 + $0xb08] ss:$16 sps:$4 sm:$0xff]   ;;  %v10524_v36 = vld [vmem:[%s16342_s2 + $0xb24] ss:$16 sps:$4 sm:$0xff]  }
 0x52b   :  { %6663 = vmatpush1.bf16.msra.mxu0 %v10470_v42  ;;  %7196 = vmatpush1.bf16.msra.mxu1 %v10471_v43  ;;  %v10525_v42 = vld [vmem:[%s16342_s2 + $0xb2c] ss:$16 sps:$4 sm:$0xff]   ;;  %v10526_v43 = vld [vmem:[%s16342_s2 + $0xb20] ss:$16 sps:$4 sm:$0xff]  }
 0x52c   :  { %6664 = vmatprep.subr.bf16.mxu0 %v10472_v44  ;;  %7197 = vmatprep.subr.bf16.mxu1 %v10473_v45  ;;  %v10527_v44 = vld [vmem:[%s16342_s2 + $0xb28] ss:$16 sps:$4 sm:$0xff]   ;;  %v10528_v45 = vld [vmem:[%s16342_s2 + $0xb44] ss:$16 sps:$4 sm:$0xff]  }
 0x52f   :  { %6665 = vmatpush1.bf16.msra.mxu0 %v10474_v47  ;;  %7198 = vmatpush1.bf16.msra.mxu1 %v10475_v52  ;;  %v10529_v47 = vld [vmem:[%s16342_s2 + $0xb4c] ss:$16 sps:$4 sm:$0xff]   ;;  %v10530_v52 = vld [vmem:[%s16342_s2 + $0xb40] ss:$16 sps:$4 sm:$0xff]  }
 0x530   :  { %6666 = vmatprep.subr.bf16.mxu0 %v10476_v53  ;;  %7199 = vmatprep.subr.bf16.mxu1 %v10477_v54  ;;  %v10531_v53 = vld [vmem:[%s16342_s2 + $0xb48] ss:$16 sps:$4 sm:$0xff]   ;;  %v10532_v54 = vld [vmem:[%s16342_s2 + $0xb64] ss:$16 sps:$4 sm:$0xff]  }
 0x533   :  { %6667 = vmatpush1.bf16.msra.mxu0 %v10478_v56  ;;  %7200 = vmatpush1.bf16.msra.mxu1 %v10479_v57  ;;  %v10533_v56 = vld [vmem:[%s16342_s2 + $0xb6c] ss:$16 sps:$4 sm:$0xff]   ;;  %v10534_v57 = vld [vmem:[%s16342_s2 + $0xb60] ss:$16 sps:$4 sm:$0xff]  }
 0x534   :  { %6668 = vmatprep.subr.bf16.mxu0 %v10480_v58  ;;  %7201 = vmatprep.subr.bf16.mxu1 %v10481_v31  ;;  %v10535_v58 = vld [vmem:[%s16342_s2 + $0xb68] ss:$16 sps:$4 sm:$0xff]   ;;  %v10536_v31 = vld [vmem:[%s16342_s2 + $0xb84] ss:$16 sps:$4 sm:$0xff]  }
 0x537   :  { %6669 = vmatpush1.bf16.msra.mxu0 %v10482_v59  ;;  %7202 = vmatpush1.bf16.msra.mxu1 %v10483_v60  ;;  %v10537_v59 = vld [vmem:[%s16342_s2 + $0xb8c] ss:$16 sps:$4 sm:$0xff]   ;;  %v10538_v60 = vld [vmem:[%s16342_s2 + $0xb80] ss:$16 sps:$4 sm:$0xff]  }
 0x538   :  { %6670 = vmatprep.subr.bf16.mxu0 %v10484_v61  ;;  %7203 = vmatprep.subr.bf16.mxu1 %v10485_v62  ;;  %v10539_v61 = vld [vmem:[%s16342_s2 + $0xb88] ss:$16 sps:$4 sm:$0xff]   ;;  %v10540_v62 = vld [vmem:[%s16342_s2 + $0xba4] ss:$16 sps:$4 sm:$0xff]  }
 0x53b   :  { %6671 = vmatpush1.bf16.msra.mxu0 %v10486_v1  ;;  %7204 = vmatpush1.bf16.msra.mxu1 %v10487_v2  ;;  %v10542_v1 = vld [vmem:[%s16342_s2 + $0xba0] ss:$16 sps:$4 sm:$0xff]   ;;  %v10543_v2 = vld [vmem:[%s16342_s2 + $0xba8] ss:$16 sps:$4 sm:$0xff]  }
 0x53c   :  { %6681 = vmatprep.subr.bf16.mxu0 %v10488_v3  ;;  %7214 = vmatprep.subr.bf16.mxu1 %v10489_v55  ;;  %v10544_v3 = vld [vmem:[%s16342_s2 + $0xbc4] ss:$16 sps:$4 sm:$0xff]   ;;  %v10545_v55 = vld [vmem:[%s16342_s2 + $0xbcc] ss:$16 sps:$4 sm:$0xff]  }
 0x53e   :  { %6673 = vmatmul.mubr.bf16.vlgmr.msra.gmra.mrb[8].mxu0 %v8564_v63  ;;  %7206 = vmatmul.mubr.bf16.vlgmr.msra.gmra.mrb[8].mxu1 %v8564_v63  ;;  %v10541_v63 = vld [vmem:[%s16342_s2 + $0xbac] ss:$16 sps:$4 sm:$0xff]  }
 0x53f   :  { %6682 = vmatpush1.bf16.msra.mxu0 %v10490_v6  ;;  %7215 = vmatpush1.bf16.msra.mxu1 %v10491_v7  ;;  %v10547_v6 = vld [vmem:[%s16342_s2 + $0xbc8] ss:$16 sps:$4 sm:$0xff]   ;;  %v10548_v7 = vld [vmem:[%s16342_s2 + $0xbe4] ss:$16 sps:$4 sm:$0xff]  }
 0x540   :  { %6683 = vmatprep.subr.bf16.mxu0 %v10492_v8  ;;  %7216 = vmatprep.subr.bf16.mxu1 %v10493_v9  ;;  %v10549_v8 = vld [vmem:[%s16342_s2 + $0xbec] ss:$16 sps:$4 sm:$0xff]   ;;  %v8566_v9 = vcombine.low %v14702_v0, %v14702_v0 }
 0x541   :  { %6713 = vmatprep.mubr.bf16.mxu0 %v8567_v5  ;;  %7246 = vmatprep.mubr.bf16.mxu1 %v8567_v5  ;;  %v10546_v5 = vld [vmem:[%s16342_s2 + $0xbc0] ss:$16 sps:$4 sm:$0xff]   ;;  %v10553_v0 = vld [vmem:[%s16342_s2 + $0xc0c] ss:$16 sps:$4 sm:$0xff]  }
 0x543   :  { %6684 = vmatpush1.bf16.msra.mxu0 %v10494_v10  ;;  %7217 = vmatpush1.bf16.msra.mxu1 %v10495_v12  ;;  %v14903_v10 = vld [vmem:[%s16341_s1 + $0x30] sm:$0xff] }
 0x544   :  { %6685 = vmatprep.subr.bf16.mxu0 %v10496_v11  ;;  %7218 = vmatprep.subr.bf16.mxu1 %v10497_v17  ;;  %v10550_v12 = vld [vmem:[%s16342_s2 + $0xbe0] ss:$16 sps:$4 sm:$0xff]   ;;  %v10551_v11 = vld [vmem:[%s16342_s2 + $0xbe8] ss:$16 sps:$4 sm:$0xff]   ;;  %v10552_v17 = vld [vmem:[%s16342_s2 + $0xc04] ss:$16 sps:$4 sm:$0xff]  }
 0x547   :  { %6686 = vmatpush1.bf16.msra.mxu0 %v10498_v14  ;;  %7219 = vmatpush1.bf16.msra.mxu1 %v10499_v4  ;;  %v8569_v14 = vcombine.high %v14903_v10, %v14903_v10  ;;  %v10554_v4 = vld [vmem:[%s16342_s2 + $0xc00] ss:$16 sps:$4 sm:$0xff]  }
 0x548   :  { %6687 = vmatprep.subr.bf16.mxu0 %v10500_v19  ;;  %7220 = vmatprep.subr.bf16.mxu1 %v10501_v20  ;;  %v10555_v19 = vld [vmem:[%s16342_s2 + $0xc08] ss:$16 sps:$4 sm:$0xff]   ;;  %v10556_v20 = vld [vmem:[%s16342_s2 + $0xc24] ss:$16 sps:$4 sm:$0xff]  }
 0x54b   :  { %6688 = vmatpush1.bf16.msra.mxu0 %v10502_v16  ;;  %7221 = vmatpush1.bf16.msra.mxu1 %v10503_v22  ;;  %v10557_v16 = vld [vmem:[%s16342_s2 + $0xc2c] ss:$16 sps:$4 sm:$0xff]   ;;  %v10558_v22 = vld [vmem:[%s16342_s2 + $0xc20] ss:$16 sps:$4 sm:$0xff]  }
 0x54c   :  { %6689 = vmatprep.subr.bf16.mxu0 %v10504_v18  ;;  %7222 = vmatprep.subr.bf16.mxu1 %v10505_v25  ;;  %v10559_v18 = vld [vmem:[%s16342_s2 + $0xc28] ss:$16 sps:$4 sm:$0xff]   ;;  %v10560_v25 = vld [vmem:[%s16342_s2 + $0xc44] ss:$16 sps:$4 sm:$0xff]  }
 0x54f   :  { %6690 = vmatpush1.bf16.msra.mxu0 %v10506_v26  ;;  %7223 = vmatpush1.bf16.msra.mxu1 %v10507_v15  ;;  %v10561_v26 = vld [vmem:[%s16342_s2 + $0xc4c] ss:$16 sps:$4 sm:$0xff]   ;;  %v10562_v15 = vld [vmem:[%s16342_s2 + $0xc40] ss:$16 sps:$4 sm:$0xff]  }
 0x550   :  { %6691 = vmatprep.subr.bf16.mxu0 %v10508_v27  ;;  %7224 = vmatprep.subr.bf16.mxu1 %v10509_v28  ;;  %v10563_v27 = vld [vmem:[%s16342_s2 + $0xc48] ss:$16 sps:$4 sm:$0xff]   ;;  %v10564_v28 = vld [vmem:[%s16342_s2 + $0xc64] ss:$16 sps:$4 sm:$0xff]  }
 0x553   :  { %6692 = vmatpush1.bf16.msra.mxu0 %v10510_v29  ;;  %7225 = vmatpush1.bf16.msra.mxu1 %v10511_v24  ;;  %v10565_v29 = vld [vmem:[%s16342_s2 + $0xc6c] ss:$16 sps:$4 sm:$0xff]   ;;  %v10566_v24 = vld [vmem:[%s16342_s2 + $0xc60] ss:$16 sps:$4 sm:$0xff]  }
 0x554   :  { %6693 = vmatprep.subr.bf16.mxu0 %v10512_v32  ;;  %7226 = vmatprep.subr.bf16.mxu1 %v10513_v21  ;;  %v10567_v32 = vld [vmem:[%s16342_s2 + $0xc68] ss:$16 sps:$4 sm:$0xff]   ;;  %v10568_v21 = vld [vmem:[%s16342_s2 + $0xc84] ss:$16 sps:$4 sm:$0xff]  }
 0x557   :  { %6694 = vmatpush1.bf16.msra.mxu0 %v10514_v34  ;;  %7227 = vmatpush1.bf16.msra.mxu1 %v10515_v23  ;;  %v10569_v34 = vld [vmem:[%s16342_s2 + $0xc8c] ss:$16 sps:$4 sm:$0xff]   ;;  %v10570_v23 = vld [vmem:[%s16342_s2 + $0xc80] ss:$16 sps:$4 sm:$0xff]  }
 0x558   :  { %6695 = vmatprep.subr.bf16.mxu0 %v10516_v35  ;;  %7228 = vmatprep.subr.bf16.mxu1 %v10517_v30  ;;  %v10571_v35 = vld [vmem:[%s16342_s2 + $0xc88] ss:$16 sps:$4 sm:$0xff]   ;;  %v10572_v30 = vld [vmem:[%s16342_s2 + $0xca4] ss:$16 sps:$4 sm:$0xff]  }
 0x55b   :  { %6696 = vmatpush1.bf16.msra.mxu0 %v10518_v37  ;;  %7229 = vmatpush1.bf16.msra.mxu1 %v10519_v38  ;;  %v10573_v37 = vld [vmem:[%s16342_s2 + $0xcac] ss:$16 sps:$4 sm:$0xff]   ;;  %v10574_v38 = vld [vmem:[%s16342_s2 + $0xca0] ss:$16 sps:$4 sm:$0xff]  }
 0x55c   :  { %6697 = vmatprep.subr.bf16.mxu0 %v10520_v33  ;;  %7230 = vmatprep.subr.bf16.mxu1 %v10521_v39  ;;  %v10575_v33 = vld [vmem:[%s16342_s2 + $0xca8] ss:$16 sps:$4 sm:$0xff]   ;;  %v10576_v39 = vld [vmem:[%s16342_s2 + $0xcc4] ss:$16 sps:$4 sm:$0xff]  }
 0x55f   :  { %6698 = vmatpush1.bf16.msra.mxu0 %v10522_v40  ;;  %7231 = vmatpush1.bf16.msra.mxu1 %v10523_v41  ;;  %v10577_v40 = vld [vmem:[%s16342_s2 + $0xccc] ss:$16 sps:$4 sm:$0xff]   ;;  %v10578_v41 = vld [vmem:[%s16342_s2 + $0xcc0] ss:$16 sps:$4 sm:$0xff]  }
 0x560   :  { %6699 = vmatprep.subr.bf16.mxu0 %v10524_v36  ;;  %7232 = vmatprep.subr.bf16.mxu1 %v10525_v42  ;;  %v10579_v36 = vld [vmem:[%s16342_s2 + $0xcc8] ss:$16 sps:$4 sm:$0xff]   ;;  %v10580_v42 = vld [vmem:[%s16342_s2 + $0xce4] ss:$16 sps:$4 sm:$0xff]  }
 0x563   :  { %6700 = vmatpush1.bf16.msra.mxu0 %v10526_v43  ;;  %7233 = vmatpush1.bf16.msra.mxu1 %v10527_v44  ;;  %v10581_v43 = vld [vmem:[%s16342_s2 + $0xcec] ss:$16 sps:$4 sm:$0xff]   ;;  %v10582_v44 = vld [vmem:[%s16342_s2 + $0xce0] ss:$16 sps:$4 sm:$0xff]  }
 0x564   :  { %6701 = vmatprep.subr.bf16.mxu0 %v10528_v45  ;;  %7234 = vmatprep.subr.bf16.mxu1 %v10529_v47  ;;  %v10583_v45 = vld [vmem:[%s16342_s2 + $0xce8] ss:$16 sps:$4 sm:$0xff]   ;;  %v10584_v47 = vld [vmem:[%s16342_s2 + $0xd04] ss:$16 sps:$4 sm:$0xff]  }
 0x567   :  { %6702 = vmatpush1.bf16.msra.mxu0 %v10530_v52  ;;  %7235 = vmatpush1.bf16.msra.mxu1 %v10531_v53  ;;  %v10585_v52 = vld [vmem:[%s16342_s2 + $0xd0c] ss:$16 sps:$4 sm:$0xff]   ;;  %v10586_v53 = vld [vmem:[%s16342_s2 + $0xd00] ss:$16 sps:$4 sm:$0xff]  }
 0x568   :  { %6703 = vmatprep.subr.bf16.mxu0 %v10532_v54  ;;  %7236 = vmatprep.subr.bf16.mxu1 %v10533_v56  ;;  %v10587_v54 = vld [vmem:[%s16342_s2 + $0xd08] ss:$16 sps:$4 sm:$0xff]   ;;  %v10588_v56 = vld [vmem:[%s16342_s2 + $0xd24] ss:$16 sps:$4 sm:$0xff]  }
 0x56b   :  { %6704 = vmatpush1.bf16.msra.mxu0 %v10534_v57  ;;  %7237 = vmatpush1.bf16.msra.mxu1 %v10535_v58  ;;  %v10589_v57 = vld [vmem:[%s16342_s2 + $0xd2c] ss:$16 sps:$4 sm:$0xff]   ;;  %v10590_v58 = vld [vmem:[%s16342_s2 + $0xd20] ss:$16 sps:$4 sm:$0xff]  }
 0x56c   :  { %6705 = vmatprep.subr.bf16.mxu0 %v10536_v31  ;;  %7238 = vmatprep.subr.bf16.mxu1 %v10537_v59  ;;  %v10591_v31 = vld [vmem:[%s16342_s2 + $0xd28] ss:$16 sps:$4 sm:$0xff]   ;;  %v10592_v59 = vld [vmem:[%s16342_s2 + $0xd44] ss:$16 sps:$4 sm:$0xff]  }
 0x56f   :  { %6706 = vmatpush1.bf16.msra.mxu0 %v10538_v60  ;;  %7239 = vmatpush1.bf16.msra.mxu1 %v10539_v61  ;;  %v10593_v60 = vld [vmem:[%s16342_s2 + $0xd4c] ss:$16 sps:$4 sm:$0xff]   ;;  %v10594_v61 = vld [vmem:[%s16342_s2 + $0xd40] ss:$16 sps:$4 sm:$0xff]  }
 0x570   :  { %6707 = vmatprep.subr.bf16.mxu0 %v10540_v62  ;;  %7240 = vmatprep.subr.bf16.mxu1 %v10541_v63  ;;  %v10595_v62 = vld [vmem:[%s16342_s2 + $0xd48] ss:$16 sps:$4 sm:$0xff]   ;;  %v10596_v63 = vld [vmem:[%s16342_s2 + $0xd64] ss:$16 sps:$4 sm:$0xff]  }
 0x573   :  { %6708 = vmatpush1.bf16.msra.mxu0 %v10542_v1  ;;  %7241 = vmatpush1.bf16.msra.mxu1 %v10543_v2  ;;  %v10597_v1 = vld [vmem:[%s16342_s2 + $0xd6c] ss:$16 sps:$4 sm:$0xff]   ;;  %v10598_v2 = vld [vmem:[%s16342_s2 + $0xd60] ss:$16 sps:$4 sm:$0xff]  }
 0x574   :  { %6709 = vmatprep.subr.bf16.mxu0 %v10544_v3  ;;  %7242 = vmatprep.subr.bf16.mxu1 %v10545_v55  ;;  %v10599_v3 = vld [vmem:[%s16342_s2 + $0xd68] ss:$16 sps:$4 sm:$0xff]   ;;  %v10600_v55 = vld [vmem:[%s16342_s2 + $0xd84] ss:$16 sps:$4 sm:$0xff]  }
 0x577   :  { %6710 = vmatpush1.bf16.msra.mxu0 %v10546_v5  ;;  %7243 = vmatpush1.bf16.msra.mxu1 %v10547_v6  ;;  %v10601_v5 = vld [vmem:[%s16342_s2 + $0xd8c] ss:$16 sps:$4 sm:$0xff]   ;;  %v10602_v6 = vld [vmem:[%s16342_s2 + $0xd80] ss:$16 sps:$4 sm:$0xff]  }
 0x578   :  { %6711 = vmatprep.subr.bf16.mxu0 %v10548_v7  ;;  %7244 = vmatprep.subr.bf16.mxu1 %v10549_v8  ;;  %v10603_v7 = vld [vmem:[%s16342_s2 + $0xd88] ss:$16 sps:$4 sm:$0xff]   ;;  %v10604_v8 = vld [vmem:[%s16342_s2 + $0xda4] ss:$16 sps:$4 sm:$0xff]  }
 0x57b   :  { %6712 = vmatpush1.bf16.msra.mxu0 %v10550_v12  ;;  %7245 = vmatpush1.bf16.msra.mxu1 %v10551_v11  ;;  %v10606_v12 = vld [vmem:[%s16342_s2 + $0xda0] ss:$16 sps:$4 sm:$0xff]   ;;  %v10607_v11 = vld [vmem:[%s16342_s2 + $0xda8] ss:$16 sps:$4 sm:$0xff]  }
 0x57c   :  { %6722 = vmatprep.subr.bf16.mxu0 %v10552_v17  ;;  %7255 = vmatprep.subr.bf16.mxu1 %v10553_v0  ;;  %v10608_v17 = vld [vmem:[%s16342_s2 + $0xdc4] ss:$16 sps:$4 sm:$0xff]   ;;  %v10609_v0 = vld [vmem:[%s16342_s2 + $0xdcc] ss:$16 sps:$4 sm:$0xff]  }
 0x57e   :  { %6714 = vmatmul.mubr.bf16.vlgmr.msra.gmra.mrb[8].mxu0 %v8566_v9  ;;  %7247 = vmatmul.mubr.bf16.vlgmr.msra.gmra.mrb[8].mxu1 %v8566_v9  ;;  %v10605_v9 = vld [vmem:[%s16342_s2 + $0xdac] ss:$16 sps:$4 sm:$0xff]  }
 0x57f   :  { %6723 = vmatpush1.bf16.msra.mxu0 %v10554_v4  ;;  %7256 = vmatpush1.bf16.msra.mxu1 %v10555_v19  ;;  %v10611_v4 = vld [vmem:[%s16342_s2 + $0xdc8] ss:$16 sps:$4 sm:$0xff]   ;;  %v10612_v19 = vld [vmem:[%s16342_s2 + $0xde4] ss:$16 sps:$4 sm:$0xff]  }
 0x580   :  { %6724 = vmatprep.subr.bf16.mxu0 %v10556_v20  ;;  %7257 = vmatprep.subr.bf16.mxu1 %v10557_v16  ;;  %v10613_v20 = vld [vmem:[%s16342_s2 + $0xdec] ss:$16 sps:$4 sm:$0xff]   ;;  %v8568_v16 = vcombine.low %v14903_v10, %v14903_v10 }
 0x581   :  { %6754 = vmatprep.mubr.bf16.mxu0 %v8569_v14  ;;  %7287 = vmatprep.mubr.bf16.mxu1 %v8569_v14  ;;  %v10610_v14 = vld [vmem:[%s16342_s2 + $0xdc0] ss:$16 sps:$4 sm:$0xff]   ;;  %v10617_v10 = vld [vmem:[%s16342_s2 + $0xe0c] ss:$16 sps:$4 sm:$0xff]  }
 0x583   :  { %6725 = vmatpush1.bf16.msra.mxu0 %v10558_v22  ;;  %7258 = vmatpush1.bf16.msra.mxu1 %v10559_v18  ;;  %v15104_v22 = vld [vmem:[%s16341_s1 + $0x38] sm:$0xff]  ;;  %v10614_v18 = vld [vmem:[%s16342_s2 + $0xde0] ss:$16 sps:$4 sm:$0xff]  }
 0x584   :  { %6726 = vmatprep.subr.bf16.mxu0 %v10560_v25  ;;  %7259 = vmatprep.subr.bf16.mxu1 %v10561_v26  ;;  %v10615_v25 = vld [vmem:[%s16342_s2 + $0xde8] ss:$16 sps:$4 sm:$0xff]   ;;  %v10616_v26 = vld [vmem:[%s16342_s2 + $0xe04] ss:$16 sps:$4 sm:$0xff]  }
 0x587   :  { %6727 = vmatpush1.bf16.msra.mxu0 %v10562_v15  ;;  %7260 = vmatpush1.bf16.msra.mxu1 %v10563_v27  ;;  %v8571_v15 = vcombine.high %v15104_v22, %v15104_v22  ;;  %v10618_v27 = vld [vmem:[%s16342_s2 + $0xe00] ss:$16 sps:$4 sm:$0xff]  }
 0x588   :  { %6728 = vmatprep.subr.bf16.mxu0 %v10564_v28  ;;  %7261 = vmatprep.subr.bf16.mxu1 %v10565_v29  ;;  %v10619_v28 = vld [vmem:[%s16342_s2 + $0xe08] ss:$16 sps:$4 sm:$0xff]   ;;  %v10620_v29 = vld [vmem:[%s16342_s2 + $0xe24] ss:$16 sps:$4 sm:$0xff]  }
 0x58b   :  { %6729 = vmatpush1.bf16.msra.mxu0 %v10566_v24  ;;  %7262 = vmatpush1.bf16.msra.mxu1 %v10567_v32  ;;  %v10621_v24 = vld [vmem:[%s16342_s2 + $0xe2c] ss:$16 sps:$4 sm:$0xff]   ;;  %v10622_v32 = vld [vmem:[%s16342_s2 + $0xe20] ss:$16 sps:$4 sm:$0xff]  }
 0x58c   :  { %6730 = vmatprep.subr.bf16.mxu0 %v10568_v21  ;;  %7263 = vmatprep.subr.bf16.mxu1 %v10569_v34  ;;  %v10623_v21 = vld [vmem:[%s16342_s2 + $0xe28] ss:$16 sps:$4 sm:$0xff]   ;;  %v10624_v34 = vld [vmem:[%s16342_s2 + $0xe44] ss:$16 sps:$4 sm:$0xff]  }
 0x58f   :  { %6731 = vmatpush1.bf16.msra.mxu0 %v10570_v23  ;;  %7264 = vmatpush1.bf16.msra.mxu1 %v10571_v35  ;;  %v10625_v23 = vld [vmem:[%s16342_s2 + $0xe4c] ss:$16 sps:$4 sm:$0xff]   ;;  %v10626_v35 = vld [vmem:[%s16342_s2 + $0xe40] ss:$16 sps:$4 sm:$0xff]  }
 0x590   :  { %6732 = vmatprep.subr.bf16.mxu0 %v10572_v30  ;;  %7265 = vmatprep.subr.bf16.mxu1 %v10573_v37  ;;  %v10627_v30 = vld [vmem:[%s16342_s2 + $0xe48] ss:$16 sps:$4 sm:$0xff]   ;;  %v10628_v37 = vld [vmem:[%s16342_s2 + $0xe64] ss:$16 sps:$4 sm:$0xff]  }
 0x593   :  { %6733 = vmatpush1.bf16.msra.mxu0 %v10574_v38  ;;  %7266 = vmatpush1.bf16.msra.mxu1 %v10575_v33  ;;  %v10629_v38 = vld [vmem:[%s16342_s2 + $0xe6c] ss:$16 sps:$4 sm:$0xff]   ;;  %v10630_v33 = vld [vmem:[%s16342_s2 + $0xe60] ss:$16 sps:$4 sm:$0xff]  }
 0x594   :  { %6734 = vmatprep.subr.bf16.mxu0 %v10576_v39  ;;  %7267 = vmatprep.subr.bf16.mxu1 %v10577_v40  ;;  %v10631_v39 = vld [vmem:[%s16342_s2 + $0xe68] ss:$16 sps:$4 sm:$0xff]   ;;  %v10632_v40 = vld [vmem:[%s16342_s2 + $0xe84] ss:$16 sps:$4 sm:$0xff]  }
 0x597   :  { %6735 = vmatpush1.bf16.msra.mxu0 %v10578_v41  ;;  %7268 = vmatpush1.bf16.msra.mxu1 %v10579_v36  ;;  %v10633_v41 = vld [vmem:[%s16342_s2 + $0xe8c] ss:$16 sps:$4 sm:$0xff]   ;;  %v10634_v36 = vld [vmem:[%s16342_s2 + $0xe80] ss:$16 sps:$4 sm:$0xff]  }
 0x598   :  { %6736 = vmatprep.subr.bf16.mxu0 %v10580_v42  ;;  %7269 = vmatprep.subr.bf16.mxu1 %v10581_v43  ;;  %v10635_v42 = vld [vmem:[%s16342_s2 + $0xe88] ss:$16 sps:$4 sm:$0xff]   ;;  %v10636_v43 = vld [vmem:[%s16342_s2 + $0xea4] ss:$16 sps:$4 sm:$0xff]  }
 0x59b   :  { %6737 = vmatpush1.bf16.msra.mxu0 %v10582_v44  ;;  %7270 = vmatpush1.bf16.msra.mxu1 %v10583_v45  ;;  %v10637_v44 = vld [vmem:[%s16342_s2 + $0xeac] ss:$16 sps:$4 sm:$0xff]   ;;  %v10638_v45 = vld [vmem:[%s16342_s2 + $0xea0] ss:$16 sps:$4 sm:$0xff]  }
 0x59c   :  { %6738 = vmatprep.subr.bf16.mxu0 %v10584_v47  ;;  %7271 = vmatprep.subr.bf16.mxu1 %v10585_v52  ;;  %v10639_v47 = vld [vmem:[%s16342_s2 + $0xea8] ss:$16 sps:$4 sm:$0xff]   ;;  %v10640_v52 = vld [vmem:[%s16342_s2 + $0xec4] ss:$16 sps:$4 sm:$0xff]  }
 0x59f   :  { %6739 = vmatpush1.bf16.msra.mxu0 %v10586_v53  ;;  %7272 = vmatpush1.bf16.msra.mxu1 %v10587_v54  ;;  %v10641_v53 = vld [vmem:[%s16342_s2 + $0xecc] ss:$16 sps:$4 sm:$0xff]   ;;  %v10642_v54 = vld [vmem:[%s16342_s2 + $0xec0] ss:$16 sps:$4 sm:$0xff]  }
 0x5a0   :  { %6740 = vmatprep.subr.bf16.mxu0 %v10588_v56  ;;  %7273 = vmatprep.subr.bf16.mxu1 %v10589_v57  ;;  %v10643_v56 = vld [vmem:[%s16342_s2 + $0xec8] ss:$16 sps:$4 sm:$0xff]   ;;  %v10644_v57 = vld [vmem:[%s16342_s2 + $0xee4] ss:$16 sps:$4 sm:$0xff]  }
 0x5a3   :  { %6741 = vmatpush1.bf16.msra.mxu0 %v10590_v58  ;;  %7274 = vmatpush1.bf16.msra.mxu1 %v10591_v31  ;;  %v10645_v58 = vld [vmem:[%s16342_s2 + $0xeec] ss:$16 sps:$4 sm:$0xff]   ;;  %v10646_v31 = vld [vmem:[%s16342_s2 + $0xee0] ss:$16 sps:$4 sm:$0xff]  }
 0x5a4   :  { %6742 = vmatprep.subr.bf16.mxu0 %v10592_v59  ;;  %7275 = vmatprep.subr.bf16.mxu1 %v10593_v60  ;;  %v10647_v59 = vld [vmem:[%s16342_s2 + $0xee8] ss:$16 sps:$4 sm:$0xff]   ;;  %v10648_v60 = vld [vmem:[%s16342_s2 + $0xf04] ss:$16 sps:$4 sm:$0xff]  }
 0x5a7   :  { %6743 = vmatpush1.bf16.msra.mxu0 %v10594_v61  ;;  %7276 = vmatpush1.bf16.msra.mxu1 %v10595_v62  ;;  %v10649_v61 = vld [vmem:[%s16342_s2 + $0xf0c] ss:$16 sps:$4 sm:$0xff]   ;;  %v10650_v62 = vld [vmem:[%s16342_s2 + $0xf00] ss:$16 sps:$4 sm:$0xff]  }
 0x5a8   :  { %6744 = vmatprep.subr.bf16.mxu0 %v10596_v63  ;;  %7277 = vmatprep.subr.bf16.mxu1 %v10597_v1  ;;  %v10651_v63 = vld [vmem:[%s16342_s2 + $0xf08] ss:$16 sps:$4 sm:$0xff]   ;;  %v10652_v1 = vld [vmem:[%s16342_s2 + $0xf24] ss:$16 sps:$4 sm:$0xff]  }
 0x5ab   :  { %6745 = vmatpush1.bf16.msra.mxu0 %v10598_v2  ;;  %7278 = vmatpush1.bf16.msra.mxu1 %v10599_v3  ;;  %v10653_v2 = vld [vmem:[%s16342_s2 + $0xf2c] ss:$16 sps:$4 sm:$0xff]   ;;  %v10654_v3 = vld [vmem:[%s16342_s2 + $0xf20] ss:$16 sps:$4 sm:$0xff]  }
 0x5ac   :  { %6746 = vmatprep.subr.bf16.mxu0 %v10600_v55  ;;  %7279 = vmatprep.subr.bf16.mxu1 %v10601_v5  ;;  %v10655_v55 = vld [vmem:[%s16342_s2 + $0xf28] ss:$16 sps:$4 sm:$0xff]   ;;  %v10656_v5 = vld [vmem:[%s16342_s2 + $0xf44] ss:$16 sps:$4 sm:$0xff]  }
 0x5af   :  { %6747 = vmatpush1.bf16.msra.mxu0 %v10602_v6  ;;  %7280 = vmatpush1.bf16.msra.mxu1 %v10603_v7  ;;  %v10657_v6 = vld [vmem:[%s16342_s2 + $0xf4c] ss:$16 sps:$4 sm:$0xff]   ;;  %v10658_v7 = vld [vmem:[%s16342_s2 + $0xf40] ss:$16 sps:$4 sm:$0xff]  }
 0x5b0   :  { %6748 = vmatprep.subr.bf16.mxu0 %v10604_v8  ;;  %7281 = vmatprep.subr.bf16.mxu1 %v10605_v9  ;;  %v10659_v8 = vld [vmem:[%s16342_s2 + $0xf48] ss:$16 sps:$4 sm:$0xff]   ;;  %v10660_v9 = vld [vmem:[%s16342_s2 + $0xf64] ss:$16 sps:$4 sm:$0xff]  }
 0x5b3   :  { %6749 = vmatpush1.bf16.msra.mxu0 %v10606_v12  ;;  %7282 = vmatpush1.bf16.msra.mxu1 %v10607_v11  ;;  %v10661_v12 = vld [vmem:[%s16342_s2 + $0xf6c] ss:$16 sps:$4 sm:$0xff]   ;;  %v10662_v11 = vld [vmem:[%s16342_s2 + $0xf60] ss:$16 sps:$4 sm:$0xff]  }
 0x5b4   :  { %6750 = vmatprep.subr.bf16.mxu0 %v10608_v17  ;;  %7283 = vmatprep.subr.bf16.mxu1 %v10609_v0  ;;  %v10663_v17 = vld [vmem:[%s16342_s2 + $0xf68] ss:$16 sps:$4 sm:$0xff]   ;;  %v10664_v0 = vld [vmem:[%s16342_s2 + $0xf84] ss:$16 sps:$4 sm:$0xff]  }
 0x5b7   :  { %6751 = vmatpush1.bf16.msra.mxu0 %v10610_v14  ;;  %7284 = vmatpush1.bf16.msra.mxu1 %v10611_v4  ;;  %v10665_v14 = vld [vmem:[%s16342_s2 + $0xf8c] ss:$16 sps:$4 sm:$0xff]   ;;  %v10666_v4 = vld [vmem:[%s16342_s2 + $0xf80] ss:$16 sps:$4 sm:$0xff]  }
 0x5b8   :  { %6752 = vmatprep.subr.bf16.mxu0 %v10612_v19  ;;  %7285 = vmatprep.subr.bf16.mxu1 %v10613_v20  ;;  %v10667_v19 = vld [vmem:[%s16342_s2 + $0xf88] ss:$16 sps:$4 sm:$0xff]   ;;  %v10668_v20 = vld [vmem:[%s16342_s2 + $0xfa4] ss:$16 sps:$4 sm:$0xff]  }
 0x5bb   :  { %6753 = vmatpush1.bf16.msra.mxu0 %v10614_v18  ;;  %7286 = vmatpush1.bf16.msra.mxu1 %v10615_v25  ;;  %v10670_v18 = vld [vmem:[%s16342_s2 + $0xfa0] ss:$16 sps:$4 sm:$0xff]   ;;  %v10671_v25 = vld [vmem:[%s16342_s2 + $0xfa8] ss:$16 sps:$4 sm:$0xff]  }
 0x5bc   :  { %6763 = vmatprep.subr.bf16.mxu0 %v10616_v26  ;;  %7296 = vmatprep.subr.bf16.mxu1 %v10617_v10  ;;  %v10672_v26 = vld [vmem:[%s16342_s2 + $0xfc4] ss:$16 sps:$4 sm:$0xff]   ;;  %v10673_v10 = vld [vmem:[%s16342_s2 + $0xfcc] ss:$16 sps:$4 sm:$0xff]  }
 0x5be   :  { %6755 = vmatmul.mubr.bf16.vlgmr.msra.gmra.mrb[8].mxu0 %v8568_v16  ;;  %7288 = vmatmul.mubr.bf16.vlgmr.msra.gmra.mrb[8].mxu1 %v8568_v16  ;;  %v10669_v16 = vld [vmem:[%s16342_s2 + $0xfac] ss:$16 sps:$4 sm:$0xff]  }
 0x5bf   :  { %6764 = vmatpush1.bf16.msra.mxu0 %v10618_v27  ;;  %7297 = vmatpush1.bf16.msra.mxu1 %v10619_v28  ;;  %v10675_v27 = vld [vmem:[%s16342_s2 + $0xfc8] ss:$16 sps:$4 sm:$0xff]   ;;  %v10676_v28 = vld [vmem:[%s16342_s2 + $0xfe4] ss:$16 sps:$4 sm:$0xff]  }
 0x5c0   :  { %6765 = vmatprep.subr.bf16.mxu0 %v10620_v29  ;;  %7298 = vmatprep.subr.bf16.mxu1 %v10621_v24  ;;  %v10677_v29 = vld [vmem:[%s16342_s2 + $0xfec] ss:$16 sps:$4 sm:$0xff]   ;;  %v8570_v24 = vcombine.low %v15104_v22, %v15104_v22 }
 0x5c1   :  { %6795 = vmatprep.mubr.bf16.mxu0 %v8571_v15  ;;  %7328 = vmatprep.mubr.bf16.mxu1 %v8571_v15  ;;  %v10674_v15 = vld [vmem:[%s16342_s2 + $0xfc0] ss:$16 sps:$4 sm:$0xff]   ;;  %v10681_v22 = vld [vmem:[%s16342_s2 + $0x100c] ss:$16 sps:$4 sm:$0xff]  }
 0x5c3   :  { %6766 = vmatpush1.bf16.msra.mxu0 %v10622_v32  ;;  %7299 = vmatpush1.bf16.msra.mxu1 %v10623_v21  ;;  %v15305_v32 = vld [vmem:[%s16341_s1 + $0x40] sm:$0xff] }
 0x5c4   :  { %6767 = vmatprep.subr.bf16.mxu0 %v10624_v34  ;;  %7300 = vmatprep.subr.bf16.mxu1 %v10625_v23  ;;  %v10678_v21 = vld [vmem:[%s16342_s2 + $0xfe0] ss:$16 sps:$4 sm:$0xff]   ;;  %v10679_v34 = vld [vmem:[%s16342_s2 + $0xfe8] ss:$16 sps:$4 sm:$0xff]   ;;  %v10680_v23 = vld [vmem:[%s16342_s2 + $0x1004] ss:$16 sps:$4 sm:$0xff]  }
 0x5c7   :  { %6768 = vmatpush1.bf16.msra.mxu0 %v10626_v35  ;;  %7301 = vmatpush1.bf16.msra.mxu1 %v10627_v30  ;;  %v8573_v35 = vcombine.high %v15305_v32, %v15305_v32  ;;  %v10682_v30 = vld [vmem:[%s16342_s2 + $0x1000] ss:$16 sps:$4 sm:$0xff]  }
 0x5c8   :  { %6769 = vmatprep.subr.bf16.mxu0 %v10628_v37  ;;  %7302 = vmatprep.subr.bf16.mxu1 %v10629_v38  ;;  %v10683_v37 = vld [vmem:[%s16342_s2 + $0x1008] ss:$16 sps:$4 sm:$0xff]   ;;  %v10684_v38 = vld [vmem:[%s16342_s2 + $0x1024] ss:$16 sps:$4 sm:$0xff]  }
 0x5cb   :  { %6770 = vmatpush1.bf16.msra.mxu0 %v10630_v33  ;;  %7303 = vmatpush1.bf16.msra.mxu1 %v10631_v39  ;;  %v10685_v33 = vld [vmem:[%s16342_s2 + $0x102c] ss:$16 sps:$4 sm:$0xff]   ;;  %v10686_v39 = vld [vmem:[%s16342_s2 + $0x1020] ss:$16 sps:$4 sm:$0xff]  }
 0x5cc   :  { %6771 = vmatprep.subr.bf16.mxu0 %v10632_v40  ;;  %7304 = vmatprep.subr.bf16.mxu1 %v10633_v41  ;;  %v10687_v40 = vld [vmem:[%s16342_s2 + $0x1028] ss:$16 sps:$4 sm:$0xff]   ;;  %v10688_v41 = vld [vmem:[%s16342_s2 + $0x1044] ss:$16 sps:$4 sm:$0xff]  }
 0x5cf   :  { %6772 = vmatpush1.bf16.msra.mxu0 %v10634_v36  ;;  %7305 = vmatpush1.bf16.msra.mxu1 %v10635_v42  ;;  %v10689_v36 = vld [vmem:[%s16342_s2 + $0x104c] ss:$16 sps:$4 sm:$0xff]   ;;  %v10690_v42 = vld [vmem:[%s16342_s2 + $0x1040] ss:$16 sps:$4 sm:$0xff]  }
 0x5d0   :  { %6773 = vmatprep.subr.bf16.mxu0 %v10636_v43  ;;  %7306 = vmatprep.subr.bf16.mxu1 %v10637_v44  ;;  %v10691_v43 = vld [vmem:[%s16342_s2 + $0x1048] ss:$16 sps:$4 sm:$0xff]   ;;  %v10692_v44 = vld [vmem:[%s16342_s2 + $0x1064] ss:$16 sps:$4 sm:$0xff]  }
 0x5d3   :  { %6774 = vmatpush1.bf16.msra.mxu0 %v10638_v45  ;;  %7307 = vmatpush1.bf16.msra.mxu1 %v10639_v47  ;;  %v10693_v45 = vld [vmem:[%s16342_s2 + $0x106c] ss:$16 sps:$4 sm:$0xff]   ;;  %v10694_v47 = vld [vmem:[%s16342_s2 + $0x1060] ss:$16 sps:$4 sm:$0xff]  }
 0x5d4   :  { %6775 = vmatprep.subr.bf16.mxu0 %v10640_v52  ;;  %7308 = vmatprep.subr.bf16.mxu1 %v10641_v53  ;;  %v10695_v52 = vld [vmem:[%s16342_s2 + $0x1068] ss:$16 sps:$4 sm:$0xff]   ;;  %v10696_v53 = vld [vmem:[%s16342_s2 + $0x1084] ss:$16 sps:$4 sm:$0xff]  }
 0x5d7   :  { %6776 = vmatpush1.bf16.msra.mxu0 %v10642_v54  ;;  %7309 = vmatpush1.bf16.msra.mxu1 %v10643_v56  ;;  %v10697_v54 = vld [vmem:[%s16342_s2 + $0x108c] ss:$16 sps:$4 sm:$0xff]   ;;  %v10698_v56 = vld [vmem:[%s16342_s2 + $0x1080] ss:$16 sps:$4 sm:$0xff]  }
 0x5d8   :  { %6777 = vmatprep.subr.bf16.mxu0 %v10644_v57  ;;  %7310 = vmatprep.subr.bf16.mxu1 %v10645_v58  ;;  %v10699_v57 = vld [vmem:[%s16342_s2 + $0x1088] ss:$16 sps:$4 sm:$0xff]   ;;  %v10700_v58 = vld [vmem:[%s16342_s2 + $0x10a4] ss:$16 sps:$4 sm:$0xff]  }
 0x5db   :  { %6778 = vmatpush1.bf16.msra.mxu0 %v10646_v31  ;;  %7311 = vmatpush1.bf16.msra.mxu1 %v10647_v59  ;;  %v10701_v31 = vld [vmem:[%s16342_s2 + $0x10ac] ss:$16 sps:$4 sm:$0xff]   ;;  %v10702_v59 = vld [vmem:[%s16342_s2 + $0x10a0] ss:$16 sps:$4 sm:$0xff]  }
 0x5dc   :  { %6779 = vmatprep.subr.bf16.mxu0 %v10648_v60  ;;  %7312 = vmatprep.subr.bf16.mxu1 %v10649_v61  ;;  %v10703_v60 = vld [vmem:[%s16342_s2 + $0x10a8] ss:$16 sps:$4 sm:$0xff]   ;;  %v10704_v61 = vld [vmem:[%s16342_s2 + $0x10c4] ss:$16 sps:$4 sm:$0xff]  }
 0x5df   :  { %6780 = vmatpush1.bf16.msra.mxu0 %v10650_v62  ;;  %7313 = vmatpush1.bf16.msra.mxu1 %v10651_v63  ;;  %v10705_v62 = vld [vmem:[%s16342_s2 + $0x10cc] ss:$16 sps:$4 sm:$0xff]   ;;  %v10706_v63 = vld [vmem:[%s16342_s2 + $0x10c0] ss:$16 sps:$4 sm:$0xff]  }
 0x5e0   :  { %6781 = vmatprep.subr.bf16.mxu0 %v10652_v1  ;;  %7314 = vmatprep.subr.bf16.mxu1 %v10653_v2  ;;  %v10707_v1 = vld [vmem:[%s16342_s2 + $0x10c8] ss:$16 sps:$4 sm:$0xff]   ;;  %v10708_v2 = vld [vmem:[%s16342_s2 + $0x10e4] ss:$16 sps:$4 sm:$0xff]  }
 0x5e3   :  { %6782 = vmatpush1.bf16.msra.mxu0 %v10654_v3  ;;  %7315 = vmatpush1.bf16.msra.mxu1 %v10655_v55  ;;  %v10709_v3 = vld [vmem:[%s16342_s2 + $0x10ec] ss:$16 sps:$4 sm:$0xff]   ;;  %v10710_v55 = vld [vmem:[%s16342_s2 + $0x10e0] ss:$16 sps:$4 sm:$0xff]  }
 0x5e4   :  { %6783 = vmatprep.subr.bf16.mxu0 %v10656_v5  ;;  %7316 = vmatprep.subr.bf16.mxu1 %v10657_v6  ;;  %v10711_v5 = vld [vmem:[%s16342_s2 + $0x10e8] ss:$16 sps:$4 sm:$0xff]   ;;  %v10712_v6 = vld [vmem:[%s16342_s2 + $0x1104] ss:$16 sps:$4 sm:$0xff]  }
 0x5e7   :  { %6784 = vmatpush1.bf16.msra.mxu0 %v10658_v7  ;;  %7317 = vmatpush1.bf16.msra.mxu1 %v10659_v8  ;;  %v10713_v7 = vld [vmem:[%s16342_s2 + $0x110c] ss:$16 sps:$4 sm:$0xff]   ;;  %v10714_v8 = vld [vmem:[%s16342_s2 + $0x1100] ss:$16 sps:$4 sm:$0xff]  }
 0x5e8   :  { %6785 = vmatprep.subr.bf16.mxu0 %v10660_v9  ;;  %7318 = vmatprep.subr.bf16.mxu1 %v10661_v12  ;;  %v10715_v9 = vld [vmem:[%s16342_s2 + $0x1108] ss:$16 sps:$4 sm:$0xff]   ;;  %v10716_v12 = vld [vmem:[%s16342_s2 + $0x1124] ss:$16 sps:$4 sm:$0xff]  }
 0x5eb   :  { %6786 = vmatpush1.bf16.msra.mxu0 %v10662_v11  ;;  %7319 = vmatpush1.bf16.msra.mxu1 %v10663_v17  ;;  %v10717_v11 = vld [vmem:[%s16342_s2 + $0x112c] ss:$16 sps:$4 sm:$0xff]   ;;  %v10718_v17 = vld [vmem:[%s16342_s2 + $0x1120] ss:$16 sps:$4 sm:$0xff]  }
 0x5ec   :  { %6787 = vmatprep.subr.bf16.mxu0 %v10664_v0  ;;  %7320 = vmatprep.subr.bf16.mxu1 %v10665_v14  ;;  %v10719_v0 = vld [vmem:[%s16342_s2 + $0x1128] ss:$16 sps:$4 sm:$0xff]   ;;  %v10720_v14 = vld [vmem:[%s16342_s2 + $0x1144] ss:$16 sps:$4 sm:$0xff]  }
 0x5ef   :  { %6788 = vmatpush1.bf16.msra.mxu0 %v10666_v4  ;;  %7321 = vmatpush1.bf16.msra.mxu1 %v10667_v19  ;;  %v10721_v4 = vld [vmem:[%s16342_s2 + $0x114c] ss:$16 sps:$4 sm:$0xff]   ;;  %v10722_v19 = vld [vmem:[%s16342_s2 + $0x1140] ss:$16 sps:$4 sm:$0xff]  }
 0x5f0   :  { %6789 = vmatprep.subr.bf16.mxu0 %v10668_v20  ;;  %7322 = vmatprep.subr.bf16.mxu1 %v10669_v16  ;;  %v10723_v20 = vld [vmem:[%s16342_s2 + $0x1148] ss:$16 sps:$4 sm:$0xff]   ;;  %v10724_v16 = vld [vmem:[%s16342_s2 + $0x1164] ss:$16 sps:$4 sm:$0xff]  }
 0x5f3   :  { %6790 = vmatpush1.bf16.msra.mxu0 %v10670_v18  ;;  %7323 = vmatpush1.bf16.msra.mxu1 %v10671_v25  ;;  %v10725_v18 = vld [vmem:[%s16342_s2 + $0x116c] ss:$16 sps:$4 sm:$0xff]   ;;  %v10726_v25 = vld [vmem:[%s16342_s2 + $0x1160] ss:$16 sps:$4 sm:$0xff]  }
 0x5f4   :  { %6791 = vmatprep.subr.bf16.mxu0 %v10672_v26  ;;  %7324 = vmatprep.subr.bf16.mxu1 %v10673_v10  ;;  %v10727_v26 = vld [vmem:[%s16342_s2 + $0x1168] ss:$16 sps:$4 sm:$0xff]   ;;  %v10728_v10 = vld [vmem:[%s16342_s2 + $0x1184] ss:$16 sps:$4 sm:$0xff]  }
 0x5f7   :  { %6792 = vmatpush1.bf16.msra.mxu0 %v10674_v15  ;;  %7325 = vmatpush1.bf16.msra.mxu1 %v10675_v27  ;;  %v10729_v15 = vld [vmem:[%s16342_s2 + $0x118c] ss:$16 sps:$4 sm:$0xff]   ;;  %v10730_v27 = vld [vmem:[%s16342_s2 + $0x1180] ss:$16 sps:$4 sm:$0xff]  }
 0x5f8   :  { %6793 = vmatprep.subr.bf16.mxu0 %v10676_v28  ;;  %7326 = vmatprep.subr.bf16.mxu1 %v10677_v29  ;;  %v10731_v28 = vld [vmem:[%s16342_s2 + $0x1188] ss:$16 sps:$4 sm:$0xff]   ;;  %v10732_v29 = vld [vmem:[%s16342_s2 + $0x11a4] ss:$16 sps:$4 sm:$0xff]  }
 0x5fb   :  { %6794 = vmatpush1.bf16.msra.mxu0 %v10678_v21  ;;  %7327 = vmatpush1.bf16.msra.mxu1 %v10679_v34  ;;  %v10734_v21 = vld [vmem:[%s16342_s2 + $0x11a0] ss:$16 sps:$4 sm:$0xff]   ;;  %v10735_v34 = vld [vmem:[%s16342_s2 + $0x11a8] ss:$16 sps:$4 sm:$0xff]  }
 0x5fc   :  { %6804 = vmatprep.subr.bf16.mxu0 %v10680_v23  ;;  %7337 = vmatprep.subr.bf16.mxu1 %v10681_v22  ;;  %v10736_v23 = vld [vmem:[%s16342_s2 + $0x11c4] ss:$16 sps:$4 sm:$0xff]   ;;  %v10737_v22 = vld [vmem:[%s16342_s2 + $0x11cc] ss:$16 sps:$4 sm:$0xff]  }
 0x5fe   :  { %6796 = vmatmul.mubr.bf16.vlgmr.msra.gmra.mrb[8].mxu0 %v8570_v24  ;;  %7329 = vmatmul.mubr.bf16.vlgmr.msra.gmra.mrb[8].mxu1 %v8570_v24  ;;  %v10733_v24 = vld [vmem:[%s16342_s2 + $0x11ac] ss:$16 sps:$4 sm:$0xff]  }
 0x5ff   :  { %6805 = vmatpush1.bf16.msra.mxu0 %v10682_v30  ;;  %7338 = vmatpush1.bf16.msra.mxu1 %v10683_v37  ;;  %v10739_v30 = vld [vmem:[%s16342_s2 + $0x11c8] ss:$16 sps:$4 sm:$0xff]   ;;  %v10740_v37 = vld [vmem:[%s16342_s2 + $0x11e4] ss:$16 sps:$4 sm:$0xff]  }
 0x600   :  { %6806 = vmatprep.subr.bf16.mxu0 %v10684_v38  ;;  %7339 = vmatprep.subr.bf16.mxu1 %v10685_v33  ;;  %v10741_v38 = vld [vmem:[%s16342_s2 + $0x11ec] ss:$16 sps:$4 sm:$0xff]   ;;  %v8572_v33 = vcombine.low %v15305_v32, %v15305_v32 }
 0x601   :  { %6836 = vmatprep.mubr.bf16.mxu0 %v8573_v35  ;;  %7369 = vmatprep.mubr.bf16.mxu1 %v8573_v35  ;;  %v10738_v35 = vld [vmem:[%s16342_s2 + $0x11c0] ss:$16 sps:$4 sm:$0xff]   ;;  %v10745_v32 = vld [vmem:[%s16342_s2 + $0x120c] ss:$16 sps:$4 sm:$0xff]  }
 0x603   :  { %6807 = vmatpush1.bf16.msra.mxu0 %v10686_v39  ;;  %7340 = vmatpush1.bf16.msra.mxu1 %v10687_v40  ;;  %v15506_v39 = vld [vmem:[%s16341_s1 + $0x48] sm:$0xff]  ;;  %v10742_v40 = vld [vmem:[%s16342_s2 + $0x11e0] ss:$16 sps:$4 sm:$0xff]  }
 0x604   :  { %6808 = vmatprep.subr.bf16.mxu0 %v10688_v41  ;;  %7341 = vmatprep.subr.bf16.mxu1 %v10689_v36  ;;  %v10743_v41 = vld [vmem:[%s16342_s2 + $0x11e8] ss:$16 sps:$4 sm:$0xff]   ;;  %v10744_v36 = vld [vmem:[%s16342_s2 + $0x1204] ss:$16 sps:$4 sm:$0xff]  }
 0x607   :  { %6809 = vmatpush1.bf16.msra.mxu0 %v10690_v42  ;;  %7342 = vmatpush1.bf16.msra.mxu1 %v10691_v43  ;;  %v8575_v42 = vcombine.high %v15506_v39, %v15506_v39  ;;  %v10746_v43 = vld [vmem:[%s16342_s2 + $0x1200] ss:$16 sps:$4 sm:$0xff]  }
 0x608   :  { %6810 = vmatprep.subr.bf16.mxu0 %v10692_v44  ;;  %7343 = vmatprep.subr.bf16.mxu1 %v10693_v45  ;;  %v10747_v44 = vld [vmem:[%s16342_s2 + $0x1208] ss:$16 sps:$4 sm:$0xff]   ;;  %v10748_v45 = vld [vmem:[%s16342_s2 + $0x1224] ss:$16 sps:$4 sm:$0xff]  }
 0x60b   :  { %6811 = vmatpush1.bf16.msra.mxu0 %v10694_v47  ;;  %7344 = vmatpush1.bf16.msra.mxu1 %v10695_v52  ;;  %v10749_v47 = vld [vmem:[%s16342_s2 + $0x122c] ss:$16 sps:$4 sm:$0xff]   ;;  %v10750_v52 = vld [vmem:[%s16342_s2 + $0x1220] ss:$16 sps:$4 sm:$0xff]  }
 0x60c   :  { %6812 = vmatprep.subr.bf16.mxu0 %v10696_v53  ;;  %7345 = vmatprep.subr.bf16.mxu1 %v10697_v54  ;;  %v10751_v53 = vld [vmem:[%s16342_s2 + $0x1228] ss:$16 sps:$4 sm:$0xff]   ;;  %v10752_v54 = vld [vmem:[%s16342_s2 + $0x1244] ss:$16 sps:$4 sm:$0xff]  }
 0x60f   :  { %6813 = vmatpush1.bf16.msra.mxu0 %v10698_v56  ;;  %7346 = vmatpush1.bf16.msra.mxu1 %v10699_v57  ;;  %v10753_v56 = vld [vmem:[%s16342_s2 + $0x124c] ss:$16 sps:$4 sm:$0xff]   ;;  %v10754_v57 = vld [vmem:[%s16342_s2 + $0x1240] ss:$16 sps:$4 sm:$0xff]  }
 0x610   :  { %6814 = vmatprep.subr.bf16.mxu0 %v10700_v58  ;;  %7347 = vmatprep.subr.bf16.mxu1 %v10701_v31  ;;  %v10755_v58 = vld [vmem:[%s16342_s2 + $0x1248] ss:$16 sps:$4 sm:$0xff]   ;;  %v10756_v31 = vld [vmem:[%s16342_s2 + $0x1264] ss:$16 sps:$4 sm:$0xff]  }
 0x613   :  { %6815 = vmatpush1.bf16.msra.mxu0 %v10702_v59  ;;  %7348 = vmatpush1.bf16.msra.mxu1 %v10703_v60  ;;  %v10757_v59 = vld [vmem:[%s16342_s2 + $0x126c] ss:$16 sps:$4 sm:$0xff]   ;;  %v10758_v60 = vld [vmem:[%s16342_s2 + $0x1260] ss:$16 sps:$4 sm:$0xff]  }
 0x614   :  { %6816 = vmatprep.subr.bf16.mxu0 %v10704_v61  ;;  %7349 = vmatprep.subr.bf16.mxu1 %v10705_v62  ;;  %v10759_v61 = vld [vmem:[%s16342_s2 + $0x1268] ss:$16 sps:$4 sm:$0xff]   ;;  %v10760_v62 = vld [vmem:[%s16342_s2 + $0x1284] ss:$16 sps:$4 sm:$0xff]  }
 0x617   :  { %6817 = vmatpush1.bf16.msra.mxu0 %v10706_v63  ;;  %7350 = vmatpush1.bf16.msra.mxu1 %v10707_v1  ;;  %v10761_v63 = vld [vmem:[%s16342_s2 + $0x128c] ss:$16 sps:$4 sm:$0xff]   ;;  %v10762_v1 = vld [vmem:[%s16342_s2 + $0x1280] ss:$16 sps:$4 sm:$0xff]  }
 0x618   :  { %6818 = vmatprep.subr.bf16.mxu0 %v10708_v2  ;;  %7351 = vmatprep.subr.bf16.mxu1 %v10709_v3  ;;  %v10763_v2 = vld [vmem:[%s16342_s2 + $0x1288] ss:$16 sps:$4 sm:$0xff]   ;;  %v10764_v3 = vld [vmem:[%s16342_s2 + $0x12a4] ss:$16 sps:$4 sm:$0xff]  }
 0x61b   :  { %6819 = vmatpush1.bf16.msra.mxu0 %v10710_v55  ;;  %7352 = vmatpush1.bf16.msra.mxu1 %v10711_v5  ;;  %v10765_v55 = vld [vmem:[%s16342_s2 + $0x12ac] ss:$16 sps:$4 sm:$0xff]   ;;  %v10766_v5 = vld [vmem:[%s16342_s2 + $0x12a0] ss:$16 sps:$4 sm:$0xff]  }
 0x61c   :  { %6820 = vmatprep.subr.bf16.mxu0 %v10712_v6  ;;  %7353 = vmatprep.subr.bf16.mxu1 %v10713_v7  ;;  %v10767_v6 = vld [vmem:[%s16342_s2 + $0x12a8] ss:$16 sps:$4 sm:$0xff]   ;;  %v10768_v7 = vld [vmem:[%s16342_s2 + $0x12c4] ss:$16 sps:$4 sm:$0xff]  }
 0x61f   :  { %6821 = vmatpush1.bf16.msra.mxu0 %v10714_v8  ;;  %7354 = vmatpush1.bf16.msra.mxu1 %v10715_v9  ;;  %v10769_v8 = vld [vmem:[%s16342_s2 + $0x12cc] ss:$16 sps:$4 sm:$0xff]   ;;  %v10770_v9 = vld [vmem:[%s16342_s2 + $0x12c0] ss:$16 sps:$4 sm:$0xff]  }
 0x620   :  { %6822 = vmatprep.subr.bf16.mxu0 %v10716_v12  ;;  %7355 = vmatprep.subr.bf16.mxu1 %v10717_v11  ;;  %v10771_v12 = vld [vmem:[%s16342_s2 + $0x12c8] ss:$16 sps:$4 sm:$0xff]   ;;  %v10772_v11 = vld [vmem:[%s16342_s2 + $0x12e4] ss:$16 sps:$4 sm:$0xff]  }
 0x623   :  { %6823 = vmatpush1.bf16.msra.mxu0 %v10718_v17  ;;  %7356 = vmatpush1.bf16.msra.mxu1 %v10719_v0  ;;  %v10773_v17 = vld [vmem:[%s16342_s2 + $0x12ec] ss:$16 sps:$4 sm:$0xff]   ;;  %v10774_v0 = vld [vmem:[%s16342_s2 + $0x12e0] ss:$16 sps:$4 sm:$0xff]  }
 0x624   :  { %6824 = vmatprep.subr.bf16.mxu0 %v10720_v14  ;;  %7357 = vmatprep.subr.bf16.mxu1 %v10721_v4  ;;  %v10775_v14 = vld [vmem:[%s16342_s2 + $0x12e8] ss:$16 sps:$4 sm:$0xff]   ;;  %v10776_v4 = vld [vmem:[%s16342_s2 + $0x1304] ss:$16 sps:$4 sm:$0xff]  }
 0x627   :  { %6825 = vmatpush1.bf16.msra.mxu0 %v10722_v19  ;;  %7358 = vmatpush1.bf16.msra.mxu1 %v10723_v20  ;;  %v10777_v19 = vld [vmem:[%s16342_s2 + $0x130c] ss:$16 sps:$4 sm:$0xff]   ;;  %v10778_v20 = vld [vmem:[%s16342_s2 + $0x1300] ss:$16 sps:$4 sm:$0xff]  }
 0x628   :  { %6826 = vmatprep.subr.bf16.mxu0 %v10724_v16  ;;  %7359 = vmatprep.subr.bf16.mxu1 %v10725_v18  ;;  %v10779_v16 = vld [vmem:[%s16342_s2 + $0x1308] ss:$16 sps:$4 sm:$0xff]   ;;  %v10780_v18 = vld [vmem:[%s16342_s2 + $0x1324] ss:$16 sps:$4 sm:$0xff]  }
 0x62b   :  { %6827 = vmatpush1.bf16.msra.mxu0 %v10726_v25  ;;  %7360 = vmatpush1.bf16.msra.mxu1 %v10727_v26  ;;  %v10781_v25 = vld [vmem:[%s16342_s2 + $0x132c] ss:$16 sps:$4 sm:$0xff]   ;;  %v10782_v26 = vld [vmem:[%s16342_s2 + $0x1320] ss:$16 sps:$4 sm:$0xff]  }
 0x62c   :  { %6828 = vmatprep.subr.bf16.mxu0 %v10728_v10  ;;  %7361 = vmatprep.subr.bf16.mxu1 %v10729_v15  ;;  %v10783_v10 = vld [vmem:[%s16342_s2 + $0x1328] ss:$16 sps:$4 sm:$0xff]   ;;  %v10784_v15 = vld [vmem:[%s16342_s2 + $0x1344] ss:$16 sps:$4 sm:$0xff]  }
 0x62f   :  { %6829 = vmatpush1.bf16.msra.mxu0 %v10730_v27  ;;  %7362 = vmatpush1.bf16.msra.mxu1 %v10731_v28  ;;  %v10785_v27 = vld [vmem:[%s16342_s2 + $0x134c] ss:$16 sps:$4 sm:$0xff]   ;;  %v10786_v28 = vld [vmem:[%s16342_s2 + $0x1340] ss:$16 sps:$4 sm:$0xff]  }
 0x630   :  { %6830 = vmatprep.subr.bf16.mxu0 %v10732_v29  ;;  %7363 = vmatprep.subr.bf16.mxu1 %v10733_v24  ;;  %v10787_v29 = vld [vmem:[%s16342_s2 + $0x1348] ss:$16 sps:$4 sm:$0xff]   ;;  %v10788_v24 = vld [vmem:[%s16342_s2 + $0x1364] ss:$16 sps:$4 sm:$0xff]  }
 0x633   :  { %6831 = vmatpush1.bf16.msra.mxu0 %v10734_v21  ;;  %7364 = vmatpush1.bf16.msra.mxu1 %v10735_v34  ;;  %v10789_v21 = vld [vmem:[%s16342_s2 + $0x136c] ss:$16 sps:$4 sm:$0xff]   ;;  %v10790_v34 = vld [vmem:[%s16342_s2 + $0x1360] ss:$16 sps:$4 sm:$0xff]  }
 0x634   :  { %6832 = vmatprep.subr.bf16.mxu0 %v10736_v23  ;;  %7365 = vmatprep.subr.bf16.mxu1 %v10737_v22  ;;  %v10791_v23 = vld [vmem:[%s16342_s2 + $0x1368] ss:$16 sps:$4 sm:$0xff]   ;;  %v10792_v22 = vld [vmem:[%s16342_s2 + $0x1384] ss:$16 sps:$4 sm:$0xff]  }
 0x637   :  { %6833 = vmatpush1.bf16.msra.mxu0 %v10738_v35  ;;  %7366 = vmatpush1.bf16.msra.mxu1 %v10739_v30  ;;  %v10793_v35 = vld [vmem:[%s16342_s2 + $0x138c] ss:$16 sps:$4 sm:$0xff]   ;;  %v10794_v30 = vld [vmem:[%s16342_s2 + $0x1380] ss:$16 sps:$4 sm:$0xff]  }
 0x638   :  { %6834 = vmatprep.subr.bf16.mxu0 %v10740_v37  ;;  %7367 = vmatprep.subr.bf16.mxu1 %v10741_v38  ;;  %v10795_v37 = vld [vmem:[%s16342_s2 + $0x1388] ss:$16 sps:$4 sm:$0xff]   ;;  %v10796_v38 = vld [vmem:[%s16342_s2 + $0x13a4] ss:$16 sps:$4 sm:$0xff]  }
 0x63b   :  { %6835 = vmatpush1.bf16.msra.mxu0 %v10742_v40  ;;  %7368 = vmatpush1.bf16.msra.mxu1 %v10743_v41  ;;  %v10798_v40 = vld [vmem:[%s16342_s2 + $0x13a0] ss:$16 sps:$4 sm:$0xff]   ;;  %v10799_v41 = vld [vmem:[%s16342_s2 + $0x13a8] ss:$16 sps:$4 sm:$0xff]  }
 0x63c   :  { %6845 = vmatprep.subr.bf16.mxu0 %v10744_v36  ;;  %7378 = vmatprep.subr.bf16.mxu1 %v10745_v32  ;;  %v10800_v36 = vld [vmem:[%s16342_s2 + $0x13c4] ss:$16 sps:$4 sm:$0xff]   ;;  %v10801_v32 = vld [vmem:[%s16342_s2 + $0x13cc] ss:$16 sps:$4 sm:$0xff]  }
 0x63e   :  { %6837 = vmatmul.mubr.bf16.vlgmr.msra.gmra.mrb[8].mxu0 %v8572_v33  ;;  %7370 = vmatmul.mubr.bf16.vlgmr.msra.gmra.mrb[8].mxu1 %v8572_v33  ;;  %v10797_v33 = vld [vmem:[%s16342_s2 + $0x13ac] ss:$16 sps:$4 sm:$0xff]  }
 0x63f   :  { %6846 = vmatpush1.bf16.msra.mxu0 %v10746_v43  ;;  %7379 = vmatpush1.bf16.msra.mxu1 %v10747_v44  ;;  %v10803_v43 = vld [vmem:[%s16342_s2 + $0x13c8] ss:$16 sps:$4 sm:$0xff]   ;;  %v10804_v44 = vld [vmem:[%s16342_s2 + $0x13e4] ss:$16 sps:$4 sm:$0xff]  }
 0x640   :  { %6847 = vmatprep.subr.bf16.mxu0 %v10748_v45  ;;  %7380 = vmatprep.subr.bf16.mxu1 %v10749_v47  ;;  %v10805_v45 = vld [vmem:[%s16342_s2 + $0x13ec] ss:$16 sps:$4 sm:$0xff]   ;;  %v8574_v47 = vcombine.low %v15506_v39, %v15506_v39 }
 0x641   :  { %6877 = vmatprep.mubr.bf16.mxu0 %v8575_v42  ;;  %7410 = vmatprep.mubr.bf16.mxu1 %v8575_v42  ;;  %v10802_v42 = vld [vmem:[%s16342_s2 + $0x13c0] ss:$16 sps:$4 sm:$0xff]   ;;  %v10809_v39 = vld [vmem:[%s16342_s2 + $0x140c] ss:$16 sps:$4 sm:$0xff]  }
 0x643   :  { %6848 = vmatpush1.bf16.msra.mxu0 %v10750_v52  ;;  %7381 = vmatpush1.bf16.msra.mxu1 %v10751_v53  ;;  %v15707_v52 = vld [vmem:[%s16341_s1 + $0x50] sm:$0xff] }
 0x644   :  { %6849 = vmatprep.subr.bf16.mxu0 %v10752_v54  ;;  %7382 = vmatprep.subr.bf16.mxu1 %v10753_v56  ;;  %v10806_v53 = vld [vmem:[%s16342_s2 + $0x13e0] ss:$16 sps:$4 sm:$0xff]   ;;  %v10807_v54 = vld [vmem:[%s16342_s2 + $0x13e8] ss:$16 sps:$4 sm:$0xff]   ;;  %v10808_v56 = vld [vmem:[%s16342_s2 + $0x1404] ss:$16 sps:$4 sm:$0xff]  }
 0x647   :  { %6850 = vmatpush1.bf16.msra.mxu0 %v10754_v57  ;;  %7383 = vmatpush1.bf16.msra.mxu1 %v10755_v58  ;;  %v8577_v57 = vcombine.high %v15707_v52, %v15707_v52  ;;  %v10810_v58 = vld [vmem:[%s16342_s2 + $0x1400] ss:$16 sps:$4 sm:$0xff]  }
 0x648   :  { %6851 = vmatprep.subr.bf16.mxu0 %v10756_v31  ;;  %7384 = vmatprep.subr.bf16.mxu1 %v10757_v59  ;;  %v10811_v31 = vld [vmem:[%s16342_s2 + $0x1408] ss:$16 sps:$4 sm:$0xff]   ;;  %v10812_v59 = vld [vmem:[%s16342_s2 + $0x1424] ss:$16 sps:$4 sm:$0xff]  }
 0x64b   :  { %6852 = vmatpush1.bf16.msra.mxu0 %v10758_v60  ;;  %7385 = vmatpush1.bf16.msra.mxu1 %v10759_v61  ;;  %v10813_v60 = vld [vmem:[%s16342_s2 + $0x142c] ss:$16 sps:$4 sm:$0xff]   ;;  %v10814_v61 = vld [vmem:[%s16342_s2 + $0x1420] ss:$16 sps:$4 sm:$0xff]  }
 0x64c   :  { %6853 = vmatprep.subr.bf16.mxu0 %v10760_v62  ;;  %7386 = vmatprep.subr.bf16.mxu1 %v10761_v63  ;;  %v10815_v62 = vld [vmem:[%s16342_s2 + $0x1428] ss:$16 sps:$4 sm:$0xff]   ;;  %v10816_v63 = vld [vmem:[%s16342_s2 + $0x1444] ss:$16 sps:$4 sm:$0xff]  }
 0x64f   :  { %6854 = vmatpush1.bf16.msra.mxu0 %v10762_v1  ;;  %7387 = vmatpush1.bf16.msra.mxu1 %v10763_v2  ;;  %v10817_v1 = vld [vmem:[%s16342_s2 + $0x144c] ss:$16 sps:$4 sm:$0xff]   ;;  %v10818_v2 = vld [vmem:[%s16342_s2 + $0x1440] ss:$16 sps:$4 sm:$0xff]  }
 0x650   :  { %6855 = vmatprep.subr.bf16.mxu0 %v10764_v3  ;;  %7388 = vmatprep.subr.bf16.mxu1 %v10765_v55  ;;  %v10819_v3 = vld [vmem:[%s16342_s2 + $0x1448] ss:$16 sps:$4 sm:$0xff]   ;;  %v10820_v55 = vld [vmem:[%s16342_s2 + $0x1464] ss:$16 sps:$4 sm:$0xff]  }
 0x653   :  { %6856 = vmatpush1.bf16.msra.mxu0 %v10766_v5  ;;  %7389 = vmatpush1.bf16.msra.mxu1 %v10767_v6  ;;  %v10821_v5 = vld [vmem:[%s16342_s2 + $0x146c] ss:$16 sps:$4 sm:$0xff]   ;;  %v10822_v6 = vld [vmem:[%s16342_s2 + $0x1460] ss:$16 sps:$4 sm:$0xff]  }
 0x654   :  { %6857 = vmatprep.subr.bf16.mxu0 %v10768_v7  ;;  %7390 = vmatprep.subr.bf16.mxu1 %v10769_v8  ;;  %v10823_v7 = vld [vmem:[%s16342_s2 + $0x1468] ss:$16 sps:$4 sm:$0xff]   ;;  %v10824_v8 = vld [vmem:[%s16342_s2 + $0x1484] ss:$16 sps:$4 sm:$0xff]  }
 0x657   :  { %6858 = vmatpush1.bf16.msra.mxu0 %v10770_v9  ;;  %7391 = vmatpush1.bf16.msra.mxu1 %v10771_v12  ;;  %v10825_v9 = vld [vmem:[%s16342_s2 + $0x148c] ss:$16 sps:$4 sm:$0xff]   ;;  %v10826_v12 = vld [vmem:[%s16342_s2 + $0x1480] ss:$16 sps:$4 sm:$0xff]  }
 0x658   :  { %6859 = vmatprep.subr.bf16.mxu0 %v10772_v11  ;;  %7392 = vmatprep.subr.bf16.mxu1 %v10773_v17  ;;  %v10827_v11 = vld [vmem:[%s16342_s2 + $0x1488] ss:$16 sps:$4 sm:$0xff]   ;;  %v10828_v17 = vld [vmem:[%s16342_s2 + $0x14a4] ss:$16 sps:$4 sm:$0xff]  }
 0x65b   :  { %6860 = vmatpush1.bf16.msra.mxu0 %v10774_v0  ;;  %7393 = vmatpush1.bf16.msra.mxu1 %v10775_v14  ;;  %v10829_v0 = vld [vmem:[%s16342_s2 + $0x14ac] ss:$16 sps:$4 sm:$0xff]   ;;  %v10830_v14 = vld [vmem:[%s16342_s2 + $0x14a0] ss:$16 sps:$4 sm:$0xff]  }
 0x65c   :  { %6861 = vmatprep.subr.bf16.mxu0 %v10776_v4  ;;  %7394 = vmatprep.subr.bf16.mxu1 %v10777_v19  ;;  %v10831_v4 = vld [vmem:[%s16342_s2 + $0x14a8] ss:$16 sps:$4 sm:$0xff]   ;;  %v10832_v19 = vld [vmem:[%s16342_s2 + $0x14c4] ss:$16 sps:$4 sm:$0xff]  }
 0x65f   :  { %6862 = vmatpush1.bf16.msra.mxu0 %v10778_v20  ;;  %7395 = vmatpush1.bf16.msra.mxu1 %v10779_v16  ;;  %v10833_v20 = vld [vmem:[%s16342_s2 + $0x14cc] ss:$16 sps:$4 sm:$0xff]   ;;  %v10834_v16 = vld [vmem:[%s16342_s2 + $0x14c0] ss:$16 sps:$4 sm:$0xff]  }
 0x660   :  { %6863 = vmatprep.subr.bf16.mxu0 %v10780_v18  ;;  %7396 = vmatprep.subr.bf16.mxu1 %v10781_v25  ;;  %v10835_v18 = vld [vmem:[%s16342_s2 + $0x14c8] ss:$16 sps:$4 sm:$0xff]   ;;  %v10836_v25 = vld [vmem:[%s16342_s2 + $0x14e4] ss:$16 sps:$4 sm:$0xff]  }
 0x663   :  { %6864 = vmatpush1.bf16.msra.mxu0 %v10782_v26  ;;  %7397 = vmatpush1.bf16.msra.mxu1 %v10783_v10  ;;  %v10837_v26 = vld [vmem:[%s16342_s2 + $0x14ec] ss:$16 sps:$4 sm:$0xff]   ;;  %v10838_v10 = vld [vmem:[%s16342_s2 + $0x14e0] ss:$16 sps:$4 sm:$0xff]  }
 0x664   :  { %6865 = vmatprep.subr.bf16.mxu0 %v10784_v15  ;;  %7398 = vmatprep.subr.bf16.mxu1 %v10785_v27  ;;  %v10839_v15 = vld [vmem:[%s16342_s2 + $0x14e8] ss:$16 sps:$4 sm:$0xff]   ;;  %v10840_v27 = vld [vmem:[%s16342_s2 + $0x1504] ss:$16 sps:$4 sm:$0xff]  }
 0x667   :  { %6866 = vmatpush1.bf16.msra.mxu0 %v10786_v28  ;;  %7399 = vmatpush1.bf16.msra.mxu1 %v10787_v29  ;;  %v10841_v28 = vld [vmem:[%s16342_s2 + $0x150c] ss:$16 sps:$4 sm:$0xff]   ;;  %v10842_v29 = vld [vmem:[%s16342_s2 + $0x1500] ss:$16 sps:$4 sm:$0xff]  }
 0x668   :  { %6867 = vmatprep.subr.bf16.mxu0 %v10788_v24  ;;  %7400 = vmatprep.subr.bf16.mxu1 %v10789_v21  ;;  %v10843_v24 = vld [vmem:[%s16342_s2 + $0x1508] ss:$16 sps:$4 sm:$0xff]   ;;  %v10844_v21 = vld [vmem:[%s16342_s2 + $0x1524] ss:$16 sps:$4 sm:$0xff]  }
 0x66b   :  { %6868 = vmatpush1.bf16.msra.mxu0 %v10790_v34  ;;  %7401 = vmatpush1.bf16.msra.mxu1 %v10791_v23  ;;  %v10845_v34 = vld [vmem:[%s16342_s2 + $0x152c] ss:$16 sps:$4 sm:$0xff]   ;;  %v10846_v23 = vld [vmem:[%s16342_s2 + $0x1520] ss:$16 sps:$4 sm:$0xff]  }
 0x66c   :  { %6869 = vmatprep.subr.bf16.mxu0 %v10792_v22  ;;  %7402 = vmatprep.subr.bf16.mxu1 %v10793_v35  ;;  %v10847_v22 = vld [vmem:[%s16342_s2 + $0x1528] ss:$16 sps:$4 sm:$0xff]   ;;  %v10848_v35 = vld [vmem:[%s16342_s2 + $0x1544] ss:$16 sps:$4 sm:$0xff]  }
 0x66f   :  { %6870 = vmatpush1.bf16.msra.mxu0 %v10794_v30  ;;  %7403 = vmatpush1.bf16.msra.mxu1 %v10795_v37  ;;  %v10849_v30 = vld [vmem:[%s16342_s2 + $0x154c] ss:$16 sps:$4 sm:$0xff]   ;;  %v10850_v37 = vld [vmem:[%s16342_s2 + $0x1540] ss:$16 sps:$4 sm:$0xff]  }
 0x670   :  { %6871 = vmatprep.subr.bf16.mxu0 %v10796_v38  ;;  %7404 = vmatprep.subr.bf16.mxu1 %v10797_v33  ;;  %v10851_v38 = vld [vmem:[%s16342_s2 + $0x1548] ss:$16 sps:$4 sm:$0xff]   ;;  %v10852_v33 = vld [vmem:[%s16342_s2 + $0x1564] ss:$16 sps:$4 sm:$0xff]  }
 0x673   :  { %6872 = vmatpush1.bf16.msra.mxu0 %v10798_v40  ;;  %7405 = vmatpush1.bf16.msra.mxu1 %v10799_v41  ;;  %v10853_v40 = vld [vmem:[%s16342_s2 + $0x156c] ss:$16 sps:$4 sm:$0xff]   ;;  %v10854_v41 = vld [vmem:[%s16342_s2 + $0x1560] ss:$16 sps:$4 sm:$0xff]  }
 0x674   :  { %6873 = vmatprep.subr.bf16.mxu0 %v10800_v36  ;;  %7406 = vmatprep.subr.bf16.mxu1 %v10801_v32  ;;  %v10855_v36 = vld [vmem:[%s16342_s2 + $0x1568] ss:$16 sps:$4 sm:$0xff]   ;;  %v10856_v32 = vld [vmem:[%s16342_s2 + $0x1584] ss:$16 sps:$4 sm:$0xff]  }
 0x677   :  { %6874 = vmatpush1.bf16.msra.mxu0 %v10802_v42  ;;  %7407 = vmatpush1.bf16.msra.mxu1 %v10803_v43  ;;  %v10857_v42 = vld [vmem:[%s16342_s2 + $0x158c] ss:$16 sps:$4 sm:$0xff]   ;;  %v10858_v43 = vld [vmem:[%s16342_s2 + $0x1580] ss:$16 sps:$4 sm:$0xff]  }
 0x678   :  { %6875 = vmatprep.subr.bf16.mxu0 %v10804_v44  ;;  %7408 = vmatprep.subr.bf16.mxu1 %v10805_v45  ;;  %v10859_v44 = vld [vmem:[%s16342_s2 + $0x1588] ss:$16 sps:$4 sm:$0xff]   ;;  %v10860_v45 = vld [vmem:[%s16342_s2 + $0x15a4] ss:$16 sps:$4 sm:$0xff]  }
 0x67b   :  { %6876 = vmatpush1.bf16.msra.mxu0 %v10806_v53  ;;  %7409 = vmatpush1.bf16.msra.mxu1 %v10807_v54  ;;  %v10862_v53 = vld [vmem:[%s16342_s2 + $0x15a0] ss:$16 sps:$4 sm:$0xff]   ;;  %v10863_v54 = vld [vmem:[%s16342_s2 + $0x15a8] ss:$16 sps:$4 sm:$0xff]  }
 0x67c   :  { %6886 = vmatprep.subr.bf16.mxu0 %v10808_v56  ;;  %7419 = vmatprep.subr.bf16.mxu1 %v10809_v39  ;;  %v10864_v56 = vld [vmem:[%s16342_s2 + $0x15c4] ss:$16 sps:$4 sm:$0xff]   ;;  %v10865_v39 = vld [vmem:[%s16342_s2 + $0x15cc] ss:$16 sps:$4 sm:$0xff]  }
 0x67e   :  { %6878 = vmatmul.mubr.bf16.vlgmr.msra.gmra.mrb[8].mxu0 %v8574_v47  ;;  %7411 = vmatmul.mubr.bf16.vlgmr.msra.gmra.mrb[8].mxu1 %v8574_v47  ;;  %v10861_v47 = vld [vmem:[%s16342_s2 + $0x15ac] ss:$16 sps:$4 sm:$0xff]  }
 0x67f   :  { %6887 = vmatpush1.bf16.msra.mxu0 %v10810_v58  ;;  %7420 = vmatpush1.bf16.msra.mxu1 %v10811_v31  ;;  %v10867_v58 = vld [vmem:[%s16342_s2 + $0x15c8] ss:$16 sps:$4 sm:$0xff]   ;;  %v10868_v31 = vld [vmem:[%s16342_s2 + $0x15e4] ss:$16 sps:$4 sm:$0xff]  }
 0x680   :  { %6888 = vmatprep.subr.bf16.mxu0 %v10812_v59  ;;  %7421 = vmatprep.subr.bf16.mxu1 %v10813_v60  ;;  %v10869_v59 = vld [vmem:[%s16342_s2 + $0x15ec] ss:$16 sps:$4 sm:$0xff]   ;;  %v8576_v60 = vcombine.low %v15707_v52, %v15707_v52 }
 0x681   :  { %6918 = vmatprep.mubr.bf16.mxu0 %v8577_v57  ;;  %7451 = vmatprep.mubr.bf16.mxu1 %v8577_v57  ;;  %v10866_v57 = vld [vmem:[%s16342_s2 + $0x15c0] ss:$16 sps:$4 sm:$0xff]   ;;  %v10873_v52 = vld [vmem:[%s16342_s2 + $0x160c] ss:$16 sps:$4 sm:$0xff]  }
 0x683   :  { %6889 = vmatpush1.bf16.msra.mxu0 %v10814_v61  ;;  %7422 = vmatpush1.bf16.msra.mxu1 %v10815_v62  ;;  %v15908_v61 = vld [vmem:[%s16341_s1 + $0x58] sm:$0xff]  ;;  %v10870_v62 = vld [vmem:[%s16342_s2 + $0x15e0] ss:$16 sps:$4 sm:$0xff]  }
 0x684   :  { %6890 = vmatprep.subr.bf16.mxu0 %v10816_v63  ;;  %7423 = vmatprep.subr.bf16.mxu1 %v10817_v1  ;;  %v10871_v63 = vld [vmem:[%s16342_s2 + $0x15e8] ss:$16 sps:$4 sm:$0xff]   ;;  %v10872_v1 = vld [vmem:[%s16342_s2 + $0x1604] ss:$16 sps:$4 sm:$0xff]  }
 0x687   :  { %6891 = vmatpush1.bf16.msra.mxu0 %v10818_v2  ;;  %7424 = vmatpush1.bf16.msra.mxu1 %v10819_v3  ;;  %v8579_v2 = vcombine.high %v15908_v61, %v15908_v61  ;;  %v10874_v3 = vld [vmem:[%s16342_s2 + $0x1600] ss:$16 sps:$4 sm:$0xff]  }
 0x688   :  { %6892 = vmatprep.subr.bf16.mxu0 %v10820_v55  ;;  %7425 = vmatprep.subr.bf16.mxu1 %v10821_v5  ;;  %v10875_v55 = vld [vmem:[%s16342_s2 + $0x1608] ss:$16 sps:$4 sm:$0xff]   ;;  %v10876_v5 = vld [vmem:[%s16342_s2 + $0x1624] ss:$16 sps:$4 sm:$0xff]  }
 0x68b   :  { %6893 = vmatpush1.bf16.msra.mxu0 %v10822_v6  ;;  %7426 = vmatpush1.bf16.msra.mxu1 %v10823_v7  ;;  %v10877_v6 = vld [vmem:[%s16342_s2 + $0x162c] ss:$16 sps:$4 sm:$0xff]   ;;  %v10878_v7 = vld [vmem:[%s16342_s2 + $0x1620] ss:$16 sps:$4 sm:$0xff]  }
 0x68c   :  { %6894 = vmatprep.subr.bf16.mxu0 %v10824_v8  ;;  %7427 = vmatprep.subr.bf16.mxu1 %v10825_v9  ;;  %v10879_v8 = vld [vmem:[%s16342_s2 + $0x1628] ss:$16 sps:$4 sm:$0xff]   ;;  %v10880_v9 = vld [vmem:[%s16342_s2 + $0x1644] ss:$16 sps:$4 sm:$0xff]  }
 0x68f   :  { %6895 = vmatpush1.bf16.msra.mxu0 %v10826_v12  ;;  %7428 = vmatpush1.bf16.msra.mxu1 %v10827_v11  ;;  %v10881_v12 = vld [vmem:[%s16342_s2 + $0x164c] ss:$16 sps:$4 sm:$0xff]   ;;  %v10882_v11 = vld [vmem:[%s16342_s2 + $0x1640] ss:$16 sps:$4 sm:$0xff]  }
 0x690   :  { %6896 = vmatprep.subr.bf16.mxu0 %v10828_v17  ;;  %7429 = vmatprep.subr.bf16.mxu1 %v10829_v0  ;;  %v10883_v17 = vld [vmem:[%s16342_s2 + $0x1648] ss:$16 sps:$4 sm:$0xff]   ;;  %v10884_v0 = vld [vmem:[%s16342_s2 + $0x1664] ss:$16 sps:$4 sm:$0xff]  }
 0x693   :  { %6897 = vmatpush1.bf16.msra.mxu0 %v10830_v14  ;;  %7430 = vmatpush1.bf16.msra.mxu1 %v10831_v4  ;;  %v10885_v14 = vld [vmem:[%s16342_s2 + $0x166c] ss:$16 sps:$4 sm:$0xff]   ;;  %v10886_v4 = vld [vmem:[%s16342_s2 + $0x1660] ss:$16 sps:$4 sm:$0xff]  }
 0x694   :  { %6898 = vmatprep.subr.bf16.mxu0 %v10832_v19  ;;  %7431 = vmatprep.subr.bf16.mxu1 %v10833_v20  ;;  %v10887_v19 = vld [vmem:[%s16342_s2 + $0x1668] ss:$16 sps:$4 sm:$0xff]   ;;  %v10888_v20 = vld [vmem:[%s16342_s2 + $0x1684] ss:$16 sps:$4 sm:$0xff]  }
 0x697   :  { %6899 = vmatpush1.bf16.msra.mxu0 %v10834_v16  ;;  %7432 = vmatpush1.bf16.msra.mxu1 %v10835_v18  ;;  %v10889_v16 = vld [vmem:[%s16342_s2 + $0x168c] ss:$16 sps:$4 sm:$0xff]   ;;  %v10890_v18 = vld [vmem:[%s16342_s2 + $0x1680] ss:$16 sps:$4 sm:$0xff]  }
 0x698   :  { %6900 = vmatprep.subr.bf16.mxu0 %v10836_v25  ;;  %7433 = vmatprep.subr.bf16.mxu1 %v10837_v26  ;;  %v10891_v25 = vld [vmem:[%s16342_s2 + $0x1688] ss:$16 sps:$4 sm:$0xff]   ;;  %v10892_v26 = vld [vmem:[%s16342_s2 + $0x16a4] ss:$16 sps:$4 sm:$0xff]  }
 0x69b   :  { %6901 = vmatpush1.bf16.msra.mxu0 %v10838_v10  ;;  %7434 = vmatpush1.bf16.msra.mxu1 %v10839_v15  ;;  %v10893_v10 = vld [vmem:[%s16342_s2 + $0x16ac] ss:$16 sps:$4 sm:$0xff]   ;;  %v10894_v15 = vld [vmem:[%s16342_s2 + $0x16a0] ss:$16 sps:$4 sm:$0xff]  }
 0x69c   :  { %6902 = vmatprep.subr.bf16.mxu0 %v10840_v27  ;;  %7435 = vmatprep.subr.bf16.mxu1 %v10841_v28  ;;  %v10895_v27 = vld [vmem:[%s16342_s2 + $0x16a8] ss:$16 sps:$4 sm:$0xff]   ;;  %v10896_v28 = vld [vmem:[%s16342_s2 + $0x16c4] ss:$16 sps:$4 sm:$0xff]  }
 0x69f   :  { %6903 = vmatpush1.bf16.msra.mxu0 %v10842_v29  ;;  %7436 = vmatpush1.bf16.msra.mxu1 %v10843_v24  ;;  %v10897_v29 = vld [vmem:[%s16342_s2 + $0x16cc] ss:$16 sps:$4 sm:$0xff]   ;;  %v10898_v24 = vld [vmem:[%s16342_s2 + $0x16c0] ss:$16 sps:$4 sm:$0xff]  }
 0x6a0   :  { %6904 = vmatprep.subr.bf16.mxu0 %v10844_v21  ;;  %7437 = vmatprep.subr.bf16.mxu1 %v10845_v34  ;;  %v10899_v21 = vld [vmem:[%s16342_s2 + $0x16c8] ss:$16 sps:$4 sm:$0xff]   ;;  %v10900_v34 = vld [vmem:[%s16342_s2 + $0x16e4] ss:$16 sps:$4 sm:$0xff]  }
 0x6a3   :  { %6905 = vmatpush1.bf16.msra.mxu0 %v10846_v23  ;;  %7438 = vmatpush1.bf16.msra.mxu1 %v10847_v22  ;;  %v10901_v23 = vld [vmem:[%s16342_s2 + $0x16ec] ss:$16 sps:$4 sm:$0xff]   ;;  %v10902_v22 = vld [vmem:[%s16342_s2 + $0x16e0] ss:$16 sps:$4 sm:$0xff]  }
 0x6a4   :  { %6906 = vmatprep.subr.bf16.mxu0 %v10848_v35  ;;  %7439 = vmatprep.subr.bf16.mxu1 %v10849_v30  ;;  %v10903_v35 = vld [vmem:[%s16342_s2 + $0x16e8] ss:$16 sps:$4 sm:$0xff]   ;;  %v10904_v30 = vld [vmem:[%s16342_s2 + $0x1704] ss:$16 sps:$4 sm:$0xff]  }
 0x6a7   :  { %6907 = vmatpush1.bf16.msra.mxu0 %v10850_v37  ;;  %7440 = vmatpush1.bf16.msra.mxu1 %v10851_v38  ;;  %v10905_v37 = vld [vmem:[%s16342_s2 + $0x170c] ss:$16 sps:$4 sm:$0xff]   ;;  %v10906_v38 = vld [vmem:[%s16342_s2 + $0x1700] ss:$16 sps:$4 sm:$0xff]  }
 0x6a8   :  { %6908 = vmatprep.subr.bf16.mxu0 %v10852_v33  ;;  %7441 = vmatprep.subr.bf16.mxu1 %v10853_v40  ;;  %v10907_v33 = vld [vmem:[%s16342_s2 + $0x1708] ss:$16 sps:$4 sm:$0xff]   ;;  %v10908_v40 = vld [vmem:[%s16342_s2 + $0x1724] ss:$16 sps:$4 sm:$0xff]  }
 0x6ab   :  { %6909 = vmatpush1.bf16.msra.mxu0 %v10854_v41  ;;  %7442 = vmatpush1.bf16.msra.mxu1 %v10855_v36  ;;  %v10909_v41 = vld [vmem:[%s16342_s2 + $0x172c] ss:$16 sps:$4 sm:$0xff]   ;;  %v10910_v36 = vld [vmem:[%s16342_s2 + $0x1720] ss:$16 sps:$4 sm:$0xff]  }
 0x6ac   :  { %6910 = vmatprep.subr.bf16.mxu0 %v10856_v32  ;;  %7443 = vmatprep.subr.bf16.mxu1 %v10857_v42  ;;  %v10911_v32 = vld [vmem:[%s16342_s2 + $0x1728] ss:$16 sps:$4 sm:$0xff]   ;;  %v10912_v42 = vld [vmem:[%s16342_s2 + $0x1744] ss:$16 sps:$4 sm:$0xff]  }
 0x6af   :  { %6911 = vmatpush1.bf16.msra.mxu0 %v10858_v43  ;;  %7444 = vmatpush1.bf16.msra.mxu1 %v10859_v44  ;;  %v10913_v43 = vld [vmem:[%s16342_s2 + $0x174c] ss:$16 sps:$4 sm:$0xff]   ;;  %v10914_v44 = vld [vmem:[%s16342_s2 + $0x1740] ss:$16 sps:$4 sm:$0xff]  }
 0x6b0   :  { %6912 = vmatprep.subr.bf16.mxu0 %v10860_v45  ;;  %7445 = vmatprep.subr.bf16.mxu1 %v10861_v47  ;;  %v10915_v45 = vld [vmem:[%s16342_s2 + $0x1748] ss:$16 sps:$4 sm:$0xff]   ;;  %v10916_v47 = vld [vmem:[%s16342_s2 + $0x1764] ss:$16 sps:$4 sm:$0xff]  }
 0x6b3   :  { %6913 = vmatpush1.bf16.msra.mxu0 %v10862_v53  ;;  %7446 = vmatpush1.bf16.msra.mxu1 %v10863_v54  ;;  %v10917_v53 = vld [vmem:[%s16342_s2 + $0x176c] ss:$16 sps:$4 sm:$0xff]   ;;  %v10918_v54 = vld [vmem:[%s16342_s2 + $0x1760] ss:$16 sps:$4 sm:$0xff]  }
 0x6b4   :  { %6914 = vmatprep.subr.bf16.mxu0 %v10864_v56  ;;  %7447 = vmatprep.subr.bf16.mxu1 %v10865_v39  ;;  %v10919_v56 = vld [vmem:[%s16342_s2 + $0x1768] ss:$16 sps:$4 sm:$0xff]   ;;  %v10920_v39 = vld [vmem:[%s16342_s2 + $0x1784] ss:$16 sps:$4 sm:$0xff]  }
 0x6b7   :  { %6915 = vmatpush1.bf16.msra.mxu0 %v10866_v57  ;;  %7448 = vmatpush1.bf16.msra.mxu1 %v10867_v58  ;;  %v10921_v57 = vld [vmem:[%s16342_s2 + $0x178c] ss:$16 sps:$4 sm:$0xff]   ;;  %v10922_v58 = vld [vmem:[%s16342_s2 + $0x1780] ss:$16 sps:$4 sm:$0xff]  }
 0x6b8   :  { %6916 = vmatprep.subr.bf16.mxu0 %v10868_v31  ;;  %7449 = vmatprep.subr.bf16.mxu1 %v10869_v59  ;;  %v10923_v31 = vld [vmem:[%s16342_s2 + $0x1788] ss:$16 sps:$4 sm:$0xff]   ;;  %v10924_v59 = vld [vmem:[%s16342_s2 + $0x17a4] ss:$16 sps:$4 sm:$0xff]  }
 0x6bb   :  { %6917 = vmatpush1.bf16.msra.mxu0 %v10870_v62  ;;  %7450 = vmatpush1.bf16.msra.mxu1 %v10871_v63  ;;  %v10926_v62 = vld [vmem:[%s16342_s2 + $0x17a0] ss:$16 sps:$4 sm:$0xff]   ;;  %v10927_v63 = vld [vmem:[%s16342_s2 + $0x17a8] ss:$16 sps:$4 sm:$0xff]  }
 0x6bc   :  { %6927 = vmatprep.subr.bf16.mxu0 %v10872_v1  ;;  %7460 = vmatprep.subr.bf16.mxu1 %v10873_v52  ;;  %v10928_v1 = vld [vmem:[%s16342_s2 + $0x17c4] ss:$16 sps:$4 sm:$0xff]   ;;  %v10929_v52 = vld [vmem:[%s16342_s2 + $0x17cc] ss:$16 sps:$4 sm:$0xff]  }
 0x6be   :  { %6919 = vmatmul.mubr.bf16.vlgmr.msra.gmra.mrb[8].mxu0 %v8576_v60  ;;  %7452 = vmatmul.mubr.bf16.vlgmr.msra.gmra.mrb[8].mxu1 %v8576_v60  ;;  %v10925_v60 = vld [vmem:[%s16342_s2 + $0x17ac] ss:$16 sps:$4 sm:$0xff]  }
 0x6bf   :  { %6928 = vmatpush1.bf16.msra.mxu0 %v10874_v3  ;;  %7461 = vmatpush1.bf16.msra.mxu1 %v10875_v55  ;;  %v10931_v3 = vld [vmem:[%s16342_s2 + $0x17c8] ss:$16 sps:$4 sm:$0xff]   ;;  %v10932_v55 = vld [vmem:[%s16342_s2 + $0x17e4] ss:$16 sps:$4 sm:$0xff]  }
 0x6c0   :  { %6929 = vmatprep.subr.bf16.mxu0 %v10876_v5  ;;  %7462 = vmatprep.subr.bf16.mxu1 %v10877_v6  ;;  %v10933_v5 = vld [vmem:[%s16342_s2 + $0x17ec] ss:$16 sps:$4 sm:$0xff]   ;;  %v8578_v6 = vcombine.low %v15908_v61, %v15908_v61  ;;  %v10938_v61 = vld [vmem:[%s16342_s2 + $0x1800] ss:$16 sps:$4 sm:$0xff]  }
 0x6c1   :  { %6959 = vmatprep.mubr.bf16.mxu0 %v8579_v2  ;;  %7492 = vmatprep.mubr.bf16.mxu1 %v8579_v2  ;;  %v10930_v2 = vld [vmem:[%s16342_s2 + $0x17c0] ss:$16 sps:$4 sm:$0xff]  }
 0x6c3   :  { %6930 = vmatpush1.bf16.msra.mxu0 %v10878_v7  ;;  %7463 = vmatpush1.bf16.msra.mxu1 %v10879_v8  ;;  %v10934_v7 = vld [vmem:[%s16342_s2 + $0x17e0] ss:$16 sps:$4 sm:$0xff]   ;;  %v10935_v8 = vld [vmem:[%s16342_s2 + $0x17e8] ss:$16 sps:$4 sm:$0xff]  }
 0x6c4   :  { %6931 = vmatprep.subr.bf16.mxu0 %v10880_v9  ;;  %7464 = vmatprep.subr.bf16.mxu1 %v10881_v12  ;;  %v10936_v9 = vld [vmem:[%s16342_s2 + $0x1804] ss:$16 sps:$4 sm:$0xff]   ;;  %v10937_v12 = vld [vmem:[%s16342_s2 + $0x180c] ss:$16 sps:$4 sm:$0xff]  }
 0x6c7   :  { %6932 = vmatpush1.bf16.msra.mxu0 %v10882_v11  ;;  %7465 = vmatpush1.bf16.msra.mxu1 %v10883_v17  ;;  %v10939_v11 = vld [vmem:[%s16342_s2 + $0x1808] ss:$16 sps:$4 sm:$0xff]   ;;  %v10940_v17 = vld [vmem:[%s16342_s2 + $0x1824] ss:$16 sps:$4 sm:$0xff]  }
 0x6c8   :  { %6933 = vmatprep.subr.bf16.mxu0 %v10884_v0  ;;  %7466 = vmatprep.subr.bf16.mxu1 %v10885_v14  ;;  %v10941_v0 = vld [vmem:[%s16342_s2 + $0x182c] ss:$16 sps:$4 sm:$0xff]   ;;  %v10942_v14 = vld [vmem:[%s16342_s2 + $0x1820] ss:$16 sps:$4 sm:$0xff]  }
 0x6cb   :  { %6934 = vmatpush1.bf16.msra.mxu0 %v10886_v4  ;;  %7467 = vmatpush1.bf16.msra.mxu1 %v10887_v19  ;;  %v10943_v4 = vld [vmem:[%s16342_s2 + $0x1828] ss:$16 sps:$4 sm:$0xff]   ;;  %v10944_v19 = vld [vmem:[%s16342_s2 + $0x1844] ss:$16 sps:$4 sm:$0xff]  }
 0x6cc   :  { %6935 = vmatprep.subr.bf16.mxu0 %v10888_v20  ;;  %7468 = vmatprep.subr.bf16.mxu1 %v10889_v16  ;;  %v10945_v20 = vld [vmem:[%s16342_s2 + $0x184c] ss:$16 sps:$4 sm:$0xff]   ;;  %v10947_v16 = vld [vmem:[%s16342_s2 + $0x1848] ss:$16 sps:$4 sm:$0xff]  }
 0x6cf   :  { %6936 = vmatpush1.bf16.msra.mxu0 %v10890_v18  ;;  %7469 = vmatpush1.bf16.msra.mxu1 %v10891_v25  ;;  %v10948_v18 = vld [vmem:[%s16342_s2 + $0x1864] ss:$16 sps:$4 sm:$0xff]   ;;  %v10949_v25 = vld [vmem:[%s16342_s2 + $0x186c] ss:$16 sps:$4 sm:$0xff]  }
 0x6d0   :  { %6937 = vmatprep.subr.bf16.mxu0 %v10892_v26  ;;  %7470 = vmatprep.subr.bf16.mxu1 %v10893_v10  ;;  %v10950_v26 = vld [vmem:[%s16342_s2 + $0x1860] ss:$16 sps:$4 sm:$0xff]   ;;  %v10951_v10 = vld [vmem:[%s16342_s2 + $0x1868] ss:$16 sps:$4 sm:$0xff]  }
 0x6d3   :  { %6938 = vmatpush1.bf16.msra.mxu0 %v10894_v15  ;;  %7471 = vmatpush1.bf16.msra.mxu1 %v10895_v27  ;;  %v10952_v15 = vld [vmem:[%s16342_s2 + $0x1884] ss:$16 sps:$4 sm:$0xff]   ;;  %v10953_v27 = vld [vmem:[%s16342_s2 + $0x188c] ss:$16 sps:$4 sm:$0xff]  }
 0x6d4   :  { %6939 = vmatprep.subr.bf16.mxu0 %v10896_v28  ;;  %7472 = vmatprep.subr.bf16.mxu1 %v10897_v29  ;;  %v10954_v28 = vld [vmem:[%s16342_s2 + $0x1880] ss:$16 sps:$4 sm:$0xff]   ;;  %v10955_v29 = vld [vmem:[%s16342_s2 + $0x1888] ss:$16 sps:$4 sm:$0xff]  }
 0x6d7   :  { %6940 = vmatpush1.bf16.msra.mxu0 %v10898_v24  ;;  %7473 = vmatpush1.bf16.msra.mxu1 %v10899_v21  ;;  %v10956_v24 = vld [vmem:[%s16342_s2 + $0x18a4] ss:$16 sps:$4 sm:$0xff]   ;;  %v10957_v21 = vld [vmem:[%s16342_s2 + $0x18ac] ss:$16 sps:$4 sm:$0xff]  }
 0x6d8   :  { %6941 = vmatprep.subr.bf16.mxu0 %v10900_v34  ;;  %7474 = vmatprep.subr.bf16.mxu1 %v10901_v23  ;;  %v10958_v34 = vld [vmem:[%s16342_s2 + $0x18a0] ss:$16 sps:$4 sm:$0xff]   ;;  %v10959_v23 = vld [vmem:[%s16342_s2 + $0x18a8] ss:$16 sps:$4 sm:$0xff]  }
 0x6db   :  { %6942 = vmatpush1.bf16.msra.mxu0 %v10902_v22  ;;  %7475 = vmatpush1.bf16.msra.mxu1 %v10903_v35  ;;  %v10960_v22 = vld [vmem:[%s16342_s2 + $0x18c4] ss:$16 sps:$4 sm:$0xff]   ;;  %v10961_v35 = vld [vmem:[%s16342_s2 + $0x18cc] ss:$16 sps:$4 sm:$0xff]  }
 0x6dc   :  { %6943 = vmatprep.subr.bf16.mxu0 %v10904_v30  ;;  %7476 = vmatprep.subr.bf16.mxu1 %v10905_v37  ;;  %v10962_v30 = vld [vmem:[%s16342_s2 + $0x18c0] ss:$16 sps:$4 sm:$0xff]   ;;  %v10963_v37 = vld [vmem:[%s16342_s2 + $0x18c8] ss:$16 sps:$4 sm:$0xff]  }
 0x6df   :  { %6944 = vmatpush1.bf16.msra.mxu0 %v10906_v38  ;;  %7477 = vmatpush1.bf16.msra.mxu1 %v10907_v33  ;;  %v10964_v38 = vld [vmem:[%s16342_s2 + $0x18e4] ss:$16 sps:$4 sm:$0xff]   ;;  %v10965_v33 = vld [vmem:[%s16342_s2 + $0x18ec] ss:$16 sps:$4 sm:$0xff]  }
 0x6e0   :  { %6945 = vmatprep.subr.bf16.mxu0 %v10908_v40  ;;  %7478 = vmatprep.subr.bf16.mxu1 %v10909_v41  ;;  %v10157_v40 = vld [vmem:[%s16341_s1 + $0x60] ss:$0 sps:$4 sm:$0xff]  }
 0x6e1   :  { %v10966_v41 = vld [vmem:[%s16342_s2 + $0x18e0] ss:$16 sps:$4 sm:$0xff]  }
 0x6e3   :  { %6946 = vmatpush1.bf16.msra.mxu0 %v10910_v36  ;;  %7479 = vmatpush1.bf16.msra.mxu1 %v10911_v32  ;;  %v10967_v36 = vld [vmem:[%s16342_s2 + $0x18e8] ss:$16 sps:$4 sm:$0xff]   ;;  %v10968_v32 = vld [vmem:[%s16344_s4 + $0x40] sm:$0xff]  }
 0x6e4   :  { %6947 = vmatprep.subr.bf16.mxu0 %v10912_v42  ;;  %7480 = vmatprep.subr.bf16.mxu1 %v10913_v43  ;;  %v10969_v42 = vld [vmem:[%s16344_s4 + $0xc0] sm:$0xff]  }
 0x6e5   :  { %v10970_v43 = vld [vmem:[%s16344_s4] sm:$0xff]  }
 0x6e7   :  { %6948 = vmatpush1.bf16.msra.mxu0 %v10914_v44  ;;  %7481 = vmatpush1.bf16.msra.mxu1 %v10915_v45  ;;  %v10971_v44 = vld [vmem:[%s16344_s4 + $0x80] sm:$0xff]   ;;  %v10972_v45 = vld [vmem:[%s16344_s4 + $0x48] sm:$0xff]  }
 0x6e8   :  { %6949 = vmatprep.subr.bf16.mxu0 %v10916_v47  ;;  %7482 = vmatprep.subr.bf16.mxu1 %v10917_v53  ;;  %v10973_v47 = vld [vmem:[%s16344_s4 + $0xc8] sm:$0xff]  }
 0x6e9   :  { %v10974_v53 = vld [vmem:[%s16344_s4 + $0x8] sm:$0xff]  }
 0x6eb   :  { %6950 = vmatpush1.bf16.msra.mxu0 %v10918_v54  ;;  %7483 = vmatpush1.bf16.msra.mxu1 %v10919_v56  ;;  %v10975_v54 = vld [vmem:[%s16344_s4 + $0x88] sm:$0xff]   ;;  %v10976_v56 = vld [vmem:[%s16344_s4 + $0x50] sm:$0xff]  }
 0x6ec   :  { %6951 = vmatprep.subr.bf16.mxu0 %v10920_v39  ;;  %7484 = vmatprep.subr.bf16.mxu1 %v10921_v57  ;;  %v10977_v39 = vld [vmem:[%s16344_s4 + $0xd0] sm:$0xff]  }
 0x6ed   :  { %v10978_v57 = vld [vmem:[%s16344_s4 + $0x10] sm:$0xff]  }
 0x6ef   :  { %6952 = vmatpush1.bf16.msra.mxu0 %v10922_v58  ;;  %7485 = vmatpush1.bf16.msra.mxu1 %v10923_v31  ;;  %v10979_v58 = vld [vmem:[%s16344_s4 + $0x90] sm:$0xff]   ;;  %v10980_v31 = vld [vmem:[%s16344_s4 + $0x58] sm:$0xff]  }
 0x6f0   :  { %6953 = vmatprep.subr.bf16.mxu0 %v10924_v59  ;;  %7486 = vmatprep.subr.bf16.mxu1 %v10925_v60  ;;  %v10981_v59 = vld [vmem:[%s16344_s4 + $0xd8] sm:$0xff]  }
 0x6f1   :  { %v10982_v60 = vld [vmem:[%s16344_s4 + $0x18] sm:$0xff]  }
 0x6f3   :  { %6954 = vmatpush1.bf16.msra.mxu0 %v10926_v62  ;;  %7487 = vmatpush1.bf16.msra.mxu1 %v10927_v63  ;;  %v10983_v62 = vld [vmem:[%s16344_s4 + $0x98] sm:$0xff]   ;;  %v10984_v63 = vld [vmem:[%s16344_s4 + $0x60] sm:$0xff]  }
 0x6f4   :  { %6955 = vmatprep.subr.bf16.mxu0 %v10928_v1  ;;  %7488 = vmatprep.subr.bf16.mxu1 %v10929_v52  ;;  %v10985_v1 = vld [vmem:[%s16344_s4 + $0xe0] sm:$0xff]  }
 0x6f5   :  { %v10986_v52 = vld [vmem:[%s16344_s4 + $0x20] sm:$0xff]  }
 0x6f7   :  { %6956 = vmatpush1.bf16.msra.mxu0 %v10930_v2  ;;  %7489 = vmatpush1.bf16.msra.mxu1 %v10931_v3  ;;  %v10987_v2 = vld [vmem:[%s16344_s4 + $0xa0] sm:$0xff]   ;;  %v10988_v3 = vld [vmem:[%s16344_s4 + $0x68] sm:$0xff]  }
 0x6f8   :  { %6957 = vmatprep.subr.bf16.mxu0 %v10932_v55  ;;  %7490 = vmatprep.subr.bf16.mxu1 %v10933_v5  ;;  %v10989_v55 = vld [vmem:[%s16344_s4 + $0xe8] sm:$0xff]  }
 0x6f9   :  { %v10990_v5 = vld [vmem:[%s16344_s4 + $0x28] sm:$0xff]  }
 0x6fb   :  { %6958 = vmatpush1.bf16.msra.mxu0 %v10934_v7  ;;  %7491 = vmatpush1.bf16.msra.mxu1 %v10935_v8  ;;  %v10992_v7 = vld [vmem:[%s16344_s4 + $0x70] sm:$0xff]  }
 0x6fc   :  { %6968 = vmatprep.subr.bf16.mxu0 %v10936_v9  ;;  %7501 = vmatprep.subr.bf16.mxu1 %v10937_v12  ;;  %v10993_v8 = vld [vmem:[%s16344_s4 + $0xf0] sm:$0xff]  }
 0x6fd   :  { %v10994_v9 = vld [vmem:[%s16344_s4 + $0x30] sm:$0xff]  }
 0x6fe   :  { %6960 = vmatmul.mubr.bf16.vlgmr.msra.gmra.mrb[8].mxu0 %v8578_v6  ;;  %7493 = vmatmul.mubr.bf16.vlgmr.msra.gmra.mrb[8].mxu1 %v8578_v6  ;;  %v10991_v6 = vld [vmem:[%s16344_s4 + $0xa8] sm:$0xff]   ;;  %v10995_v12 = vld [vmem:[%s16344_s4 + $0xb0] sm:$0xff]  }
 0x6ff   :  { %6969 = vmatpush1.bf16.msra.mxu0 %v10938_v61  ;;  %7502 = vmatpush1.bf16.msra.mxu1 %v10939_v11  ;;  %v10996_v61 = vld [vmem:[%s16344_s4 + $0x78] sm:$0xff]  }
 0x700   :  { %6970 = vmatprep.subr.bf16.mxu0 %v10940_v17  ;;  %7503 = vmatprep.subr.bf16.mxu1 %v10941_v0  ;;  %v10997_v11 = vld [vmem:[%s16344_s4 + $0xf8] sm:$0xff]  }
 0x701   :  { %7000 = vmatprep.mubr.bf16.mxu0 %v11025_v46  ;;  %7533 = vmatprep.mubr.bf16.mxu1 %v11025_v46  ;;  %v10946_v46 = vld [vmem:[%s16342_s2 + $0x1840] ss:$16 sps:$4 sm:$0xff]   ;;  %v10998_v17 = vld [vmem:[%s16344_s4 + $0x38] sm:$0xff]  }
 0x702   :  { %v10999_v0 = vld [vmem:[%s16344_s4 + $0xb8] sm:$0xff]  }
 0x703   :  { %6971 = vmatpush1.bf16.msra.mxu0 %v10942_v14  ;;  %7504 = vmatpush1.bf16.msra.mxu1 %v10943_v4 }
 0x704   :  { %6972 = vmatprep.subr.bf16.mxu0 %v10944_v19  ;;  %7505 = vmatprep.subr.bf16.mxu1 %v10945_v20 }
 0x707   :  { %6973 = vmatpush1.bf16.msra.mxu0 %v10946_v46  ;;  %7506 = vmatpush1.bf16.msra.mxu1 %v10947_v16 }
 0x708   :  { %6974 = vmatprep.subr.bf16.mxu0 %v10948_v18  ;;  %7507 = vmatprep.subr.bf16.mxu1 %v10949_v25 }
 0x70b   :  { %6975 = vmatpush1.bf16.msra.mxu0 %v10950_v26  ;;  %7508 = vmatpush1.bf16.msra.mxu1 %v10951_v10 }
 0x70c   :  { %6976 = vmatprep.subr.bf16.mxu0 %v10952_v15  ;;  %7509 = vmatprep.subr.bf16.mxu1 %v10953_v27 }
 0x70f   :  { %6977 = vmatpush1.bf16.msra.mxu0 %v10954_v28  ;;  %7510 = vmatpush1.bf16.msra.mxu1 %v10955_v29 }
 0x710   :  { %6978 = vmatprep.subr.bf16.mxu0 %v10956_v24  ;;  %7511 = vmatprep.subr.bf16.mxu1 %v10957_v21 }
 0x713   :  { %6979 = vmatpush1.bf16.msra.mxu0 %v10958_v34  ;;  %7512 = vmatpush1.bf16.msra.mxu1 %v10959_v23 }
 0x714   :  { %6980 = vmatprep.subr.bf16.mxu0 %v10960_v22  ;;  %7513 = vmatprep.subr.bf16.mxu1 %v10961_v35 }
 0x717   :  { %6981 = vmatpush1.bf16.msra.mxu0 %v10962_v30  ;;  %7514 = vmatpush1.bf16.msra.mxu1 %v10963_v37 }
 0x718   :  { %6982 = vmatprep.subr.bf16.mxu0 %v10964_v38  ;;  %7515 = vmatprep.subr.bf16.mxu1 %v10965_v33 }
 0x71b   :  { %6983 = vmatpush1.bf16.msra.mxu0 %v10966_v41  ;;  %7516 = vmatpush1.bf16.msra.mxu1 %v10967_v36  ;;  %v11000_v36 = vld [vmem:[%s16345_s5] ss:$0 sm:$0xff] }
 0x71c   :  { %8626 = vmatprep.subr.bf16.mxu0 %v10968_v32  ;;  %8648 = vmatprep.subr.bf16.mxu1 %v10969_v42 }
 0x71e   :  { %7001 = vmatmul.mubr.bf16.vlgmr.msra.gmra.mrb[8].mxu0 %v10157_v40  ;;  %7534 = vmatmul.mubr.bf16.vlgmr.msra.gmra.mrb[8].mxu1 %v10157_v40 }
 0x71f   :  { %8627 = vmatpush3.bf16.msra.mxu0 %v10970_v43  ;;  %8649 = vmatpush3.bf16.msra.mxu1 %v10971_v44  ;;  %v10159_v43 = vpop.eup %10158 }
 0x720   :  { %8628 = vmatprep.subr.bf16.mxu0 %v10972_v45  ;;  %8650 = vmatprep.subr.bf16.mxu1 %v10973_v47  ;;  %v8581_v47 = vld [vmem:[%s16346_s6] ss:$0 sm:$0xff] }
 0x723   :  { %8629 = vmatpush3.bf16.msra.mxu0 %v10974_v53  ;;  %8651 = vmatpush3.bf16.msra.mxu1 %v10975_v54 }
 0x724   :  { %8630 = vmatprep.subr.bf16.mxu0 %v10976_v56  ;;  %8652 = vmatprep.subr.bf16.mxu1 %v10977_v39  ;;  %v7644_v56 = vld [vmem:[%s16348_s8] sm:$0xff] }
 0x725   :  { %v7669_v39 = vsel %vm7657_vm0, %v7644_v56, 0.0 }
 0x726   :  { %7670 = vadd.xlane.f32.xlu1 %v7669_v39 }
 0x727   :  { %8631 = vmatpush3.bf16.msra.mxu0 %v10978_v57  ;;  %8653 = vmatpush3.bf16.msra.mxu1 %v10979_v58 }
 0x728   :  { %8632 = vmatprep.subr.bf16.mxu0 %v10980_v31  ;;  %8654 = vmatprep.subr.bf16.mxu1 %v10981_v59 }
 0x72b   :  { %8633 = vmatpush3.bf16.msra.mxu0 %v10982_v60  ;;  %8655 = vmatpush3.bf16.msra.mxu1 %v10983_v62  ;;  %v7643_v62 = vld [vmem:[%s16347_s7] sm:$0xff] }
 0x72c   :  { %8634 = vmatprep.subr.bf16.mxu0 %v10984_v63  ;;  %8656 = vmatprep.subr.bf16.mxu1 %v10985_v1 }
 0x72f   :  { %8635 = vmatpush3.bf16.msra.mxu0 %v10986_v52  ;;  %8657 = vmatpush3.bf16.msra.mxu1 %v10987_v2 }
 0x730   :  { %8636 = vmatprep.subr.bf16.mxu0 %v10988_v3  ;;  %8658 = vmatprep.subr.bf16.mxu1 %v10989_v55 }
 0x733   :  { %8637 = vmatpush3.bf16.msra.mxu0 %v10990_v5  ;;  %8659 = vmatpush3.bf16.msra.mxu1 %v10991_v6 }
 0x734   :  { %8638 = vmatprep.subr.bf16.mxu0 %v10992_v7  ;;  %8660 = vmatprep.subr.bf16.mxu1 %v10993_v8 }
 0x737   :  { %8639 = vmatpush3.bf16.msra.mxu0 %v10994_v9  ;;  %8661 = vmatpush3.bf16.msra.mxu1 %v10995_v12 }
 0x738   :  { %8640 = vmatprep.subr.bf16.mxu0 %v10996_v61  ;;  %8662 = vmatprep.subr.bf16.mxu1 %v10997_v11 }
 0x73b   :  { %8641 = vmatpush3.bf16.msra.mxu0 %v10998_v17  ;;  %8663 = vmatpush3.bf16.msra.mxu1 %v10999_v0 }
 0x7b3   :  { %v7671_v7 = vpop.xlane.xlu1 %7670 }
 0x7b4   :  { %v7672_v8 = vrot.slane %v7671_v7, 4 }
 0x7b6   :  { %v7673_v9 = vadd.f32 %v7672_v8, %v7671_v7 }
 0x7b8   :  { %v7674_v12 = vrot.slane %v7673_v9, 2 }
 0x7ba   :  { %v7675_v0 = vadd.f32 %v7674_v12, %v7673_v9 }
 0x7f1   :  { %v7002_v14 = vpop.f32.mrb[8].mxu0  ;;  %v7535_v4 = vpop.f32.mrb[8].mxu1 }
 0x7f2   :  { %v8674_v19 = vadd.f32 %v7002_v14, %v13689_v48  ;;  %v8676_v20 = vadd.f32 %v7535_v4, %v13691_v49  ;;  %v7004_v46 = vpop.f32.mrb[9].mxu0  ;;  %v7537_v16 = vpop.f32.mrb[9].mxu1 }
 0x7f3   :  { %v8675_v18 = vadd.f32 %v7004_v46, %v13693_v50  ;;  %v8677_v25 = vadd.f32 %v7537_v16, %v13695_v51  ;;  %v7006_v26 = vpop.f32.mrb[10].mxu0  ;;  %v7539_v10 = vpop.f32.mrb[10].mxu1 }
 0x7f4   :  { %v7542_v15 = vmax.f32 %v8674_v19, 0.0  ;;  %v7544_v27 = vmax.f32 %v8676_v20, 0.0  ;;  %v7007_v28 = vpop.f32.mrb[11].mxu0  ;;  %v7540_v29 = vpop.f32.mrb[11].mxu1  ;;  %v7676_v19 = vrot.slane %v7675_v0, 1 }
 0x7f5   :  { %v7543_v24 = vmax.f32 %v8675_v18, 0.0  ;;  %v7545_v21 = vmax.f32 %v8677_v25, 0.0 }
 0x7f6   :  { %v7546_v22 = vpack.c.bf16 %v7542_v15, %v7542_v15  ;;  %v7548_v48 = vpack.c.bf16 %v7544_v27, %v7544_v27  ;;  %v7677_v16 = vadd.f32 %v7676_v19, %v7675_v0 }
 0x7f7   :  { %v7547_v34 = vpack.c.bf16 %v7543_v24, %v7543_v24  ;;  %v7549_v23 = vpack.c.bf16 %v7545_v21, %v7545_v21 }
 0x7f9   :  { %7582 = vmatprep.mubr.bf16.mxu0 %v7547_v34  ;;  %7622 = vmatprep.mubr.bf16.mxu1 %v7549_v23 }
 0x7fa   :  { %7583 = vmatmul.mubr.bf16.vlgmr.msra.gmra.mrb[12].mxu0 %v7546_v22  ;;  %7623 = vmatmul.mubr.bf16.vlgmr.msra.gmra.mrb[12].mxu1 %v7548_v48 }
 0x8cd   :  { %v8642_v49 = vpop.f32.mrb[12].mxu0  ;;  %v8664_v50 = vpop.f32.mrb[12].mxu1 }
 0x8ce   :  { %v8643_v35 = vpop.f32.mrb[13].mxu0  ;;  %v8665_v51 = vpop.f32.mrb[13].mxu1 }
 0x8cf   :  { %v8644_v30 = vadd.f32 %v8643_v35, %v8642_v49  ;;  %v8666_v37 = vadd.f32 %v8665_v51, %v8664_v50  ;;  %v8645_v38 = vpop.f32.mrb[14].mxu0  ;;  %v8667_v33 = vpop.f32.mrb[14].mxu1 }
 0x8d0   :  { %v8646_v40 = vpop.f32.mrb[15].mxu0  ;;  %v8668_v41 = vpop.f32.mrb[15].mxu1 }
 0x8d1   :  { %v7585_v32 = vadd.f32 %v11000_v36, %v8644_v30 }
 0x8d3   :  { %v7625_v42 = vadd.f32 %v8666_v37, %v7585_v32 }
 0x8d5   :  { %10160 = vtanh.f32 %v7625_v42 }
 0x8df   :  { %v10161_v44 = vpop.eup %10160 }
 0x8e0   :  { %v7631_v45 = vsub.f32 %v10159_v43, %v10161_v44 }
 0x8e2   :  { %v7632_v53 = vand.u32 2147483647, %v7631_v45 }
 0x8e4   :  { %v7640_v54 = vmul.f32 %v8581_v47, %v7632_v53 }
 0x8e6   :  { %7641 = vadd.xlane.f32.xlu0 %v7640_v54 }
 0x973   :  { %v7642_v13 = vpop.xlane.xlu0 %7641 }
 0x974   :  { %v7648_v57 = vand.u32 2147483647, %v7642_v13  ;;  %v7645_v63 = vmax.f32 %v7642_v13, 0.0  ;;  %v7646_v1 = vmul.f32 %v7643_v62, %v7642_v13 }
 0x976   :  { %v7649_v58 = vsub.f32 0.0, %v7648_v57  ;;  %v7647_v2 = vsub.f32 %v7645_v63, %v7646_v1 }
 0x978   :  { %v7650_v31 = vmul.f32 1.442695, %v7649_v58 }
 0x97a   :  { %10162 = vpow2.f32 %v7650_v31 }
 0x984   :  { %v10163_v59 = vpop.eup %10162 }
 0x985   :  { %v7652_v60 = vadd.f32 1.0, %v10163_v59 }
 0x987   :  { %10164 = vlog2.f32 %v7652_v60 }
 0x991   :  { %v10165_v52 = vpop.eup %10164 }
 0x992   :  { %v7654_v3 = vmul.f32 0.6931472, %v10165_v52 }
 0x994   :  { %v7655_v55 = vadd.f32 %v7654_v3, %v7647_v2 }
 0x996   :  { %v7656_v5 = vmul.f32 %v7655_v55, %v7644_v56 }
 0x998   :  { %v7658_v6 = vsel %vm7657_vm0, %v7656_v5, 0.0 }
 0x999   :  { %7659 = vadd.xlane.f32.xlu0 %v7658_v6 }
 0xa26   :  { %v7660_v61 = vpop.xlane.xlu0 %7659 }
 0xa27   :  { %v7661_v11 = vrot.slane %v7660_v61, 4 }
 0xa29   :  { %v7662_v17 = vadd.f32 %v7661_v11, %v7660_v61 }
 0xa2b   :  { %v7663_v14 = vrot.slane %v7662_v17, 2 }
 0xa2d   :  { %v7664_v4 = vadd.f32 %v7663_v14, %v7662_v17 }
 0xa2f   :  { %v7665_v20 = vrot.slane %v7664_v4, 1 }
 0xa31   :  { %v7666_v46 = vadd.f32 %v7665_v20, %v7664_v4 }
 0xa33   :  { %8870 = vpush %v7666_v46 }
 0xa34   :  { %8872 = vpush %v7677_v16 }
 0xa64   :  { %s8871_s7 = spop %8870 }
 0xa65   :  { %s8873_s8 = spop %8872  ;;  %v7668_v26 = vstv %s8871_s7 }
 0xa66   :  { %v7679_v18 = vstv %s8873_s8 }
 0xa67   :  { %10166 = vrcp.f32 %v7679_v18 }
 0xa71   :  { %v10167_v25 = vpop.eup %10166 }
 0xa72   :  { %v7681_v10 = vmul.f32 %v10167_v25, %v7668_v26 }
 0xa74   :  { %7683 = vst.msk [vmem:[#allocation2] sm:$0x1] %vm7682_vm1, %v7681_v10 }
 0xa75   :  { %11012 = shalt.err (!%p11009_p4)
}
 0xa76   :  { %s11013_s13 = scalar_lea.hbm %s16349_s9, 16 }
 0xa77   :  { %p11014_p5 = scmp.ne.s32.totalorder %s16349_s9, %s11013_s13  ;;  %p11017_p6 = scmp.lt.u32.totalorder %s11013_s13, %s16349_s9 }
 0xa79   :  { %p11019_p7 = pnand %p11017_p6, %p11014_p5 }
 0xa7b   :  { %11022 = shalt.err (!%p11019_p7)
}
 0xa7c   :  { %7693 = dma.vmem_to_hbm [thread:$0]  %s7691_s0, 16, %s16349_s9, [#allocation3]  }
 0xa7d   :  { %11023 = dma.done.wait [#allocation3], 16  }
 0xa7e   :  { %11024 = vsyncadd [#allocation3], 4294967280 }
 0xa7f   :  { %7697 = vsyncpa [#allocation3], 1 }

</bundles_post_ra>
